<compile_context>
chip_gen: v7x
topology: tpu7x:2x2x1
jax: 0.10.0
libtpu: 0.0.40
codegen_flags: <defaults>
</compile_context>

<pallas_src>
import jax
import jax.numpy as jnp
from jax import lax
from jax.experimental import pallas as pl
from jax.experimental.pallas import tpu as pltpu


# ----------------------------------------------------------------------------- helpers
def _softmax_last(x):
    m = jnp.max(x, axis=-1, keepdims=True)
    e = jnp.exp(x - m)
    return e / jnp.sum(e, axis=-1, keepdims=True)


def _lstm_cell(x_bf16, h_bf16, wx, wh, b, c, H):
    """LSTM cell, gate order (i, f, g, o).

    gates = x @ Wx + h @ Wh + b : two MXU pushes, no per-step lane concat.
    Single EUP sweep over the (B, 4H) gates via tanh(v) = 2*sigmoid(2v) - 1.
    """
    gates = (jnp.dot(x_bf16, wx, preferred_element_type=jnp.float32)
             + jnp.dot(h_bf16, wh, preferred_element_type=jnp.float32)
             + b)
    lane = lax.broadcasted_iota(jnp.int32, gates.shape, 1)
    is_g = (lane >= 2 * H) & (lane < 3 * H)
    s = jax.nn.sigmoid(jnp.where(is_g, 2.0 * gates, gates))   # one EUP pass
    act = jnp.where(is_g, 2.0 * s - 1.0, s)                   # i,f,o: sigmoid; g: tanh
    i_g = act[:, 0 * H:1 * H]
    f_g = act[:, 1 * H:2 * H]
    g_g = act[:, 2 * H:3 * H]
    o_g = act[:, 3 * H:4 * H]
    c_t = f_g * c + i_g * g_g
    h_t = o_g * jnp.tanh(c_t)
    return h_t, c_t


def _pick_unroll(T):
    # Full unroll only at tiny T; bounded factor otherwise (sweep 2..8).
    return T if T <= 8 else 4


def _vmem_limit_bytes(nbytes_estimate):
    # Explicit scoped-VMEM limit (defaults: 16 MiB on v5e, 32 MiB on v6e/v7x).
    # Clamp at 64 MiB so the same value is valid on v7x's smaller VMEM; for
    # big T/B on v7x also shrink the per-core batch (batch_blocks).
    return int(min(max(3 * nbytes_estimate, 32 * 2**20), 64 * 2**20))


# ----------------------------------------------------------------------------- encoder
def _make_encoder_kernel(num_layers, unroll):
    def kernel(x_ref, *args):
        wx_refs = args[0:num_layers]                     # (In_l, 4H) bf16
        wh_refs = args[num_layers:2 * num_layers]        # (H, 4H)    bf16
        b_refs = args[2 * num_layers:3 * num_layers]     # (1, 4H)    f32
        y_ref, hN_ref, cN_ref = args[3 * num_layers:3 * num_layers + 3]
        buf_ref = args[3 * num_layers + 3] if num_layers > 1 else None

        T, B = x_ref.shape[0], x_ref.shape[1]
        H = hN_ref.shape[-1]

        for l in range(num_layers):                      # fused layers, no HBM roundtrip
            # TODO(synk): inter-layer training dropout not implemented (eval mode).
            src = x_ref if l == 0 else buf_ref           # time-major (T, B, In_l)
            wx = wx_refs[l][...]
            wh = wh_refs[l][...]
            b = b_refs[l][...]
            last = (l == num_layers - 1)

            def step(t, carry):
                h, c = carry
                x_t = src[t].astype(jnp.bfloat16)        # dense (B, In_l) read
                h_t, c_t = _lstm_cell(x_t, h.astype(jnp.bfloat16), wx, wh, b, c, H)
                if last:
                    # Batch-major output: the decoder consumes it as-is, so no
                    # wrapper-side HBM transpose.  The store is one sublane row
                    # per batch tile of the VMEM-resident output block.
                    # TODO(synk): bf16 output would halve HBM traffic but needs
                    # packed-row masked stores here; kept f32 for robustness.
                    y_ref[:, pl.ds(t, 1), :] = h_t[:, None, :]
                else:
                    buf_ref[t] = h_t.astype(buf_ref.dtype)
                return (h_t, c_t)

            h0 = jnp.zeros((B, H), jnp.float32)          # nn.LSTM hidden=None -> zeros
            c0 = jnp.zeros((B, H), jnp.float32)
            hL, cL = lax.fori_loop(0, T, step, (h0, c0), unroll=unroll)
            if last:                                     # final state, written once
                hN_ref[...] = hL
                cN_ref[...] = cL

    return kernel


def lstm_encoder(x_btd, layers, *, batch_blocks=1):
    B, T, Din = x_btd.shape
    L = len(layers)
    H = layers[0]['b'].shape[-1] // 4
    assert B % batch_blocks == 0, "batch must divide evenly into batch blocks"
    BB = B // batch_blocks
    assert batch_blocks == 1 or BB % 8 == 0, \
        "per-core batch must stay sublane-aligned when splitting across cores"

    # Time-major input so the recurrence reads dense (B, Din) rows per step
    # (input-side transpose only; the large activations no longer round-trip
    # through XLA transposes).
    x_tbd = jnp.transpose(x_btd, (1, 0, 2))
    args = ([x_tbd]
            + [lyr['wx'] for lyr in layers]
            + [lyr['wh'] for lyr in layers]
            + [lyr['b'] for lyr in layers])

    in_specs = [pl.BlockSpec((T, BB, Din), lambda b: (0, b, 0))]
    in_specs += [pl.BlockSpec(a.shape, lambda b: (0, 0)) for a in args[1:]]

    scratch = [pltpu.VMEM((T, BB, H), jnp.bfloat16)] if L > 1 else []

    est = (sum(int(a.size) * a.dtype.itemsize for a in args)
           + B * T * H * 4 + 2 * B * H * 4
           + (T * BB * H * 2 if L > 1 else 0))

    y_bth, hN, cN = pl.pallas_call(
        _make_encoder_kernel(L, _pick_unroll(T)),
        out_shape=(jax.ShapeDtypeStruct((B, T, H), jnp.float32),
                   jax.ShapeDtypeStruct((B, H), jnp.float32),
                   jax.ShapeDtypeStruct((B, H), jnp.float32)),
        grid_spec=pltpu.PrefetchScalarGridSpec(
            num_scalar_prefetch=0,
            grid=(batch_blocks,),
            in_specs=in_specs,
            out_specs=[pl.BlockSpec((BB, T, H), lambda b: (b, 0, 0)),
                       pl.BlockSpec((BB, H), lambda b: (b, 0)),
                       pl.BlockSpec((BB, H), lambda b: (b, 0))],
            scratch_shapes=scratch),
        compiler_params=pltpu.CompilerParams(
            dimension_semantics=("parallel",),
            vmem_limit_bytes=_vmem_limit_bytes(est)),
    )(*args)
    return y_bth, hN, cN


# ----------------------------------------------------------------------------- decoder
def _make_decoder_kernel(unroll):
    def kernel(inputs_ref, cand_ref, h0_ref, c0_ref, mask0_ref,
               input0_ref,
               wx_ref, wh_ref, bg_ref, wq_ref, bq_ref, wc_ref, bc_ref,
               v_ref, woa_ref, woh_ref, bo_ref,
               scores_ref, ptr_ref):
        B, T, H = cand_ref.shape
        Din = inputs_ref.shape[-1]

        # --- t-invariant work, hoisted out of the decode loop ---
        inp_bf = inputs_ref[...].astype(jnp.bfloat16)                   # (B, T, Din)
        cand_bf = cand_ref[...].astype(jnp.bfloat16)                    # (B, T, H)
        # Attention keys as ONE 2-D matmul (fills MXU sublanes).
        k = (jnp.dot(cand_bf.reshape(B * T, H), wc_ref[...],
                     preferred_element_type=jnp.float32).reshape(B, T, H)
             + bc_ref[...])                                             # (B, T, H)
        # Fused-gather RHS, [candidate | inputs], hoisted: (B, T, H + Din).
        gat_rhs = jnp.concatenate([cand_bf, inp_bf], axis=-1)

        wx = wx_ref[...]
        wh = wh_ref[...]
        bg = bg_ref[...]
        wq = wq_ref[...]
        bq = bq_ref[...]
        v = v_ref[...]
        woa = woa_ref[...]
        woh = woh_ref[...]
        bo = bo_ref[...]

        mask0 = mask0_ref[...]                                          # (B, T) f32
        max_len = jnp.sum(mask0, axis=-1, keepdims=True).astype(jnp.int32)
        col = lax.broadcasted_iota(jnp.int32, (B, T), 1)
        in00 = jnp.broadcast_to(input0_ref[...], (B, Din))              # hoisted broadcast

        def step(t, carry):
            h, c, mask, x, ptrs = carry

            # --- forward_step: LSTM cell (split x/h matmuls, one EUP sweep) ---
            h_t, c_t = _lstm_cell(x.astype(jnp.bfloat16), h.astype(jnp.bfloat16),
                                  wx, wh, bg, c, H)

            # --- additive attention with hoisted keys ---
            q = jnp.dot(h_t.astype(jnp.bfloat16), wq,
                        preferred_element_type=jnp.float32) + bq        # (B, H)
            u = jnp.tanh(q[:, None, :] + k)                             # (B, T, H)
            scores = jnp.sum(u * v[None, :, :], axis=-1)                # (B, T)
            scores = jnp.where(mask == 0.0, jnp.float32(-1e9), scores)  # init_inf masking
            alpha = _softmax_last(scores)

            # --- greedy pointer selection (f32 compare, first-index tie break) ---
            masked = alpha * mask
            mval = jnp.max(masked, axis=-1, keepdims=True)
            sel_arg = jnp.min(jnp.where(masked == mval, col, T), axis=-1)
            is_out = max_len[:, 0] > t
            sel = jnp.where(is_out, sel_arg, t)                         # (B,) int32
            one_hot = (col == sel[:, None]).astype(jnp.float32)         # (B, T)
            new_mask = mask * (1.0 - one_hot)                           # repeat=False

            # --- fused attn-context + next-input gather: ONE MXU op per step ---
            lhs = jnp.concatenate([alpha[:, None, :], one_hot[:, None, :]],
                                  axis=1).astype(jnp.bfloat16)          # (B, 2, T)
            gat = jnp.einsum('bqt,btd->bqd', lhs, gat_rhs,
                             preferred_element_type=jnp.float32)        # (B, 2, H+Din)
            attn_ctx = gat[:, 0, :H]                                    # alpha @ cand
            x_next = gat[:, 1, H:]                                      # one_hot @ inputs

            # hidden_out on cat((attn_ctx, h_t)) as two split matmuls (no concat)
            attn = jnp.tanh(
                jnp.dot(attn_ctx.astype(jnp.bfloat16), woa,
                        preferred_element_type=jnp.float32)
                + jnp.dot(h_t.astype(jnp.bfloat16), woh,
                          preferred_element_type=jnp.float32)
                + bo)

            ptrs = jnp.where(col == t, sel[:, None], ptrs)              # lane-dense accum
            # Batch-major scores: (B, T, T) returned untouched by the wrapper.
            scores_ref[:, pl.ds(t, 1), :] = scores[:, None, :]
            return (attn, c_t, new_mask, x_next, ptrs)

        carry0 = (h0_ref[...], c0_ref[...], mask0, in00,
                  jnp.zeros((B, T), jnp.int32))
        *_, ptrs = lax.fori_loop(0, T, step, carry0, unroll=unroll)
        ptr_ref[...] = ptrs                                             # single writeback

    return kernel


def pointer_decode(inputs, candidate, h0, c0, mask0, dp, *, batch_blocks=1):
    B, T, Din = inputs.shape
    H = h0.shape[-1]
    assert B % batch_blocks == 0, "batch must divide evenly into batch blocks"
    BB = B // batch_blocks
    assert batch_blocks == 1 or BB % 8 == 0, \
        "per-core batch must stay sublane-aligned when splitting across cores"

    args = (inputs, candidate, h0, c0, mask0, dp['input0'],
            dp['wx'], dp['wh'], dp['b_gate'], dp['wq'], dp['bq'],
            dp['wc'], dp['bc'], dp['v'], dp['wo_a'], dp['wo_h'], dp['bo'])

    in_specs = [
        pl.BlockSpec((BB, T, Din), lambda b: (b, 0, 0)),
        pl.BlockSpec((BB, T, H), lambda b: (b, 0, 0)),
        pl.BlockSpec((BB, H), lambda b: (b, 0)),
        pl.BlockSpec((BB, H), lambda b: (b, 0)),
        pl.BlockSpec((BB, T), lambda b: (b, 0)),
    ] + [pl.BlockSpec(a.shape, lambda b: (0, 0)) for a in args[5:]]

    est = (sum(int(a.size) * a.dtype.itemsize for a in args)
           + B * T * T * 4 + B * T * 4            # outputs
           + B * T * H * 4                        # hoisted keys (f32)
           + B * T * (H + Din) * 2)               # hoisted gather RHS (bf16)

    scores, ptrs = pl.pallas_call(
        _make_decoder_kernel(_pick_unroll(T)),
        out_shape=(jax.ShapeDtypeStruct((B, T, T), jnp.float32),
                   jax.ShapeDtypeStruct((B, T), jnp.int32)),
        grid_spec=pltpu.PrefetchScalarGridSpec(
            num_scalar_prefetch=0,
            grid=(batch_blocks,),
            in_specs=in_specs,
            out_specs=[pl.BlockSpec((BB, T, T), lambda b: (b, 0, 0)),
                       pl.BlockSpec((BB, T), lambda b: (b, 0))]),
        compiler_params=pltpu.CompilerParams(
            dimension_semantics=("parallel",),
            vmem_limit_bytes=_vmem_limit_bytes(est)),
    )(*args)
    return scores, ptrs


# ----------------------------------------------------------------------------- PointerNet
def pointer_net_forward(params, inputs, mask_inputs=None, *, batch_blocks=1):
    # TODO(synk): beam_search (beam_size > 1), force_index (inputs_index) and
    # bidirectional / training-dropout encoder paths are not implemented;
    # greedy decode of the unidirectional eval-mode module only.
    B, T, Din = inputs.shape
    x = inputs.astype(jnp.float32)

    candidate, hN, cN = lstm_encoder(x, params['enc_layers'],
                                     batch_blocks=batch_blocks)         # (B, T, H)
    mask0 = (mask_inputs.astype(jnp.float32) if mask_inputs is not None
             else jnp.ones((B, T), jnp.float32))
    outputs, pointers = pointer_decode(x, candidate, hN, cN, mask0,
                                       params['dec'],
                                       batch_blocks=batch_blocks)
    return outputs, pointers                                            # (B,T,T),(B,T)


# ----------------------------------------------------------------------------- params
def init_params(key, input_dim, hidden_dim, num_layers):
    H = hidden_dim
    keys = iter(jax.random.split(key, 4 * num_layers + 16))

    def uni(shape, bound):
        return jax.random.uniform(next(keys), shape, jnp.float32, -bound, bound)

    lstm_b = 1.0 / (H ** 0.5)
    enc_layers = []
    in_dim = input_dim
    for _ in range(num_layers):
        wih = uni((4 * H, in_dim), lstm_b)
        whh = uni((4 * H, H), lstm_b)
        bih = uni((4 * H,), lstm_b)
        bhh = uni((4 * H,), lstm_b)
        enc_layers.append({
            'wx': wih.T.astype(jnp.bfloat16),          # (In_l, 4H)
            'wh': whh.T.astype(jnp.bfloat16),          # (H, 4H)
            'b': (bih + bhh).reshape(1, 4 * H),
        })
        in_dim = H

    b_in = 1.0 / (input_dim ** 0.5)
    b_h = 1.0 / (H ** 0.5)
    b_2h = 1.0 / ((2 * H) ** 0.5)
    w_ih = uni((4 * H, input_dim), b_in)
    w_hh = uni((4 * H, H), b_h)
    bih = uni((4 * H,), b_in)
    bhh = uni((4 * H,), b_h)
    w_out = uni((H, 2 * H), b_2h)                      # hidden_out on cat((attn, h_t))
    dec = {
        'input0': uni((input_dim,), 1.0).reshape(1, input_dim),
        'wx': w_ih.T.astype(jnp.bfloat16),             # (Din, 4H)
        'wh': w_hh.T.astype(jnp.bfloat16),             # (H, 4H)
        'b_gate': (bih + bhh).reshape(1, 4 * H),
        'wq': uni((H, H), b_h).T.astype(jnp.bfloat16),
        'bq': uni((H,), b_h).reshape(1, H),
        'wc': uni((H, H), b_h).T.astype(jnp.bfloat16),
        'bc': uni((H,), b_h).reshape(1, H),
        'v': uni((H,), 1.0).reshape(1, H),
        'wo_a': w_out[:, :H].T.astype(jnp.bfloat16),   # (H, H): attn-context part
        'wo_h': w_out[:, H:].T.astype(jnp.bfloat16),   # (H, H): h_t part
        'bo': uni((H,), b_2h).reshape(1, H),
    }
    return {'enc_layers': enc_layers, 'dec': dec}


# ----------------------------------------------------------------------------- main
if __name__ == "__main__":
    B, T, Din, H, L = 2, 8, 32, 32, 1
    key = jax.random.PRNGKey(0)
    params = init_params(key, Din, H, L)
    inputs = jax.random.normal(jax.random.fold_in(key, 123), (B, T, Din), jnp.float32)

    fwd = jax.jit(pointer_net_forward)
    outputs, pointers = fwd(params, inputs)
    jax.block_until_ready((outputs, pointers))
    assert outputs.shape == (B, T, T) and pointers.shape == (B, T)
    print("KERNEL_OK")
</pallas_src>

<mosaic_0001>
module attributes {stable_mosaic.version = 11 : i64} {
  func.func @kernel(%arg0: i32, %arg1: memref<2x8x32xf32, #tpu.memory_space<vmem>>, %arg2: memref<2x8x32xf32, #tpu.memory_space<vmem>>, %arg3: memref<2x32xf32, #tpu.memory_space<vmem>>, %arg4: memref<2x32xf32, #tpu.memory_space<vmem>>, %arg5: memref<2x8xf32, #tpu.memory_space<vmem>>, %arg6: memref<1x32xf32, #tpu.memory_space<vmem>>, %arg7: memref<32x128xbf16, #tpu.memory_space<vmem>>, %arg8: memref<32x128xbf16, #tpu.memory_space<vmem>>, %arg9: memref<1x128xf32, #tpu.memory_space<vmem>>, %arg10: memref<32x32xbf16, #tpu.memory_space<vmem>>, %arg11: memref<1x32xf32, #tpu.memory_space<vmem>>, %arg12: memref<32x32xbf16, #tpu.memory_space<vmem>>, %arg13: memref<1x32xf32, #tpu.memory_space<vmem>>, %arg14: memref<1x32xf32, #tpu.memory_space<vmem>>, %arg15: memref<32x32xbf16, #tpu.memory_space<vmem>>, %arg16: memref<32x32xbf16, #tpu.memory_space<vmem>>, %arg17: memref<1x32xf32, #tpu.memory_space<vmem>>, %arg18: memref<2x8x8xf32, #tpu.memory_space<vmem>>, %arg19: memref<2x8xi32, #tpu.memory_space<vmem>>) attributes {dimension_semantics = [#tpu.dimension_semantics<parallel>], iteration_bounds = array<i64: 1>, scalar_prefetch = 0 : i64, scratch_operands = 0 : i64, tpu.core_type = #tpu.core_type<tc>, window_params = [{transform_indices = @transform_0, window_bounds = array<i64: 2, 8, 32>}, {transform_indices = @transform_1, window_bounds = array<i64: 2, 8, 32>}, {transform_indices = @transform_2, window_bounds = array<i64: 2, 32>}, {transform_indices = @transform_3, window_bounds = array<i64: 2, 32>}, {transform_indices = @transform_4, window_bounds = array<i64: 2, 8>}, {pipeline_mode = #tpu.pipeline_mode<synchronous>, transform_indices = @transform_5, window_bounds = array<i64: 1, 32>}, {pipeline_mode = #tpu.pipeline_mode<synchronous>, transform_indices = @transform_6, window_bounds = array<i64: 32, 128>}, {pipeline_mode = #tpu.pipeline_mode<synchronous>, transform_indices = @transform_7, window_bounds = array<i64: 32, 128>}, {pipeline_mode = #tpu.pipeline_mode<synchronous>, transform_indices = @transform_8, window_bounds = array<i64: 1, 128>}, {pipeline_mode = #tpu.pipeline_mode<synchronous>, transform_indices = @transform_9, window_bounds = array<i64: 32, 32>}, {pipeline_mode = #tpu.pipeline_mode<synchronous>, transform_indices = @transform_10, window_bounds = array<i64: 1, 32>}, {pipeline_mode = #tpu.pipeline_mode<synchronous>, transform_indices = @transform_11, window_bounds = array<i64: 32, 32>}, {pipeline_mode = #tpu.pipeline_mode<synchronous>, transform_indices = @transform_12, window_bounds = array<i64: 1, 32>}, {pipeline_mode = #tpu.pipeline_mode<synchronous>, transform_indices = @transform_13, window_bounds = array<i64: 1, 32>}, {pipeline_mode = #tpu.pipeline_mode<synchronous>, transform_indices = @transform_14, window_bounds = array<i64: 32, 32>}, {pipeline_mode = #tpu.pipeline_mode<synchronous>, transform_indices = @transform_15, window_bounds = array<i64: 32, 32>}, {pipeline_mode = #tpu.pipeline_mode<synchronous>, transform_indices = @transform_16, window_bounds = array<i64: 1, 32>}, {transform_indices = @transform_17, window_bounds = array<i64: 2, 8, 8>}, {transform_indices = @transform_18, window_bounds = array<i64: 2, 8>}]} {
    %c0 = arith.constant 0 : index
    %c0_0 = arith.constant 0 : index
    %c0_1 = arith.constant 0 : index
    %0 = vector.load %arg1[%c0, %c0_0, %c0_1] : memref<2x8x32xf32, #tpu.memory_space<vmem>>, vector<2x8x32xf32>
    %1 = arith.truncf %0 : vector<2x8x32xf32> to vector<2x8x32xbf16>
    %c0_2 = arith.constant 0 : index
    %c0_3 = arith.constant 0 : index
    %c0_4 = arith.constant 0 : index
    %2 = vector.load %arg2[%c0_2, %c0_3, %c0_4] : memref<2x8x32xf32, #tpu.memory_space<vmem>>, vector<2x8x32xf32>
    %3 = arith.truncf %2 : vector<2x8x32xf32> to vector<2x8x32xbf16>
    %4 = vector.shape_cast %3 : vector<2x8x32xbf16> to vector<16x32xbf16>
    %c0_5 = arith.constant 0 : index
    %c0_6 = arith.constant 0 : index
    %5 = vector.load %arg12[%c0_5, %c0_6] : memref<32x32xbf16, #tpu.memory_space<vmem>>, vector<32x32xbf16>
    %cst = arith.constant dense<0.000000e+00> : vector<16x32xf32>
    %6 = tpu.matmul %4, %5, %cst {dimension_numbers = #tpu.dot_dimension_numbers<[1], [0], [0], [1], [0, 0, 1, 1], [], []>} : vector<16x32xbf16>, vector<32x32xbf16>, vector<16x32xf32> -> vector<16x32xf32>
    %7 = vector.shape_cast %6 : vector<16x32xf32> to vector<2x8x32xf32>
    %c0_7 = arith.constant 0 : index
    %c0_8 = arith.constant 0 : index
    %8 = vector.load %arg13[%c0_7, %c0_8] : memref<1x32xf32, #tpu.memory_space<vmem>>, vector<1x32xf32>
    %9 = vector.shape_cast %8 : vector<1x32xf32> to vector<1x1x32xf32>
    %10 = vector.broadcast %9 : vector<1x1x32xf32> to vector<2x8x32xf32>
    %11 = arith.addf %7, %10 : vector<2x8x32xf32>
    %12 = tpu.concatenate %3, %1 in 2 : vector<2x8x32xbf16>, vector<2x8x32xbf16> -> vector<2x8x64xbf16>
    %c0_9 = arith.constant 0 : index
    %c0_10 = arith.constant 0 : index
    %13 = vector.load %arg7[%c0_9, %c0_10] : memref<32x128xbf16, #tpu.memory_space<vmem>>, vector<32x128xbf16>
    %c0_11 = arith.constant 0 : index
    %c0_12 = arith.constant 0 : index
    %14 = vector.load %arg8[%c0_11, %c0_12] : memref<32x128xbf16, #tpu.memory_space<vmem>>, vector<32x128xbf16>
    %c0_13 = arith.constant 0 : index
    %c0_14 = arith.constant 0 : index
    %15 = vector.load %arg9[%c0_13, %c0_14] : memref<1x128xf32, #tpu.memory_space<vmem>>, vector<1x128xf32>
    %c0_15 = arith.constant 0 : index
    %c0_16 = arith.constant 0 : index
    %16 = vector.load %arg10[%c0_15, %c0_16] : memref<32x32xbf16, #tpu.memory_space<vmem>>, vector<32x32xbf16>
    %c0_17 = arith.constant 0 : index
    %c0_18 = arith.constant 0 : index
    %17 = vector.load %arg11[%c0_17, %c0_18] : memref<1x32xf32, #tpu.memory_space<vmem>>, vector<1x32xf32>
    %c0_19 = arith.constant 0 : index
    %c0_20 = arith.constant 0 : index
    %18 = vector.load %arg14[%c0_19, %c0_20] : memref<1x32xf32, #tpu.memory_space<vmem>>, vector<1x32xf32>
    %c0_21 = arith.constant 0 : index
    %c0_22 = arith.constant 0 : index
    %19 = vector.load %arg15[%c0_21, %c0_22] : memref<32x32xbf16, #tpu.memory_space<vmem>>, vector<32x32xbf16>
    %c0_23 = arith.constant 0 : index
    %c0_24 = arith.constant 0 : index
    %20 = vector.load %arg16[%c0_23, %c0_24] : memref<32x32xbf16, #tpu.memory_space<vmem>>, vector<32x32xbf16>
    %c0_25 = arith.constant 0 : index
    %c0_26 = arith.constant 0 : index
    %21 = vector.load %arg17[%c0_25, %c0_26] : memref<1x32xf32, #tpu.memory_space<vmem>>, vector<1x32xf32>
    %c0_27 = arith.constant 0 : index
    %c0_28 = arith.constant 0 : index
    %22 = vector.load %arg5[%c0_27, %c0_28] : memref<2x8xf32, #tpu.memory_space<vmem>>, vector<2x8xf32>
    %cst_29 = arith.constant dense<0.000000e+00> : vector<2xf32>
    %23 = vector.multi_reduction <add>, %22, %cst_29 [1] : vector<2x8xf32> to vector<2xf32>
    %24 = vector.shape_cast %23 : vector<2xf32> to vector<2x1xf32>
    %25 = arith.fptosi %24 : vector<2x1xf32> to vector<2x1xi32>
    %26 = tpu.iota {dimensions = array<i32: 1>} : vector<2x8xi32>
    %c0_30 = arith.constant 0 : index
    %c0_31 = arith.constant 0 : index
    %27 = vector.load %arg6[%c0_30, %c0_31] : memref<1x32xf32, #tpu.memory_space<vmem>>, vector<1x32xf32>
    %28 = vector.shape_cast %27 : vector<1x32xf32> to vector<1x32xf32>
    %29 = vector.broadcast %28 : vector<1x32xf32> to vector<2x32xf32>
    %c0_32 = arith.constant 0 : index
    %c0_33 = arith.constant 0 : index
    %30 = vector.load %arg3[%c0_32, %c0_33] : memref<2x32xf32, #tpu.memory_space<vmem>>, vector<2x32xf32>
    %c0_34 = arith.constant 0 : index
    %c0_35 = arith.constant 0 : index
    %31 = vector.load %arg4[%c0_34, %c0_35] : memref<2x32xf32, #tpu.memory_space<vmem>>, vector<2x32xf32>
    %c0_i32 = arith.constant 0 : i32
    %32 = vector.broadcast %c0_i32 : i32 to vector<2x8xi32>
    %c0_i32_36 = arith.constant 0 : i32
    %33 = arith.truncf %29 : vector<2x32xf32> to vector<2x32xbf16>
    %34 = arith.truncf %30 : vector<2x32xf32> to vector<2x32xbf16>
    %cst_37 = arith.constant dense<0.000000e+00> : vector<2x128xf32>
    %35 = tpu.matmul %33, %13, %cst_37 {dimension_numbers = #tpu.dot_dimension_numbers<[1], [0], [0], [1], [0, 0, 1, 1], [], []>} : vector<2x32xbf16>, vector<32x128xbf16>, vector<2x128xf32> -> vector<2x128xf32>
    %cst_38 = arith.constant dense<0.000000e+00> : vector<2x128xf32>
    %36 = tpu.matmul %34, %14, %cst_38 {dimension_numbers = #tpu.dot_dimension_numbers<[1], [0], [0], [1], [0, 0, 1, 1], [], []>} : vector<2x32xbf16>, vector<32x128xbf16>, vector<2x128xf32> -> vector<2x128xf32>
    %37 = arith.addf %35, %36 : vector<2x128xf32>
    %38 = vector.broadcast %15 : vector<1x128xf32> to vector<2x128xf32>
    %39 = arith.addf %37, %38 : vector<2x128xf32>
    %40 = tpu.iota {dimensions = array<i32: 1>} : vector<2x128xi32>
    %c64_i32 = arith.constant 64 : i32
    %41 = vector.broadcast %c64_i32 : i32 to vector<2x128xi32>
    %42 = arith.cmpi sge, %40, %41 : vector<2x128xi32>
    %c96_i32 = arith.constant 96 : i32
    %43 = vector.broadcast %c96_i32 : i32 to vector<2x128xi32>
    %44 = arith.cmpi slt, %40, %43 : vector<2x128xi32>
    %45 = arith.andi %42, %44 : vector<2x128xi1>
    %cst_39 = arith.constant 2.000000e+00 : f32
    %46 = vector.broadcast %cst_39 : f32 to vector<2x128xf32>
    %47 = arith.mulf %46, %39 : vector<2x128xf32>
    %48 = arith.select %45, %47, %39 : vector<2x128xi1>, vector<2x128xf32>
    %49 = arith.negf %48 : vector<2x128xf32>
    %50 = math.exp %49 : vector<2x128xf32>
    %cst_40 = arith.constant 1.000000e+00 : f32
    %51 = vector.broadcast %cst_40 : f32 to vector<2x128xf32>
    %52 = arith.addf %51, %50 : vector<2x128xf32>
    %53 = arith.divf %51, %52 : vector<2x128xf32>
    %cst_41 = arith.constant 2.000000e+00 : f32
    %54 = vector.broadcast %cst_41 : f32 to vector<2x128xf32>
    %55 = arith.mulf %54, %53 : vector<2x128xf32>
    %cst_42 = arith.constant 1.000000e+00 : f32
    %56 = vector.broadcast %cst_42 : f32 to vector<2x128xf32>
    %57 = arith.subf %55, %56 : vector<2x128xf32>
    %58 = arith.select %45, %57, %53 : vector<2x128xi1>, vector<2x128xf32>
    %59 = vector.extract_strided_slice %58 {offsets = [0, 0], sizes = [2, 32], strides = [1, 1]} : vector<2x128xf32> to vector<2x32xf32>
    %60 = vector.extract_strided_slice %58 {offsets = [0, 32], sizes = [2, 32], strides = [1, 1]} : vector<2x128xf32> to vector<2x32xf32>
    %61 = vector.extract_strided_slice %58 {offsets = [0, 64], sizes = [2, 32], strides = [1, 1]} : vector<2x128xf32> to vector<2x32xf32>
    %62 = vector.extract_strided_slice %58 {offsets = [0, 96], sizes = [2, 32], strides = [1, 1]} : vector<2x128xf32> to vector<2x32xf32>
    %63 = arith.mulf %60, %31 : vector<2x32xf32>
    %64 = arith.mulf %59, %61 : vector<2x32xf32>
    %65 = arith.addf %63, %64 : vector<2x32xf32>
    %66 = math.tanh %65 : vector<2x32xf32>
    %67 = arith.mulf %62, %66 : vector<2x32xf32>
    %68 = arith.truncf %67 : vector<2x32xf32> to vector<2x32xbf16>
    %cst_43 = arith.constant dense<0.000000e+00> : vector<2x32xf32>
    %69 = tpu.matmul %68, %16, %cst_43 {dimension_numbers = #tpu.dot_dimension_numbers<[1], [0], [0], [1], [0, 0, 1, 1], [], []>} : vector<2x32xbf16>, vector<32x32xbf16>, vector<2x32xf32> -> vector<2x32xf32>
    %70 = vector.broadcast %17 : vector<1x32xf32> to vector<2x32xf32>
    %71 = arith.addf %69, %70 : vector<2x32xf32>
    %72 = vector.shape_cast %71 : vector<2x32xf32> to vector<2x1x32xf32>
    %73 = vector.broadcast %72 : vector<2x1x32xf32> to vector<2x8x32xf32>
    %74 = arith.addf %73, %11 : vector<2x8x32xf32>
    %75 = math.tanh %74 : vector<2x8x32xf32>
    %76 = vector.shape_cast %18 : vector<1x32xf32> to vector<1x1x32xf32>
    %77 = vector.broadcast %76 : vector<1x1x32xf32> to vector<2x8x32xf32>
    %78 = arith.mulf %75, %77 : vector<2x8x32xf32>
    %cst_44 = arith.constant dense<0.000000e+00> : vector<2x8xf32>
    %79 = vector.multi_reduction <add>, %78, %cst_44 [2] : vector<2x8x32xf32> to vector<2x8xf32>
    %cst_45 = arith.constant 0.000000e+00 : f32
    %80 = vector.broadcast %cst_45 : f32 to vector<2x8xf32>
    %81 = arith.cmpf oeq, %22, %80 : vector<2x8xf32>
    %cst_46 = arith.constant -1.000000e+09 : f32
    %82 = vector.broadcast %cst_46 : f32 to vector<2x8xf32>
    %83 = arith.select %81, %82, %79 : vector<2x8xi1>, vector<2x8xf32>
    %cst_47 = arith.constant dense<0xFF800000> : vector<2xf32>
    %84 = vector.multi_reduction <maximumf>, %83, %cst_47 [1] : vector<2x8xf32> to vector<2xf32>
    %85 = vector.shape_cast %84 : vector<2xf32> to vector<2x1xf32>
    %86 = vector.broadcast %85 : vector<2x1xf32> to vector<2x8xf32>
    %87 = arith.subf %83, %86 : vector<2x8xf32>
    %88 = math.exp %87 : vector<2x8xf32>
    %cst_48 = arith.constant dense<0.000000e+00> : vector<2xf32>
    %89 = vector.multi_reduction <add>, %88, %cst_48 [1] : vector<2x8xf32> to vector<2xf32>
    %90 = vector.shape_cast %89 : vector<2xf32> to vector<2x1xf32>
    %91 = vector.broadcast %90 : vector<2x1xf32> to vector<2x8xf32>
    %92 = arith.divf %88, %91 : vector<2x8xf32>
    %93 = arith.mulf %92, %22 : vector<2x8xf32>
    %cst_49 = arith.constant dense<0xFF800000> : vector<2xf32>
    %94 = vector.multi_reduction <maximumf>, %93, %cst_49 [1] : vector<2x8xf32> to vector<2xf32>
    %95 = vector.shape_cast %94 : vector<2xf32> to vector<2x1xf32>
    %96 = vector.broadcast %95 : vector<2x1xf32> to vector<2x8xf32>
    %97 = arith.cmpf oeq, %93, %96 : vector<2x8xf32>
    %c8_i32 = arith.constant 8 : i32
    %98 = vector.broadcast %c8_i32 : i32 to vector<2x8xi32>
    %99 = arith.select %97, %26, %98 : vector<2x8xi1>, vector<2x8xi32>
    %cst_50 = arith.constant dense<2147483647> : vector<2xi32>
    %100 = vector.multi_reduction <minsi>, %99, %cst_50 [1] : vector<2x8xi32> to vector<2xi32>
    %101 = vector.shape_cast %25 : vector<2x1xi32> to vector<2xi32>
    %102 = vector.broadcast %c0_i32_36 : i32 to vector<2xi32>
    %103 = arith.cmpi sgt, %101, %102 : vector<2xi32>
    %104 = vector.broadcast %c0_i32_36 : i32 to vector<2xi32>
    %105 = arith.select %103, %100, %104 : vector<2xi1>, vector<2xi32>
    %106 = vector.shape_cast %105 : vector<2xi32> to vector<2x1xi32>
    %107 = vector.broadcast %106 : vector<2x1xi32> to vector<2x8xi32>
    %108 = arith.cmpi eq, %26, %107 : vector<2x8xi32>
    %109 = arith.extui %108 : vector<2x8xi1> to vector<2x8xi32>
    %110 = arith.sitofp %109 : vector<2x8xi32> to vector<2x8xf32>
    %cst_51 = arith.constant 1.000000e+00 : f32
    %111 = vector.broadcast %cst_51 : f32 to vector<2x8xf32>
    %112 = arith.subf %111, %110 : vector<2x8xf32>
    %113 = arith.mulf %22, %112 : vector<2x8xf32>
    %114 = vector.shape_cast %92 : vector<2x8xf32> to vector<2x1x8xf32>
    %115 = vector.shape_cast %110 : vector<2x8xf32> to vector<2x1x8xf32>
    %116 = tpu.concatenate %114, %115 in 1 : vector<2x1x8xf32>, vector<2x1x8xf32> -> vector<2x2x8xf32>
    %117 = arith.truncf %116 : vector<2x2x8xf32> to vector<2x2x8xbf16>
    "tpu.trace_start"() <{level = 10 : i32, message = "bqt,btd->bqd"}> : () -> ()
    %cst_52 = arith.constant dense<0.000000e+00> : vector<2x2x64xf32>
    %118 = tpu.matmul %117, %12, %cst_52 {dimension_numbers = #tpu.dot_dimension_numbers<[2], [1], [1], [2], [0, 0, 0, 1, 1, 2], [0], [0]>} : vector<2x2x8xbf16>, vector<2x8x64xbf16>, vector<2x2x64xf32> -> vector<2x2x64xf32>
    "tpu.trace_stop"() : () -> ()
    %119 = vector.extract_strided_slice %118 {offsets = [0, 0, 0], sizes = [2, 1, 32], strides = [1, 1, 1]} : vector<2x2x64xf32> to vector<2x1x32xf32>
    %120 = vector.shape_cast %119 : vector<2x1x32xf32> to vector<2x32xf32>
    %121 = vector.extract_strided_slice %118 {offsets = [0, 1, 32], sizes = [2, 1, 32], strides = [1, 1, 1]} : vector<2x2x64xf32> to vector<2x1x32xf32>
    %122 = vector.shape_cast %121 : vector<2x1x32xf32> to vector<2x32xf32>
    %123 = arith.truncf %120 : vector<2x32xf32> to vector<2x32xbf16>
    %cst_53 = arith.constant dense<0.000000e+00> : vector<2x32xf32>
    %124 = tpu.matmul %123, %19, %cst_53 {dimension_numbers = #tpu.dot_dimension_numbers<[1], [0], [0], [1], [0, 0, 1, 1], [], []>} : vector<2x32xbf16>, vector<32x32xbf16>, vector<2x32xf32> -> vector<2x32xf32>
    %125 = arith.truncf %67 : vector<2x32xf32> to vector<2x32xbf16>
    %cst_54 = arith.constant dense<0.000000e+00> : vector<2x32xf32>
    %126 = tpu.matmul %125, %20, %cst_54 {dimension_numbers = #tpu.dot_dimension_numbers<[1], [0], [0], [1], [0, 0, 1, 1], [], []>} : vector<2x32xbf16>, vector<32x32xbf16>, vector<2x32xf32> -> vector<2x32xf32>
    %127 = arith.addf %124, %126 : vector<2x32xf32>
    %128 = vector.broadcast %21 : vector<1x32xf32> to vector<2x32xf32>
    %129 = arith.addf %127, %128 : vector<2x32xf32>
    %130 = math.tanh %129 : vector<2x32xf32>
    %131 = vector.broadcast %c0_i32_36 : i32 to vector<2x8xi32>
    %132 = arith.cmpi eq, %26, %131 : vector<2x8xi32>
    %133 = vector.shape_cast %105 : vector<2xi32> to vector<2x1xi32>
    %134 = vector.shape_cast %133 : vector<2x1xi32> to vector<2x1xi32>
    %135 = vector.broadcast %134 : vector<2x1xi32> to vector<2x8xi32>
    %136 = arith.select %132, %135, %32 : vector<2x8xi1>, vector<2x8xi32>
    %137 = vector.shape_cast %83 : vector<2x8xf32> to vector<2x1x8xf32>
    %c0_55 = arith.constant 0 : index
    %138 = arith.index_cast %c0_i32_36 : i32 to index
    %c0_56 = arith.constant 0 : index
    %139 = vector.load %arg18[%c0_55, %138, %c0_56] : memref<2x8x8xf32, #tpu.memory_space<vmem>>, vector<2x1x8xf32>
    tpu.vector_store %arg18[%c0_55, %138, %c0_56], %137 {strides = array<i32>} : memref<2x8x8xf32, #tpu.memory_space<vmem>>, vector<2x1x8xf32>,
    %c1_i32 = arith.constant 1 : i32
    %140 = arith.truncf %122 : vector<2x32xf32> to vector<2x32xbf16>
    %141 = arith.truncf %130 : vector<2x32xf32> to vector<2x32xbf16>
    %cst_57 = arith.constant dense<0.000000e+00> : vector<2x128xf32>
    %142 = tpu.matmul %140, %13, %cst_57 {dimension_numbers = #tpu.dot_dimension_numbers<[1], [0], [0], [1], [0, 0, 1, 1], [], []>} : vector<2x32xbf16>, vector<32x128xbf16>, vector<2x128xf32> -> vector<2x128xf32>
    %cst_58 = arith.constant dense<0.000000e+00> : vector<2x128xf32>
    %143 = tpu.matmul %141, %14, %cst_58 {dimension_numbers = #tpu.dot_dimension_numbers<[1], [0], [0], [1], [0, 0, 1, 1], [], []>} : vector<2x32xbf16>, vector<32x128xbf16>, vector<2x128xf32> -> vector<2x128xf32>
    %144 = arith.addf %142, %143 : vector<2x128xf32>
    %145 = vector.broadcast %15 : vector<1x128xf32> to vector<2x128xf32>
    %146 = arith.addf %144, %145 : vector<2x128xf32>
    %147 = tpu.iota {dimensions = array<i32: 1>} : vector<2x128xi32>
    %c64_i32_59 = arith.constant 64 : i32
    %148 = vector.broadcast %c64_i32_59 : i32 to vector<2x128xi32>
    %149 = arith.cmpi sge, %147, %148 : vector<2x128xi32>
    %c96_i32_60 = arith.constant 96 : i32
    %150 = vector.broadcast %c96_i32_60 : i32 to vector<2x128xi32>
    %151 = arith.cmpi slt, %147, %150 : vector<2x128xi32>
    %152 = arith.andi %149, %151 : vector<2x128xi1>
    %cst_61 = arith.constant 2.000000e+00 : f32
    %153 = vector.broadcast %cst_61 : f32 to vector<2x128xf32>
    %154 = arith.mulf %153, %146 : vector<2x128xf32>
    %155 = arith.select %152, %154, %146 : vector<2x128xi1>, vector<2x128xf32>
    %156 = arith.negf %155 : vector<2x128xf32>
    %157 = math.exp %156 : vector<2x128xf32>
    %cst_62 = arith.constant 1.000000e+00 : f32
    %158 = vector.broadcast %cst_62 : f32 to vector<2x128xf32>
    %159 = arith.addf %158, %157 : vector<2x128xf32>
    %160 = arith.divf %158, %159 : vector<2x128xf32>
    %cst_63 = arith.constant 2.000000e+00 : f32
    %161 = vector.broadcast %cst_63 : f32 to vector<2x128xf32>
    %162 = arith.mulf %161, %160 : vector<2x128xf32>
    %cst_64 = arith.constant 1.000000e+00 : f32
    %163 = vector.broadcast %cst_64 : f32 to vector<2x128xf32>
    %164 = arith.subf %162, %163 : vector<2x128xf32>
    %165 = arith.select %152, %164, %160 : vector<2x128xi1>, vector<2x128xf32>
    %166 = vector.extract_strided_slice %165 {offsets = [0, 0], sizes = [2, 32], strides = [1, 1]} : vector<2x128xf32> to vector<2x32xf32>
    %167 = vector.extract_strided_slice %165 {offsets = [0, 32], sizes = [2, 32], strides = [1, 1]} : vector<2x128xf32> to vector<2x32xf32>
    %168 = vector.extract_strided_slice %165 {offsets = [0, 64], sizes = [2, 32], strides = [1, 1]} : vector<2x128xf32> to vector<2x32xf32>
    %169 = vector.extract_strided_slice %165 {offsets = [0, 96], sizes = [2, 32], strides = [1, 1]} : vector<2x128xf32> to vector<2x32xf32>
    %170 = arith.mulf %167, %65 : vector<2x32xf32>
    %171 = arith.mulf %166, %168 : vector<2x32xf32>
    %172 = arith.addf %170, %171 : vector<2x32xf32>
    %173 = math.tanh %172 : vector<2x32xf32>
    %174 = arith.mulf %169, %173 : vector<2x32xf32>
    %175 = arith.truncf %174 : vector<2x32xf32> to vector<2x32xbf16>
    %cst_65 = arith.constant dense<0.000000e+00> : vector<2x32xf32>
    %176 = tpu.matmul %175, %16, %cst_65 {dimension_numbers = #tpu.dot_dimension_numbers<[1], [0], [0], [1], [0, 0, 1, 1], [], []>} : vector<2x32xbf16>, vector<32x32xbf16>, vector<2x32xf32> -> vector<2x32xf32>
    %177 = vector.broadcast %17 : vector<1x32xf32> to vector<2x32xf32>
    %178 = arith.addf %176, %177 : vector<2x32xf32>
    %179 = vector.shape_cast %178 : vector<2x32xf32> to vector<2x1x32xf32>
    %180 = vector.broadcast %179 : vector<2x1x32xf32> to vector<2x8x32xf32>
    %181 = arith.addf %180, %11 : vector<2x8x32xf32>
    %182 = math.tanh %181 : vector<2x8x32xf32>
    %183 = vector.shape_cast %18 : vector<1x32xf32> to vector<1x1x32xf32>
    %184 = vector.broadcast %183 : vector<1x1x32xf32> to vector<2x8x32xf32>
    %185 = arith.mulf %182, %184 : vector<2x8x32xf32>
    %cst_66 = arith.constant dense<0.000000e+00> : vector<2x8xf32>
    %186 = vector.multi_reduction <add>, %185, %cst_66 [2] : vector<2x8x32xf32> to vector<2x8xf32>
    %cst_67 = arith.constant 0.000000e+00 : f32
    %187 = vector.broadcast %cst_67 : f32 to vector<2x8xf32>
    %188 = arith.cmpf oeq, %113, %187 : vector<2x8xf32>
    %cst_68 = arith.constant -1.000000e+09 : f32
    %189 = vector.broadcast %cst_68 : f32 to vector<2x8xf32>
    %190 = arith.select %188, %189, %186 : vector<2x8xi1>, vector<2x8xf32>
    %cst_69 = arith.constant dense<0xFF800000> : vector<2xf32>
    %191 = vector.multi_reduction <maximumf>, %190, %cst_69 [1] : vector<2x8xf32> to vector<2xf32>
    %192 = vector.shape_cast %191 : vector<2xf32> to vector<2x1xf32>
    %193 = vector.broadcast %192 : vector<2x1xf32> to vector<2x8xf32>
    %194 = arith.subf %190, %193 : vector<2x8xf32>
    %195 = math.exp %194 : vector<2x8xf32>
    %cst_70 = arith.constant dense<0.000000e+00> : vector<2xf32>
    %196 = vector.multi_reduction <add>, %195, %cst_70 [1] : vector<2x8xf32> to vector<2xf32>
    %197 = vector.shape_cast %196 : vector<2xf32> to vector<2x1xf32>
    %198 = vector.broadcast %197 : vector<2x1xf32> to vector<2x8xf32>
    %199 = arith.divf %195, %198 : vector<2x8xf32>
    %200 = arith.mulf %199, %113 : vector<2x8xf32>
    %cst_71 = arith.constant dense<0xFF800000> : vector<2xf32>
    %201 = vector.multi_reduction <maximumf>, %200, %cst_71 [1] : vector<2x8xf32> to vector<2xf32>
    %202 = vector.shape_cast %201 : vector<2xf32> to vector<2x1xf32>
    %203 = vector.broadcast %202 : vector<2x1xf32> to vector<2x8xf32>
    %204 = arith.cmpf oeq, %200, %203 : vector<2x8xf32>
    %c8_i32_72 = arith.constant 8 : i32
    %205 = vector.broadcast %c8_i32_72 : i32 to vector<2x8xi32>
    %206 = arith.select %204, %26, %205 : vector<2x8xi1>, vector<2x8xi32>
    %cst_73 = arith.constant dense<2147483647> : vector<2xi32>
    %207 = vector.multi_reduction <minsi>, %206, %cst_73 [1] : vector<2x8xi32> to vector<2xi32>
    %208 = vector.shape_cast %25 : vector<2x1xi32> to vector<2xi32>
    %209 = vector.broadcast %c1_i32 : i32 to vector<2xi32>
    %210 = arith.cmpi sgt, %208, %209 : vector<2xi32>
    %211 = vector.broadcast %c1_i32 : i32 to vector<2xi32>
    %212 = arith.select %210, %207, %211 : vector<2xi1>, vector<2xi32>
    %213 = vector.shape_cast %212 : vector<2xi32> to vector<2x1xi32>
    %214 = vector.broadcast %213 : vector<2x1xi32> to vector<2x8xi32>
    %215 = arith.cmpi eq, %26, %214 : vector<2x8xi32>
    %216 = arith.extui %215 : vector<2x8xi1> to vector<2x8xi32>
    %217 = arith.sitofp %216 : vector<2x8xi32> to vector<2x8xf32>
    %cst_74 = arith.constant 1.000000e+00 : f32
    %218 = vector.broadcast %cst_74 : f32 to vector<2x8xf32>
    %219 = arith.subf %218, %217 : vector<2x8xf32>
    %220 = arith.mulf %113, %219 : vector<2x8xf32>
    %221 = vector.shape_cast %199 : vector<2x8xf32> to vector<2x1x8xf32>
    %222 = vector.shape_cast %217 : vector<2x8xf32> to vector<2x1x8xf32>
    %223 = tpu.concatenate %221, %222 in 1 : vector<2x1x8xf32>, vector<2x1x8xf32> -> vector<2x2x8xf32>
    %224 = arith.truncf %223 : vector<2x2x8xf32> to vector<2x2x8xbf16>
    "tpu.trace_start"() <{level = 10 : i32, message = "bqt,btd->bqd"}> : () -> ()
    %cst_75 = arith.constant dense<0.000000e+00> : vector<2x2x64xf32>
    %225 = tpu.matmul %224, %12, %cst_75 {dimension_numbers = #tpu.dot_dimension_numbers<[2], [1], [1], [2], [0, 0, 0, 1, 1, 2], [0], [0]>} : vector<2x2x8xbf16>, vector<2x8x64xbf16>, vector<2x2x64xf32> -> vector<2x2x64xf32>
    "tpu.trace_stop"() : () -> ()
    %226 = vector.extract_strided_slice %225 {offsets = [0, 0, 0], sizes = [2, 1, 32], strides = [1, 1, 1]} : vector<2x2x64xf32> to vector<2x1x32xf32>
    %227 = vector.shape_cast %226 : vector<2x1x32xf32> to vector<2x32xf32>
    %228 = vector.extract_strided_slice %225 {offsets = [0, 1, 32], sizes = [2, 1, 32], strides = [1, 1, 1]} : vector<2x2x64xf32> to vector<2x1x32xf32>
    %229 = vector.shape_cast %228 : vector<2x1x32xf32> to vector<2x32xf32>
    %230 = arith.truncf %227 : vector<2x32xf32> to vector<2x32xbf16>
    %cst_76 = arith.constant dense<0.000000e+00> : vector<2x32xf32>
    %231 = tpu.matmul %230, %19, %cst_76 {dimension_numbers = #tpu.dot_dimension_numbers<[1], [0], [0], [1], [0, 0, 1, 1], [], []>} : vector<2x32xbf16>, vector<32x32xbf16>, vector<2x32xf32> -> vector<2x32xf32>
    %232 = arith.truncf %174 : vector<2x32xf32> to vector<2x32xbf16>
    %cst_77 = arith.constant dense<0.000000e+00> : vector<2x32xf32>
    %233 = tpu.matmul %232, %20, %cst_77 {dimension_numbers = #tpu.dot_dimension_numbers<[1], [0], [0], [1], [0, 0, 1, 1], [], []>} : vector<2x32xbf16>, vector<32x32xbf16>, vector<2x32xf32> -> vector<2x32xf32>
    %234 = arith.addf %231, %233 : vector<2x32xf32>
    %235 = vector.broadcast %21 : vector<1x32xf32> to vector<2x32xf32>
    %236 = arith.addf %234, %235 : vector<2x32xf32>
    %237 = math.tanh %236 : vector<2x32xf32>
    %238 = vector.broadcast %c1_i32 : i32 to vector<2x8xi32>
    %239 = arith.cmpi eq, %26, %238 : vector<2x8xi32>
    %240 = vector.shape_cast %212 : vector<2xi32> to vector<2x1xi32>
    %241 = vector.shape_cast %240 : vector<2x1xi32> to vector<2x1xi32>
    %242 = vector.broadcast %241 : vector<2x1xi32> to vector<2x8xi32>
    %243 = arith.select %239, %242, %136 : vector<2x8xi1>, vector<2x8xi32>
    %244 = vector.shape_cast %190 : vector<2x8xf32> to vector<2x1x8xf32>
    %c0_78 = arith.constant 0 : index
    %245 = arith.index_cast %c1_i32 : i32 to index
    %c0_79 = arith.constant 0 : index
    %246 = vector.load %arg18[%c0_78, %245, %c0_79] : memref<2x8x8xf32, #tpu.memory_space<vmem>>, vector<2x1x8xf32>
    tpu.vector_store %arg18[%c0_78, %245, %c0_79], %244 {strides = array<i32>} : memref<2x8x8xf32, #tpu.memory_space<vmem>>, vector<2x1x8xf32>,
    %c2_i32 = arith.constant 2 : i32
    %247 = arith.truncf %229 : vector<2x32xf32> to vector<2x32xbf16>
    %248 = arith.truncf %237 : vector<2x32xf32> to vector<2x32xbf16>
    %cst_80 = arith.constant dense<0.000000e+00> : vector<2x128xf32>
    %249 = tpu.matmul %247, %13, %cst_80 {dimension_numbers = #tpu.dot_dimension_numbers<[1], [0], [0], [1], [0, 0, 1, 1], [], []>} : vector<2x32xbf16>, vector<32x128xbf16>, vector<2x128xf32> -> vector<2x128xf32>
    %cst_81 = arith.constant dense<0.000000e+00> : vector<2x128xf32>
    %250 = tpu.matmul %248, %14, %cst_81 {dimension_numbers = #tpu.dot_dimension_numbers<[1], [0], [0], [1], [0, 0, 1, 1], [], []>} : vector<2x32xbf16>, vector<32x128xbf16>, vector<2x128xf32> -> vector<2x128xf32>
    %251 = arith.addf %249, %250 : vector<2x128xf32>
    %252 = vector.broadcast %15 : vector<1x128xf32> to vector<2x128xf32>
    %253 = arith.addf %251, %252 : vector<2x128xf32>
    %254 = tpu.iota {dimensions = array<i32: 1>} : vector<2x128xi32>
    %c64_i32_82 = arith.constant 64 : i32
    %255 = vector.broadcast %c64_i32_82 : i32 to vector<2x128xi32>
    %256 = arith.cmpi sge, %254, %255 : vector<2x128xi32>
    %c96_i32_83 = arith.constant 96 : i32
    %257 = vector.broadcast %c96_i32_83 : i32 to vector<2x128xi32>
    %258 = arith.cmpi slt, %254, %257 : vector<2x128xi32>
    %259 = arith.andi %256, %258 : vector<2x128xi1>
    %cst_84 = arith.constant 2.000000e+00 : f32
    %260 = vector.broadcast %cst_84 : f32 to vector<2x128xf32>
    %261 = arith.mulf %260, %253 : vector<2x128xf32>
    %262 = arith.select %259, %261, %253 : vector<2x128xi1>, vector<2x128xf32>
    %263 = arith.negf %262 : vector<2x128xf32>
    %264 = math.exp %263 : vector<2x128xf32>
    %cst_85 = arith.constant 1.000000e+00 : f32
    %265 = vector.broadcast %cst_85 : f32 to vector<2x128xf32>
    %266 = arith.addf %265, %264 : vector<2x128xf32>
    %267 = arith.divf %265, %266 : vector<2x128xf32>
    %cst_86 = arith.constant 2.000000e+00 : f32
    %268 = vector.broadcast %cst_86 : f32 to vector<2x128xf32>
    %269 = arith.mulf %268, %267 : vector<2x128xf32>
    %cst_87 = arith.constant 1.000000e+00 : f32
    %270 = vector.broadcast %cst_87 : f32 to vector<2x128xf32>
    %271 = arith.subf %269, %270 : vector<2x128xf32>
    %272 = arith.select %259, %271, %267 : vector<2x128xi1>, vector<2x128xf32>
    %273 = vector.extract_strided_slice %272 {offsets = [0, 0], sizes = [2, 32], strides = [1, 1]} : vector<2x128xf32> to vector<2x32xf32>
    %274 = vector.extract_strided_slice %272 {offsets = [0, 32], sizes = [2, 32], strides = [1, 1]} : vector<2x128xf32> to vector<2x32xf32>
    %275 = vector.extract_strided_slice %272 {offsets = [0, 64], sizes = [2, 32], strides = [1, 1]} : vector<2x128xf32> to vector<2x32xf32>
    %276 = vector.extract_strided_slice %272 {offsets = [0, 96], sizes = [2, 32], strides = [1, 1]} : vector<2x128xf32> to vector<2x32xf32>
    %277 = arith.mulf %274, %172 : vector<2x32xf32>
    %278 = arith.mulf %273, %275 : vector<2x32xf32>
    %279 = arith.addf %277, %278 : vector<2x32xf32>
    %280 = math.tanh %279 : vector<2x32xf32>
    %281 = arith.mulf %276, %280 : vector<2x32xf32>
    %282 = arith.truncf %281 : vector<2x32xf32> to vector<2x32xbf16>
    %cst_88 = arith.constant dense<0.000000e+00> : vector<2x32xf32>
    %283 = tpu.matmul %282, %16, %cst_88 {dimension_numbers = #tpu.dot_dimension_numbers<[1], [0], [0], [1], [0, 0, 1, 1], [], []>} : vector<2x32xbf16>, vector<32x32xbf16>, vector<2x32xf32> -> vector<2x32xf32>
    %284 = vector.broadcast %17 : vector<1x32xf32> to vector<2x32xf32>
    %285 = arith.addf %283, %284 : vector<2x32xf32>
    %286 = vector.shape_cast %285 : vector<2x32xf32> to vector<2x1x32xf32>
    %287 = vector.broadcast %286 : vector<2x1x32xf32> to vector<2x8x32xf32>
    %288 = arith.addf %287, %11 : vector<2x8x32xf32>
    %289 = math.tanh %288 : vector<2x8x32xf32>
    %290 = vector.shape_cast %18 : vector<1x32xf32> to vector<1x1x32xf32>
    %291 = vector.broadcast %290 : vector<1x1x32xf32> to vector<2x8x32xf32>
    %292 = arith.mulf %289, %291 : vector<2x8x32xf32>
    %cst_89 = arith.constant dense<0.000000e+00> : vector<2x8xf32>
    %293 = vector.multi_reduction <add>, %292, %cst_89 [2] : vector<2x8x32xf32> to vector<2x8xf32>
    %cst_90 = arith.constant 0.000000e+00 : f32
    %294 = vector.broadcast %cst_90 : f32 to vector<2x8xf32>
    %295 = arith.cmpf oeq, %220, %294 : vector<2x8xf32>
    %cst_91 = arith.constant -1.000000e+09 : f32
    %296 = vector.broadcast %cst_91 : f32 to vector<2x8xf32>
    %297 = arith.select %295, %296, %293 : vector<2x8xi1>, vector<2x8xf32>
    %cst_92 = arith.constant dense<0xFF800000> : vector<2xf32>
    %298 = vector.multi_reduction <maximumf>, %297, %cst_92 [1] : vector<2x8xf32> to vector<2xf32>
    %299 = vector.shape_cast %298 : vector<2xf32> to vector<2x1xf32>
    %300 = vector.broadcast %299 : vector<2x1xf32> to vector<2x8xf32>
    %301 = arith.subf %297, %300 : vector<2x8xf32>
    %302 = math.exp %301 : vector<2x8xf32>
    %cst_93 = arith.constant dense<0.000000e+00> : vector<2xf32>
    %303 = vector.multi_reduction <add>, %302, %cst_93 [1] : vector<2x8xf32> to vector<2xf32>
    %304 = vector.shape_cast %303 : vector<2xf32> to vector<2x1xf32>
    %305 = vector.broadcast %304 : vector<2x1xf32> to vector<2x8xf32>
    %306 = arith.divf %302, %305 : vector<2x8xf32>
    %307 = arith.mulf %306, %220 : vector<2x8xf32>
    %cst_94 = arith.constant dense<0xFF800000> : vector<2xf32>
    %308 = vector.multi_reduction <maximumf>, %307, %cst_94 [1] : vector<2x8xf32> to vector<2xf32>
    %309 = vector.shape_cast %308 : vector<2xf32> to vector<2x1xf32>
    %310 = vector.broadcast %309 : vector<2x1xf32> to vector<2x8xf32>
    %311 = arith.cmpf oeq, %307, %310 : vector<2x8xf32>
    %c8_i32_95 = arith.constant 8 : i32
    %312 = vector.broadcast %c8_i32_95 : i32 to vector<2x8xi32>
    %313 = arith.select %311, %26, %312 : vector<2x8xi1>, vector<2x8xi32>
    %cst_96 = arith.constant dense<2147483647> : vector<2xi32>
    %314 = vector.multi_reduction <minsi>, %313, %cst_96 [1] : vector<2x8xi32> to vector<2xi32>
    %315 = vector.shape_cast %25 : vector<2x1xi32> to vector<2xi32>
    %316 = vector.broadcast %c2_i32 : i32 to vector<2xi32>
    %317 = arith.cmpi sgt, %315, %316 : vector<2xi32>
    %318 = vector.broadcast %c2_i32 : i32 to vector<2xi32>
    %319 = arith.select %317, %314, %318 : vector<2xi1>, vector<2xi32>
    %320 = vector.shape_cast %319 : vector<2xi32> to vector<2x1xi32>
    %321 = vector.broadcast %320 : vector<2x1xi32> to vector<2x8xi32>
    %322 = arith.cmpi eq, %26, %321 : vector<2x8xi32>
    %323 = arith.extui %322 : vector<2x8xi1> to vector<2x8xi32>
    %324 = arith.sitofp %323 : vector<2x8xi32> to vector<2x8xf32>
    %cst_97 = arith.constant 1.000000e+00 : f32
    %325 = vector.broadcast %cst_97 : f32 to vector<2x8xf32>
    %326 = arith.subf %325, %324 : vector<2x8xf32>
    %327 = arith.mulf %220, %326 : vector<2x8xf32>
    %328 = vector.shape_cast %306 : vector<2x8xf32> to vector<2x1x8xf32>
    %329 = vector.shape_cast %324 : vector<2x8xf32> to vector<2x1x8xf32>
    %330 = tpu.concatenate %328, %329 in 1 : vector<2x1x8xf32>, vector<2x1x8xf32> -> vector<2x2x8xf32>
    %331 = arith.truncf %330 : vector<2x2x8xf32> to vector<2x2x8xbf16>
    "tpu.trace_start"() <{level = 10 : i32, message = "bqt,btd->bqd"}> : () -> ()
    %cst_98 = arith.constant dense<0.000000e+00> : vector<2x2x64xf32>
    %332 = tpu.matmul %331, %12, %cst_98 {dimension_numbers = #tpu.dot_dimension_numbers<[2], [1], [1], [2], [0, 0, 0, 1, 1, 2], [0], [0]>} : vector<2x2x8xbf16>, vector<2x8x64xbf16>, vector<2x2x64xf32> -> vector<2x2x64xf32>
    "tpu.trace_stop"() : () -> ()
    %333 = vector.extract_strided_slice %332 {offsets = [0, 0, 0], sizes = [2, 1, 32], strides = [1, 1, 1]} : vector<2x2x64xf32> to vector<2x1x32xf32>
    %334 = vector.shape_cast %333 : vector<2x1x32xf32> to vector<2x32xf32>
    %335 = vector.extract_strided_slice %332 {offsets = [0, 1, 32], sizes = [2, 1, 32], strides = [1, 1, 1]} : vector<2x2x64xf32> to vector<2x1x32xf32>
    %336 = vector.shape_cast %335 : vector<2x1x32xf32> to vector<2x32xf32>
    %337 = arith.truncf %334 : vector<2x32xf32> to vector<2x32xbf16>
    %cst_99 = arith.constant dense<0.000000e+00> : vector<2x32xf32>
    %338 = tpu.matmul %337, %19, %cst_99 {dimension_numbers = #tpu.dot_dimension_numbers<[1], [0], [0], [1], [0, 0, 1, 1], [], []>} : vector<2x32xbf16>, vector<32x32xbf16>, vector<2x32xf32> -> vector<2x32xf32>
    %339 = arith.truncf %281 : vector<2x32xf32> to vector<2x32xbf16>
    %cst_100 = arith.constant dense<0.000000e+00> : vector<2x32xf32>
    %340 = tpu.matmul %339, %20, %cst_100 {dimension_numbers = #tpu.dot_dimension_numbers<[1], [0], [0], [1], [0, 0, 1, 1], [], []>} : vector<2x32xbf16>, vector<32x32xbf16>, vector<2x32xf32> -> vector<2x32xf32>
    %341 = arith.addf %338, %340 : vector<2x32xf32>
    %342 = vector.broadcast %21 : vector<1x32xf32> to vector<2x32xf32>
    %343 = arith.addf %341, %342 : vector<2x32xf32>
    %344 = math.tanh %343 : vector<2x32xf32>
    %345 = vector.broadcast %c2_i32 : i32 to vector<2x8xi32>
    %346 = arith.cmpi eq, %26, %345 : vector<2x8xi32>
    %347 = vector.shape_cast %319 : vector<2xi32> to vector<2x1xi32>
    %348 = vector.shape_cast %347 : vector<2x1xi32> to vector<2x1xi32>
    %349 = vector.broadcast %348 : vector<2x1xi32> to vector<2x8xi32>
    %350 = arith.select %346, %349, %243 : vector<2x8xi1>, vector<2x8xi32>
    %351 = vector.shape_cast %297 : vector<2x8xf32> to vector<2x1x8xf32>
    %c0_101 = arith.constant 0 : index
    %352 = arith.index_cast %c2_i32 : i32 to index
    %c0_102 = arith.constant 0 : index
    %353 = vector.load %arg18[%c0_101, %352, %c0_102] : memref<2x8x8xf32, #tpu.memory_space<vmem>>, vector<2x1x8xf32>
    tpu.vector_store %arg18[%c0_101, %352, %c0_102], %351 {strides = array<i32>} : memref<2x8x8xf32, #tpu.memory_space<vmem>>, vector<2x1x8xf32>,
    %c3_i32 = arith.constant 3 : i32
    %354 = arith.truncf %336 : vector<2x32xf32> to vector<2x32xbf16>
    %355 = arith.truncf %344 : vector<2x32xf32> to vector<2x32xbf16>
    %cst_103 = arith.constant dense<0.000000e+00> : vector<2x128xf32>
    %356 = tpu.matmul %354, %13, %cst_103 {dimension_numbers = #tpu.dot_dimension_numbers<[1], [0], [0], [1], [0, 0, 1, 1], [], []>} : vector<2x32xbf16>, vector<32x128xbf16>, vector<2x128xf32> -> vector<2x128xf32>
    %cst_104 = arith.constant dense<0.000000e+00> : vector<2x128xf32>
    %357 = tpu.matmul %355, %14, %cst_104 {dimension_numbers = #tpu.dot_dimension_numbers<[1], [0], [0], [1], [0, 0, 1, 1], [], []>} : vector<2x32xbf16>, vector<32x128xbf16>, vector<2x128xf32> -> vector<2x128xf32>
    %358 = arith.addf %356, %357 : vector<2x128xf32>
    %359 = vector.broadcast %15 : vector<1x128xf32> to vector<2x128xf32>
    %360 = arith.addf %358, %359 : vector<2x128xf32>
    %361 = tpu.iota {dimensions = array<i32: 1>} : vector<2x128xi32>
    %c64_i32_105 = arith.constant 64 : i32
    %362 = vector.broadcast %c64_i32_105 : i32 to vector<2x128xi32>
    %363 = arith.cmpi sge, %361, %362 : vector<2x128xi32>
    %c96_i32_106 = arith.constant 96 : i32
    %364 = vector.broadcast %c96_i32_106 : i32 to vector<2x128xi32>
    %365 = arith.cmpi slt, %361, %364 : vector<2x128xi32>
    %366 = arith.andi %363, %365 : vector<2x128xi1>
    %cst_107 = arith.constant 2.000000e+00 : f32
    %367 = vector.broadcast %cst_107 : f32 to vector<2x128xf32>
    %368 = arith.mulf %367, %360 : vector<2x128xf32>
    %369 = arith.select %366, %368, %360 : vector<2x128xi1>, vector<2x128xf32>
    %370 = arith.negf %369 : vector<2x128xf32>
    %371 = math.exp %370 : vector<2x128xf32>
    %cst_108 = arith.constant 1.000000e+00 : f32
    %372 = vector.broadcast %cst_108 : f32 to vector<2x128xf32>
    %373 = arith.addf %372, %371 : vector<2x128xf32>
    %374 = arith.divf %372, %373 : vector<2x128xf32>
    %cst_109 = arith.constant 2.000000e+00 : f32
    %375 = vector.broadcast %cst_109 : f32 to vector<2x128xf32>
    %376 = arith.mulf %375, %374 : vector<2x128xf32>
    %cst_110 = arith.constant 1.000000e+00 : f32
    %377 = vector.broadcast %cst_110 : f32 to vector<2x128xf32>
    %378 = arith.subf %376, %377 : vector<2x128xf32>
    %379 = arith.select %366, %378, %374 : vector<2x128xi1>, vector<2x128xf32>
    %380 = vector.extract_strided_slice %379 {offsets = [0, 0], sizes = [2, 32], strides = [1, 1]} : vector<2x128xf32> to vector<2x32xf32>
    %381 = vector.extract_strided_slice %379 {offsets = [0, 32], sizes = [2, 32], strides = [1, 1]} : vector<2x128xf32> to vector<2x32xf32>
    %382 = vector.extract_strided_slice %379 {offsets = [0, 64], sizes = [2, 32], strides = [1, 1]} : vector<2x128xf32> to vector<2x32xf32>
    %383 = vector.extract_strided_slice %379 {offsets = [0, 96], sizes = [2, 32], strides = [1, 1]} : vector<2x128xf32> to vector<2x32xf32>
    %384 = arith.mulf %381, %279 : vector<2x32xf32>
    %385 = arith.mulf %380, %382 : vector<2x32xf32>
    %386 = arith.addf %384, %385 : vector<2x32xf32>
    %387 = math.tanh %386 : vector<2x32xf32>
    %388 = arith.mulf %383, %387 : vector<2x32xf32>
    %389 = arith.truncf %388 : vector<2x32xf32> to vector<2x32xbf16>
    %cst_111 = arith.constant dense<0.000000e+00> : vector<2x32xf32>
    %390 = tpu.matmul %389, %16, %cst_111 {dimension_numbers = #tpu.dot_dimension_numbers<[1], [0], [0], [1], [0, 0, 1, 1], [], []>} : vector<2x32xbf16>, vector<32x32xbf16>, vector<2x32xf32> -> vector<2x32xf32>
    %391 = vector.broadcast %17 : vector<1x32xf32> to vector<2x32xf32>
    %392 = arith.addf %390, %391 : vector<2x32xf32>
    %393 = vector.shape_cast %392 : vector<2x32xf32> to vector<2x1x32xf32>
    %394 = vector.broadcast %393 : vector<2x1x32xf32> to vector<2x8x32xf32>
    %395 = arith.addf %394, %11 : vector<2x8x32xf32>
    %396 = math.tanh %395 : vector<2x8x32xf32>
    %397 = vector.shape_cast %18 : vector<1x32xf32> to vector<1x1x32xf32>
    %398 = vector.broadcast %397 : vector<1x1x32xf32> to vector<2x8x32xf32>
    %399 = arith.mulf %396, %398 : vector<2x8x32xf32>
    %cst_112 = arith.constant dense<0.000000e+00> : vector<2x8xf32>
    %400 = vector.multi_reduction <add>, %399, %cst_112 [2] : vector<2x8x32xf32> to vector<2x8xf32>
    %cst_113 = arith.constant 0.000000e+00 : f32
    %401 = vector.broadcast %cst_113 : f32 to vector<2x8xf32>
    %402 = arith.cmpf oeq, %327, %401 : vector<2x8xf32>
    %cst_114 = arith.constant -1.000000e+09 : f32
    %403 = vector.broadcast %cst_114 : f32 to vector<2x8xf32>
    %404 = arith.select %402, %403, %400 : vector<2x8xi1>, vector<2x8xf32>
    %cst_115 = arith.constant dense<0xFF800000> : vector<2xf32>
    %405 = vector.multi_reduction <maximumf>, %404, %cst_115 [1] : vector<2x8xf32> to vector<2xf32>
    %406 = vector.shape_cast %405 : vector<2xf32> to vector<2x1xf32>
    %407 = vector.broadcast %406 : vector<2x1xf32> to vector<2x8xf32>
    %408 = arith.subf %404, %407 : vector<2x8xf32>
    %409 = math.exp %408 : vector<2x8xf32>
    %cst_116 = arith.constant dense<0.000000e+00> : vector<2xf32>
    %410 = vector.multi_reduction <add>, %409, %cst_116 [1] : vector<2x8xf32> to vector<2xf32>
    %411 = vector.shape_cast %410 : vector<2xf32> to vector<2x1xf32>
    %412 = vector.broadcast %411 : vector<2x1xf32> to vector<2x8xf32>
    %413 = arith.divf %409, %412 : vector<2x8xf32>
    %414 = arith.mulf %413, %327 : vector<2x8xf32>
    %cst_117 = arith.constant dense<0xFF800000> : vector<2xf32>
    %415 = vector.multi_reduction <maximumf>, %414, %cst_117 [1] : vector<2x8xf32> to vector<2xf32>
    %416 = vector.shape_cast %415 : vector<2xf32> to vector<2x1xf32>
    %417 = vector.broadcast %416 : vector<2x1xf32> to vector<2x8xf32>
    %418 = arith.cmpf oeq, %414, %417 : vector<2x8xf32>
    %c8_i32_118 = arith.constant 8 : i32
    %419 = vector.broadcast %c8_i32_118 : i32 to vector<2x8xi32>
    %420 = arith.select %418, %26, %419 : vector<2x8xi1>, vector<2x8xi32>
    %cst_119 = arith.constant dense<2147483647> : vector<2xi32>
    %421 = vector.multi_reduction <minsi>, %420, %cst_119 [1] : vector<2x8xi32> to vector<2xi32>
    %422 = vector.shape_cast %25 : vector<2x1xi32> to vector<2xi32>
    %423 = vector.broadcast %c3_i32 : i32 to vector<2xi32>
    %424 = arith.cmpi sgt, %422, %423 : vector<2xi32>
    %425 = vector.broadcast %c3_i32 : i32 to vector<2xi32>
    %426 = arith.select %424, %421, %425 : vector<2xi1>, vector<2xi32>
    %427 = vector.shape_cast %426 : vector<2xi32> to vector<2x1xi32>
    %428 = vector.broadcast %427 : vector<2x1xi32> to vector<2x8xi32>
    %429 = arith.cmpi eq, %26, %428 : vector<2x8xi32>
    %430 = arith.extui %429 : vector<2x8xi1> to vector<2x8xi32>
    %431 = arith.sitofp %430 : vector<2x8xi32> to vector<2x8xf32>
    %cst_120 = arith.constant 1.000000e+00 : f32
    %432 = vector.broadcast %cst_120 : f32 to vector<2x8xf32>
    %433 = arith.subf %432, %431 : vector<2x8xf32>
    %434 = arith.mulf %327, %433 : vector<2x8xf32>
    %435 = vector.shape_cast %413 : vector<2x8xf32> to vector<2x1x8xf32>
    %436 = vector.shape_cast %431 : vector<2x8xf32> to vector<2x1x8xf32>
    %437 = tpu.concatenate %435, %436 in 1 : vector<2x1x8xf32>, vector<2x1x8xf32> -> vector<2x2x8xf32>
    %438 = arith.truncf %437 : vector<2x2x8xf32> to vector<2x2x8xbf16>
    "tpu.trace_start"() <{level = 10 : i32, message = "bqt,btd->bqd"}> : () -> ()
    %cst_121 = arith.constant dense<0.000000e+00> : vector<2x2x64xf32>
    %439 = tpu.matmul %438, %12, %cst_121 {dimension_numbers = #tpu.dot_dimension_numbers<[2], [1], [1], [2], [0, 0, 0, 1, 1, 2], [0], [0]>} : vector<2x2x8xbf16>, vector<2x8x64xbf16>, vector<2x2x64xf32> -> vector<2x2x64xf32>
    "tpu.trace_stop"() : () -> ()
    %440 = vector.extract_strided_slice %439 {offsets = [0, 0, 0], sizes = [2, 1, 32], strides = [1, 1, 1]} : vector<2x2x64xf32> to vector<2x1x32xf32>
    %441 = vector.shape_cast %440 : vector<2x1x32xf32> to vector<2x32xf32>
    %442 = vector.extract_strided_slice %439 {offsets = [0, 1, 32], sizes = [2, 1, 32], strides = [1, 1, 1]} : vector<2x2x64xf32> to vector<2x1x32xf32>
    %443 = vector.shape_cast %442 : vector<2x1x32xf32> to vector<2x32xf32>
    %444 = arith.truncf %441 : vector<2x32xf32> to vector<2x32xbf16>
    %cst_122 = arith.constant dense<0.000000e+00> : vector<2x32xf32>
    %445 = tpu.matmul %444, %19, %cst_122 {dimension_numbers = #tpu.dot_dimension_numbers<[1], [0], [0], [1], [0, 0, 1, 1], [], []>} : vector<2x32xbf16>, vector<32x32xbf16>, vector<2x32xf32> -> vector<2x32xf32>
    %446 = arith.truncf %388 : vector<2x32xf32> to vector<2x32xbf16>
    %cst_123 = arith.constant dense<0.000000e+00> : vector<2x32xf32>
    %447 = tpu.matmul %446, %20, %cst_123 {dimension_numbers = #tpu.dot_dimension_numbers<[1], [0], [0], [1], [0, 0, 1, 1], [], []>} : vector<2x32xbf16>, vector<32x32xbf16>, vector<2x32xf32> -> vector<2x32xf32>
    %448 = arith.addf %445, %447 : vector<2x32xf32>
    %449 = vector.broadcast %21 : vector<1x32xf32> to vector<2x32xf32>
    %450 = arith.addf %448, %449 : vector<2x32xf32>
    %451 = math.tanh %450 : vector<2x32xf32>
    %452 = vector.broadcast %c3_i32 : i32 to vector<2x8xi32>
    %453 = arith.cmpi eq, %26, %452 : vector<2x8xi32>
    %454 = vector.shape_cast %426 : vector<2xi32> to vector<2x1xi32>
    %455 = vector.shape_cast %454 : vector<2x1xi32> to vector<2x1xi32>
    %456 = vector.broadcast %455 : vector<2x1xi32> to vector<2x8xi32>
    %457 = arith.select %453, %456, %350 : vector<2x8xi1>, vector<2x8xi32>
    %458 = vector.shape_cast %404 : vector<2x8xf32> to vector<2x1x8xf32>
    %c0_124 = arith.constant 0 : index
    %459 = arith.index_cast %c3_i32 : i32 to index
    %c0_125 = arith.constant 0 : index
    %460 = vector.load %arg18[%c0_124, %459, %c0_125] : memref<2x8x8xf32, #tpu.memory_space<vmem>>, vector<2x1x8xf32>
    tpu.vector_store %arg18[%c0_124, %459, %c0_125], %458 {strides = array<i32>} : memref<2x8x8xf32, #tpu.memory_space<vmem>>, vector<2x1x8xf32>,
    %c4_i32 = arith.constant 4 : i32
    %461 = arith.truncf %443 : vector<2x32xf32> to vector<2x32xbf16>
    %462 = arith.truncf %451 : vector<2x32xf32> to vector<2x32xbf16>
    %cst_126 = arith.constant dense<0.000000e+00> : vector<2x128xf32>
    %463 = tpu.matmul %461, %13, %cst_126 {dimension_numbers = #tpu.dot_dimension_numbers<[1], [0], [0], [1], [0, 0, 1, 1], [], []>} : vector<2x32xbf16>, vector<32x128xbf16>, vector<2x128xf32> -> vector<2x128xf32>
    %cst_127 = arith.constant dense<0.000000e+00> : vector<2x128xf32>
    %464 = tpu.matmul %462, %14, %cst_127 {dimension_numbers = #tpu.dot_dimension_numbers<[1], [0], [0], [1], [0, 0, 1, 1], [], []>} : vector<2x32xbf16>, vector<32x128xbf16>, vector<2x128xf32> -> vector<2x128xf32>
    %465 = arith.addf %463, %464 : vector<2x128xf32>
    %466 = vector.broadcast %15 : vector<1x128xf32> to vector<2x128xf32>
    %467 = arith.addf %465, %466 : vector<2x128xf32>
    %468 = tpu.iota {dimensions = array<i32: 1>} : vector<2x128xi32>
    %c64_i32_128 = arith.constant 64 : i32
    %469 = vector.broadcast %c64_i32_128 : i32 to vector<2x128xi32>
    %470 = arith.cmpi sge, %468, %469 : vector<2x128xi32>
    %c96_i32_129 = arith.constant 96 : i32
    %471 = vector.broadcast %c96_i32_129 : i32 to vector<2x128xi32>
    %472 = arith.cmpi slt, %468, %471 : vector<2x128xi32>
    %473 = arith.andi %470, %472 : vector<2x128xi1>
    %cst_130 = arith.constant 2.000000e+00 : f32
    %474 = vector.broadcast %cst_130 : f32 to vector<2x128xf32>
    %475 = arith.mulf %474, %467 : vector<2x128xf32>
    %476 = arith.select %473, %475, %467 : vector<2x128xi1>, vector<2x128xf32>
    %477 = arith.negf %476 : vector<2x128xf32>
    %478 = math.exp %477 : vector<2x128xf32>
    %cst_131 = arith.constant 1.000000e+00 : f32
    %479 = vector.broadcast %cst_131 : f32 to vector<2x128xf32>
    %480 = arith.addf %479, %478 : vector<2x128xf32>
    %481 = arith.divf %479, %480 : vector<2x128xf32>
    %cst_132 = arith.constant 2.000000e+00 : f32
    %482 = vector.broadcast %cst_132 : f32 to vector<2x128xf32>
    %483 = arith.mulf %482, %481 : vector<2x128xf32>
    %cst_133 = arith.constant 1.000000e+00 : f32
    %484 = vector.broadcast %cst_133 : f32 to vector<2x128xf32>
    %485 = arith.subf %483, %484 : vector<2x128xf32>
    %486 = arith.select %473, %485, %481 : vector<2x128xi1>, vector<2x128xf32>
    %487 = vector.extract_strided_slice %486 {offsets = [0, 0], sizes = [2, 32], strides = [1, 1]} : vector<2x128xf32> to vector<2x32xf32>
    %488 = vector.extract_strided_slice %486 {offsets = [0, 32], sizes = [2, 32], strides = [1, 1]} : vector<2x128xf32> to vector<2x32xf32>
    %489 = vector.extract_strided_slice %486 {offsets = [0, 64], sizes = [2, 32], strides = [1, 1]} : vector<2x128xf32> to vector<2x32xf32>
    %490 = vector.extract_strided_slice %486 {offsets = [0, 96], sizes = [2, 32], strides = [1, 1]} : vector<2x128xf32> to vector<2x32xf32>
    %491 = arith.mulf %488, %386 : vector<2x32xf32>
    %492 = arith.mulf %487, %489 : vector<2x32xf32>
    %493 = arith.addf %491, %492 : vector<2x32xf32>
    %494 = math.tanh %493 : vector<2x32xf32>
    %495 = arith.mulf %490, %494 : vector<2x32xf32>
    %496 = arith.truncf %495 : vector<2x32xf32> to vector<2x32xbf16>
    %cst_134 = arith.constant dense<0.000000e+00> : vector<2x32xf32>
    %497 = tpu.matmul %496, %16, %cst_134 {dimension_numbers = #tpu.dot_dimension_numbers<[1], [0], [0], [1], [0, 0, 1, 1], [], []>} : vector<2x32xbf16>, vector<32x32xbf16>, vector<2x32xf32> -> vector<2x32xf32>
    %498 = vector.broadcast %17 : vector<1x32xf32> to vector<2x32xf32>
    %499 = arith.addf %497, %498 : vector<2x32xf32>
    %500 = vector.shape_cast %499 : vector<2x32xf32> to vector<2x1x32xf32>
    %501 = vector.broadcast %500 : vector<2x1x32xf32> to vector<2x8x32xf32>
    %502 = arith.addf %501, %11 : vector<2x8x32xf32>
    %503 = math.tanh %502 : vector<2x8x32xf32>
    %504 = vector.shape_cast %18 : vector<1x32xf32> to vector<1x1x32xf32>
    %505 = vector.broadcast %504 : vector<1x1x32xf32> to vector<2x8x32xf32>
    %506 = arith.mulf %503, %505 : vector<2x8x32xf32>
    %cst_135 = arith.constant dense<0.000000e+00> : vector<2x8xf32>
    %507 = vector.multi_reduction <add>, %506, %cst_135 [2] : vector<2x8x32xf32> to vector<2x8xf32>
    %cst_136 = arith.constant 0.000000e+00 : f32
    %508 = vector.broadcast %cst_136 : f32 to vector<2x8xf32>
    %509 = arith.cmpf oeq, %434, %508 : vector<2x8xf32>
    %cst_137 = arith.constant -1.000000e+09 : f32
    %510 = vector.broadcast %cst_137 : f32 to vector<2x8xf32>
    %511 = arith.select %509, %510, %507 : vector<2x8xi1>, vector<2x8xf32>
    %cst_138 = arith.constant dense<0xFF800000> : vector<2xf32>
    %512 = vector.multi_reduction <maximumf>, %511, %cst_138 [1] : vector<2x8xf32> to vector<2xf32>
    %513 = vector.shape_cast %512 : vector<2xf32> to vector<2x1xf32>
    %514 = vector.broadcast %513 : vector<2x1xf32> to vector<2x8xf32>
    %515 = arith.subf %511, %514 : vector<2x8xf32>
    %516 = math.exp %515 : vector<2x8xf32>
    %cst_139 = arith.constant dense<0.000000e+00> : vector<2xf32>
    %517 = vector.multi_reduction <add>, %516, %cst_139 [1] : vector<2x8xf32> to vector<2xf32>
    %518 = vector.shape_cast %517 : vector<2xf32> to vector<2x1xf32>
    %519 = vector.broadcast %518 : vector<2x1xf32> to vector<2x8xf32>
    %520 = arith.divf %516, %519 : vector<2x8xf32>
    %521 = arith.mulf %520, %434 : vector<2x8xf32>
    %cst_140 = arith.constant dense<0xFF800000> : vector<2xf32>
    %522 = vector.multi_reduction <maximumf>, %521, %cst_140 [1] : vector<2x8xf32> to vector<2xf32>
    %523 = vector.shape_cast %522 : vector<2xf32> to vector<2x1xf32>
    %524 = vector.broadcast %523 : vector<2x1xf32> to vector<2x8xf32>
    %525 = arith.cmpf oeq, %521, %524 : vector<2x8xf32>
    %c8_i32_141 = arith.constant 8 : i32
    %526 = vector.broadcast %c8_i32_141 : i32 to vector<2x8xi32>
    %527 = arith.select %525, %26, %526 : vector<2x8xi1>, vector<2x8xi32>
    %cst_142 = arith.constant dense<2147483647> : vector<2xi32>
    %528 = vector.multi_reduction <minsi>, %527, %cst_142 [1] : vector<2x8xi32> to vector<2xi32>
    %529 = vector.shape_cast %25 : vector<2x1xi32> to vector<2xi32>
    %530 = vector.broadcast %c4_i32 : i32 to vector<2xi32>
    %531 = arith.cmpi sgt, %529, %530 : vector<2xi32>
    %532 = vector.broadcast %c4_i32 : i32 to vector<2xi32>
    %533 = arith.select %531, %528, %532 : vector<2xi1>, vector<2xi32>
    %534 = vector.shape_cast %533 : vector<2xi32> to vector<2x1xi32>
    %535 = vector.broadcast %534 : vector<2x1xi32> to vector<2x8xi32>
    %536 = arith.cmpi eq, %26, %535 : vector<2x8xi32>
    %537 = arith.extui %536 : vector<2x8xi1> to vector<2x8xi32>
    %538 = arith.sitofp %537 : vector<2x8xi32> to vector<2x8xf32>
    %cst_143 = arith.constant 1.000000e+00 : f32
    %539 = vector.broadcast %cst_143 : f32 to vector<2x8xf32>
    %540 = arith.subf %539, %538 : vector<2x8xf32>
    %541 = arith.mulf %434, %540 : vector<2x8xf32>
    %542 = vector.shape_cast %520 : vector<2x8xf32> to vector<2x1x8xf32>
    %543 = vector.shape_cast %538 : vector<2x8xf32> to vector<2x1x8xf32>
    %544 = tpu.concatenate %542, %543 in 1 : vector<2x1x8xf32>, vector<2x1x8xf32> -> vector<2x2x8xf32>
    %545 = arith.truncf %544 : vector<2x2x8xf32> to vector<2x2x8xbf16>
    "tpu.trace_start"() <{level = 10 : i32, message = "bqt,btd->bqd"}> : () -> ()
    %cst_144 = arith.constant dense<0.000000e+00> : vector<2x2x64xf32>
    %546 = tpu.matmul %545, %12, %cst_144 {dimension_numbers = #tpu.dot_dimension_numbers<[2], [1], [1], [2], [0, 0, 0, 1, 1, 2], [0], [0]>} : vector<2x2x8xbf16>, vector<2x8x64xbf16>, vector<2x2x64xf32> -> vector<2x2x64xf32>
    "tpu.trace_stop"() : () -> ()
    %547 = vector.extract_strided_slice %546 {offsets = [0, 0, 0], sizes = [2, 1, 32], strides = [1, 1, 1]} : vector<2x2x64xf32> to vector<2x1x32xf32>
    %548 = vector.shape_cast %547 : vector<2x1x32xf32> to vector<2x32xf32>
    %549 = vector.extract_strided_slice %546 {offsets = [0, 1, 32], sizes = [2, 1, 32], strides = [1, 1, 1]} : vector<2x2x64xf32> to vector<2x1x32xf32>
    %550 = vector.shape_cast %549 : vector<2x1x32xf32> to vector<2x32xf32>
    %551 = arith.truncf %548 : vector<2x32xf32> to vector<2x32xbf16>
    %cst_145 = arith.constant dense<0.000000e+00> : vector<2x32xf32>
    %552 = tpu.matmul %551, %19, %cst_145 {dimension_numbers = #tpu.dot_dimension_numbers<[1], [0], [0], [1], [0, 0, 1, 1], [], []>} : vector<2x32xbf16>, vector<32x32xbf16>, vector<2x32xf32> -> vector<2x32xf32>
    %553 = arith.truncf %495 : vector<2x32xf32> to vector<2x32xbf16>
    %cst_146 = arith.constant dense<0.000000e+00> : vector<2x32xf32>
    %554 = tpu.matmul %553, %20, %cst_146 {dimension_numbers = #tpu.dot_dimension_numbers<[1], [0], [0], [1], [0, 0, 1, 1], [], []>} : vector<2x32xbf16>, vector<32x32xbf16>, vector<2x32xf32> -> vector<2x32xf32>
    %555 = arith.addf %552, %554 : vector<2x32xf32>
    %556 = vector.broadcast %21 : vector<1x32xf32> to vector<2x32xf32>
    %557 = arith.addf %555, %556 : vector<2x32xf32>
    %558 = math.tanh %557 : vector<2x32xf32>
    %559 = vector.broadcast %c4_i32 : i32 to vector<2x8xi32>
    %560 = arith.cmpi eq, %26, %559 : vector<2x8xi32>
    %561 = vector.shape_cast %533 : vector<2xi32> to vector<2x1xi32>
    %562 = vector.shape_cast %561 : vector<2x1xi32> to vector<2x1xi32>
    %563 = vector.broadcast %562 : vector<2x1xi32> to vector<2x8xi32>
    %564 = arith.select %560, %563, %457 : vector<2x8xi1>, vector<2x8xi32>
    %565 = vector.shape_cast %511 : vector<2x8xf32> to vector<2x1x8xf32>
    %c0_147 = arith.constant 0 : index
    %566 = arith.index_cast %c4_i32 : i32 to index
    %c0_148 = arith.constant 0 : index
    %567 = vector.load %arg18[%c0_147, %566, %c0_148] : memref<2x8x8xf32, #tpu.memory_space<vmem>>, vector<2x1x8xf32>
    tpu.vector_store %arg18[%c0_147, %566, %c0_148], %565 {strides = array<i32>} : memref<2x8x8xf32, #tpu.memory_space<vmem>>, vector<2x1x8xf32>,
    %c5_i32 = arith.constant 5 : i32
    %568 = arith.truncf %550 : vector<2x32xf32> to vector<2x32xbf16>
    %569 = arith.truncf %558 : vector<2x32xf32> to vector<2x32xbf16>
    %cst_149 = arith.constant dense<0.000000e+00> : vector<2x128xf32>
    %570 = tpu.matmul %568, %13, %cst_149 {dimension_numbers = #tpu.dot_dimension_numbers<[1], [0], [0], [1], [0, 0, 1, 1], [], []>} : vector<2x32xbf16>, vector<32x128xbf16>, vector<2x128xf32> -> vector<2x128xf32>
    %cst_150 = arith.constant dense<0.000000e+00> : vector<2x128xf32>
    %571 = tpu.matmul %569, %14, %cst_150 {dimension_numbers = #tpu.dot_dimension_numbers<[1], [0], [0], [1], [0, 0, 1, 1], [], []>} : vector<2x32xbf16>, vector<32x128xbf16>, vector<2x128xf32> -> vector<2x128xf32>
    %572 = arith.addf %570, %571 : vector<2x128xf32>
    %573 = vector.broadcast %15 : vector<1x128xf32> to vector<2x128xf32>
    %574 = arith.addf %572, %573 : vector<2x128xf32>
    %575 = tpu.iota {dimensions = array<i32: 1>} : vector<2x128xi32>
    %c64_i32_151 = arith.constant 64 : i32
    %576 = vector.broadcast %c64_i32_151 : i32 to vector<2x128xi32>
    %577 = arith.cmpi sge, %575, %576 : vector<2x128xi32>
    %c96_i32_152 = arith.constant 96 : i32
    %578 = vector.broadcast %c96_i32_152 : i32 to vector<2x128xi32>
    %579 = arith.cmpi slt, %575, %578 : vector<2x128xi32>
    %580 = arith.andi %577, %579 : vector<2x128xi1>
    %cst_153 = arith.constant 2.000000e+00 : f32
    %581 = vector.broadcast %cst_153 : f32 to vector<2x128xf32>
    %582 = arith.mulf %581, %574 : vector<2x128xf32>
    %583 = arith.select %580, %582, %574 : vector<2x128xi1>, vector<2x128xf32>
    %584 = arith.negf %583 : vector<2x128xf32>
    %585 = math.exp %584 : vector<2x128xf32>
    %cst_154 = arith.constant 1.000000e+00 : f32
    %586 = vector.broadcast %cst_154 : f32 to vector<2x128xf32>
    %587 = arith.addf %586, %585 : vector<2x128xf32>
    %588 = arith.divf %586, %587 : vector<2x128xf32>
    %cst_155 = arith.constant 2.000000e+00 : f32
    %589 = vector.broadcast %cst_155 : f32 to vector<2x128xf32>
    %590 = arith.mulf %589, %588 : vector<2x128xf32>
    %cst_156 = arith.constant 1.000000e+00 : f32
    %591 = vector.broadcast %cst_156 : f32 to vector<2x128xf32>
    %592 = arith.subf %590, %591 : vector<2x128xf32>
    %593 = arith.select %580, %592, %588 : vector<2x128xi1>, vector<2x128xf32>
    %594 = vector.extract_strided_slice %593 {offsets = [0, 0], sizes = [2, 32], strides = [1, 1]} : vector<2x128xf32> to vector<2x32xf32>
    %595 = vector.extract_strided_slice %593 {offsets = [0, 32], sizes = [2, 32], strides = [1, 1]} : vector<2x128xf32> to vector<2x32xf32>
    %596 = vector.extract_strided_slice %593 {offsets = [0, 64], sizes = [2, 32], strides = [1, 1]} : vector<2x128xf32> to vector<2x32xf32>
    %597 = vector.extract_strided_slice %593 {offsets = [0, 96], sizes = [2, 32], strides = [1, 1]} : vector<2x128xf32> to vector<2x32xf32>
    %598 = arith.mulf %595, %493 : vector<2x32xf32>
    %599 = arith.mulf %594, %596 : vector<2x32xf32>
    %600 = arith.addf %598, %599 : vector<2x32xf32>
    %601 = math.tanh %600 : vector<2x32xf32>
    %602 = arith.mulf %597, %601 : vector<2x32xf32>
    %603 = arith.truncf %602 : vector<2x32xf32> to vector<2x32xbf16>
    %cst_157 = arith.constant dense<0.000000e+00> : vector<2x32xf32>
    %604 = tpu.matmul %603, %16, %cst_157 {dimension_numbers = #tpu.dot_dimension_numbers<[1], [0], [0], [1], [0, 0, 1, 1], [], []>} : vector<2x32xbf16>, vector<32x32xbf16>, vector<2x32xf32> -> vector<2x32xf32>
    %605 = vector.broadcast %17 : vector<1x32xf32> to vector<2x32xf32>
    %606 = arith.addf %604, %605 : vector<2x32xf32>
    %607 = vector.shape_cast %606 : vector<2x32xf32> to vector<2x1x32xf32>
    %608 = vector.broadcast %607 : vector<2x1x32xf32> to vector<2x8x32xf32>
    %609 = arith.addf %608, %11 : vector<2x8x32xf32>
    %610 = math.tanh %609 : vector<2x8x32xf32>
    %611 = vector.shape_cast %18 : vector<1x32xf32> to vector<1x1x32xf32>
    %612 = vector.broadcast %611 : vector<1x1x32xf32> to vector<2x8x32xf32>
    %613 = arith.mulf %610, %612 : vector<2x8x32xf32>
    %cst_158 = arith.constant dense<0.000000e+00> : vector<2x8xf32>
    %614 = vector.multi_reduction <add>, %613, %cst_158 [2] : vector<2x8x32xf32> to vector<2x8xf32>
    %cst_159 = arith.constant 0.000000e+00 : f32
    %615 = vector.broadcast %cst_159 : f32 to vector<2x8xf32>
    %616 = arith.cmpf oeq, %541, %615 : vector<2x8xf32>
    %cst_160 = arith.constant -1.000000e+09 : f32
    %617 = vector.broadcast %cst_160 : f32 to vector<2x8xf32>
    %618 = arith.select %616, %617, %614 : vector<2x8xi1>, vector<2x8xf32>
    %cst_161 = arith.constant dense<0xFF800000> : vector<2xf32>
    %619 = vector.multi_reduction <maximumf>, %618, %cst_161 [1] : vector<2x8xf32> to vector<2xf32>
    %620 = vector.shape_cast %619 : vector<2xf32> to vector<2x1xf32>
    %621 = vector.broadcast %620 : vector<2x1xf32> to vector<2x8xf32>
    %622 = arith.subf %618, %621 : vector<2x8xf32>
    %623 = math.exp %622 : vector<2x8xf32>
    %cst_162 = arith.constant dense<0.000000e+00> : vector<2xf32>
    %624 = vector.multi_reduction <add>, %623, %cst_162 [1] : vector<2x8xf32> to vector<2xf32>
    %625 = vector.shape_cast %624 : vector<2xf32> to vector<2x1xf32>
    %626 = vector.broadcast %625 : vector<2x1xf32> to vector<2x8xf32>
    %627 = arith.divf %623, %626 : vector<2x8xf32>
    %628 = arith.mulf %627, %541 : vector<2x8xf32>
    %cst_163 = arith.constant dense<0xFF800000> : vector<2xf32>
    %629 = vector.multi_reduction <maximumf>, %628, %cst_163 [1] : vector<2x8xf32> to vector<2xf32>
    %630 = vector.shape_cast %629 : vector<2xf32> to vector<2x1xf32>
    %631 = vector.broadcast %630 : vector<2x1xf32> to vector<2x8xf32>
    %632 = arith.cmpf oeq, %628, %631 : vector<2x8xf32>
    %c8_i32_164 = arith.constant 8 : i32
    %633 = vector.broadcast %c8_i32_164 : i32 to vector<2x8xi32>
    %634 = arith.select %632, %26, %633 : vector<2x8xi1>, vector<2x8xi32>
    %cst_165 = arith.constant dense<2147483647> : vector<2xi32>
    %635 = vector.multi_reduction <minsi>, %634, %cst_165 [1] : vector<2x8xi32> to vector<2xi32>
    %636 = vector.shape_cast %25 : vector<2x1xi32> to vector<2xi32>
    %637 = vector.broadcast %c5_i32 : i32 to vector<2xi32>
    %638 = arith.cmpi sgt, %636, %637 : vector<2xi32>
    %639 = vector.broadcast %c5_i32 : i32 to vector<2xi32>
    %640 = arith.select %638, %635, %639 : vector<2xi1>, vector<2xi32>
    %641 = vector.shape_cast %640 : vector<2xi32> to vector<2x1xi32>
    %642 = vector.broadcast %641 : vector<2x1xi32> to vector<2x8xi32>
    %643 = arith.cmpi eq, %26, %642 : vector<2x8xi32>
    %644 = arith.extui %643 : vector<2x8xi1> to vector<2x8xi32>
    %645 = arith.sitofp %644 : vector<2x8xi32> to vector<2x8xf32>
    %cst_166 = arith.constant 1.000000e+00 : f32
    %646 = vector.broadcast %cst_166 : f32 to vector<2x8xf32>
    %647 = arith.subf %646, %645 : vector<2x8xf32>
    %648 = arith.mulf %541, %647 : vector<2x8xf32>
    %649 = vector.shape_cast %627 : vector<2x8xf32> to vector<2x1x8xf32>
    %650 = vector.shape_cast %645 : vector<2x8xf32> to vector<2x1x8xf32>
    %651 = tpu.concatenate %649, %650 in 1 : vector<2x1x8xf32>, vector<2x1x8xf32> -> vector<2x2x8xf32>
    %652 = arith.truncf %651 : vector<2x2x8xf32> to vector<2x2x8xbf16>
    "tpu.trace_start"() <{level = 10 : i32, message = "bqt,btd->bqd"}> : () -> ()
    %cst_167 = arith.constant dense<0.000000e+00> : vector<2x2x64xf32>
    %653 = tpu.matmul %652, %12, %cst_167 {dimension_numbers = #tpu.dot_dimension_numbers<[2], [1], [1], [2], [0, 0, 0, 1, 1, 2], [0], [0]>} : vector<2x2x8xbf16>, vector<2x8x64xbf16>, vector<2x2x64xf32> -> vector<2x2x64xf32>
    "tpu.trace_stop"() : () -> ()
    %654 = vector.extract_strided_slice %653 {offsets = [0, 0, 0], sizes = [2, 1, 32], strides = [1, 1, 1]} : vector<2x2x64xf32> to vector<2x1x32xf32>
    %655 = vector.shape_cast %654 : vector<2x1x32xf32> to vector<2x32xf32>
    %656 = vector.extract_strided_slice %653 {offsets = [0, 1, 32], sizes = [2, 1, 32], strides = [1, 1, 1]} : vector<2x2x64xf32> to vector<2x1x32xf32>
    %657 = vector.shape_cast %656 : vector<2x1x32xf32> to vector<2x32xf32>
    %658 = arith.truncf %655 : vector<2x32xf32> to vector<2x32xbf16>
    %cst_168 = arith.constant dense<0.000000e+00> : vector<2x32xf32>
    %659 = tpu.matmul %658, %19, %cst_168 {dimension_numbers = #tpu.dot_dimension_numbers<[1], [0], [0], [1], [0, 0, 1, 1], [], []>} : vector<2x32xbf16>, vector<32x32xbf16>, vector<2x32xf32> -> vector<2x32xf32>
    %660 = arith.truncf %602 : vector<2x32xf32> to vector<2x32xbf16>
    %cst_169 = arith.constant dense<0.000000e+00> : vector<2x32xf32>
    %661 = tpu.matmul %660, %20, %cst_169 {dimension_numbers = #tpu.dot_dimension_numbers<[1], [0], [0], [1], [0, 0, 1, 1], [], []>} : vector<2x32xbf16>, vector<32x32xbf16>, vector<2x32xf32> -> vector<2x32xf32>
    %662 = arith.addf %659, %661 : vector<2x32xf32>
    %663 = vector.broadcast %21 : vector<1x32xf32> to vector<2x32xf32>
    %664 = arith.addf %662, %663 : vector<2x32xf32>
    %665 = math.tanh %664 : vector<2x32xf32>
    %666 = vector.broadcast %c5_i32 : i32 to vector<2x8xi32>
    %667 = arith.cmpi eq, %26, %666 : vector<2x8xi32>
    %668 = vector.shape_cast %640 : vector<2xi32> to vector<2x1xi32>
    %669 = vector.shape_cast %668 : vector<2x1xi32> to vector<2x1xi32>
    %670 = vector.broadcast %669 : vector<2x1xi32> to vector<2x8xi32>
    %671 = arith.select %667, %670, %564 : vector<2x8xi1>, vector<2x8xi32>
    %672 = vector.shape_cast %618 : vector<2x8xf32> to vector<2x1x8xf32>
    %c0_170 = arith.constant 0 : index
    %673 = arith.index_cast %c5_i32 : i32 to index
    %c0_171 = arith.constant 0 : index
    %674 = vector.load %arg18[%c0_170, %673, %c0_171] : memref<2x8x8xf32, #tpu.memory_space<vmem>>, vector<2x1x8xf32>
    tpu.vector_store %arg18[%c0_170, %673, %c0_171], %672 {strides = array<i32>} : memref<2x8x8xf32, #tpu.memory_space<vmem>>, vector<2x1x8xf32>,
    %c6_i32 = arith.constant 6 : i32
    %675 = arith.truncf %657 : vector<2x32xf32> to vector<2x32xbf16>
    %676 = arith.truncf %665 : vector<2x32xf32> to vector<2x32xbf16>
    %cst_172 = arith.constant dense<0.000000e+00> : vector<2x128xf32>
    %677 = tpu.matmul %675, %13, %cst_172 {dimension_numbers = #tpu.dot_dimension_numbers<[1], [0], [0], [1], [0, 0, 1, 1], [], []>} : vector<2x32xbf16>, vector<32x128xbf16>, vector<2x128xf32> -> vector<2x128xf32>
    %cst_173 = arith.constant dense<0.000000e+00> : vector<2x128xf32>
    %678 = tpu.matmul %676, %14, %cst_173 {dimension_numbers = #tpu.dot_dimension_numbers<[1], [0], [0], [1], [0, 0, 1, 1], [], []>} : vector<2x32xbf16>, vector<32x128xbf16>, vector<2x128xf32> -> vector<2x128xf32>
    %679 = arith.addf %677, %678 : vector<2x128xf32>
    %680 = vector.broadcast %15 : vector<1x128xf32> to vector<2x128xf32>
    %681 = arith.addf %679, %680 : vector<2x128xf32>
    %682 = tpu.iota {dimensions = array<i32: 1>} : vector<2x128xi32>
    %c64_i32_174 = arith.constant 64 : i32
    %683 = vector.broadcast %c64_i32_174 : i32 to vector<2x128xi32>
    %684 = arith.cmpi sge, %682, %683 : vector<2x128xi32>
    %c96_i32_175 = arith.constant 96 : i32
    %685 = vector.broadcast %c96_i32_175 : i32 to vector<2x128xi32>
    %686 = arith.cmpi slt, %682, %685 : vector<2x128xi32>
    %687 = arith.andi %684, %686 : vector<2x128xi1>
    %cst_176 = arith.constant 2.000000e+00 : f32
    %688 = vector.broadcast %cst_176 : f32 to vector<2x128xf32>
    %689 = arith.mulf %688, %681 : vector<2x128xf32>
    %690 = arith.select %687, %689, %681 : vector<2x128xi1>, vector<2x128xf32>
    %691 = arith.negf %690 : vector<2x128xf32>
    %692 = math.exp %691 : vector<2x128xf32>
    %cst_177 = arith.constant 1.000000e+00 : f32
    %693 = vector.broadcast %cst_177 : f32 to vector<2x128xf32>
    %694 = arith.addf %693, %692 : vector<2x128xf32>
    %695 = arith.divf %693, %694 : vector<2x128xf32>
    %cst_178 = arith.constant 2.000000e+00 : f32
    %696 = vector.broadcast %cst_178 : f32 to vector<2x128xf32>
    %697 = arith.mulf %696, %695 : vector<2x128xf32>
    %cst_179 = arith.constant 1.000000e+00 : f32
    %698 = vector.broadcast %cst_179 : f32 to vector<2x128xf32>
    %699 = arith.subf %697, %698 : vector<2x128xf32>
    %700 = arith.select %687, %699, %695 : vector<2x128xi1>, vector<2x128xf32>
    %701 = vector.extract_strided_slice %700 {offsets = [0, 0], sizes = [2, 32], strides = [1, 1]} : vector<2x128xf32> to vector<2x32xf32>
    %702 = vector.extract_strided_slice %700 {offsets = [0, 32], sizes = [2, 32], strides = [1, 1]} : vector<2x128xf32> to vector<2x32xf32>
    %703 = vector.extract_strided_slice %700 {offsets = [0, 64], sizes = [2, 32], strides = [1, 1]} : vector<2x128xf32> to vector<2x32xf32>
    %704 = vector.extract_strided_slice %700 {offsets = [0, 96], sizes = [2, 32], strides = [1, 1]} : vector<2x128xf32> to vector<2x32xf32>
    %705 = arith.mulf %702, %600 : vector<2x32xf32>
    %706 = arith.mulf %701, %703 : vector<2x32xf32>
    %707 = arith.addf %705, %706 : vector<2x32xf32>
    %708 = math.tanh %707 : vector<2x32xf32>
    %709 = arith.mulf %704, %708 : vector<2x32xf32>
    %710 = arith.truncf %709 : vector<2x32xf32> to vector<2x32xbf16>
    %cst_180 = arith.constant dense<0.000000e+00> : vector<2x32xf32>
    %711 = tpu.matmul %710, %16, %cst_180 {dimension_numbers = #tpu.dot_dimension_numbers<[1], [0], [0], [1], [0, 0, 1, 1], [], []>} : vector<2x32xbf16>, vector<32x32xbf16>, vector<2x32xf32> -> vector<2x32xf32>
    %712 = vector.broadcast %17 : vector<1x32xf32> to vector<2x32xf32>
    %713 = arith.addf %711, %712 : vector<2x32xf32>
    %714 = vector.shape_cast %713 : vector<2x32xf32> to vector<2x1x32xf32>
    %715 = vector.broadcast %714 : vector<2x1x32xf32> to vector<2x8x32xf32>
    %716 = arith.addf %715, %11 : vector<2x8x32xf32>
    %717 = math.tanh %716 : vector<2x8x32xf32>
    %718 = vector.shape_cast %18 : vector<1x32xf32> to vector<1x1x32xf32>
    %719 = vector.broadcast %718 : vector<1x1x32xf32> to vector<2x8x32xf32>
    %720 = arith.mulf %717, %719 : vector<2x8x32xf32>
    %cst_181 = arith.constant dense<0.000000e+00> : vector<2x8xf32>
    %721 = vector.multi_reduction <add>, %720, %cst_181 [2] : vector<2x8x32xf32> to vector<2x8xf32>
    %cst_182 = arith.constant 0.000000e+00 : f32
    %722 = vector.broadcast %cst_182 : f32 to vector<2x8xf32>
    %723 = arith.cmpf oeq, %648, %722 : vector<2x8xf32>
    %cst_183 = arith.constant -1.000000e+09 : f32
    %724 = vector.broadcast %cst_183 : f32 to vector<2x8xf32>
    %725 = arith.select %723, %724, %721 : vector<2x8xi1>, vector<2x8xf32>
    %cst_184 = arith.constant dense<0xFF800000> : vector<2xf32>
    %726 = vector.multi_reduction <maximumf>, %725, %cst_184 [1] : vector<2x8xf32> to vector<2xf32>
    %727 = vector.shape_cast %726 : vector<2xf32> to vector<2x1xf32>
    %728 = vector.broadcast %727 : vector<2x1xf32> to vector<2x8xf32>
    %729 = arith.subf %725, %728 : vector<2x8xf32>
    %730 = math.exp %729 : vector<2x8xf32>
    %cst_185 = arith.constant dense<0.000000e+00> : vector<2xf32>
    %731 = vector.multi_reduction <add>, %730, %cst_185 [1] : vector<2x8xf32> to vector<2xf32>
    %732 = vector.shape_cast %731 : vector<2xf32> to vector<2x1xf32>
    %733 = vector.broadcast %732 : vector<2x1xf32> to vector<2x8xf32>
    %734 = arith.divf %730, %733 : vector<2x8xf32>
    %735 = arith.mulf %734, %648 : vector<2x8xf32>
    %cst_186 = arith.constant dense<0xFF800000> : vector<2xf32>
    %736 = vector.multi_reduction <maximumf>, %735, %cst_186 [1] : vector<2x8xf32> to vector<2xf32>
    %737 = vector.shape_cast %736 : vector<2xf32> to vector<2x1xf32>
    %738 = vector.broadcast %737 : vector<2x1xf32> to vector<2x8xf32>
    %739 = arith.cmpf oeq, %735, %738 : vector<2x8xf32>
    %c8_i32_187 = arith.constant 8 : i32
    %740 = vector.broadcast %c8_i32_187 : i32 to vector<2x8xi32>
    %741 = arith.select %739, %26, %740 : vector<2x8xi1>, vector<2x8xi32>
    %cst_188 = arith.constant dense<2147483647> : vector<2xi32>
    %742 = vector.multi_reduction <minsi>, %741, %cst_188 [1] : vector<2x8xi32> to vector<2xi32>
    %743 = vector.shape_cast %25 : vector<2x1xi32> to vector<2xi32>
    %744 = vector.broadcast %c6_i32 : i32 to vector<2xi32>
    %745 = arith.cmpi sgt, %743, %744 : vector<2xi32>
    %746 = vector.broadcast %c6_i32 : i32 to vector<2xi32>
    %747 = arith.select %745, %742, %746 : vector<2xi1>, vector<2xi32>
    %748 = vector.shape_cast %747 : vector<2xi32> to vector<2x1xi32>
    %749 = vector.broadcast %748 : vector<2x1xi32> to vector<2x8xi32>
    %750 = arith.cmpi eq, %26, %749 : vector<2x8xi32>
    %751 = arith.extui %750 : vector<2x8xi1> to vector<2x8xi32>
    %752 = arith.sitofp %751 : vector<2x8xi32> to vector<2x8xf32>
    %cst_189 = arith.constant 1.000000e+00 : f32
    %753 = vector.broadcast %cst_189 : f32 to vector<2x8xf32>
    %754 = arith.subf %753, %752 : vector<2x8xf32>
    %755 = arith.mulf %648, %754 : vector<2x8xf32>
    %756 = vector.shape_cast %734 : vector<2x8xf32> to vector<2x1x8xf32>
    %757 = vector.shape_cast %752 : vector<2x8xf32> to vector<2x1x8xf32>
    %758 = tpu.concatenate %756, %757 in 1 : vector<2x1x8xf32>, vector<2x1x8xf32> -> vector<2x2x8xf32>
    %759 = arith.truncf %758 : vector<2x2x8xf32> to vector<2x2x8xbf16>
    "tpu.trace_start"() <{level = 10 : i32, message = "bqt,btd->bqd"}> : () -> ()
    %cst_190 = arith.constant dense<0.000000e+00> : vector<2x2x64xf32>
    %760 = tpu.matmul %759, %12, %cst_190 {dimension_numbers = #tpu.dot_dimension_numbers<[2], [1], [1], [2], [0, 0, 0, 1, 1, 2], [0], [0]>} : vector<2x2x8xbf16>, vector<2x8x64xbf16>, vector<2x2x64xf32> -> vector<2x2x64xf32>
    "tpu.trace_stop"() : () -> ()
    %761 = vector.extract_strided_slice %760 {offsets = [0, 0, 0], sizes = [2, 1, 32], strides = [1, 1, 1]} : vector<2x2x64xf32> to vector<2x1x32xf32>
    %762 = vector.shape_cast %761 : vector<2x1x32xf32> to vector<2x32xf32>
    %763 = vector.extract_strided_slice %760 {offsets = [0, 1, 32], sizes = [2, 1, 32], strides = [1, 1, 1]} : vector<2x2x64xf32> to vector<2x1x32xf32>
    %764 = vector.shape_cast %763 : vector<2x1x32xf32> to vector<2x32xf32>
    %765 = arith.truncf %762 : vector<2x32xf32> to vector<2x32xbf16>
    %cst_191 = arith.constant dense<0.000000e+00> : vector<2x32xf32>
    %766 = tpu.matmul %765, %19, %cst_191 {dimension_numbers = #tpu.dot_dimension_numbers<[1], [0], [0], [1], [0, 0, 1, 1], [], []>} : vector<2x32xbf16>, vector<32x32xbf16>, vector<2x32xf32> -> vector<2x32xf32>
    %767 = arith.truncf %709 : vector<2x32xf32> to vector<2x32xbf16>
    %cst_192 = arith.constant dense<0.000000e+00> : vector<2x32xf32>
    %768 = tpu.matmul %767, %20, %cst_192 {dimension_numbers = #tpu.dot_dimension_numbers<[1], [0], [0], [1], [0, 0, 1, 1], [], []>} : vector<2x32xbf16>, vector<32x32xbf16>, vector<2x32xf32> -> vector<2x32xf32>
    %769 = arith.addf %766, %768 : vector<2x32xf32>
    %770 = vector.broadcast %21 : vector<1x32xf32> to vector<2x32xf32>
    %771 = arith.addf %769, %770 : vector<2x32xf32>
    %772 = math.tanh %771 : vector<2x32xf32>
    %773 = vector.broadcast %c6_i32 : i32 to vector<2x8xi32>
    %774 = arith.cmpi eq, %26, %773 : vector<2x8xi32>
    %775 = vector.shape_cast %747 : vector<2xi32> to vector<2x1xi32>
    %776 = vector.shape_cast %775 : vector<2x1xi32> to vector<2x1xi32>
    %777 = vector.broadcast %776 : vector<2x1xi32> to vector<2x8xi32>
    %778 = arith.select %774, %777, %671 : vector<2x8xi1>, vector<2x8xi32>
    %779 = vector.shape_cast %725 : vector<2x8xf32> to vector<2x1x8xf32>
    %c0_193 = arith.constant 0 : index
    %780 = arith.index_cast %c6_i32 : i32 to index
    %c0_194 = arith.constant 0 : index
    %781 = vector.load %arg18[%c0_193, %780, %c0_194] : memref<2x8x8xf32, #tpu.memory_space<vmem>>, vector<2x1x8xf32>
    tpu.vector_store %arg18[%c0_193, %780, %c0_194], %779 {strides = array<i32>} : memref<2x8x8xf32, #tpu.memory_space<vmem>>, vector<2x1x8xf32>,
    %c7_i32 = arith.constant 7 : i32
    %782 = arith.truncf %764 : vector<2x32xf32> to vector<2x32xbf16>
    %783 = arith.truncf %772 : vector<2x32xf32> to vector<2x32xbf16>
    %cst_195 = arith.constant dense<0.000000e+00> : vector<2x128xf32>
    %784 = tpu.matmul %782, %13, %cst_195 {dimension_numbers = #tpu.dot_dimension_numbers<[1], [0], [0], [1], [0, 0, 1, 1], [], []>} : vector<2x32xbf16>, vector<32x128xbf16>, vector<2x128xf32> -> vector<2x128xf32>
    %cst_196 = arith.constant dense<0.000000e+00> : vector<2x128xf32>
    %785 = tpu.matmul %783, %14, %cst_196 {dimension_numbers = #tpu.dot_dimension_numbers<[1], [0], [0], [1], [0, 0, 1, 1], [], []>} : vector<2x32xbf16>, vector<32x128xbf16>, vector<2x128xf32> -> vector<2x128xf32>
    %786 = arith.addf %784, %785 : vector<2x128xf32>
    %787 = vector.broadcast %15 : vector<1x128xf32> to vector<2x128xf32>
    %788 = arith.addf %786, %787 : vector<2x128xf32>
    %789 = tpu.iota {dimensions = array<i32: 1>} : vector<2x128xi32>
    %c64_i32_197 = arith.constant 64 : i32
    %790 = vector.broadcast %c64_i32_197 : i32 to vector<2x128xi32>
    %791 = arith.cmpi sge, %789, %790 : vector<2x128xi32>
    %c96_i32_198 = arith.constant 96 : i32
    %792 = vector.broadcast %c96_i32_198 : i32 to vector<2x128xi32>
    %793 = arith.cmpi slt, %789, %792 : vector<2x128xi32>
    %794 = arith.andi %791, %793 : vector<2x128xi1>
    %cst_199 = arith.constant 2.000000e+00 : f32
    %795 = vector.broadcast %cst_199 : f32 to vector<2x128xf32>
    %796 = arith.mulf %795, %788 : vector<2x128xf32>
    %797 = arith.select %794, %796, %788 : vector<2x128xi1>, vector<2x128xf32>
    %798 = arith.negf %797 : vector<2x128xf32>
    %799 = math.exp %798 : vector<2x128xf32>
    %cst_200 = arith.constant 1.000000e+00 : f32
    %800 = vector.broadcast %cst_200 : f32 to vector<2x128xf32>
    %801 = arith.addf %800, %799 : vector<2x128xf32>
    %802 = arith.divf %800, %801 : vector<2x128xf32>
    %cst_201 = arith.constant 2.000000e+00 : f32
    %803 = vector.broadcast %cst_201 : f32 to vector<2x128xf32>
    %804 = arith.mulf %803, %802 : vector<2x128xf32>
    %cst_202 = arith.constant 1.000000e+00 : f32
    %805 = vector.broadcast %cst_202 : f32 to vector<2x128xf32>
    %806 = arith.subf %804, %805 : vector<2x128xf32>
    %807 = arith.select %794, %806, %802 : vector<2x128xi1>, vector<2x128xf32>
    %808 = vector.extract_strided_slice %807 {offsets = [0, 0], sizes = [2, 32], strides = [1, 1]} : vector<2x128xf32> to vector<2x32xf32>
    %809 = vector.extract_strided_slice %807 {offsets = [0, 32], sizes = [2, 32], strides = [1, 1]} : vector<2x128xf32> to vector<2x32xf32>
    %810 = vector.extract_strided_slice %807 {offsets = [0, 64], sizes = [2, 32], strides = [1, 1]} : vector<2x128xf32> to vector<2x32xf32>
    %811 = vector.extract_strided_slice %807 {offsets = [0, 96], sizes = [2, 32], strides = [1, 1]} : vector<2x128xf32> to vector<2x32xf32>
    %812 = arith.mulf %809, %707 : vector<2x32xf32>
    %813 = arith.mulf %808, %810 : vector<2x32xf32>
    %814 = arith.addf %812, %813 : vector<2x32xf32>
    %815 = math.tanh %814 : vector<2x32xf32>
    %816 = arith.mulf %811, %815 : vector<2x32xf32>
    %817 = arith.truncf %816 : vector<2x32xf32> to vector<2x32xbf16>
    %cst_203 = arith.constant dense<0.000000e+00> : vector<2x32xf32>
    %818 = tpu.matmul %817, %16, %cst_203 {dimension_numbers = #tpu.dot_dimension_numbers<[1], [0], [0], [1], [0, 0, 1, 1], [], []>} : vector<2x32xbf16>, vector<32x32xbf16>, vector<2x32xf32> -> vector<2x32xf32>
    %819 = vector.broadcast %17 : vector<1x32xf32> to vector<2x32xf32>
    %820 = arith.addf %818, %819 : vector<2x32xf32>
    %821 = vector.shape_cast %820 : vector<2x32xf32> to vector<2x1x32xf32>
    %822 = vector.broadcast %821 : vector<2x1x32xf32> to vector<2x8x32xf32>
    %823 = arith.addf %822, %11 : vector<2x8x32xf32>
    %824 = math.tanh %823 : vector<2x8x32xf32>
    %825 = vector.shape_cast %18 : vector<1x32xf32> to vector<1x1x32xf32>
    %826 = vector.broadcast %825 : vector<1x1x32xf32> to vector<2x8x32xf32>
    %827 = arith.mulf %824, %826 : vector<2x8x32xf32>
    %cst_204 = arith.constant dense<0.000000e+00> : vector<2x8xf32>
    %828 = vector.multi_reduction <add>, %827, %cst_204 [2] : vector<2x8x32xf32> to vector<2x8xf32>
    %cst_205 = arith.constant 0.000000e+00 : f32
    %829 = vector.broadcast %cst_205 : f32 to vector<2x8xf32>
    %830 = arith.cmpf oeq, %755, %829 : vector<2x8xf32>
    %cst_206 = arith.constant -1.000000e+09 : f32
    %831 = vector.broadcast %cst_206 : f32 to vector<2x8xf32>
    %832 = arith.select %830, %831, %828 : vector<2x8xi1>, vector<2x8xf32>
    %cst_207 = arith.constant dense<0xFF800000> : vector<2xf32>
    %833 = vector.multi_reduction <maximumf>, %832, %cst_207 [1] : vector<2x8xf32> to vector<2xf32>
    %834 = vector.shape_cast %833 : vector<2xf32> to vector<2x1xf32>
    %835 = vector.broadcast %834 : vector<2x1xf32> to vector<2x8xf32>
    %836 = arith.subf %832, %835 : vector<2x8xf32>
    %837 = math.exp %836 : vector<2x8xf32>
    %cst_208 = arith.constant dense<0.000000e+00> : vector<2xf32>
    %838 = vector.multi_reduction <add>, %837, %cst_208 [1] : vector<2x8xf32> to vector<2xf32>
    %839 = vector.shape_cast %838 : vector<2xf32> to vector<2x1xf32>
    %840 = vector.broadcast %839 : vector<2x1xf32> to vector<2x8xf32>
    %841 = arith.divf %837, %840 : vector<2x8xf32>
    %842 = arith.mulf %841, %755 : vector<2x8xf32>
    %cst_209 = arith.constant dense<0xFF800000> : vector<2xf32>
    %843 = vector.multi_reduction <maximumf>, %842, %cst_209 [1] : vector<2x8xf32> to vector<2xf32>
    %844 = vector.shape_cast %843 : vector<2xf32> to vector<2x1xf32>
    %845 = vector.broadcast %844 : vector<2x1xf32> to vector<2x8xf32>
    %846 = arith.cmpf oeq, %842, %845 : vector<2x8xf32>
    %c8_i32_210 = arith.constant 8 : i32
    %847 = vector.broadcast %c8_i32_210 : i32 to vector<2x8xi32>
    %848 = arith.select %846, %26, %847 : vector<2x8xi1>, vector<2x8xi32>
    %cst_211 = arith.constant dense<2147483647> : vector<2xi32>
    %849 = vector.multi_reduction <minsi>, %848, %cst_211 [1] : vector<2x8xi32> to vector<2xi32>
    %850 = vector.shape_cast %25 : vector<2x1xi32> to vector<2xi32>
    %851 = vector.broadcast %c7_i32 : i32 to vector<2xi32>
    %852 = arith.cmpi sgt, %850, %851 : vector<2xi32>
    %853 = vector.broadcast %c7_i32 : i32 to vector<2xi32>
    %854 = arith.select %852, %849, %853 : vector<2xi1>, vector<2xi32>
    %855 = vector.shape_cast %854 : vector<2xi32> to vector<2x1xi32>
    %856 = vector.broadcast %855 : vector<2x1xi32> to vector<2x8xi32>
    %857 = arith.cmpi eq, %26, %856 : vector<2x8xi32>
    %858 = arith.extui %857 : vector<2x8xi1> to vector<2x8xi32>
    %859 = arith.sitofp %858 : vector<2x8xi32> to vector<2x8xf32>
    %cst_212 = arith.constant 1.000000e+00 : f32
    %860 = vector.broadcast %cst_212 : f32 to vector<2x8xf32>
    %861 = arith.subf %860, %859 : vector<2x8xf32>
    %862 = arith.mulf %755, %861 : vector<2x8xf32>
    %863 = vector.shape_cast %841 : vector<2x8xf32> to vector<2x1x8xf32>
    %864 = vector.shape_cast %859 : vector<2x8xf32> to vector<2x1x8xf32>
    %865 = tpu.concatenate %863, %864 in 1 : vector<2x1x8xf32>, vector<2x1x8xf32> -> vector<2x2x8xf32>
    %866 = arith.truncf %865 : vector<2x2x8xf32> to vector<2x2x8xbf16>
    "tpu.trace_start"() <{level = 10 : i32, message = "bqt,btd->bqd"}> : () -> ()
    %cst_213 = arith.constant dense<0.000000e+00> : vector<2x2x64xf32>
    %867 = tpu.matmul %866, %12, %cst_213 {dimension_numbers = #tpu.dot_dimension_numbers<[2], [1], [1], [2], [0, 0, 0, 1, 1, 2], [0], [0]>} : vector<2x2x8xbf16>, vector<2x8x64xbf16>, vector<2x2x64xf32> -> vector<2x2x64xf32>
    "tpu.trace_stop"() : () -> ()
    %868 = vector.extract_strided_slice %867 {offsets = [0, 0, 0], sizes = [2, 1, 32], strides = [1, 1, 1]} : vector<2x2x64xf32> to vector<2x1x32xf32>
    %869 = vector.shape_cast %868 : vector<2x1x32xf32> to vector<2x32xf32>
    %870 = vector.extract_strided_slice %867 {offsets = [0, 1, 32], sizes = [2, 1, 32], strides = [1, 1, 1]} : vector<2x2x64xf32> to vector<2x1x32xf32>
    %871 = vector.shape_cast %870 : vector<2x1x32xf32> to vector<2x32xf32>
    %872 = arith.truncf %869 : vector<2x32xf32> to vector<2x32xbf16>
    %cst_214 = arith.constant dense<0.000000e+00> : vector<2x32xf32>
    %873 = tpu.matmul %872, %19, %cst_214 {dimension_numbers = #tpu.dot_dimension_numbers<[1], [0], [0], [1], [0, 0, 1, 1], [], []>} : vector<2x32xbf16>, vector<32x32xbf16>, vector<2x32xf32> -> vector<2x32xf32>
    %874 = arith.truncf %816 : vector<2x32xf32> to vector<2x32xbf16>
    %cst_215 = arith.constant dense<0.000000e+00> : vector<2x32xf32>
    %875 = tpu.matmul %874, %20, %cst_215 {dimension_numbers = #tpu.dot_dimension_numbers<[1], [0], [0], [1], [0, 0, 1, 1], [], []>} : vector<2x32xbf16>, vector<32x32xbf16>, vector<2x32xf32> -> vector<2x32xf32>
    %876 = arith.addf %873, %875 : vector<2x32xf32>
    %877 = vector.broadcast %21 : vector<1x32xf32> to vector<2x32xf32>
    %878 = arith.addf %876, %877 : vector<2x32xf32>
    %879 = math.tanh %878 : vector<2x32xf32>
    %880 = vector.broadcast %c7_i32 : i32 to vector<2x8xi32>
    %881 = arith.cmpi eq, %26, %880 : vector<2x8xi32>
    %882 = vector.shape_cast %854 : vector<2xi32> to vector<2x1xi32>
    %883 = vector.shape_cast %882 : vector<2x1xi32> to vector<2x1xi32>
    %884 = vector.broadcast %883 : vector<2x1xi32> to vector<2x8xi32>
    %885 = arith.select %881, %884, %778 : vector<2x8xi1>, vector<2x8xi32>
    %886 = vector.shape_cast %832 : vector<2x8xf32> to vector<2x1x8xf32>
    %c0_216 = arith.constant 0 : index
    %887 = arith.index_cast %c7_i32 : i32 to index
    %c0_217 = arith.constant 0 : index
    %888 = vector.load %arg18[%c0_216, %887, %c0_217] : memref<2x8x8xf32, #tpu.memory_space<vmem>>, vector<2x1x8xf32>
    tpu.vector_store %arg18[%c0_216, %887, %c0_217], %886 {strides = array<i32>} : memref<2x8x8xf32, #tpu.memory_space<vmem>>, vector<2x1x8xf32>,
    %c8_i32_218 = arith.constant 8 : i32
    %c0_219 = arith.constant 0 : index
    %c0_220 = arith.constant 0 : index
    %889 = vector.load %arg19[%c0_219, %c0_220] : memref<2x8xi32, #tpu.memory_space<vmem>>, vector<2x8xi32>
    tpu.vector_store %arg19[%c0_219, %c0_220], %885 {strides = array<i32>} : memref<2x8xi32, #tpu.memory_space<vmem>>, vector<2x8xi32>,
    return
  }
  func.func @transform_0(%arg0: i32) -> (i32, i32, i32) {
    %c0_i32 = arith.constant 0 : i32
    %c0_i32_0 = arith.constant 0 : i32
    %c0_i32_1 = arith.constant 0 : i32
    return %arg0, %c0_i32, %c0_i32_0 : i32, i32, i32
  }
  func.func @transform_1(%arg0: i32) -> (i32, i32, i32) {
    %c0_i32 = arith.constant 0 : i32
    %c0_i32_0 = arith.constant 0 : i32
    %c0_i32_1 = arith.constant 0 : i32
    return %arg0, %c0_i32, %c0_i32_0 : i32, i32, i32
  }
  func.func @transform_2(%arg0: i32) -> (i32, i32) {
    %c0_i32 = arith.constant 0 : i32
    %c0_i32_0 = arith.constant 0 : i32
    return %arg0, %c0_i32 : i32, i32
  }
  func.func @transform_3(%arg0: i32) -> (i32, i32) {
    %c0_i32 = arith.constant 0 : i32
    %c0_i32_0 = arith.constant 0 : i32
    return %arg0, %c0_i32 : i32, i32
  }
  func.func @transform_4(%arg0: i32) -> (i32, i32) {
    %c0_i32 = arith.constant 0 : i32
    %c0_i32_0 = arith.constant 0 : i32
    return %arg0, %c0_i32 : i32, i32
  }
  func.func @transform_5(%arg0: i32) -> (i32, i32) {
    %c0_i32 = arith.constant 0 : i32
    %c0_i32_0 = arith.constant 0 : i32
    %c0_i32_1 = arith.constant 0 : i32
    return %c0_i32, %c0_i32_0 : i32, i32
  }
  func.func @transform_6(%arg0: i32) -> (i32, i32) {
    %c0_i32 = arith.constant 0 : i32
    %c0_i32_0 = arith.constant 0 : i32
    %c0_i32_1 = arith.constant 0 : i32
    return %c0_i32, %c0_i32_0 : i32, i32
  }
  func.func @transform_7(%arg0: i32) -> (i32, i32) {
    %c0_i32 = arith.constant 0 : i32
    %c0_i32_0 = arith.constant 0 : i32
    %c0_i32_1 = arith.constant 0 : i32
    return %c0_i32, %c0_i32_0 : i32, i32
  }
  func.func @transform_8(%arg0: i32) -> (i32, i32) {
    %c0_i32 = arith.constant 0 : i32
    %c0_i32_0 = arith.constant 0 : i32
    %c0_i32_1 = arith.constant 0 : i32
    return %c0_i32, %c0_i32_0 : i32, i32
  }
  func.func @transform_9(%arg0: i32) -> (i32, i32) {
    %c0_i32 = arith.constant 0 : i32
    %c0_i32_0 = arith.constant 0 : i32
    %c0_i32_1 = arith.constant 0 : i32
    return %c0_i32, %c0_i32_0 : i32, i32
  }
  func.func @transform_10(%arg0: i32) -> (i32, i32) {
    %c0_i32 = arith.constant 0 : i32
    %c0_i32_0 = arith.constant 0 : i32
    %c0_i32_1 = arith.constant 0 : i32
    return %c0_i32, %c0_i32_0 : i32, i32
  }
  func.func @transform_11(%arg0: i32) -> (i32, i32) {
    %c0_i32 = arith.constant 0 : i32
    %c0_i32_0 = arith.constant 0 : i32
    %c0_i32_1 = arith.constant 0 : i32
    return %c0_i32, %c0_i32_0 : i32, i32
  }
  func.func @transform_12(%arg0: i32) -> (i32, i32) {
    %c0_i32 = arith.constant 0 : i32
    %c0_i32_0 = arith.constant 0 : i32
    %c0_i32_1 = arith.constant 0 : i32
    return %c0_i32, %c0_i32_0 : i32, i32
  }
  func.func @transform_13(%arg0: i32) -> (i32, i32) {
    %c0_i32 = arith.constant 0 : i32
    %c0_i32_0 = arith.constant 0 : i32
    %c0_i32_1 = arith.constant 0 : i32
    return %c0_i32, %c0_i32_0 : i32, i32
  }
  func.func @transform_14(%arg0: i32) -> (i32, i32) {
    %c0_i32 = arith.constant 0 : i32
    %c0_i32_0 = arith.constant 0 : i32
    %c0_i32_1 = arith.constant 0 : i32
    return %c0_i32, %c0_i32_0 : i32, i32
  }
  func.func @transform_15(%arg0: i32) -> (i32, i32) {
    %c0_i32 = arith.constant 0 : i32
    %c0_i32_0 = arith.constant 0 : i32
    %c0_i32_1 = arith.constant 0 : i32
    return %c0_i32, %c0_i32_0 : i32, i32
  }
  func.func @transform_16(%arg0: i32) -> (i32, i32) {
    %c0_i32 = arith.constant 0 : i32
    %c0_i32_0 = arith.constant 0 : i32
    %c0_i32_1 = arith.constant 0 : i32
    return %c0_i32, %c0_i32_0 : i32, i32
  }
  func.func @transform_17(%arg0: i32) -> (i32, i32, i32) {
    %c0_i32 = arith.constant 0 : i32
    %c0_i32_0 = arith.constant 0 : i32
    %c0_i32_1 = arith.constant 0 : i32
    return %arg0, %c0_i32, %c0_i32_0 : i32, i32, i32
  }
  func.func @transform_18(%arg0: i32) -> (i32, i32) {
    %c0_i32 = arith.constant 0 : i32
    %c0_i32_0 = arith.constant 0 : i32
    return %arg0, %c0_i32 : i32, i32
  }
}

module attributes {stable_mosaic.version = 11 : i64} {
  func.func @kernel(%arg0: i32, %arg1: memref<8x2x32xf32, #tpu.memory_space<vmem>>, %arg2: memref<32x128xbf16, #tpu.memory_space<vmem>>, %arg3: memref<32x128xbf16, #tpu.memory_space<vmem>>, %arg4: memref<1x128xf32, #tpu.memory_space<vmem>>, %arg5: memref<2x8x32xf32, #tpu.memory_space<vmem>>, %arg6: memref<2x32xf32, #tpu.memory_space<vmem>>, %arg7: memref<2x32xf32, #tpu.memory_space<vmem>>) attributes {dimension_semantics = [#tpu.dimension_semantics<parallel>], iteration_bounds = array<i64: 1>, scalar_prefetch = 0 : i64, scratch_operands = 0 : i64, tpu.core_type = #tpu.core_type<tc>, window_params = [{transform_indices = @transform_0, window_bounds = array<i64: 8, 2, 32>}, {pipeline_mode = #tpu.pipeline_mode<synchronous>, transform_indices = @transform_1, window_bounds = array<i64: 32, 128>}, {pipeline_mode = #tpu.pipeline_mode<synchronous>, transform_indices = @transform_2, window_bounds = array<i64: 32, 128>}, {pipeline_mode = #tpu.pipeline_mode<synchronous>, transform_indices = @transform_3, window_bounds = array<i64: 1, 128>}, {transform_indices = @transform_4, window_bounds = array<i64: 2, 8, 32>}, {transform_indices = @transform_5, window_bounds = array<i64: 2, 32>}, {transform_indices = @transform_6, window_bounds = array<i64: 2, 32>}]} {
    %c0 = arith.constant 0 : index
    %c0_0 = arith.constant 0 : index
    %0 = vector.load %arg2[%c0, %c0_0] : memref<32x128xbf16, #tpu.memory_space<vmem>>, vector<32x128xbf16>
    %c0_1 = arith.constant 0 : index
    %c0_2 = arith.constant 0 : index
    %1 = vector.load %arg3[%c0_1, %c0_2] : memref<32x128xbf16, #tpu.memory_space<vmem>>, vector<32x128xbf16>
    %c0_3 = arith.constant 0 : index
    %c0_4 = arith.constant 0 : index
    %2 = vector.load %arg4[%c0_3, %c0_4] : memref<1x128xf32, #tpu.memory_space<vmem>>, vector<1x128xf32>
    %cst = arith.constant 0.000000e+00 : f32
    %3 = vector.broadcast %cst : f32 to vector<2x32xf32>
    %cst_5 = arith.constant 0.000000e+00 : f32
    %4 = vector.broadcast %cst_5 : f32 to vector<2x32xf32>
    %c0_i32 = arith.constant 0 : i32
    %5 = arith.index_cast %c0_i32 : i32 to index
    %c0_6 = arith.constant 0 : index
    %c0_7 = arith.constant 0 : index
    %6 = vector.load %arg1[%5, %c0_6, %c0_7] : memref<8x2x32xf32, #tpu.memory_space<vmem>>, vector<1x2x32xf32>
    %7 = vector.shape_cast %6 : vector<1x2x32xf32> to vector<2x32xf32>
    %8 = arith.truncf %7 : vector<2x32xf32> to vector<2x32xbf16>
    %9 = arith.truncf %3 : vector<2x32xf32> to vector<2x32xbf16>
    %cst_8 = arith.constant dense<0.000000e+00> : vector<2x128xf32>
    %10 = tpu.matmul %8, %0, %cst_8 {dimension_numbers = #tpu.dot_dimension_numbers<[1], [0], [0], [1], [0, 0, 1, 1], [], []>} : vector<2x32xbf16>, vector<32x128xbf16>, vector<2x128xf32> -> vector<2x128xf32>
    %cst_9 = arith.constant dense<0.000000e+00> : vector<2x128xf32>
    %11 = tpu.matmul %9, %1, %cst_9 {dimension_numbers = #tpu.dot_dimension_numbers<[1], [0], [0], [1], [0, 0, 1, 1], [], []>} : vector<2x32xbf16>, vector<32x128xbf16>, vector<2x128xf32> -> vector<2x128xf32>
    %12 = arith.addf %10, %11 : vector<2x128xf32>
    %13 = vector.broadcast %2 : vector<1x128xf32> to vector<2x128xf32>
    %14 = arith.addf %12, %13 : vector<2x128xf32>
    %15 = tpu.iota {dimensions = array<i32: 1>} : vector<2x128xi32>
    %c64_i32 = arith.constant 64 : i32
    %16 = vector.broadcast %c64_i32 : i32 to vector<2x128xi32>
    %17 = arith.cmpi sge, %15, %16 : vector<2x128xi32>
    %c96_i32 = arith.constant 96 : i32
    %18 = vector.broadcast %c96_i32 : i32 to vector<2x128xi32>
    %19 = arith.cmpi slt, %15, %18 : vector<2x128xi32>
    %20 = arith.andi %17, %19 : vector<2x128xi1>
    %cst_10 = arith.constant 2.000000e+00 : f32
    %21 = vector.broadcast %cst_10 : f32 to vector<2x128xf32>
    %22 = arith.mulf %21, %14 : vector<2x128xf32>
    %23 = arith.select %20, %22, %14 : vector<2x128xi1>, vector<2x128xf32>
    %24 = arith.negf %23 : vector<2x128xf32>
    %25 = math.exp %24 : vector<2x128xf32>
    %cst_11 = arith.constant 1.000000e+00 : f32
    %26 = vector.broadcast %cst_11 : f32 to vector<2x128xf32>
    %27 = arith.addf %26, %25 : vector<2x128xf32>
    %28 = arith.divf %26, %27 : vector<2x128xf32>
    %cst_12 = arith.constant 2.000000e+00 : f32
    %29 = vector.broadcast %cst_12 : f32 to vector<2x128xf32>
    %30 = arith.mulf %29, %28 : vector<2x128xf32>
    %cst_13 = arith.constant 1.000000e+00 : f32
    %31 = vector.broadcast %cst_13 : f32 to vector<2x128xf32>
    %32 = arith.subf %30, %31 : vector<2x128xf32>
    %33 = arith.select %20, %32, %28 : vector<2x128xi1>, vector<2x128xf32>
    %34 = vector.extract_strided_slice %33 {offsets = [0, 0], sizes = [2, 32], strides = [1, 1]} : vector<2x128xf32> to vector<2x32xf32>
    %35 = vector.extract_strided_slice %33 {offsets = [0, 32], sizes = [2, 32], strides = [1, 1]} : vector<2x128xf32> to vector<2x32xf32>
    %36 = vector.extract_strided_slice %33 {offsets = [0, 64], sizes = [2, 32], strides = [1, 1]} : vector<2x128xf32> to vector<2x32xf32>
    %37 = vector.extract_strided_slice %33 {offsets = [0, 96], sizes = [2, 32], strides = [1, 1]} : vector<2x128xf32> to vector<2x32xf32>
    %38 = arith.mulf %35, %4 : vector<2x32xf32>
    %39 = arith.mulf %34, %36 : vector<2x32xf32>
    %40 = arith.addf %38, %39 : vector<2x32xf32>
    %41 = math.tanh %40 : vector<2x32xf32>
    %42 = arith.mulf %37, %41 : vector<2x32xf32>
    %43 = vector.shape_cast %42 : vector<2x32xf32> to vector<2x1x32xf32>
    %c0_14 = arith.constant 0 : index
    %44 = arith.index_cast %c0_i32 : i32 to index
    %c0_15 = arith.constant 0 : index
    %45 = vector.load %arg5[%c0_14, %44, %c0_15] : memref<2x8x32xf32, #tpu.memory_space<vmem>>, vector<2x1x32xf32>
    tpu.vector_store %arg5[%c0_14, %44, %c0_15], %43 {strides = array<i32>} : memref<2x8x32xf32, #tpu.memory_space<vmem>>, vector<2x1x32xf32>,
    %c1_i32 = arith.constant 1 : i32
    %46 = arith.index_cast %c1_i32 : i32 to index
    %c0_16 = arith.constant 0 : index
    %c0_17 = arith.constant 0 : index
    %47 = vector.load %arg1[%46, %c0_16, %c0_17] : memref<8x2x32xf32, #tpu.memory_space<vmem>>, vector<1x2x32xf32>
    %48 = vector.shape_cast %47 : vector<1x2x32xf32> to vector<2x32xf32>
    %49 = arith.truncf %48 : vector<2x32xf32> to vector<2x32xbf16>
    %50 = arith.truncf %42 : vector<2x32xf32> to vector<2x32xbf16>
    %cst_18 = arith.constant dense<0.000000e+00> : vector<2x128xf32>
    %51 = tpu.matmul %49, %0, %cst_18 {dimension_numbers = #tpu.dot_dimension_numbers<[1], [0], [0], [1], [0, 0, 1, 1], [], []>} : vector<2x32xbf16>, vector<32x128xbf16>, vector<2x128xf32> -> vector<2x128xf32>
    %cst_19 = arith.constant dense<0.000000e+00> : vector<2x128xf32>
    %52 = tpu.matmul %50, %1, %cst_19 {dimension_numbers = #tpu.dot_dimension_numbers<[1], [0], [0], [1], [0, 0, 1, 1], [], []>} : vector<2x32xbf16>, vector<32x128xbf16>, vector<2x128xf32> -> vector<2x128xf32>
    %53 = arith.addf %51, %52 : vector<2x128xf32>
    %54 = vector.broadcast %2 : vector<1x128xf32> to vector<2x128xf32>
    %55 = arith.addf %53, %54 : vector<2x128xf32>
    %56 = tpu.iota {dimensions = array<i32: 1>} : vector<2x128xi32>
    %c64_i32_20 = arith.constant 64 : i32
    %57 = vector.broadcast %c64_i32_20 : i32 to vector<2x128xi32>
    %58 = arith.cmpi sge, %56, %57 : vector<2x128xi32>
    %c96_i32_21 = arith.constant 96 : i32
    %59 = vector.broadcast %c96_i32_21 : i32 to vector<2x128xi32>
    %60 = arith.cmpi slt, %56, %59 : vector<2x128xi32>
    %61 = arith.andi %58, %60 : vector<2x128xi1>
    %cst_22 = arith.constant 2.000000e+00 : f32
    %62 = vector.broadcast %cst_22 : f32 to vector<2x128xf32>
    %63 = arith.mulf %62, %55 : vector<2x128xf32>
    %64 = arith.select %61, %63, %55 : vector<2x128xi1>, vector<2x128xf32>
    %65 = arith.negf %64 : vector<2x128xf32>
    %66 = math.exp %65 : vector<2x128xf32>
    %cst_23 = arith.constant 1.000000e+00 : f32
    %67 = vector.broadcast %cst_23 : f32 to vector<2x128xf32>
    %68 = arith.addf %67, %66 : vector<2x128xf32>
    %69 = arith.divf %67, %68 : vector<2x128xf32>
    %cst_24 = arith.constant 2.000000e+00 : f32
    %70 = vector.broadcast %cst_24 : f32 to vector<2x128xf32>
    %71 = arith.mulf %70, %69 : vector<2x128xf32>
    %cst_25 = arith.constant 1.000000e+00 : f32
    %72 = vector.broadcast %cst_25 : f32 to vector<2x128xf32>
    %73 = arith.subf %71, %72 : vector<2x128xf32>
    %74 = arith.select %61, %73, %69 : vector<2x128xi1>, vector<2x128xf32>
    %75 = vector.extract_strided_slice %74 {offsets = [0, 0], sizes = [2, 32], strides = [1, 1]} : vector<2x128xf32> to vector<2x32xf32>
    %76 = vector.extract_strided_slice %74 {offsets = [0, 32], sizes = [2, 32], strides = [1, 1]} : vector<2x128xf32> to vector<2x32xf32>
    %77 = vector.extract_strided_slice %74 {offsets = [0, 64], sizes = [2, 32], strides = [1, 1]} : vector<2x128xf32> to vector<2x32xf32>
    %78 = vector.extract_strided_slice %74 {offsets = [0, 96], sizes = [2, 32], strides = [1, 1]} : vector<2x128xf32> to vector<2x32xf32>
    %79 = arith.mulf %76, %40 : vector<2x32xf32>
    %80 = arith.mulf %75, %77 : vector<2x32xf32>
    %81 = arith.addf %79, %80 : vector<2x32xf32>
    %82 = math.tanh %81 : vector<2x32xf32>
    %83 = arith.mulf %78, %82 : vector<2x32xf32>
    %84 = vector.shape_cast %83 : vector<2x32xf32> to vector<2x1x32xf32>
    %c0_26 = arith.constant 0 : index
    %85 = arith.index_cast %c1_i32 : i32 to index
    %c0_27 = arith.constant 0 : index
    %86 = vector.load %arg5[%c0_26, %85, %c0_27] : memref<2x8x32xf32, #tpu.memory_space<vmem>>, vector<2x1x32xf32>
    tpu.vector_store %arg5[%c0_26, %85, %c0_27], %84 {strides = array<i32>} : memref<2x8x32xf32, #tpu.memory_space<vmem>>, vector<2x1x32xf32>,
    %c2_i32 = arith.constant 2 : i32
    %87 = arith.index_cast %c2_i32 : i32 to index
    %c0_28 = arith.constant 0 : index
    %c0_29 = arith.constant 0 : index
    %88 = vector.load %arg1[%87, %c0_28, %c0_29] : memref<8x2x32xf32, #tpu.memory_space<vmem>>, vector<1x2x32xf32>
    %89 = vector.shape_cast %88 : vector<1x2x32xf32> to vector<2x32xf32>
    %90 = arith.truncf %89 : vector<2x32xf32> to vector<2x32xbf16>
    %91 = arith.truncf %83 : vector<2x32xf32> to vector<2x32xbf16>
    %cst_30 = arith.constant dense<0.000000e+00> : vector<2x128xf32>
    %92 = tpu.matmul %90, %0, %cst_30 {dimension_numbers = #tpu.dot_dimension_numbers<[1], [0], [0], [1], [0, 0, 1, 1], [], []>} : vector<2x32xbf16>, vector<32x128xbf16>, vector<2x128xf32> -> vector<2x128xf32>
    %cst_31 = arith.constant dense<0.000000e+00> : vector<2x128xf32>
    %93 = tpu.matmul %91, %1, %cst_31 {dimension_numbers = #tpu.dot_dimension_numbers<[1], [0], [0], [1], [0, 0, 1, 1], [], []>} : vector<2x32xbf16>, vector<32x128xbf16>, vector<2x128xf32> -> vector<2x128xf32>
    %94 = arith.addf %92, %93 : vector<2x128xf32>
    %95 = vector.broadcast %2 : vector<1x128xf32> to vector<2x128xf32>
    %96 = arith.addf %94, %95 : vector<2x128xf32>
    %97 = tpu.iota {dimensions = array<i32: 1>} : vector<2x128xi32>
    %c64_i32_32 = arith.constant 64 : i32
    %98 = vector.broadcast %c64_i32_32 : i32 to vector<2x128xi32>
    %99 = arith.cmpi sge, %97, %98 : vector<2x128xi32>
    %c96_i32_33 = arith.constant 96 : i32
    %100 = vector.broadcast %c96_i32_33 : i32 to vector<2x128xi32>
    %101 = arith.cmpi slt, %97, %100 : vector<2x128xi32>
    %102 = arith.andi %99, %101 : vector<2x128xi1>
    %cst_34 = arith.constant 2.000000e+00 : f32
    %103 = vector.broadcast %cst_34 : f32 to vector<2x128xf32>
    %104 = arith.mulf %103, %96 : vector<2x128xf32>
    %105 = arith.select %102, %104, %96 : vector<2x128xi1>, vector<2x128xf32>
    %106 = arith.negf %105 : vector<2x128xf32>
    %107 = math.exp %106 : vector<2x128xf32>
    %cst_35 = arith.constant 1.000000e+00 : f32
    %108 = vector.broadcast %cst_35 : f32 to vector<2x128xf32>
    %109 = arith.addf %108, %107 : vector<2x128xf32>
    %110 = arith.divf %108, %109 : vector<2x128xf32>
    %cst_36 = arith.constant 2.000000e+00 : f32
    %111 = vector.broadcast %cst_36 : f32 to vector<2x128xf32>
    %112 = arith.mulf %111, %110 : vector<2x128xf32>
    %cst_37 = arith.constant 1.000000e+00 : f32
    %113 = vector.broadcast %cst_37 : f32 to vector<2x128xf32>
    %114 = arith.subf %112, %113 : vector<2x128xf32>
    %115 = arith.select %102, %114, %110 : vector<2x128xi1>, vector<2x128xf32>
    %116 = vector.extract_strided_slice %115 {offsets = [0, 0], sizes = [2, 32], strides = [1, 1]} : vector<2x128xf32> to vector<2x32xf32>
    %117 = vector.extract_strided_slice %115 {offsets = [0, 32], sizes = [2, 32], strides = [1, 1]} : vector<2x128xf32> to vector<2x32xf32>
    %118 = vector.extract_strided_slice %115 {offsets = [0, 64], sizes = [2, 32], strides = [1, 1]} : vector<2x128xf32> to vector<2x32xf32>
    %119 = vector.extract_strided_slice %115 {offsets = [0, 96], sizes = [2, 32], strides = [1, 1]} : vector<2x128xf32> to vector<2x32xf32>
    %120 = arith.mulf %117, %81 : vector<2x32xf32>
    %121 = arith.mulf %116, %118 : vector<2x32xf32>
    %122 = arith.addf %120, %121 : vector<2x32xf32>
    %123 = math.tanh %122 : vector<2x32xf32>
    %124 = arith.mulf %119, %123 : vector<2x32xf32>
    %125 = vector.shape_cast %124 : vector<2x32xf32> to vector<2x1x32xf32>
    %c0_38 = arith.constant 0 : index
    %126 = arith.index_cast %c2_i32 : i32 to index
    %c0_39 = arith.constant 0 : index
    %127 = vector.load %arg5[%c0_38, %126, %c0_39] : memref<2x8x32xf32, #tpu.memory_space<vmem>>, vector<2x1x32xf32>
    tpu.vector_store %arg5[%c0_38, %126, %c0_39], %125 {strides = array<i32>} : memref<2x8x32xf32, #tpu.memory_space<vmem>>, vector<2x1x32xf32>,
    %c3_i32 = arith.constant 3 : i32
    %128 = arith.index_cast %c3_i32 : i32 to index
    %c0_40 = arith.constant 0 : index
    %c0_41 = arith.constant 0 : index
    %129 = vector.load %arg1[%128, %c0_40, %c0_41] : memref<8x2x32xf32, #tpu.memory_space<vmem>>, vector<1x2x32xf32>
    %130 = vector.shape_cast %129 : vector<1x2x32xf32> to vector<2x32xf32>
    %131 = arith.truncf %130 : vector<2x32xf32> to vector<2x32xbf16>
    %132 = arith.truncf %124 : vector<2x32xf32> to vector<2x32xbf16>
    %cst_42 = arith.constant dense<0.000000e+00> : vector<2x128xf32>
    %133 = tpu.matmul %131, %0, %cst_42 {dimension_numbers = #tpu.dot_dimension_numbers<[1], [0], [0], [1], [0, 0, 1, 1], [], []>} : vector<2x32xbf16>, vector<32x128xbf16>, vector<2x128xf32> -> vector<2x128xf32>
    %cst_43 = arith.constant dense<0.000000e+00> : vector<2x128xf32>
    %134 = tpu.matmul %132, %1, %cst_43 {dimension_numbers = #tpu.dot_dimension_numbers<[1], [0], [0], [1], [0, 0, 1, 1], [], []>} : vector<2x32xbf16>, vector<32x128xbf16>, vector<2x128xf32> -> vector<2x128xf32>
    %135 = arith.addf %133, %134 : vector<2x128xf32>
    %136 = vector.broadcast %2 : vector<1x128xf32> to vector<2x128xf32>
    %137 = arith.addf %135, %136 : vector<2x128xf32>
    %138 = tpu.iota {dimensions = array<i32: 1>} : vector<2x128xi32>
    %c64_i32_44 = arith.constant 64 : i32
    %139 = vector.broadcast %c64_i32_44 : i32 to vector<2x128xi32>
    %140 = arith.cmpi sge, %138, %139 : vector<2x128xi32>
    %c96_i32_45 = arith.constant 96 : i32
    %141 = vector.broadcast %c96_i32_45 : i32 to vector<2x128xi32>
    %142 = arith.cmpi slt, %138, %141 : vector<2x128xi32>
    %143 = arith.andi %140, %142 : vector<2x128xi1>
    %cst_46 = arith.constant 2.000000e+00 : f32
    %144 = vector.broadcast %cst_46 : f32 to vector<2x128xf32>
    %145 = arith.mulf %144, %137 : vector<2x128xf32>
    %146 = arith.select %143, %145, %137 : vector<2x128xi1>, vector<2x128xf32>
    %147 = arith.negf %146 : vector<2x128xf32>
    %148 = math.exp %147 : vector<2x128xf32>
    %cst_47 = arith.constant 1.000000e+00 : f32
    %149 = vector.broadcast %cst_47 : f32 to vector<2x128xf32>
    %150 = arith.addf %149, %148 : vector<2x128xf32>
    %151 = arith.divf %149, %150 : vector<2x128xf32>
    %cst_48 = arith.constant 2.000000e+00 : f32
    %152 = vector.broadcast %cst_48 : f32 to vector<2x128xf32>
    %153 = arith.mulf %152, %151 : vector<2x128xf32>
    %cst_49 = arith.constant 1.000000e+00 : f32
    %154 = vector.broadcast %cst_49 : f32 to vector<2x128xf32>
    %155 = arith.subf %153, %154 : vector<2x128xf32>
    %156 = arith.select %143, %155, %151 : vector<2x128xi1>, vector<2x128xf32>
    %157 = vector.extract_strided_slice %156 {offsets = [0, 0], sizes = [2, 32], strides = [1, 1]} : vector<2x128xf32> to vector<2x32xf32>
    %158 = vector.extract_strided_slice %156 {offsets = [0, 32], sizes = [2, 32], strides = [1, 1]} : vector<2x128xf32> to vector<2x32xf32>
    %159 = vector.extract_strided_slice %156 {offsets = [0, 64], sizes = [2, 32], strides = [1, 1]} : vector<2x128xf32> to vector<2x32xf32>
    %160 = vector.extract_strided_slice %156 {offsets = [0, 96], sizes = [2, 32], strides = [1, 1]} : vector<2x128xf32> to vector<2x32xf32>
    %161 = arith.mulf %158, %122 : vector<2x32xf32>
    %162 = arith.mulf %157, %159 : vector<2x32xf32>
    %163 = arith.addf %161, %162 : vector<2x32xf32>
    %164 = math.tanh %163 : vector<2x32xf32>
    %165 = arith.mulf %160, %164 : vector<2x32xf32>
    %166 = vector.shape_cast %165 : vector<2x32xf32> to vector<2x1x32xf32>
    %c0_50 = arith.constant 0 : index
    %167 = arith.index_cast %c3_i32 : i32 to index
    %c0_51 = arith.constant 0 : index
    %168 = vector.load %arg5[%c0_50, %167, %c0_51] : memref<2x8x32xf32, #tpu.memory_space<vmem>>, vector<2x1x32xf32>
    tpu.vector_store %arg5[%c0_50, %167, %c0_51], %166 {strides = array<i32>} : memref<2x8x32xf32, #tpu.memory_space<vmem>>, vector<2x1x32xf32>,
    %c4_i32 = arith.constant 4 : i32
    %169 = arith.index_cast %c4_i32 : i32 to index
    %c0_52 = arith.constant 0 : index
    %c0_53 = arith.constant 0 : index
    %170 = vector.load %arg1[%169, %c0_52, %c0_53] : memref<8x2x32xf32, #tpu.memory_space<vmem>>, vector<1x2x32xf32>
    %171 = vector.shape_cast %170 : vector<1x2x32xf32> to vector<2x32xf32>
    %172 = arith.truncf %171 : vector<2x32xf32> to vector<2x32xbf16>
    %173 = arith.truncf %165 : vector<2x32xf32> to vector<2x32xbf16>
    %cst_54 = arith.constant dense<0.000000e+00> : vector<2x128xf32>
    %174 = tpu.matmul %172, %0, %cst_54 {dimension_numbers = #tpu.dot_dimension_numbers<[1], [0], [0], [1], [0, 0, 1, 1], [], []>} : vector<2x32xbf16>, vector<32x128xbf16>, vector<2x128xf32> -> vector<2x128xf32>
    %cst_55 = arith.constant dense<0.000000e+00> : vector<2x128xf32>
    %175 = tpu.matmul %173, %1, %cst_55 {dimension_numbers = #tpu.dot_dimension_numbers<[1], [0], [0], [1], [0, 0, 1, 1], [], []>} : vector<2x32xbf16>, vector<32x128xbf16>, vector<2x128xf32> -> vector<2x128xf32>
    %176 = arith.addf %174, %175 : vector<2x128xf32>
    %177 = vector.broadcast %2 : vector<1x128xf32> to vector<2x128xf32>
    %178 = arith.addf %176, %177 : vector<2x128xf32>
    %179 = tpu.iota {dimensions = array<i32: 1>} : vector<2x128xi32>
    %c64_i32_56 = arith.constant 64 : i32
    %180 = vector.broadcast %c64_i32_56 : i32 to vector<2x128xi32>
    %181 = arith.cmpi sge, %179, %180 : vector<2x128xi32>
    %c96_i32_57 = arith.constant 96 : i32
    %182 = vector.broadcast %c96_i32_57 : i32 to vector<2x128xi32>
    %183 = arith.cmpi slt, %179, %182 : vector<2x128xi32>
    %184 = arith.andi %181, %183 : vector<2x128xi1>
    %cst_58 = arith.constant 2.000000e+00 : f32
    %185 = vector.broadcast %cst_58 : f32 to vector<2x128xf32>
    %186 = arith.mulf %185, %178 : vector<2x128xf32>
    %187 = arith.select %184, %186, %178 : vector<2x128xi1>, vector<2x128xf32>
    %188 = arith.negf %187 : vector<2x128xf32>
    %189 = math.exp %188 : vector<2x128xf32>
    %cst_59 = arith.constant 1.000000e+00 : f32
    %190 = vector.broadcast %cst_59 : f32 to vector<2x128xf32>
    %191 = arith.addf %190, %189 : vector<2x128xf32>
    %192 = arith.divf %190, %191 : vector<2x128xf32>
    %cst_60 = arith.constant 2.000000e+00 : f32
    %193 = vector.broadcast %cst_60 : f32 to vector<2x128xf32>
    %194 = arith.mulf %193, %192 : vector<2x128xf32>
    %cst_61 = arith.constant 1.000000e+00 : f32
    %195 = vector.broadcast %cst_61 : f32 to vector<2x128xf32>
    %196 = arith.subf %194, %195 : vector<2x128xf32>
    %197 = arith.select %184, %196, %192 : vector<2x128xi1>, vector<2x128xf32>
    %198 = vector.extract_strided_slice %197 {offsets = [0, 0], sizes = [2, 32], strides = [1, 1]} : vector<2x128xf32> to vector<2x32xf32>
    %199 = vector.extract_strided_slice %197 {offsets = [0, 32], sizes = [2, 32], strides = [1, 1]} : vector<2x128xf32> to vector<2x32xf32>
    %200 = vector.extract_strided_slice %197 {offsets = [0, 64], sizes = [2, 32], strides = [1, 1]} : vector<2x128xf32> to vector<2x32xf32>
    %201 = vector.extract_strided_slice %197 {offsets = [0, 96], sizes = [2, 32], strides = [1, 1]} : vector<2x128xf32> to vector<2x32xf32>
    %202 = arith.mulf %199, %163 : vector<2x32xf32>
    %203 = arith.mulf %198, %200 : vector<2x32xf32>
    %204 = arith.addf %202, %203 : vector<2x32xf32>
    %205 = math.tanh %204 : vector<2x32xf32>
    %206 = arith.mulf %201, %205 : vector<2x32xf32>
    %207 = vector.shape_cast %206 : vector<2x32xf32> to vector<2x1x32xf32>
    %c0_62 = arith.constant 0 : index
    %208 = arith.index_cast %c4_i32 : i32 to index
    %c0_63 = arith.constant 0 : index
    %209 = vector.load %arg5[%c0_62, %208, %c0_63] : memref<2x8x32xf32, #tpu.memory_space<vmem>>, vector<2x1x32xf32>
    tpu.vector_store %arg5[%c0_62, %208, %c0_63], %207 {strides = array<i32>} : memref<2x8x32xf32, #tpu.memory_space<vmem>>, vector<2x1x32xf32>,
    %c5_i32 = arith.constant 5 : i32
    %210 = arith.index_cast %c5_i32 : i32 to index
    %c0_64 = arith.constant 0 : index
    %c0_65 = arith.constant 0 : index
    %211 = vector.load %arg1[%210, %c0_64, %c0_65] : memref<8x2x32xf32, #tpu.memory_space<vmem>>, vector<1x2x32xf32>
    %212 = vector.shape_cast %211 : vector<1x2x32xf32> to vector<2x32xf32>
    %213 = arith.truncf %212 : vector<2x32xf32> to vector<2x32xbf16>
    %214 = arith.truncf %206 : vector<2x32xf32> to vector<2x32xbf16>
    %cst_66 = arith.constant dense<0.000000e+00> : vector<2x128xf32>
    %215 = tpu.matmul %213, %0, %cst_66 {dimension_numbers = #tpu.dot_dimension_numbers<[1], [0], [0], [1], [0, 0, 1, 1], [], []>} : vector<2x32xbf16>, vector<32x128xbf16>, vector<2x128xf32> -> vector<2x128xf32>
    %cst_67 = arith.constant dense<0.000000e+00> : vector<2x128xf32>
    %216 = tpu.matmul %214, %1, %cst_67 {dimension_numbers = #tpu.dot_dimension_numbers<[1], [0], [0], [1], [0, 0, 1, 1], [], []>} : vector<2x32xbf16>, vector<32x128xbf16>, vector<2x128xf32> -> vector<2x128xf32>
    %217 = arith.addf %215, %216 : vector<2x128xf32>
    %218 = vector.broadcast %2 : vector<1x128xf32> to vector<2x128xf32>
    %219 = arith.addf %217, %218 : vector<2x128xf32>
    %220 = tpu.iota {dimensions = array<i32: 1>} : vector<2x128xi32>
    %c64_i32_68 = arith.constant 64 : i32
    %221 = vector.broadcast %c64_i32_68 : i32 to vector<2x128xi32>
    %222 = arith.cmpi sge, %220, %221 : vector<2x128xi32>
    %c96_i32_69 = arith.constant 96 : i32
    %223 = vector.broadcast %c96_i32_69 : i32 to vector<2x128xi32>
    %224 = arith.cmpi slt, %220, %223 : vector<2x128xi32>
    %225 = arith.andi %222, %224 : vector<2x128xi1>
    %cst_70 = arith.constant 2.000000e+00 : f32
    %226 = vector.broadcast %cst_70 : f32 to vector<2x128xf32>
    %227 = arith.mulf %226, %219 : vector<2x128xf32>
    %228 = arith.select %225, %227, %219 : vector<2x128xi1>, vector<2x128xf32>
    %229 = arith.negf %228 : vector<2x128xf32>
    %230 = math.exp %229 : vector<2x128xf32>
    %cst_71 = arith.constant 1.000000e+00 : f32
    %231 = vector.broadcast %cst_71 : f32 to vector<2x128xf32>
    %232 = arith.addf %231, %230 : vector<2x128xf32>
    %233 = arith.divf %231, %232 : vector<2x128xf32>
    %cst_72 = arith.constant 2.000000e+00 : f32
    %234 = vector.broadcast %cst_72 : f32 to vector<2x128xf32>
    %235 = arith.mulf %234, %233 : vector<2x128xf32>
    %cst_73 = arith.constant 1.000000e+00 : f32
    %236 = vector.broadcast %cst_73 : f32 to vector<2x128xf32>
    %237 = arith.subf %235, %236 : vector<2x128xf32>
    %238 = arith.select %225, %237, %233 : vector<2x128xi1>, vector<2x128xf32>
    %239 = vector.extract_strided_slice %238 {offsets = [0, 0], sizes = [2, 32], strides = [1, 1]} : vector<2x128xf32> to vector<2x32xf32>
    %240 = vector.extract_strided_slice %238 {offsets = [0, 32], sizes = [2, 32], strides = [1, 1]} : vector<2x128xf32> to vector<2x32xf32>
    %241 = vector.extract_strided_slice %238 {offsets = [0, 64], sizes = [2, 32], strides = [1, 1]} : vector<2x128xf32> to vector<2x32xf32>
    %242 = vector.extract_strided_slice %238 {offsets = [0, 96], sizes = [2, 32], strides = [1, 1]} : vector<2x128xf32> to vector<2x32xf32>
    %243 = arith.mulf %240, %204 : vector<2x32xf32>
    %244 = arith.mulf %239, %241 : vector<2x32xf32>
    %245 = arith.addf %243, %244 : vector<2x32xf32>
    %246 = math.tanh %245 : vector<2x32xf32>
    %247 = arith.mulf %242, %246 : vector<2x32xf32>
    %248 = vector.shape_cast %247 : vector<2x32xf32> to vector<2x1x32xf32>
    %c0_74 = arith.constant 0 : index
    %249 = arith.index_cast %c5_i32 : i32 to index
    %c0_75 = arith.constant 0 : index
    %250 = vector.load %arg5[%c0_74, %249, %c0_75] : memref<2x8x32xf32, #tpu.memory_space<vmem>>, vector<2x1x32xf32>
    tpu.vector_store %arg5[%c0_74, %249, %c0_75], %248 {strides = array<i32>} : memref<2x8x32xf32, #tpu.memory_space<vmem>>, vector<2x1x32xf32>,
    %c6_i32 = arith.constant 6 : i32
    %251 = arith.index_cast %c6_i32 : i32 to index
    %c0_76 = arith.constant 0 : index
    %c0_77 = arith.constant 0 : index
    %252 = vector.load %arg1[%251, %c0_76, %c0_77] : memref<8x2x32xf32, #tpu.memory_space<vmem>>, vector<1x2x32xf32>
    %253 = vector.shape_cast %252 : vector<1x2x32xf32> to vector<2x32xf32>
    %254 = arith.truncf %253 : vector<2x32xf32> to vector<2x32xbf16>
    %255 = arith.truncf %247 : vector<2x32xf32> to vector<2x32xbf16>
    %cst_78 = arith.constant dense<0.000000e+00> : vector<2x128xf32>
    %256 = tpu.matmul %254, %0, %cst_78 {dimension_numbers = #tpu.dot_dimension_numbers<[1], [0], [0], [1], [0, 0, 1, 1], [], []>} : vector<2x32xbf16>, vector<32x128xbf16>, vector<2x128xf32> -> vector<2x128xf32>
    %cst_79 = arith.constant dense<0.000000e+00> : vector<2x128xf32>
    %257 = tpu.matmul %255, %1, %cst_79 {dimension_numbers = #tpu.dot_dimension_numbers<[1], [0], [0], [1], [0, 0, 1, 1], [], []>} : vector<2x32xbf16>, vector<32x128xbf16>, vector<2x128xf32> -> vector<2x128xf32>
    %258 = arith.addf %256, %257 : vector<2x128xf32>
    %259 = vector.broadcast %2 : vector<1x128xf32> to vector<2x128xf32>
    %260 = arith.addf %258, %259 : vector<2x128xf32>
    %261 = tpu.iota {dimensions = array<i32: 1>} : vector<2x128xi32>
    %c64_i32_80 = arith.constant 64 : i32
    %262 = vector.broadcast %c64_i32_80 : i32 to vector<2x128xi32>
    %263 = arith.cmpi sge, %261, %262 : vector<2x128xi32>
    %c96_i32_81 = arith.constant 96 : i32
    %264 = vector.broadcast %c96_i32_81 : i32 to vector<2x128xi32>
    %265 = arith.cmpi slt, %261, %264 : vector<2x128xi32>
    %266 = arith.andi %263, %265 : vector<2x128xi1>
    %cst_82 = arith.constant 2.000000e+00 : f32
    %267 = vector.broadcast %cst_82 : f32 to vector<2x128xf32>
    %268 = arith.mulf %267, %260 : vector<2x128xf32>
    %269 = arith.select %266, %268, %260 : vector<2x128xi1>, vector<2x128xf32>
    %270 = arith.negf %269 : vector<2x128xf32>
    %271 = math.exp %270 : vector<2x128xf32>
    %cst_83 = arith.constant 1.000000e+00 : f32
    %272 = vector.broadcast %cst_83 : f32 to vector<2x128xf32>
    %273 = arith.addf %272, %271 : vector<2x128xf32>
    %274 = arith.divf %272, %273 : vector<2x128xf32>
    %cst_84 = arith.constant 2.000000e+00 : f32
    %275 = vector.broadcast %cst_84 : f32 to vector<2x128xf32>
    %276 = arith.mulf %275, %274 : vector<2x128xf32>
    %cst_85 = arith.constant 1.000000e+00 : f32
    %277 = vector.broadcast %cst_85 : f32 to vector<2x128xf32>
    %278 = arith.subf %276, %277 : vector<2x128xf32>
    %279 = arith.select %266, %278, %274 : vector<2x128xi1>, vector<2x128xf32>
    %280 = vector.extract_strided_slice %279 {offsets = [0, 0], sizes = [2, 32], strides = [1, 1]} : vector<2x128xf32> to vector<2x32xf32>
    %281 = vector.extract_strided_slice %279 {offsets = [0, 32], sizes = [2, 32], strides = [1, 1]} : vector<2x128xf32> to vector<2x32xf32>
    %282 = vector.extract_strided_slice %279 {offsets = [0, 64], sizes = [2, 32], strides = [1, 1]} : vector<2x128xf32> to vector<2x32xf32>
    %283 = vector.extract_strided_slice %279 {offsets = [0, 96], sizes = [2, 32], strides = [1, 1]} : vector<2x128xf32> to vector<2x32xf32>
    %284 = arith.mulf %281, %245 : vector<2x32xf32>
    %285 = arith.mulf %280, %282 : vector<2x32xf32>
    %286 = arith.addf %284, %285 : vector<2x32xf32>
    %287 = math.tanh %286 : vector<2x32xf32>
    %288 = arith.mulf %283, %287 : vector<2x32xf32>
    %289 = vector.shape_cast %288 : vector<2x32xf32> to vector<2x1x32xf32>
    %c0_86 = arith.constant 0 : index
    %290 = arith.index_cast %c6_i32 : i32 to index
    %c0_87 = arith.constant 0 : index
    %291 = vector.load %arg5[%c0_86, %290, %c0_87] : memref<2x8x32xf32, #tpu.memory_space<vmem>>, vector<2x1x32xf32>
    tpu.vector_store %arg5[%c0_86, %290, %c0_87], %289 {strides = array<i32>} : memref<2x8x32xf32, #tpu.memory_space<vmem>>, vector<2x1x32xf32>,
    %c7_i32 = arith.constant 7 : i32
    %292 = arith.index_cast %c7_i32 : i32 to index
    %c0_88 = arith.constant 0 : index
    %c0_89 = arith.constant 0 : index
    %293 = vector.load %arg1[%292, %c0_88, %c0_89] : memref<8x2x32xf32, #tpu.memory_space<vmem>>, vector<1x2x32xf32>
    %294 = vector.shape_cast %293 : vector<1x2x32xf32> to vector<2x32xf32>
    %295 = arith.truncf %294 : vector<2x32xf32> to vector<2x32xbf16>
    %296 = arith.truncf %288 : vector<2x32xf32> to vector<2x32xbf16>
    %cst_90 = arith.constant dense<0.000000e+00> : vector<2x128xf32>
    %297 = tpu.matmul %295, %0, %cst_90 {dimension_numbers = #tpu.dot_dimension_numbers<[1], [0], [0], [1], [0, 0, 1, 1], [], []>} : vector<2x32xbf16>, vector<32x128xbf16>, vector<2x128xf32> -> vector<2x128xf32>
    %cst_91 = arith.constant dense<0.000000e+00> : vector<2x128xf32>
    %298 = tpu.matmul %296, %1, %cst_91 {dimension_numbers = #tpu.dot_dimension_numbers<[1], [0], [0], [1], [0, 0, 1, 1], [], []>} : vector<2x32xbf16>, vector<32x128xbf16>, vector<2x128xf32> -> vector<2x128xf32>
    %299 = arith.addf %297, %298 : vector<2x128xf32>
    %300 = vector.broadcast %2 : vector<1x128xf32> to vector<2x128xf32>
    %301 = arith.addf %299, %300 : vector<2x128xf32>
    %302 = tpu.iota {dimensions = array<i32: 1>} : vector<2x128xi32>
    %c64_i32_92 = arith.constant 64 : i32
    %303 = vector.broadcast %c64_i32_92 : i32 to vector<2x128xi32>
    %304 = arith.cmpi sge, %302, %303 : vector<2x128xi32>
    %c96_i32_93 = arith.constant 96 : i32
    %305 = vector.broadcast %c96_i32_93 : i32 to vector<2x128xi32>
    %306 = arith.cmpi slt, %302, %305 : vector<2x128xi32>
    %307 = arith.andi %304, %306 : vector<2x128xi1>
    %cst_94 = arith.constant 2.000000e+00 : f32
    %308 = vector.broadcast %cst_94 : f32 to vector<2x128xf32>
    %309 = arith.mulf %308, %301 : vector<2x128xf32>
    %310 = arith.select %307, %309, %301 : vector<2x128xi1>, vector<2x128xf32>
    %311 = arith.negf %310 : vector<2x128xf32>
    %312 = math.exp %311 : vector<2x128xf32>
    %cst_95 = arith.constant 1.000000e+00 : f32
    %313 = vector.broadcast %cst_95 : f32 to vector<2x128xf32>
    %314 = arith.addf %313, %312 : vector<2x128xf32>
    %315 = arith.divf %313, %314 : vector<2x128xf32>
    %cst_96 = arith.constant 2.000000e+00 : f32
    %316 = vector.broadcast %cst_96 : f32 to vector<2x128xf32>
    %317 = arith.mulf %316, %315 : vector<2x128xf32>
    %cst_97 = arith.constant 1.000000e+00 : f32
    %318 = vector.broadcast %cst_97 : f32 to vector<2x128xf32>
    %319 = arith.subf %317, %318 : vector<2x128xf32>
    %320 = arith.select %307, %319, %315 : vector<2x128xi1>, vector<2x128xf32>
    %321 = vector.extract_strided_slice %320 {offsets = [0, 0], sizes = [2, 32], strides = [1, 1]} : vector<2x128xf32> to vector<2x32xf32>
    %322 = vector.extract_strided_slice %320 {offsets = [0, 32], sizes = [2, 32], strides = [1, 1]} : vector<2x128xf32> to vector<2x32xf32>
    %323 = vector.extract_strided_slice %320 {offsets = [0, 64], sizes = [2, 32], strides = [1, 1]} : vector<2x128xf32> to vector<2x32xf32>
    %324 = vector.extract_strided_slice %320 {offsets = [0, 96], sizes = [2, 32], strides = [1, 1]} : vector<2x128xf32> to vector<2x32xf32>
    %325 = arith.mulf %322, %286 : vector<2x32xf32>
    %326 = arith.mulf %321, %323 : vector<2x32xf32>
    %327 = arith.addf %325, %326 : vector<2x32xf32>
    %328 = math.tanh %327 : vector<2x32xf32>
    %329 = arith.mulf %324, %328 : vector<2x32xf32>
    %330 = vector.shape_cast %329 : vector<2x32xf32> to vector<2x1x32xf32>
    %c0_98 = arith.constant 0 : index
    %331 = arith.index_cast %c7_i32 : i32 to index
    %c0_99 = arith.constant 0 : index
    %332 = vector.load %arg5[%c0_98, %331, %c0_99] : memref<2x8x32xf32, #tpu.memory_space<vmem>>, vector<2x1x32xf32>
    tpu.vector_store %arg5[%c0_98, %331, %c0_99], %330 {strides = array<i32>} : memref<2x8x32xf32, #tpu.memory_space<vmem>>, vector<2x1x32xf32>,
    %c8_i32 = arith.constant 8 : i32
    %c0_100 = arith.constant 0 : index
    %c0_101 = arith.constant 0 : index
    %333 = vector.load %arg6[%c0_100, %c0_101] : memref<2x32xf32, #tpu.memory_space<vmem>>, vector<2x32xf32>
    tpu.vector_store %arg6[%c0_100, %c0_101], %329 {strides = array<i32>} : memref<2x32xf32, #tpu.memory_space<vmem>>, vector<2x32xf32>,
    %c0_102 = arith.constant 0 : index
    %c0_103 = arith.constant 0 : index
    %334 = vector.load %arg7[%c0_102, %c0_103] : memref<2x32xf32, #tpu.memory_space<vmem>>, vector<2x32xf32>
    tpu.vector_store %arg7[%c0_102, %c0_103], %327 {strides = array<i32>} : memref<2x32xf32, #tpu.memory_space<vmem>>, vector<2x32xf32>,
    return
  }
  func.func @transform_0(%arg0: i32) -> (i32, i32, i32) {
    %c0_i32 = arith.constant 0 : i32
    %c0_i32_0 = arith.constant 0 : i32
    %c0_i32_1 = arith.constant 0 : i32
    return %c0_i32, %arg0, %c0_i32_0 : i32, i32, i32
  }
  func.func @transform_1(%arg0: i32) -> (i32, i32) {
    %c0_i32 = arith.constant 0 : i32
    %c0_i32_0 = arith.constant 0 : i32
    %c0_i32_1 = arith.constant 0 : i32
    return %c0_i32, %c0_i32_0 : i32, i32
  }
  func.func @transform_2(%arg0: i32) -> (i32, i32) {
    %c0_i32 = arith.constant 0 : i32
    %c0_i32_0 = arith.constant 0 : i32
    %c0_i32_1 = arith.constant 0 : i32
    return %c0_i32, %c0_i32_0 : i32, i32
  }
  func.func @transform_3(%arg0: i32) -> (i32, i32) {
    %c0_i32 = arith.constant 0 : i32
    %c0_i32_0 = arith.constant 0 : i32
    %c0_i32_1 = arith.constant 0 : i32
    return %c0_i32, %c0_i32_0 : i32, i32
  }
  func.func @transform_4(%arg0: i32) -> (i32, i32, i32) {
    %c0_i32 = arith.constant 0 : i32
    %c0_i32_0 = arith.constant 0 : i32
    %c0_i32_1 = arith.constant 0 : i32
    return %arg0, %c0_i32, %c0_i32_0 : i32, i32, i32
  }
  func.func @transform_5(%arg0: i32) -> (i32, i32) {
    %c0_i32 = arith.constant 0 : i32
    %c0_i32_0 = arith.constant 0 : i32
    return %arg0, %c0_i32 : i32, i32
  }
  func.func @transform_6(%arg0: i32) -> (i32, i32) {
    %c0_i32 = arith.constant 0 : i32
    %c0_i32_0 = arith.constant 0 : i32
    return %arg0, %c0_i32 : i32, i32
  }
}

</mosaic_0001>

<bundles_post_ra>
// kernel: pointer_net_forward.2
= control target key start
LH: loop header
LB: loop body
LE: loop exit
PB: predicated region body
PF: predicated region fallthrough
CT: control target
= control target key end

     0   :  { %v1650_v0 = vmov 0.0   ;;  %vm1651_vm0 = vmmov 0   ;;  %vm44_vm1 = vcmask 261120   ;;  %v1652_v7 = vmov 0   ;;  %s1654_s7 = smov 32   ;;  %s1656_s15 = smov 96   ;;  %s2104_s2 = inlined_call_operand.vmem [shape: bf16[32,128], index: 2, kind: input, shape index: {}]   ;;  %s2105_s1 = inlined_call_operand.vmem [shape: bf16[32,128], index: 1, kind: input, shape index: {}]   ;;  %s2106_s0 = inlined_call_operand.vmem [shape: f32[8,2,32], index: 0, kind: input, shape index: {}]   ;;  %s2107_s3 = inlined_call_operand.vmem [shape: f32[1,128], index: 3, kind: input, shape index: {}]   ;;  %s2108_s4 = inlined_call_operand.vmem [shape: f32[2,8,32], index: 4, kind: output, shape index: {0}]   ;;  %s2109_s5 = inlined_call_operand.vmem [shape: f32[2,32], index: 5, kind: output, shape index: {1}]   ;;  %s2110_s6 = inlined_call_operand.vmem [shape: f32[2,32], index: 6, kind: output, shape index: {2}]  }
   0x1   :  { %1463 = vmatprep.subr.bf16.mxu0 %v1650_v0  ;;  %1471 = vmatprep.subr.bf16.mxu1 %v1650_v0  ;;  %v1697_v1 = vld [vmem:[%s2104_s2] sm:$0xff]   ;;  %v1712_v3 = vld [vmem:[%s2104_s2 + $0x8] sm:$0xff]   ;;  %v150_v8 = vlaneseq  ;;  %vm220_vm5 = vcmask 253952   ;;  %vm1353_vm6 = vcmask 254976  }
   0x2   :  { %v1702_v2 = vld [vmem:[%s2105_s1] sm:$0xff]   ;;  %1467 = vmatprep.mubr.msk.bf16.mxu0 %vm1651_vm0, %v1650_v0  ;;  %1475 = vmatprep.mubr.msk.bf16.mxu1 %vm1651_vm0, %v1650_v0  ;;  %v1719_v4 = vld [vmem:[%s2105_s1 + $0x8] sm:$0xff]  }
   0x3   :  { %1464 = vmatpush3.bf16.msra.mxu0 %v1697_v1  ;;  %1472 = vmatpush3.bf16.msra.mxu1 %v1702_v2  ;;  %v30_v5 = vld [vmem:[%s2106_s0] sm:$0x3]  ;;  %v151_v9 = vand.u32 127, %v150_v8  ;;  %v1380_v36 = vld [vmem:[%s2106_s0 + $0x2] sm:$0x3] }
   0x4   :  { %1465 = vmatprep.subr.bf16.mxu0 %v1650_v0  ;;  %1473 = vmatprep.subr.bf16.mxu1 %v1650_v0  ;;  %v31_v6 = vpack.c.bf16 %v30_v5, %v30_v5  ;;  %v1746_v11 = vld [vmem:[%s2107_s3] ss:$0 sm:$0xff]  ;;  %s1653_s3 = smov 64   ;;  %v225_v37 = vpack.c.bf16 %v1380_v36, %v1380_v36 }
   0x5   :  { %vm152_vm2 = vcmp.ge.s32.totalorder %v151_v9, 64  ;;  %vm153_vm3 = vcmp.lt.s32.totalorder %v151_v9, 96  ;;  %v1385_v9 = vld [vmem:[%s2106_s0 + $0x4] sm:$0x3] }
   0x6   :  { %vm1749_vm4 = vmand %vm152_vm2, %vm153_vm3 }
   0x7   :  { %1466 = vmatpush3.bf16.msra.mxu0 %v1712_v3  ;;  %1474 = vmatpush3.bf16.msra.mxu1 %v1719_v4 }
   0x8   :  { %1479 = vmatprep.subr.bf16.mxu0 %v1650_v0  ;;  %1487 = vmatprep.subr.bf16.mxu1 %v1650_v0 }
   0xa   :  { %1468 = vmatmul.mubr.bf16.vlgmr.msra.gmra.mrb[0].mxu0 %v1652_v7  ;;  %1476 = vmatmul.mubr.msk.bf16.vlgmr.msra.gmra.mrb[0].mxu1 %vm44_vm1, %v31_v6 }
   0xb   :  { %1480 = vmatpush3.bf16.msra.mxu0 %v1697_v1  ;;  %1488 = vmatpush3.bf16.msra.mxu1 %v1702_v2 }
   0xc   :  { %1481 = vmatprep.subr.bf16.mxu0 %v1650_v0  ;;  %1489 = vmatprep.subr.bf16.mxu1 %v1650_v0 }
   0xd   :  { %1491 = vmatprep.mubr.msk.bf16.mxu1 %vm1651_vm0, %v1650_v0  ;;  %1483 = vmatprep.mubr.msk.bf16.mxu0 %vm1651_vm0, %v1650_v0 }
   0xf   :  { %1482 = vmatpush3.bf16.msra.mxu0 %v1712_v3  ;;  %1490 = vmatpush3.bf16.msra.mxu1 %v1719_v4 }
  0x10   :  { %1495 = vmatprep.subr.bf16.mxu0 %v1650_v0  ;;  %1503 = vmatprep.subr.bf16.mxu1 %v1650_v0 }
  0x12   :  { %1492 = vmatmul.mubr.msk.bf16.vlgmr.msra.gmra.mrb[4].mxu1 %vm44_vm1, %v225_v37 }
  0x13   :  { %1504 = vmatpush3.bf16.msra.mxu1 %v1702_v2  ;;  %1507 = vmatprep.mubr.msk.bf16.mxu1 %vm1651_vm0, %v1650_v0 }
  0x14   :  { %1505 = vmatprep.subr.bf16.mxu1 %v1650_v0 }
  0x17   :  { %1506 = vmatpush3.bf16.msra.mxu1 %v1719_v4 }
  0x18   :  { %1519 = vmatprep.subr.bf16.mxu1 %v1650_v0 }
  0xdd   :  { %v82_v10 = vpop.f32.mrb[0].mxu0  ;;  %v137_v12 = vpop.f32.mrb[0].mxu1 }
  0xde   :  { %v1469_v13 = vpop.f32.mrb[1].mxu0  ;;  %v138_v14 = vadd.f32 %v137_v12, %v82_v10  ;;  %v1477_v15 = vpop.f32.mrb[1].mxu1  ;;  %v386_v10 = vpack.c.bf16 %v1385_v9, %v1385_v9 }
  0xdf   :  { %v85_v16 = vpop.f32.mrb[2].mxu0  ;;  %v140_v17 = vpop.f32.mrb[2].mxu1 }
  0xe0   :  { %v1470_v18 = vpop.f32.mrb[3].mxu0  ;;  %v149_v19 = vadd.f32 %v1746_v11, %v138_v14  ;;  %v1478_v20 = vpop.f32.mrb[3].mxu1  ;;  %1508 = vmatmul.mubr.msk.bf16.vlgmr.msra.gmra.mrb[8].mxu1 %vm44_vm1, %v386_v10 }
  0xe1   :  { %1520 = vmatpush3.bf16.msra.mxu1 %v1702_v2  ;;  %1523 = vmatprep.mubr.msk.bf16.mxu1 %vm1651_vm0, %v1650_v0 }
  0xe2   :  { %v155_v22 = vmul.f32 2.0, %v149_v19  ;;  %1521 = vmatprep.subr.bf16.mxu1 %v1650_v0 }
  0xe4   :  { %v156_v23 = vsel %vm1749_vm4, %v155_v22, %v149_v19 }
  0xe5   :  { %v1378_v24 = vmul.f32 -1.442695, %v156_v23  ;;  %v310_v42 = vpop.f32.mrb[4].mxu1  ;;  %1522 = vmatpush3.bf16.msra.mxu1 %v1719_v4 }
  0xe6   :  { %v1493_v43 = vpop.f32.mrb[5].mxu1  ;;  %1535 = vmatprep.subr.bf16.mxu1 %v1650_v0 }
  0xe7   :  { %1602 = vpow2.f32 %v1378_v24  ;;  %v313_v44 = vpop.f32.mrb[6].mxu1  ;;  %v1390_v43 = vld [vmem:[%s2106_s0 + $0x6] sm:$0x3] }
  0xe8   :  { %v1494_v45 = vpop.f32.mrb[7].mxu1  ;;  %v547_v44 = vpack.c.bf16 %v1390_v43, %v1390_v43 }
  0xea   :  { %1524 = vmatmul.mubr.msk.bf16.vlgmr.msra.gmra.mrb[12].mxu1 %vm44_vm1, %v547_v44 }
  0xeb   :  { %1536 = vmatpush3.bf16.msra.mxu1 %v1702_v2  ;;  %1539 = vmatprep.mubr.msk.bf16.mxu1 %vm1651_vm0, %v1650_v0 }
  0xec   :  { %1537 = vmatprep.subr.bf16.mxu1 %v1650_v0 }
  0xef   :  { %1538 = vmatpush3.bf16.msra.mxu1 %v1719_v4 }
  0xf0   :  { %1551 = vmatprep.subr.bf16.mxu1 %v1650_v0 }
  0xf1   :  { %v1603_v25 = vpop.eup %1602 }
  0xf2   :  { %v160_v26 = vadd.f32 1.0, %v1603_v25 }
  0xf4   :  { %1604 = vrcp.f32 %v160_v26 }
  0xfe   :  { %v1605_v27 = vpop.eup %1604 }
  0xff   :  { %v163_v28 = vmul.f32 2.0, %v1605_v27 }
 0x101   :  { %v1379_v29 = vadd.f32 -1.0, %v163_v28 }
 0x103   :  { %v165_v30 = vsel %vm1749_vm4, %v1379_v29, %v1605_v27 }
 0x104   :  { %168 = vrot.lane.b32.xlu0 %v165_v30, %s1653_s3  ;;  %v166_v33 = vmul.f32 0.0, %v165_v30 }
 0x176   :  { %v169_v31 = vpop.permute.xlu0 %168 }
 0x177   :  { %v171_v32 = vmul.f32 %v169_v31, %v165_v30 }
 0x179   :  { %173 = vrot.lane.b32.xlu0 %v171_v32, %s1654_s7 }
 0x1b3   :  { %v471_v16 = vpop.f32.mrb[8].mxu1 }
 0x1b4   :  { %v1509_v17 = vpop.f32.mrb[9].mxu1 }
 0x1b5   :  { %v474_v18 = vpop.f32.mrb[10].mxu1 }
 0x1b6   :  { %v1510_v19 = vpop.f32.mrb[11].mxu1  ;;  %v1395_v18 = vld [vmem:[%s2106_s0 + $0x8] sm:$0x3] }
 0x1b7   :  { %v708_v19 = vpack.c.bf16 %v1395_v18, %v1395_v18 }
 0x1b9   :  { %1540 = vmatmul.mubr.msk.bf16.vlgmr.msra.gmra.mrb[16].mxu1 %vm44_vm1, %v708_v19 }
 0x1ba   :  { %1552 = vmatpush3.bf16.msra.mxu1 %v1702_v2  ;;  %1555 = vmatprep.mubr.msk.bf16.mxu1 %vm1651_vm0, %v1650_v0 }
 0x1bb   :  { %1553 = vmatprep.subr.bf16.mxu1 %v1650_v0 }
 0x1be   :  { %1554 = vmatpush3.bf16.msra.mxu1 %v1719_v4 }
 0x1bf   :  { %1567 = vmatprep.subr.bf16.mxu1 %v1650_v0 }
 0x1eb   :  { %v174_v34 = vpop.permute.xlu0 %173 }
 0x1ec   :  { %v176_v35 = vadd.f32 %v174_v34, %v166_v33 }
 0x1ee   :  { %1606 = vtanh.f32 %v176_v35 }
 0x1f8   :  { %v1607_v38 = vpop.eup %1606 }
 0x1f9   :  { %179 = vrot.lane.b32.xlu1 %v1607_v38, %s1653_s3 }
 0x26b   :  { %v180_v39 = vpop.permute.xlu1 %179 }
 0x26c   :  { %v1770_v40 = vmul.f32 %v180_v39, %v165_v30 }
 0x26e   :  { %v226_v41 = vpack.c.bf16 %v1770_v40, %v1770_v40 }
 0x270   :  { %228 = vrot.lane.b32.xlu1 %v226_v41, %s1654_s7 }
 0x2e2   :  { %v229_v46 = vpop.permute.xlu1 %228 }
 0x2e3   :  { %1484 = vmatmul.mubr.msk.bf16.vlgmr.msra.gmra.mrb[4].mxu0 %vm44_vm1, %v229_v46 }
 0x2e4   :  { %1496 = vmatpush3.bf16.msra.mxu0 %v1697_v1  ;;  %1499 = vmatprep.mubr.msk.bf16.mxu0 %vm1651_vm0, %v1650_v0 }
 0x2e5   :  { %1497 = vmatprep.subr.bf16.mxu0 %v1650_v0 }
 0x2e8   :  { %1498 = vmatpush3.bf16.msra.mxu0 %v1712_v3 }
 0x2e9   :  { %1511 = vmatprep.subr.bf16.mxu0 %v1650_v0 }
 0x3b6   :  { %v267_v47 = vpop.f32.mrb[4].mxu0 }
 0x3b7   :  { %v311_v48 = vadd.f32 %v310_v42, %v267_v47  ;;  %v1485_v49 = vpop.f32.mrb[5].mxu0 }
 0x3b8   :  { %v270_v50 = vpop.f32.mrb[6].mxu0  ;;  %v632_v49 = vpop.f32.mrb[12].mxu1 }
 0x3b9   :  { %v316_v51 = vadd.f32 %v1746_v11, %v311_v48  ;;  %v1486_v52 = vpop.f32.mrb[7].mxu0  ;;  %v1525_v50 = vpop.f32.mrb[13].mxu1 }
 0x3bb   :  { %v317_v53 = vmul.f32 2.0, %v316_v51 }
 0x3bd   :  { %v318_v54 = vsel %vm1749_vm4, %v317_v53, %v316_v51  ;;  %v635_v51 = vpop.f32.mrb[14].mxu1 }
 0x3be   :  { %v1383_v55 = vmul.f32 -1.442695, %v318_v54  ;;  %v1526_v52 = vpop.f32.mrb[15].mxu1 }
 0x3bf   :  { %v1400_v52 = vld [vmem:[%s2106_s0 + $0xa] sm:$0x3] }
 0x3c0   :  { %1608 = vpow2.f32 %v1383_v55 }
 0x3ca   :  { %v1609_v56 = vpop.eup %1608 }
 0x3cb   :  { %v322_v57 = vadd.f32 1.0, %v1609_v56 }
 0x3cd   :  { %1610 = vrcp.f32 %v322_v57 }
 0x3d7   :  { %v1611_v58 = vpop.eup %1610 }
 0x3d8   :  { %v325_v59 = vmul.f32 2.0, %v1611_v58 }
 0x3da   :  { %v1384_v60 = vadd.f32 -1.0, %v325_v59 }
 0x3dc   :  { %v327_v61 = vsel %vm1749_vm4, %v1384_v60, %v1611_v58 }
 0x3dd   :  { %330 = vrot.lane.b32.xlu0 %v327_v61, %s1653_s3  ;;  %v328_v5 = vmul.f32 %v327_v61, %v176_v35 }
 0x44f   :  { %v331_v62 = vpop.permute.xlu0 %330 }
 0x450   :  { %v333_v63 = vmul.f32 %v331_v62, %v327_v61 }
 0x452   :  { %335 = vrot.lane.b32.xlu1 %v333_v63, %s1654_s7 }
 0x4c4   :  { %v336_v6 = vpop.permute.xlu1 %335 }
 0x4c5   :  { %v338_v7 = vadd.f32 %v336_v6, %v328_v5 }
 0x4c7   :  { %1612 = vtanh.f32 %v338_v7 }
 0x4d1   :  { %v1613_v12 = vpop.eup %1612 }
 0x4d2   :  { %341 = vrot.lane.b32.xlu0 %v1613_v12, %s1653_s3 }
 0x544   :  { %v342_v13 = vpop.permute.xlu0 %341 }
 0x545   :  { %v1800_v14 = vmul.f32 %v342_v13, %v327_v61 }
 0x547   :  { %v387_v15 = vpack.c.bf16 %v1800_v14, %v1800_v14 }
 0x549   :  { %389 = vrot.lane.b32.xlu1 %v387_v15, %s1654_s7 }
 0x5bb   :  { %v390_v20 = vpop.permute.xlu1 %389 }
 0x5bc   :  { %1500 = vmatmul.mubr.msk.bf16.vlgmr.msra.gmra.mrb[8].mxu0 %vm44_vm1, %v390_v20 }
 0x5bd   :  { %1512 = vmatpush3.bf16.msra.mxu0 %v1697_v1  ;;  %1515 = vmatprep.mubr.msk.bf16.mxu0 %vm1651_vm0, %v1650_v0 }
 0x5be   :  { %1513 = vmatprep.subr.bf16.mxu0 %v1650_v0 }
 0x5c1   :  { %1514 = vmatpush3.bf16.msra.mxu0 %v1712_v3 }
 0x5c2   :  { %1527 = vmatprep.subr.bf16.mxu0 %v1650_v0 }
 0x68f   :  { %v428_v22 = vpop.f32.mrb[8].mxu0 }
 0x690   :  { %v472_v23 = vadd.f32 %v471_v16, %v428_v22  ;;  %v1501_v24 = vpop.f32.mrb[9].mxu0 }
 0x691   :  { %v431_v25 = vpop.f32.mrb[10].mxu0 }
 0x692   :  { %v477_v26 = vadd.f32 %v1746_v11, %v472_v23  ;;  %v1502_v27 = vpop.f32.mrb[11].mxu0  ;;  %v793_v25 = vpop.f32.mrb[16].mxu1 }
 0x694   :  { %v478_v28 = vmul.f32 2.0, %v477_v26 }
 0x696   :  { %v479_v29 = vsel %vm1749_vm4, %v478_v28, %v477_v26  ;;  %v1541_v26 = vpop.f32.mrb[17].mxu1 }
 0x697   :  { %v1388_v30 = vmul.f32 -1.442695, %v479_v29  ;;  %v796_v27 = vpop.f32.mrb[18].mxu1 }
 0x698   :  { %v1542_v28 = vpop.f32.mrb[19].mxu1 }
 0x699   :  { %1614 = vpow2.f32 %v1388_v30 }
 0x6a3   :  { %v1615_v31 = vpop.eup %1614 }
 0x6a4   :  { %v483_v32 = vadd.f32 1.0, %v1615_v31 }
 0x6a6   :  { %1616 = vrcp.f32 %v483_v32 }
 0x6b0   :  { %v1617_v33 = vpop.eup %1616 }
 0x6b1   :  { %v486_v34 = vmul.f32 2.0, %v1617_v33 }
 0x6b3   :  { %v1389_v35 = vadd.f32 -1.0, %v486_v34 }
 0x6b5   :  { %v488_v36 = vsel %vm1749_vm4, %v1389_v35, %v1617_v33 }
 0x6b6   :  { %491 = vrot.lane.b32.xlu0 %v488_v36, %s1653_s3  ;;  %v489_v39 = vmul.f32 %v488_v36, %v338_v7 }
 0x728   :  { %v492_v37 = vpop.permute.xlu0 %491 }
 0x729   :  { %v494_v38 = vmul.f32 %v492_v37, %v488_v36 }
 0x72b   :  { %496 = vrot.lane.b32.xlu1 %v494_v38, %s1654_s7 }
 0x79d   :  { %v497_v41 = vpop.permute.xlu1 %496 }
 0x79e   :  { %v499_v42 = vadd.f32 %v497_v41, %v489_v39 }
 0x7a0   :  { %1618 = vtanh.f32 %v499_v42 }
 0x7aa   :  { %v1619_v45 = vpop.eup %1618 }
 0x7ab   :  { %502 = vrot.lane.b32.xlu0 %v1619_v45, %s1653_s3 }
 0x81d   :  { %v503_v46 = vpop.permute.xlu0 %502 }
 0x81e   :  { %v1830_v47 = vmul.f32 %v503_v46, %v488_v36 }
 0x820   :  { %v548_v48 = vpack.c.bf16 %v1830_v47, %v1830_v47 }
 0x822   :  { %550 = vrot.lane.b32.xlu1 %v548_v48, %s1654_s7 }
 0x894   :  { %v551_v53 = vpop.permute.xlu1 %550 }
 0x895   :  { %1516 = vmatmul.mubr.msk.bf16.vlgmr.msra.gmra.mrb[12].mxu0 %vm44_vm1, %v551_v53  ;;  %v869_v53 = vpack.c.bf16 %v1400_v52, %v1400_v52 }
 0x896   :  { %1528 = vmatpush3.bf16.msra.mxu0 %v1697_v1  ;;  %1531 = vmatprep.mubr.msk.bf16.mxu0 %vm1651_vm0, %v1650_v0 }
 0x897   :  { %1529 = vmatprep.subr.bf16.mxu0 %v1650_v0  ;;  %1556 = vmatmul.mubr.msk.bf16.vlgmr.msra.gmra.mrb[20].mxu1 %vm44_vm1, %v869_v53 }
 0x898   :  { %1568 = vmatpush3.bf16.msra.mxu1 %v1702_v2  ;;  %1571 = vmatprep.mubr.msk.bf16.mxu1 %vm1651_vm0, %v1650_v0 }
 0x899   :  { %1569 = vmatprep.subr.bf16.mxu1 %v1650_v0 }
 0x89a   :  { %1530 = vmatpush3.bf16.msra.mxu0 %v1712_v3 }
 0x89b   :  { %1543 = vmatprep.subr.bf16.mxu0 %v1650_v0 }
 0x89c   :  { %1570 = vmatpush3.bf16.msra.mxu1 %v1719_v4 }
 0x89d   :  { %1583 = vmatprep.subr.bf16.mxu1 %v1650_v0 }
 0x968   :  { %v589_v54 = vpop.f32.mrb[12].mxu0 }
 0x969   :  { %v633_v55 = vadd.f32 %v632_v49, %v589_v54  ;;  %v1517_v56 = vpop.f32.mrb[13].mxu0 }
 0x96a   :  { %v592_v57 = vpop.f32.mrb[14].mxu0 }
 0x96b   :  { %v638_v58 = vadd.f32 %v1746_v11, %v633_v55  ;;  %v1518_v59 = vpop.f32.mrb[15].mxu0 }
 0x96d   :  { %v639_v60 = vmul.f32 2.0, %v638_v58 }
 0x96f   :  { %v640_v61 = vsel %vm1749_vm4, %v639_v60, %v638_v58  ;;  %v954_v58 = vpop.f32.mrb[20].mxu1 }
 0x970   :  { %v1393_v62 = vmul.f32 -1.442695, %v640_v61  ;;  %v1557_v59 = vpop.f32.mrb[21].mxu1 }
 0x971   :  { %v957_v60 = vpop.f32.mrb[22].mxu1 }
 0x972   :  { %1620 = vpow2.f32 %v1393_v62  ;;  %v1558_v61 = vpop.f32.mrb[23].mxu1 }
 0x97c   :  { %v1621_v63 = vpop.eup %1620 }
 0x97d   :  { %v644_v5 = vadd.f32 1.0, %v1621_v63 }
 0x97f   :  { %1622 = vrcp.f32 %v644_v5 }
 0x989   :  { %v1623_v6 = vpop.eup %1622 }
 0x98a   :  { %v647_v7 = vmul.f32 2.0, %v1623_v6 }
 0x98c   :  { %v1394_v9 = vadd.f32 -1.0, %v647_v7 }
 0x98e   :  { %v649_v10 = vsel %vm1749_vm4, %v1394_v9, %v1623_v6 }
 0x98f   :  { %652 = vrot.lane.b32.xlu0 %v649_v10, %s1653_s3  ;;  %v650_v15 = vmul.f32 %v649_v10, %v499_v42 }
 0xa01   :  { %v653_v12 = vpop.permute.xlu0 %652 }
 0xa02   :  { %v655_v13 = vmul.f32 %v653_v12, %v649_v10 }
 0xa04   :  { %657 = vrot.lane.b32.xlu1 %v655_v13, %s1654_s7 }
 0xa76   :  { %v658_v16 = vpop.permute.xlu1 %657 }
 0xa77   :  { %v660_v17 = vadd.f32 %v658_v16, %v650_v15 }
 0xa79   :  { %1624 = vtanh.f32 %v660_v17 }
 0xa83   :  { %v1625_v20 = vpop.eup %1624 }
 0xa84   :  { %663 = vrot.lane.b32.xlu0 %v1625_v20, %s1653_s3 }
 0xaf6   :  { %v664_v22 = vpop.permute.xlu0 %663 }
 0xaf7   :  { %v1860_v23 = vmul.f32 %v664_v22, %v649_v10 }
 0xaf9   :  { %v709_v24 = vpack.c.bf16 %v1860_v23, %v1860_v23 }
 0xafb   :  { %711 = vrot.lane.b32.xlu1 %v709_v24, %s1654_s7 }
 0xb6d   :  { %v712_v29 = vpop.permute.xlu1 %711 }
 0xb6e   :  { %1532 = vmatmul.mubr.msk.bf16.vlgmr.msra.gmra.mrb[16].mxu0 %vm44_vm1, %v712_v29  ;;  %v1405_v29 = vld [vmem:[%s2106_s0 + $0xc] sm:$0x3] }
 0xb6f   :  { %1544 = vmatpush3.bf16.msra.mxu0 %v1697_v1  ;;  %1547 = vmatprep.mubr.msk.bf16.mxu0 %vm1651_vm0, %v1650_v0 }
 0xb70   :  { %1545 = vmatprep.subr.bf16.mxu0 %v1650_v0 }
 0xb73   :  { %1546 = vmatpush3.bf16.msra.mxu0 %v1712_v3 }
 0xb74   :  { %1559 = vmatprep.subr.bf16.mxu0 %v1650_v0 }
 0xc41   :  { %v750_v30 = vpop.f32.mrb[16].mxu0 }
 0xc42   :  { %v794_v31 = vadd.f32 %v793_v25, %v750_v30  ;;  %v1533_v32 = vpop.f32.mrb[17].mxu0  ;;  %v1030_v30 = vpack.c.bf16 %v1405_v29, %v1405_v29 }
 0xc43   :  { %v753_v33 = vpop.f32.mrb[18].mxu0 }
 0xc44   :  { %v799_v34 = vadd.f32 %v1746_v11, %v794_v31  ;;  %v1534_v35 = vpop.f32.mrb[19].mxu0  ;;  %1572 = vmatmul.mubr.msk.bf16.vlgmr.msra.gmra.mrb[24].mxu1 %vm44_vm1, %v1030_v30 }
 0xc45   :  { %1584 = vmatpush3.bf16.msra.mxu1 %v1702_v2  ;;  %1587 = vmatprep.mubr.msk.bf16.mxu1 %vm1651_vm0, %v1650_v0 }
 0xc46   :  { %v800_v36 = vmul.f32 2.0, %v799_v34  ;;  %1585 = vmatprep.subr.bf16.mxu1 %v1650_v0 }
 0xc48   :  { %v801_v37 = vsel %vm1749_vm4, %v800_v36, %v799_v34 }
 0xc49   :  { %v1398_v38 = vmul.f32 -1.442695, %v801_v37  ;;  %1586 = vmatpush3.bf16.msra.mxu1 %v1719_v4 }
 0xc4b   :  { %1626 = vpow2.f32 %v1398_v38 }
 0xc55   :  { %v1627_v39 = vpop.eup %1626 }
 0xc56   :  { %v805_v41 = vadd.f32 1.0, %v1627_v39 }
 0xc58   :  { %1628 = vrcp.f32 %v805_v41 }
 0xc62   :  { %v1629_v42 = vpop.eup %1628 }
 0xc63   :  { %v808_v43 = vmul.f32 2.0, %v1629_v42 }
 0xc65   :  { %v1399_v44 = vadd.f32 -1.0, %v808_v43 }
 0xc67   :  { %v810_v45 = vsel %vm1749_vm4, %v1399_v44, %v1629_v42 }
 0xc68   :  { %813 = vrot.lane.b32.xlu0 %v810_v45, %s1653_s3  ;;  %v811_v49 = vmul.f32 %v810_v45, %v660_v17 }
 0xcda   :  { %v814_v46 = vpop.permute.xlu0 %813 }
 0xcdb   :  { %v816_v48 = vmul.f32 %v814_v46, %v810_v45 }
 0xcdd   :  { %818 = vrot.lane.b32.xlu1 %v816_v48, %s1654_s7 }
 0xd17   :  { %v1115_v35 = vpop.f32.mrb[24].mxu1 }
 0xd18   :  { %v1573_v2 = vpop.f32.mrb[25].mxu1 }
 0xd19   :  { %v1118_v36 = vpop.f32.mrb[26].mxu1 }
 0xd1a   :  { %v1574_v37 = vpop.f32.mrb[27].mxu1 }
 0xd4f   :  { %v819_v50 = vpop.permute.xlu1 %818 }
 0xd50   :  { %v821_v51 = vadd.f32 %v819_v50, %v811_v49 }
 0xd52   :  { %1630 = vtanh.f32 %v821_v51 }
 0xd5c   :  { %v1631_v54 = vpop.eup %1630 }
 0xd5d   :  { %824 = vrot.lane.b32.xlu0 %v1631_v54, %s1653_s3 }
 0xdcf   :  { %v825_v55 = vpop.permute.xlu0 %824 }
 0xdd0   :  { %v1890_v56 = vmul.f32 %v825_v55, %v810_v45 }
 0xdd2   :  { %v870_v57 = vpack.c.bf16 %v1890_v56, %v1890_v56 }
 0xdd4   :  { %872 = vrot.lane.b32.xlu1 %v870_v57, %s1654_s7 }
 0xe46   :  { %v873_v62 = vpop.permute.xlu1 %872 }
 0xe47   :  { %1548 = vmatmul.mubr.msk.bf16.vlgmr.msra.gmra.mrb[20].mxu0 %vm44_vm1, %v873_v62 }
 0xe48   :  { %1560 = vmatpush3.bf16.msra.mxu0 %v1697_v1  ;;  %1563 = vmatprep.mubr.msk.bf16.mxu0 %vm1651_vm0, %v1650_v0 }
 0xe49   :  { %1561 = vmatprep.subr.bf16.mxu0 %v1650_v0 }
 0xe4c   :  { %1562 = vmatpush3.bf16.msra.mxu0 %v1712_v3 }
 0xe4d   :  { %1575 = vmatprep.subr.bf16.mxu0 %v1650_v0 }
 0xf1a   :  { %v911_v63 = vpop.f32.mrb[20].mxu0 }
 0xf1b   :  { %v955_v5 = vadd.f32 %v954_v58, %v911_v63  ;;  %v1549_v6 = vpop.f32.mrb[21].mxu0  ;;  %v1410_v58 = vld [vmem:[%s2106_s0 + $0xe] sm:$0x3] }
 0xf1c   :  { %v914_v7 = vpop.f32.mrb[22].mxu0  ;;  %v1191_v59 = vpack.c.bf16 %v1410_v58, %v1410_v58 }
 0xf1d   :  { %v960_v9 = vadd.f32 %v1746_v11, %v955_v5  ;;  %v1550_v10 = vpop.f32.mrb[23].mxu0 }
 0xf1e   :  { %1588 = vmatmul.mubr.msk.bf16.vlgmr.msra.gmra.mrb[28].mxu1 %vm44_vm1, %v1191_v59 }
 0xf1f   :  { %v961_v12 = vmul.f32 2.0, %v960_v9 }
 0xf21   :  { %v962_v13 = vsel %vm1749_vm4, %v961_v12, %v960_v9 }
 0xf22   :  { %v1403_v15 = vmul.f32 -1.442695, %v962_v13 }
 0xf24   :  { %1632 = vpow2.f32 %v1403_v15 }
 0xf2e   :  { %v1633_v16 = vpop.eup %1632 }
 0xf2f   :  { %v966_v17 = vadd.f32 1.0, %v1633_v16 }
 0xf31   :  { %1634 = vrcp.f32 %v966_v17 }
 0xf3b   :  { %v1635_v18 = vpop.eup %1634 }
 0xf3c   :  { %v969_v19 = vmul.f32 2.0, %v1635_v18 }
 0xf3e   :  { %v1404_v20 = vadd.f32 -1.0, %v969_v19 }
 0xf40   :  { %v971_v22 = vsel %vm1749_vm4, %v1404_v20, %v1635_v18 }
 0xf41   :  { %974 = vrot.lane.b32.xlu0 %v971_v22, %s1653_s3  ;;  %v972_v26 = vmul.f32 %v971_v22, %v821_v51 }
 0xfb3   :  { %v975_v24 = vpop.permute.xlu0 %974 }
 0xfb4   :  { %v977_v25 = vmul.f32 %v975_v24, %v971_v22 }
 0xfb6   :  { %979 = vrot.lane.b32.xlu1 %v977_v25, %s1654_s7 }
 0xff1   :  { %v1276_v5 = vpop.f32.mrb[28].mxu1 }
 0xff2   :  { %v1589_v6 = vpop.f32.mrb[29].mxu1 }
 0xff3   :  { %v1279_v7 = vpop.f32.mrb[30].mxu1 }
 0xff4   :  { %v1590_v9 = vpop.f32.mrb[31].mxu1 }
0x1028   :  { %v980_v27 = vpop.permute.xlu1 %979 }
0x1029   :  { %v982_v28 = vadd.f32 %v980_v27, %v972_v26 }
0x102b   :  { %1636 = vtanh.f32 %v982_v28 }
0x1035   :  { %v1637_v31 = vpop.eup %1636 }
0x1036   :  { %985 = vrot.lane.b32.xlu0 %v1637_v31, %s1653_s3 }
0x10a8   :  { %v986_v32 = vpop.permute.xlu0 %985 }
0x10a9   :  { %v1919_v33 = vmul.f32 %v986_v32, %v971_v22  ;;  %v188_v32 = vshrl.u32 %v150_v8, 7 }
0x10ab   :  { %v1031_v34 = vpack.c.bf16 %v1919_v33, %v1919_v33  ;;  %v1961_v36 = vsub.s32 0, %v188_v32 }
0x10ad   :  { %1033 = vrot.lane.b32.xlu1 %v1031_v34, %s1654_s7 }
0x111f   :  { %v1034_v38 = vpop.permute.xlu1 %1033 }
0x1120   :  { %1564 = vmatmul.mubr.msk.bf16.vlgmr.msra.gmra.mrb[24].mxu0 %vm44_vm1, %v1034_v38 }
0x1121   :  { %1576 = vmatpush3.bf16.msra.mxu0 %v1697_v1  ;;  %1579 = vmatprep.mubr.msk.bf16.mxu0 %vm1651_vm0, %v1650_v0 }
0x1122   :  { %1577 = vmatprep.subr.bf16.mxu0 %v1650_v0 }
0x1125   :  { %1578 = vmatpush3.bf16.msra.mxu0 %v1712_v3 }
0x11f3   :  { %v1072_v4 = vpop.f32.mrb[24].mxu0 }
0x11f4   :  { %v1116_v39 = vadd.f32 %v1115_v35, %v1072_v4  ;;  %v1565_v41 = vpop.f32.mrb[25].mxu0 }
0x11f5   :  { %v1075_v42 = vpop.f32.mrb[26].mxu0 }
0x11f6   :  { %v1121_v43 = vadd.f32 %v1746_v11, %v1116_v39  ;;  %v1566_v44 = vpop.f32.mrb[27].mxu0 }
0x11f8   :  { %v1122_v45 = vmul.f32 2.0, %v1121_v43 }
0x11fa   :  { %v1123_v46 = vsel %vm1749_vm4, %v1122_v45, %v1121_v43 }
0x11fb   :  { %v1408_v48 = vmul.f32 -1.442695, %v1123_v46 }
0x11fd   :  { %1638 = vpow2.f32 %v1408_v48 }
0x1207   :  { %v1639_v1 = vpop.eup %1638 }
0x1208   :  { %v1127_v49 = vadd.f32 1.0, %v1639_v1 }
0x120a   :  { %1640 = vrcp.f32 %v1127_v49 }
0x1214   :  { %v1641_v50 = vpop.eup %1640 }
0x1215   :  { %v1130_v0 = vmul.f32 2.0, %v1641_v50 }
0x1217   :  { %v1409_v51 = vadd.f32 -1.0, %v1130_v0 }
0x1219   :  { %v1132_v3 = vsel %vm1749_vm4, %v1409_v51, %v1641_v50 }
0x121a   :  { %1135 = vrot.lane.b32.xlu0 %v1132_v3, %s1653_s3  ;;  %v1133_v54 = vmul.f32 %v1132_v3, %v982_v28 }
0x128c   :  { %v1136_v52 = vpop.permute.xlu0 %1135 }
0x128d   :  { %v1138_v53 = vmul.f32 %v1136_v52, %v1132_v3 }
0x128f   :  { %1140 = vrot.lane.b32.xlu1 %v1138_v53, %s1654_s7 }
0x1301   :  { %v1141_v55 = vpop.permute.xlu1 %1140 }
0x1302   :  { %v1937_v57 = vadd.f32 %v1141_v55, %v1133_v54 }
0x1304   :  { %1642 = vtanh.f32 %v1937_v57 }
0x130e   :  { %v1643_v60 = vpop.eup %1642 }
0x130f   :  { %1146 = vrot.lane.b32.xlu0 %v1643_v60, %s1653_s3 }
0x1381   :  { %v1147_v61 = vpop.permute.xlu0 %1146 }
0x1382   :  { %v1149_v62 = vmul.f32 %v1147_v61, %v1132_v3 }
0x1384   :  { %v1192_v63 = vpack.c.bf16 %v1149_v62, %v1149_v62 }
0x1386   :  { %1194 = vrot.lane.b32.xlu1 %v1192_v63, %s1654_s7 }
0x13f8   :  { %v1195_v10 = vpop.permute.xlu1 %1194 }
0x13f9   :  { %1580 = vmatmul.mubr.msk.bf16.vlgmr.msra.gmra.mrb[28].mxu0 %vm44_vm1, %v1195_v10 }
0x14cc   :  { %v1233_v12 = vpop.f32.mrb[28].mxu0 }
0x14cd   :  { %v1277_v13 = vadd.f32 %v1276_v5, %v1233_v12  ;;  %v1581_v15 = vpop.f32.mrb[29].mxu0 }
0x14ce   :  { %v1236_v16 = vpop.f32.mrb[30].mxu0 }
0x14cf   :  { %v1282_v17 = vadd.f32 %v1746_v11, %v1277_v13  ;;  %v1582_v18 = vpop.f32.mrb[31].mxu0  ;;  %v1655_v11 = vmov 1966171168  }
0x14d0   :  { %v185_v30 = vunpack.c.l.s4 %v1655_v11 }
0x14d1   :  { %v1283_v19 = vmul.f32 2.0, %v1282_v17 }
0x14d2   :  { %v186_v31 = vunpack.c.0.s8 %v185_v30 }
0x14d3   :  { %v1284_v20 = vsel %vm1749_vm4, %v1283_v19, %v1282_v17 }
0x14d4   :  { %v1413_v22 = vmul.f32 -1.442695, %v1284_v20  ;;  %v1957_v34 = vsub.s32 %v186_v31, %v188_v32 }
0x14d6   :  { %1644 = vpow2.f32 %v1413_v22  ;;  %v190_v35 = vrot.slane %v1770_v40, %v1957_v34  ;;  %v352_v37 = vrot.slane %v1800_v14, %v1957_v34  ;;  %v513_v8 = vrot.slane %v1830_v47, %v1957_v34 }
0x14d7   :  { %v674_v41 = vrot.slane %v1860_v23, %v1957_v34  ;;  %v835_v43 = vrot.slane %v1890_v56, %v1957_v34  ;;  %v996_v45 = vrot.slane %v1919_v33, %v1957_v34  ;;  %v1157_v48 = vrot.slane %v1149_v62, %v1957_v34 }
0x14d8   :  { %v198_v21 = vrot.slane %v190_v35, %v1957_v34  ;;  %v360_v4 = vrot.slane %v352_v37, %v1957_v34  ;;  %v521_v40 = vrot.slane %v513_v8, %v1957_v34  ;;  %v191_v52 = vcombine.high %v190_v35, %v190_v35 }
0x14d9   :  { %v682_v42 = vrot.slane %v674_v41, %v1957_v34  ;;  %v843_v44 = vrot.slane %v835_v43, %v1957_v34  ;;  %v1004_v46 = vrot.slane %v996_v45, %v1957_v34  ;;  %v1165_v56 = vrot.slane %v1157_v48, %v1957_v34 }
0x14da   :  { %v209_v39 = vrot.slane %v198_v21, %v1961_v36  ;;  %v371_v14 = vrot.slane %v360_v4, %v1961_v36  ;;  %v532_v47 = vrot.slane %v521_v40, %v1961_v36  ;;  %v353_v54 = vcombine.high %v352_v37, %v352_v37 }
0x14db   :  { %v693_v23 = vrot.slane %v682_v42, %v1961_v36  ;;  %v854_v1 = vrot.slane %v843_v44, %v1961_v36  ;;  %v1015_v49 = vrot.slane %v1004_v46, %v1961_v36  ;;  %v1176_v33 = vrot.slane %v1165_v56, %v1961_v36 }
0x14dc   :  { %v514_v59 = vcombine.high %v513_v8, %v513_v8  ;;  %v367_v62 = vrot.slane %v353_v54, %v1957_v34  ;;  %v675_v63 = vcombine.high %v674_v41, %v674_v41  ;;  %v836_v9 = vcombine.high %v835_v43, %v835_v43 }
0x14dd   :  { %v997_v15 = vcombine.high %v996_v45, %v996_v45  ;;  %v1158_v19 = vcombine.high %v1157_v48, %v1157_v48 }
0x14de   :  { %v375_v6 = vrot.slane %v367_v62, %v1961_v36  ;;  %v528_v7 = vrot.slane %v514_v59, %v1957_v34  ;;  %v689_v13 = vrot.slane %v675_v63, %v1957_v34  ;;  %v850_v18 = vrot.slane %v836_v9, %v1957_v34 }
0x14df   :  { %v1011_v22 = vrot.slane %v997_v15, %v1957_v34 }
0x14e0   :  { %v1645_v24 = vpop.eup %1644  ;;  %v536_v12 = vrot.slane %v528_v7, %v1961_v36  ;;  %v697_v17 = vrot.slane %v689_v13, %v1961_v36  ;;  %v858_v20 = vrot.slane %v850_v18, %v1961_v36 }
0x14e1   :  { %v1288_v25 = vadd.f32 1.0, %v1645_v24  ;;  %v1019_v24 = vrot.slane %v1011_v22, %v1961_v36 }
0x14e3   :  { %1646 = vrcp.f32 %v1288_v25  ;;  %v1172_v25 = vrot.slane %v1158_v19, %v1957_v34 }
0x14ed   :  { %v1647_v26 = vpop.eup %1646 }
0x14ee   :  { %v1291_v27 = vmul.f32 2.0, %v1647_v26 }
0x14f0   :  { %v1414_v28 = vadd.f32 -1.0, %v1291_v27 }
0x14f2   :  { %v1952_v29 = vsel %vm1749_vm4, %v1414_v28, %v1647_v26  ;;  %v1180_v26 = vrot.slane %v1172_v25, %v1961_v36 }
0x14f3   :  { %1296 = vrot.lane.b32.xlu0 %v1952_v29, %s1653_s3  ;;  %v1294_v50 = vmul.f32 %v1952_v29, %v1937_v57  ;;  %v205_v57 = vrot.slane %v191_v52, %v1957_v34 }
0x14f5   :  { %v213_v61 = vrot.slane %v205_v57, %v1961_v36 }
0x1565   :  { %v1297_v2 = vpop.permute.xlu0 %1296 }
0x1566   :  { %v1299_v38 = vmul.f32 %v1297_v2, %v1952_v29 }
0x1568   :  { %1301 = vrot.lane.b32.xlu1 %v1299_v38, %s1654_s7 }
0x156c   :  { %214 = vrot.lane.b32.xlu1 %v209_v39, %s1654_s7 }
0x1570   :  { %376 = vrot.lane.b32.xlu1 %v371_v14, %s1654_s7 }
0x1574   :  { %537 = vrot.lane.b32.xlu1 %v532_v47, %s1654_s7 }
0x1578   :  { %698 = vrot.lane.b32.xlu1 %v693_v23, %s1654_s7 }
0x157c   :  { %859 = vrot.lane.b32.xlu1 %v854_v1, %s1654_s7 }
0x1580   :  { %1020 = vrot.lane.b32.xlu1 %v1015_v49, %s1654_s7 }
0x1584   :  { %1181 = vrot.lane.b32.xlu1 %v1176_v33, %s1654_s7 }
0x15da   :  { %v1302_v0 = vpop.permute.xlu1 %1301 }
0x15db   :  { %v1999_v51 = vadd.f32 %v1302_v0, %v1294_v50 }
0x15dd   :  { %1648 = vtanh.f32 %v1999_v51 }
0x15de   :  { %v215_v3 = vpop.permute.xlu1 %214 }
0x15df   :  { %221 = vst.msk [vmem:[%s2108_s4] sm:$0x1] %vm220_vm5, %v215_v3 }
0x15e2   :  { %v377_v53 = vpop.permute.xlu1 %376 }
0x15e3   :  { %382 = vst.msk [vmem:[%s2108_s4 + $0x1] sm:$0x1] %vm220_vm5, %v377_v53 }
0x15e6   :  { %v538_v55 = vpop.permute.xlu1 %537 }
0x15e7   :  { %v1649_v58 = vpop.eup %1648  ;;  %543 = vst.msk [vmem:[%s2108_s4 + $0x2] sm:$0x1] %vm220_vm5, %v538_v55 }
0x15e8   :  { %1307 = vrot.lane.b32.xlu0 %v1649_v58, %s1653_s3 }
0x15ea   :  { %v699_v60 = vpop.permute.xlu1 %698 }
0x15eb   :  { %704 = vst.msk [vmem:[%s2108_s4 + $0x3] sm:$0x1] %vm220_vm5, %v699_v60 }
0x15ec   :  { %216 = vrot.lane.b32.xlu0 %v213_v61, %s1654_s7 }
0x15ee   :  { %v860_v5 = vpop.permute.xlu1 %859 }
0x15ef   :  { %865 = vst.msk [vmem:[%s2108_s4 + $0x4] sm:$0x1] %vm220_vm5, %v860_v5 }
0x15f0   :  { %378 = vrot.lane.b32.xlu0 %v375_v6, %s1654_s7 }
0x15f2   :  { %v1021_v10 = vpop.permute.xlu1 %1020 }
0x15f3   :  { %1026 = vst.msk [vmem:[%s2108_s4 + $0x5] sm:$0x1] %vm220_vm5, %v1021_v10 }
0x15f4   :  { %539 = vrot.lane.b32.xlu0 %v536_v12, %s1654_s7 }
0x15f6   :  { %v1182_v16 = vpop.permute.xlu1 %1181 }
0x15f7   :  { %1187 = vst.msk [vmem:[%s2108_s4 + $0x6] sm:$0x1] %vm220_vm5, %v1182_v16 }
0x15f8   :  { %700 = vrot.lane.b32.xlu0 %v697_v17, %s1654_s7 }
0x15fc   :  { %861 = vrot.lane.b32.xlu0 %v858_v20, %s1654_s7 }
0x1600   :  { %1022 = vrot.lane.b32.xlu0 %v1019_v24, %s1654_s7 }
0x1604   :  { %1183 = vrot.lane.b32.xlu0 %v1180_v26, %s1654_s7 }
0x165a   :  { %v1308_v27 = vpop.permute.xlu0 %1307 }
0x165b   :  { %v1310_v28 = vmul.f32 %v1308_v27, %v1952_v29 }
0x165d   :  { %v1318_v11 = vrot.slane %v1310_v28, %v1957_v34 }
0x165e   :  { %v217_v30 = vpop.permute.xlu0 %216 }
0x165f   :  { %v1319_v31 = vcombine.high %v1318_v11, %v1318_v11  ;;  %v1326_v32 = vrot.slane %v1318_v11, %v1957_v34  ;;  %222 = vst.msk [vmem:[%s2108_s4 + $0x8] sm:$0x1] %vm220_vm5, %v217_v30 }
0x1661   :  { %v1337_v35 = vrot.slane %v1326_v32, %v1961_v36  ;;  %v1333_v2 = vrot.slane %v1319_v31, %v1957_v34 }
0x1662   :  { %v379_v21 = vpop.permute.xlu0 %378 }
0x1663   :  { %383 = vst.msk [vmem:[%s2108_s4 + $0x9] sm:$0x1] %vm220_vm5, %v379_v21  ;;  %1342 = vrot.lane.b32.xlu1 %v1337_v35, %s1654_s7  ;;  %v1341_v29 = vrot.slane %v1333_v2, %v1961_v36 }
0x1665   :  { %1344 = vrot.lane.b32.xlu0 %v1341_v29, %s1654_s7 }
0x1666   :  { %v540_v37 = vpop.permute.xlu0 %539 }
0x1667   :  { %544 = vst.msk [vmem:[%s2108_s4 + $0xa] sm:$0x1] %vm220_vm5, %v540_v37  ;;  %1350 = vrot.lane.b32.xlu1 %v1310_v28, %s1654_s7 }
0x1669   :  { %1356 = vrot.lane.b32.xlu0 %v1999_v51, %s1656_s15 }
0x166a   :  { %v701_v34 = vpop.permute.xlu0 %700 }
0x166b   :  { %705 = vst.msk [vmem:[%s2108_s4 + $0xb] sm:$0x1] %vm220_vm5, %v701_v34 }
0x166e   :  { %v862_v36 = vpop.permute.xlu0 %861 }
0x166f   :  { %866 = vst.msk [vmem:[%s2108_s4 + $0xc] sm:$0x1] %vm220_vm5, %v862_v36 }
0x1672   :  { %v1023_v38 = vpop.permute.xlu0 %1022 }
0x1673   :  { %1027 = vst.msk [vmem:[%s2108_s4 + $0xd] sm:$0x1] %vm220_vm5, %v1023_v38 }
0x1676   :  { %v1184_v4 = vpop.permute.xlu0 %1183 }
0x1677   :  { %1188 = vst.msk [vmem:[%s2108_s4 + $0xe] sm:$0x1] %vm220_vm5, %v1184_v4 }
0x16d5   :  { %v1343_v8 = vpop.permute.xlu1 %1342 }
0x16d6   :  { %1348 = vst.msk [vmem:[%s2108_s4 + $0x7] sm:$0x1] %vm220_vm5, %v1343_v8 }
0x16d7   :  { %v1345_v39 = vpop.permute.xlu0 %1344 }
0x16d8   :  { %1349 = vst.msk [vmem:[%s2108_s4 + $0xf] sm:$0x1] %vm220_vm5, %v1345_v39 }
0x16d9   :  { %v1351_v40 = vpop.permute.xlu1 %1350 }
0x16da   :  { %1354 = vst.msk [vmem:[%s2109_s5] sm:$0x3] %vm1353_vm6, %v1351_v40 }
0x16db   :  { %v1357_v41 = vpop.permute.xlu0 %1356 }
0x16dc   :  { %1359 = vst.msk [vmem:[%s2110_s6] sm:$0x3] %vm1353_vm6, %v1357_v41 }

// kernel: pointer_net_forward.3
= control target key start
LH: loop header
LB: loop body
LE: loop exit
PB: predicated region body
PF: predicated region fallthrough
CT: control target
= control target key end

     0   :  { %s6738_s0 = inlined_call_operand.vmem [shape: f32[2,8,32], index: 0, kind: input, shape index: {}]   ;;  %s6739_s1 = inlined_call_operand.vmem [shape: f32[2,8,32], index: 1, kind: input, shape index: {}]   ;;  %s6740_s2 = inlined_call_operand.vmem [shape: f32[2,32], index: 2, kind: input, shape index: {}]   ;;  %s6741_s3 = inlined_call_operand.vmem [shape: f32[2,32], index: 3, kind: input, shape index: {}]   ;;  %s6742_s4 = inlined_call_operand.vmem [shape: f32[2,8], index: 4, kind: input, shape index: {}]   ;;  %s6743_s5 = inlined_call_operand.vmem [shape: f32[1,32], index: 5, kind: input, shape index: {}]   ;;  %s6744_s6 = inlined_call_operand.vmem [shape: bf16[32,128], index: 6, kind: input, shape index: {}]   ;;  %s6745_s7 = inlined_call_operand.vmem [shape: bf16[32,128], index: 7, kind: input, shape index: {}]   ;;  %s6746_s8 = inlined_call_operand.hbm [shape: f32[1,128], index: 8, kind: input, shape index: {}]   ;;  %s6747_s9 = inlined_call_operand.vmem [shape: bf16[32,32], index: 9, kind: input, shape index: {}]   ;;  %s6748_s10 = inlined_call_operand.vmem [shape: f32[1,32], index: 10, kind: input, shape index: {}]   ;;  %s6749_s11 = inlined_call_operand.vmem [shape: bf16[32,32], index: 11, kind: input, shape index: {}]   ;;  %s6750_s12 = inlined_call_operand.hbm [shape: f32[1,32], index: 12, kind: input, shape index: {}]   ;;  %s6751_s13 = inlined_call_operand.hbm [shape: f32[1,32], index: 13, kind: input, shape index: {}]   ;;  %s6752_s14 = inlined_call_operand.hbm [shape: bf16[32,32], index: 14, kind: input, shape index: {}]   ;;  %s6753_s15 = inlined_call_operand.vmem [shape: bf16[32,32], index: 15, kind: input, shape index: {}]   ;;  %s6754_s16 = inlined_call_operand.hbm [shape: f32[1,32], index: 16, kind: input, shape index: {}]   ;;  %s6755_s17 = inlined_call_operand.hbm [shape: f32[2,8,8], index: 17, kind: output, shape index: {0}]   ;;  %s6756_s18 = inlined_call_operand.hbm [shape: s32[2,8], index: 18, kind: output, shape index: {1}]  }
   0x1   :  { %6759 = sst [smem:[#allocation19_spill]] %s6738_s0 }
   0x2   :  { %6760 = sst [smem:[#allocation20_spill]] %s6739_s1 }
   0x3   :  { %6761 = sst [smem:[#allocation21_spill]] %s6740_s2 }
   0x4   :  { %24 = vsyncpa [#allocation3], 0 }
   0x5   :  { %25 = vsyncpa [#allocation6], 0 }
   0x6   :  { %26 = vsyncpa [#allocation9], 0 }
   0x7   :  { %27 = vsyncpa [#allocation4], 0 }
   0x8   :  { %28 = vsyncpa [#allocation13], 0  ;;  %s5421_s27 = smov [#allocation5]   ;;  %s5422_s29 = smov [#allocation8]  }
   0x9   :  { %s67_s28 = sshll.u32 %s5421_s27, 4  ;;  %s86_s30 = sshll.u32 %s5422_s29, 4  ;;  %s68_s28 = int_to_ptr.vmem [resolvable:$true] %s67_s28  ;;  %s5532_s30 = int_to_ptr.vmem [resolvable:$true] %s86_s30 }
   0xa   :  { %s5257_s1 = scalar_lea.hbm %s6750_s12, 16 }
   0xb   :  { %p5258_p0 = scmp.ne.s32.totalorder %s6750_s12, %s5257_s1  ;;  %p5261_p1 = scmp.lt.u32.totalorder %s5257_s1, %s6750_s12 }
   0xd   :  { %p5263_p2 = pnand %p5261_p1, %p5258_p0 }
   0xf   :  { %5266 = shalt.err (!%p5263_p2)
}
  0x10   :  { %s5267_s23 = scalar_lea.vmem %s68_s28, 16  ;;  %s5271_s24 = scalar_lea.vmem %s68_s28, 32 }
  0x11   :  { %p5268_p3 = scmp.ne.s32.totalorder %s68_s28, %s5267_s23  ;;  %p5272_p4 = scmp.lt.s32.totalorder %s68_s28, %s68_s28 }
  0x12   :  { %p5273_p5 = scmp.lt.s32.totalorder %s5271_s24, %s5267_s23 }
  0x14   :  { %p5274_p6 = por %p5273_p5, %p5272_p4 }
  0x16   :  { %p5275_p7 = pnand %p5274_p6, %p5268_p3 }
  0x18   :  { %5278 = shalt.err (!%p5275_p7)
}
  0x19   :  { %70 = dma.hbm_to_vmem [thread:$0]  %s6750_s12, 16, %s68_s28, [#allocation6]  }
  0x1a   :  { %s5279_s0 = scalar_lea.hbm %s6752_s14, 256 }
  0x1b   :  { %p5280_p8 = scmp.ne.s32.totalorder %s6752_s14, %s5279_s0  ;;  %p5283_p9 = scmp.lt.u32.totalorder %s5279_s0, %s6752_s14 }
  0x1d   :  { %p5285_p10 = pnand %p5283_p9, %p5280_p8 }
  0x1f   :  { %5288 = shalt.err (!%p5285_p10)
}
  0x20   :  { %s5289_s22 = scalar_lea.vmem %s5532_s30, 256  ;;  %p5294_p12 = scmp.lt.s32.totalorder %s5532_s30, %s5532_s30 }
  0x21   :  { %p5290_p11 = scmp.ne.s32.totalorder %s5532_s30, %s5289_s22  ;;  %p5295_p13 = scmp.lt.s32.totalorder %s5289_s22, %s5289_s22 }
  0x23   :  { %p5296_p0 = por %p5295_p13, %p5294_p12 }
  0x25   :  { %p5297_p1 = pnand %p5296_p0, %p5290_p11 }
  0x27   :  { %5300 = shalt.err (!%p5297_p1)
}
  0x28   :  { %s5423_s12 = smov 64   ;;  %s5424_s28 = smov 4  }
  0x29   :  { %92 = dma.hbm_to_vmem [thread:$0]  %s6752_s14, 256, %s5532_s30, [#allocation9], %s5423_s12, %s5423_s12, %s5424_s28  }
  0x2a   :  { %s5425_s24 = smov [#allocation2]   ;;  %s5426_s26 = smov [#allocation7]  }
  0x2b   :  { %s51_s25 = sshll.u32 %s5425_s24, 4  ;;  %s77_s27 = sshll.u32 %s5426_s26, 4  ;;  %s52_s25 = int_to_ptr.vmem [resolvable:$true] %s51_s25  ;;  %s78_s27 = int_to_ptr.vmem [resolvable:$true] %s77_s27 }
  0x2c   :  { %s5301_s19 = scalar_lea.hbm %s6746_s8, 16 }
  0x2d   :  { %p5302_p2 = scmp.ne.s32.totalorder %s6746_s8, %s5301_s19  ;;  %p5305_p3 = scmp.lt.u32.totalorder %s5301_s19, %s6746_s8 }
  0x2f   :  { %p5307_p4 = pnand %p5305_p3, %p5302_p2 }
  0x31   :  { %5310 = shalt.err (!%p5307_p4)
}
  0x32   :  { %s5311_s14 = scalar_lea.vmem %s52_s25, 16  ;;  %s5315_s30 = scalar_lea.vmem %s52_s25, 32 }
  0x33   :  { %p5312_p5 = scmp.ne.s32.totalorder %s52_s25, %s5311_s14  ;;  %p5316_p6 = scmp.lt.s32.totalorder %s52_s25, %s52_s25 }
  0x34   :  { %p5317_p7 = scmp.lt.s32.totalorder %s5315_s30, %s5311_s14 }
  0x36   :  { %p5318_p8 = por %p5317_p7, %p5316_p6 }
  0x38   :  { %p5319_p9 = pnand %p5318_p8, %p5312_p5 }
  0x3a   :  { %5322 = shalt.err (!%p5319_p9)
}
  0x3b   :  { %54 = dma.hbm_to_vmem [thread:$0]  %s6746_s8, 16, %s52_s25, [#allocation3]  }
  0x3c   :  { %s5323_s26 = scalar_lea.hbm %s6751_s13, 16 }
  0x3d   :  { %p5324_p10 = scmp.ne.s32.totalorder %s6751_s13, %s5323_s26  ;;  %p5327_p11 = scmp.lt.u32.totalorder %s5323_s26, %s6751_s13 }
  0x3f   :  { %p5329_p12 = pnand %p5327_p11, %p5324_p10 }
  0x41   :  { %5332 = shalt.err (!%p5329_p12)
}
  0x42   :  { %s5333_s20 = scalar_lea.vmem %s78_s27, 16  ;;  %s5337_s21 = scalar_lea.vmem %s78_s27, 32 }
  0x43   :  { %p5334_p13 = scmp.ne.s32.totalorder %s78_s27, %s5333_s20  ;;  %p5338_p0 = scmp.lt.s32.totalorder %s78_s27, %s78_s27 }
  0x44   :  { %p5339_p1 = scmp.lt.s32.totalorder %s5337_s21, %s5333_s20 }
  0x46   :  { %p5340_p2 = por %p5339_p1, %p5338_p0 }
  0x48   :  { %p5341_p3 = pnand %p5340_p2, %p5334_p13 }
  0x4a   :  { %5344 = shalt.err (!%p5341_p3)
}
  0x4b   :  { %80 = dma.hbm_to_vmem [thread:$0]  %s6751_s13, 16, %s78_s27, [#allocation6]  }
  0x4c   :  { %s5427_s22 = smov [#allocation10]   ;;  %s5345_s2 = scalar_lea.hbm %s6754_s16, 16 }
  0x4d   :  { %s101_s14 = sshll.u32 %s5427_s22, 4  ;;  %p5346_p4 = scmp.ne.s32.totalorder %s6754_s16, %s5345_s2  ;;  %s102_s14 = int_to_ptr.vmem [resolvable:$true] %s101_s14 }
  0x4e   :  { %p5349_p5 = scmp.lt.u32.totalorder %s5345_s2, %s6754_s16 }
  0x50   :  { %p5351_p6 = pnand %p5349_p5, %p5346_p4 }
  0x52   :  { %5354 = shalt.err (!%p5351_p6)
}
  0x53   :  { %s5355_s0 = scalar_lea.vmem %s102_s14, 16  ;;  %s5359_s13 = scalar_lea.vmem %s102_s14, 32 }
  0x54   :  { %p5356_p7 = scmp.ne.s32.totalorder %s102_s14, %s5355_s0  ;;  %p5360_p8 = scmp.lt.s32.totalorder %s102_s14, %s102_s14 }
  0x55   :  { %p5361_p9 = scmp.lt.s32.totalorder %s5359_s13, %s5355_s0 }
  0x57   :  { %p5362_p10 = por %p5361_p9, %p5360_p8 }
  0x59   :  { %p5363_p11 = pnand %p5362_p10, %p5356_p7 }
  0x5b   :  { %5366 = shalt.err (!%p5363_p11)
}
  0x5c   :  { %104 = dma.hbm_to_vmem [thread:$0]  %s6754_s16, 16, %s102_s14, [#allocation9]  }
  0x5d   :  { %5411 = dma.done.wait [#allocation3], 16  }
  0x5e   :  { %5412 = vsyncadd [#allocation3], 4294967280 }
  0x5f   :  { %5413 = dma.done.wait [#allocation6], 32  }
  0x60   :  { %5414 = vsyncadd [#allocation6], 4294967264 }
  0x61   :  { %5415 = dma.done.wait [#allocation9], 272  }
  0x62   :  { %5416 = vsyncadd [#allocation9], 4294967024  ;;  %v5428_v0 = vmov 0.0   ;;  %vm5429_vm0 = vmmov 0   ;;  %v5091_v1 = vld [vmem:[%s6749_s11] sm:$0xff]   ;;  %v5092_v2 = vld [vmem:[%s6749_s11 + $0x8] sm:$0xff]   ;;  %v246_v16 = vlaneseq }
  0x63   :  { %4677 = vmatprep.subr.bf16.mxu0 %v5428_v0  ;;  %4685 = vmatprep.subr.bf16.mxu1 %v5428_v0  ;;  %v5616_v3 = vld [vmem:[%s6745_s7] sm:$0xff]   ;;  %s6762_s30 = sld [smem:[#allocation20_spill]]  ;;  %v5636_v7 = vld [vmem:[%s6745_s7 + $0x8] sm:$0xff]   ;;  %vm150_vm1 = vcmask 261120   ;;  %s6763_s13 = sld [smem:[#allocation21_spill]]  ;;  %vm538_vm5 = vcmask 1041409  }
  0x64   :  { %4681 = vmatprep.mubr.msk.bf16.mxu0 %vm5429_vm0, %v5428_v0  ;;  %4689 = vmatprep.mubr.msk.bf16.mxu1 %vm5429_vm0, %v5428_v0  ;;  %v5641_v8 = vld [vmem:[%s6744_s6] sm:$0xff]   ;;  %v5651_v11 = vld [vmem:[%s6744_s6 + $0x8] sm:$0xff]   ;;  %v5674_v22 = vand.u32 127, %v246_v16  ;;  %s5430_s21 = smov 32   ;;  %v5431_v55 = vmov 1966171168  }
  0x65   :  { %4678 = vmatpush3.bf16.msra.mxu0 %v5091_v1  ;;  %4686 = vmatpush3.bf16.msra.mxu1 %v5616_v3  ;;  %v4441_v12 = vld [vmem:[%s6743_s5] ss:$0 sm:$0xff]  ;;  %v5707_v49 = vld [vmem:[%s6747_s9 + $0x8] sm:$0xff]   ;;  %v478_v56 = vunpack.c.l.s4 %v5431_v55  ;;  %v481_v58 = vshrl.u32 %v246_v16, 7  ;;  %vm241_vm7 = vcmask 58368   ;;  %vm887_vm8 = vcmask 57344  }
  0x66   :  { %4679 = vmatprep.subr.bf16.mxu0 %v5428_v0  ;;  %4687 = vmatprep.subr.bf16.mxu1 %v5428_v0  ;;  %v257_v13 = vpack.c.bf16 %v4441_v12, %v4441_v12  ;;  %v5676_v24 = vld [vmem:[#allocation2] ss:$0 sm:$0xff]  ;;  %vm376_vm2 = vcmp.ge.s32.totalorder %v5674_v22, 64  ;;  %vm377_vm3 = vcmp.lt.s32.totalorder %v5674_v22, 96  ;;  %s6766_s23 = sld [smem:[#allocation19_spill]]  ;;  %vm648_vm11 = vcmask 1043456  }
  0x67   :  { %vm5681_vm4 = vmand %vm376_vm2, %vm377_vm3  ;;  %v256_v41 = vld [vmem:[%s6741_s3] sm:$0x3]  ;;  %v479_v57 = vunpack.c.0.s8 %v478_v56  ;;  %vm639_vm14 = vcmask 1040384   ;;  %vm644_vm15 = vcmask 64512   ;;  %s5432_s19 = smov 96  }
  0x68   :  { %v5701_v48 = vld [vmem:[%s6747_s9] sm:$0xff]  }
  0x69   :  { %v5622_v4 = vld [vmem:[%s6762_s30] sm:$0xff]  ;;  %v5627_v5 = vld [vmem:[%s6762_s30 + $0x8] sm:$0xff]  ;;  %4680 = vmatpush3.bf16.msra.mxu0 %v5092_v2  ;;  %4688 = vmatpush3.bf16.msra.mxu1 %v5636_v7  ;;  %v5725_v60 = vsub.s32 %v479_v57, %v481_v58  ;;  %v5728_v2 = vsub.s32 0, %v481_v58 }
  0x6a   :  { %v4531_v6 = vpack.c.bf16 %v5627_v5, %v5622_v4  ;;  %v255_v9 = vld [vmem:[%s6763_s13] sm:$0x3]  ;;  %4693 = vmatprep.subr.bf16.mxu0 %v5428_v0  ;;  %4701 = vmatprep.subr.bf16.mxu1 %v5428_v0 }
  0x6b   :  { %v258_v10 = vpack.c.bf16 %v255_v9, %v255_v9  ;;  %v5723_v59 = vld [vmem:[%s6748_s10] ss:$0 sm:$0xff] }
  0x6c   :  { %4682 = vmatmul.mubr.msk.bf16.vlgmr.msra.gmra.mrb[0].mxu0 %vm150_vm1, %v4531_v6 }
  0x6d   :  { %4694 = vmatpush3.bf16.msra.mxu0 %v5641_v8  ;;  %4697 = vmatprep.mubr.msk.bf16.mxu0 %vm5429_vm0, %v5428_v0 }
  0x6e   :  { %4695 = vmatprep.subr.bf16.mxu0 %v5428_v0  ;;  %4690 = vmatmul.mubr.msk.bf16.vlgmr.msra.gmra.mrb[0].mxu1 %vm150_vm1, %v258_v10  ;;  %v4440_v10 = vld [vmem:[#allocation5] ss:$0 sm:$0xff] }
  0x6f   :  { %4705 = vmatprep.mubr.msk.bf16.mxu1 %vm5429_vm0, %v5428_v0  ;;  %4702 = vmatpush3.bf16.msra.mxu1 %v5701_v48 }
  0x70   :  { %4703 = vmatprep.subr.bf16.mxu1 %v5428_v0 }
  0x71   :  { %4696 = vmatpush3.bf16.msra.mxu0 %v5651_v11 }
  0x72   :  { %4709 = vmatprep.subr.bf16.mxu0 %v5428_v0 }
  0x73   :  { %4704 = vmatpush3.bf16.msra.mxu1 %v5707_v49 }
  0x74   :  { %4698 = vmatmul.mubr.msk.bf16.vlgmr.msra.gmra.mrb[4].mxu0 %vm150_vm1, %v257_v13  ;;  %4715 = vmatprep.subr.bf16.mxu1 %v5428_v0 }
  0x75   :  { %4711 = vmatprep.mubr.msk.bf16.mxu0 %vm5429_vm0, %v5428_v0 }
 0x13f   :  { %v5670_v14 = vpop.f32.mrb[0].mxu0 }
 0x140   :  { %v4683_v15 = vpop.f32.mrb[1].mxu0 }
 0x141   :  { %v5672_v17 = vpop.f32.mrb[2].mxu0  ;;  %v308_v18 = vpop.f32.mrb[0].mxu1  ;;  %v5733_v15 = vadd.f32 %v4440_v10, %v5670_v14 }
 0x142   :  { %v4684_v19 = vpop.f32.mrb[3].mxu0  ;;  %v4691_v20 = vpop.f32.mrb[1].mxu1 }
 0x143   :  { %v311_v21 = vpop.f32.mrb[2].mxu1  ;;  %v5738_v19 = vadd.f32 %v4440_v10, %v5672_v17 }
 0x144   :  { %v4692_v23 = vpop.f32.mrb[3].mxu1 }
 0x147   :  { %v363_v25 = vpop.f32.mrb[4].mxu0 }
 0x148   :  { %v364_v26 = vadd.f32 %v363_v25, %v308_v18  ;;  %v4699_v27 = vpop.f32.mrb[5].mxu0  ;;  %v5743_v25 = vld [vmem:[#allocation7] ss:$0 sm:$0xff] }
 0x149   :  { %v366_v28 = vpop.f32.mrb[6].mxu0 }
 0x14a   :  { %v375_v29 = vadd.f32 %v5676_v24, %v364_v26  ;;  %v4700_v30 = vpop.f32.mrb[7].mxu0 }
 0x14b   :  { %v5750_v30 = vsub.s32 %v5674_v22, %v481_v58 }
 0x14c   :  { %v379_v32 = vmul.f32 2.0, %v375_v29 }
 0x14e   :  { %v380_v33 = vsel %vm5681_vm4, %v379_v32, %v375_v29 }
 0x14f   :  { %v4449_v34 = vmul.f32 -1.442695, %v380_v33  ;;  %v5755_v33 = vld [vmem:[%s6742_s4] sm:$0x3] }
 0x150   :  { %vm527_vm6 = vcmp.eq.f32.partialorder %v5755_v33, 0.0 }
 0x151   :  { %5103 = vpow2.f32 %v4449_v34 }
 0x15b   :  { %v5104_v35 = vpop.eup %5103 }
 0x15c   :  { %v384_v36 = vadd.f32 1.0, %v5104_v35 }
 0x15e   :  { %5105 = vrcp.f32 %v384_v36 }
 0x168   :  { %v5106_v37 = vpop.eup %5105 }
 0x169   :  { %v387_v38 = vmul.f32 2.0, %v5106_v37 }
 0x16b   :  { %v4450_v39 = vadd.f32 -1.0, %v387_v38 }
 0x16d   :  { %v389_v40 = vsel %vm5681_vm4, %v4450_v39, %v5106_v37 }
 0x16e   :  { %396 = vrot.lane.b32.xlu0 %v389_v40, %s5423_s12 }
 0x172   :  { %391 = vrot.lane.b32.xlu0 %v256_v41, %s5430_s21 }
 0x1e0   :  { %v397_v42 = vpop.permute.xlu0 %396 }
 0x1e1   :  { %v399_v43 = vmul.f32 %v397_v42, %v389_v40 }
 0x1e3   :  { %401 = vrot.lane.b32.xlu1 %v399_v43, %s5430_s21 }
 0x1e4   :  { %v392_v44 = vpop.permute.xlu0 %391 }
 0x1e5   :  { %v394_v45 = vmul.f32 %v392_v44, %v389_v40 }
 0x255   :  { %v402_v46 = vpop.permute.xlu1 %401 }
 0x256   :  { %v5695_v47 = vadd.f32 %v402_v46, %v394_v45 }
 0x258   :  { %5107 = vtanh.f32 %v5695_v47 }
 0x262   :  { %v5108_v50 = vpop.eup %5107 }
 0x263   :  { %407 = vrot.lane.b32.xlu1 %v5108_v50, %s5423_s12 }
 0x2d5   :  { %v408_v51 = vpop.permute.xlu1 %407 }
 0x2d6   :  { %v410_v52 = vmul.f32 %v408_v51, %v389_v40 }
 0x2d8   :  { %v411_v53 = vpack.c.bf16 %v410_v52, %v410_v52 }
 0x2da   :  { %419 = vrot.lane.b32.xlu0 %v411_v53, %s5430_s21 }
 0x34c   :  { %v5714_v54 = vpop.permute.xlu0 %419 }
 0x34d   :  { %4706 = vmatmul.mubr.msk.bf16.vlgmr.msra.gmra.mrb[4].mxu1 %vm150_vm1, %v5714_v54 }
 0x34e   :  { %4717 = vmatprep.mubr.msk.bf16.mxu1 %vm5429_vm0, %v5428_v0 }
 0x420   :  { %v470_v61 = vpop.f32.mrb[4].mxu1 }
 0x421   :  { %v471_v62 = vadd.f32 %v5723_v59, %v470_v61  ;;  %v4707_v63 = vpop.f32.mrb[5].mxu1 }
 0x422   :  { %v473_v1 = vpop.f32.mrb[6].mxu1 }
 0x423   :  { %v483_v6 = vrot.slane %v471_v62, %v5725_v60  ;;  %v4708_v9 = vpop.f32.mrb[7].mxu1 }
 0x424   :  { %v122_v9 = vld [vmem:[%s6766_s23 + $0x8] sm:$0xff] }
 0x425   :  { %v484_v12 = vcombine.high %v483_v6, %v483_v6  ;;  %v491_v13 = vrot.slane %v483_v6, %v5725_v60  ;;  %v242_v6 = vsel %vm241_vm7, %v5755_v33, 0.0  ;;  %v124_v10 = vpack.c.bf16 %v122_v9, %v122_v9 }
 0x427   :  { %v498_v16 = vrot.slane %v484_v12, %v5725_v60  ;;  %v502_v18 = vrot.slane %v491_v13, %v5728_v2 }
 0x429   :  { %v506_v20 = vrot.slane %v498_v16, %v5728_v2  ;;  %v509_v21 = vadd.f32 %v502_v18, %v5733_v15 }
 0x42b   :  { %v510_v23 = vadd.f32 %v506_v20, %v5738_v19  ;;  %5109 = vtanh.f32 %v509_v21  ;;  %v121_v20 = vld [vmem:[%s6766_s23] sm:$0xff] }
 0x42c   :  { %v123_v21 = vpack.c.bf16 %v121_v20, %v121_v20 }
 0x42d   :  { %5111 = vtanh.f32 %v510_v23 }
 0x435   :  { %v5110_v26 = vpop.eup %5109 }
 0x436   :  { %v519_v14 = vmul.f32 %v5110_v26, %v5743_v25  ;;  %v128_v26 = vpack.c.bf16 %v5627_v5, %v5627_v5  ;;  %v127_v5 = vpack.c.bf16 %v5622_v4, %v5622_v4 }
 0x437   :  { %v5112_v27 = vpop.eup %5111 }
 0x438   :  { %v521_v28 = vsel %vm150_vm1, %v519_v14, 0.0  ;;  %v520_v29 = vmul.f32 %v5112_v27, %v5743_v25 }
 0x439   :  { %522 = vadd.xlane.f32.xlu1 %v521_v28 }
 0x43a   :  { %v524_v17 = vsel %vm150_vm1, %v520_v29, 0.0 }
 0x43b   :  { %525 = vadd.xlane.f32.xlu0 %v524_v17 }
 0x4c6   :  { %v523_v32 = vpop.xlane.xlu1 %522 }
 0x4c7   :  { %v533_v35 = vrot.slane %v523_v32, %v5750_v30 }
 0x4c8   :  { %v526_v34 = vpop.xlane.xlu0 %525 }
 0x4c9   :  { %v537_v36 = vrot.slane %v526_v34, %v5750_v30 }
 0x4cb   :  { %v539_v37 = vsel %vm538_vm5, %v537_v36, %v533_v35 }
 0x4cc   :  { %v541_v38 = vsel %vm527_vm6, -1e+09, %v539_v37 }
 0x4cd   :  { %v542_v39 = vsel %vm241_vm7, %v541_v38, -inf  ;;  %v869_v40 = vrot.slane %v541_v38, %v5725_v60 }
 0x4ce   :  { %543 = vmax.xlane.f32.xlu0 %v542_v39 }
 0x4cf   :  { %v870_v41 = vcombine.high %v869_v40, %v869_v40  ;;  %v877_v42 = vrot.slane %v869_v40, %v5725_v60 }
 0x4d1   :  { %v884_v43 = vrot.slane %v870_v41, %v5725_v60  ;;  %888 = vst.msk [vmem:[#allocation11] sm:$0x1] %vm887_vm8, %v877_v42 }
 0x4d3   :  { %889 = vst.msk [vmem:[#allocation11 + $0x8] sm:$0x1] %vm887_vm8, %v884_v43 }
 0x55b   :  { %v544_v44 = vpop.xlane.xlu0 %543 }
 0x55c   :  { %v545_v45 = vsub.f32 %v541_v38, %v544_v44 }
 0x55e   :  { %v546_v46 = vmul.f32 1.442695, %v545_v45 }
 0x560   :  { %5113 = vpow2.f32 %v546_v46 }
 0x56a   :  { %v5114_v50 = vpop.eup %5113 }
 0x56b   :  { %v548_v51 = vsel %vm241_vm7, %v5114_v50, 0.0 }
 0x56c   :  { %549 = vadd.xlane.f32.xlu1 %v548_v51 }
 0x5f9   :  { %v550_v52 = vpop.xlane.xlu1 %549 }
 0x5fa   :  { %5115 = vrcp.f32 %v550_v52 }
 0x604   :  { %v5116_v53 = vpop.eup %5115 }
 0x605   :  { %v552_v55 = vmul.f32 %v5116_v53, %v5114_v50 }
 0x607   :  { %v553_v56 = vmul.f32 %v552_v55, %v5755_v33  ;;  %v588_v41 = vrot.slane %v552_v55, %v5725_v60 }
 0x609   :  { %v554_v57 = vsel %vm241_vm7, %v553_v56, -inf  ;;  %v589_v44 = vcombine.high %v588_v41, %v588_v41  ;;  %v596_v50 = vrot.slane %v588_v41, %v5725_v60 }
 0x60a   :  { %555 = vmax.xlane.f32.xlu0 %v554_v57  ;;  %v5821_v57 = vld [vmem:[%s6753_s15] sm:$0xff]  }
 0x60b   :  { %v603_v53 = vrot.slane %v589_v44, %v5725_v60 }
 0x60e   :  { %243 = vadd.xlane.f32.xlu0 %v242_v6  ;;  %v5851_v6 = vld [vmem:[#allocation8 + $0x8] sm:$0xff]  }
 0x624   :  { %208 = vrot.lane.b32.xlu0 %v124_v10, %s5430_s21 }
 0x697   :  { %v556_v58 = vpop.xlane.xlu0 %555 }
 0x698   :  { %vm557_vm9 = vcmp.eq.f32.partialorder %v553_v56, %v556_v58 }
 0x699   :  { %v558_v61 = vsel %vm557_vm9, %v5674_v22, 8  ;;  %vm860_vm9 = vcmp.eq.s32.totalorder %v5674_v22, 0 }
 0x69a   :  { %v559_v62 = vsel %vm241_vm7, %v558_v61, 2147483647 }
 0x69b   :  { %v561_v63 = vshra.s32 %v559_v62, 16  ;;  %v560_v12 = vand.u32 65535, %v559_v62  ;;  %v244_v23 = vpop.xlane.xlu0 %243 }
 0x69c   :  { %v5073_v29 = vtrunc.f32 %v244_v23 }
 0x69d   :  { %v563_v1 = vcvt.s32.f32 %v561_v63  ;;  %v562_v16 = vcvt.s32.f32 %v560_v12  ;;  %v5829_v63 = vld [vmem:[%s6753_s15 + $0x8] sm:$0xff]  }
 0x69e   :  { %v5790_v32 = vcvt.f32.s32 %v5073_v29 }
 0x69f   :  { %564 = vmin.xlane.f32.xlu1 %v563_v1  ;;  %v209_v14 = vpop.permute.xlu0 %208 }
 0x6a0   :  { %v215_v27 = vsel %vm150_vm1, %v128_v26, %v209_v14  ;;  %vm574_vm12 = vcmp.gt.s32.totalorder %v5790_v32, 0 }
 0x6a1   :  { %v5786_v28 = vsel %vm648_vm11, %v215_v27, 0 }
 0x6a2   :  { %4716 = vmatpush3.bf16.msra.mxu1 %v5786_v28 }
 0x6a3   :  { %4729 = vmatprep.subr.bf16.mxu1 %v5428_v0 }
 0x72c   :  { %v565_v13 = vpop.xlane.xlu1 %564 }
 0x72d   :  { %vm566_vm10 = vcmp.eq.f32.partialorder %v563_v1, %v565_v13  ;;  %v571_v17 = vcvt.f32.s32 %v565_v13  ;;  %v5847_v1 = vld [vmem:[#allocation8] sm:$0xff]  }
 0x72e   :  { %v567_v18 = vsel %vm566_vm10, %v562_v16, inf  ;;  %vm1398_vm10 = vcmp.eq.s32.totalorder %v5674_v22, 1 }
 0x72f   :  { %568 = vmin.xlane.f32.xlu1 %v567_v18  ;;  %v572_v35 = vshll.u32 %v571_v17, 16 }
 0x740   :  { %206 = vrot.lane.b32.xlu1 %v123_v21, %s5430_s21 }
 0x7bc   :  { %v569_v34 = vpop.xlane.xlu1 %568 }
 0x7bd   :  { %v570_v36 = vcvt.f32.s32 %v569_v34 }
 0x7bf   :  { %v573_v37 = vadd.s32 %v572_v35, %v570_v36 }
 0x7c0   :  { %v207_v38 = vpop.permute.xlu1 %206 }
 0x7c1   :  { %v5795_v39 = vsel %vm574_vm12, %v573_v37, 0  ;;  %v212_v40 = vsel %vm150_vm1, %v127_v5, %v207_v38 }
 0x7c2   :  { %vm576_vm13 = vcmp.eq.s32.totalorder %v5674_v22, %v5795_v39  ;;  %v5802_v42 = vsel %vm648_vm11, %v212_v40, 0  ;;  %vm1149_vm11 = vcmp.gt.s32.totalorder %v5790_v32, 1 }
 0x7c3   :  { %v5805_v43 = vsel %vm576_vm13, 1.0, %v5428_v0  ;;  %4710 = vmatpush3.bf16.msra.mxu0 %v5802_v42 }
 0x7c4   :  { %v613_v4 = vrot.slane %v5805_v43, %v5725_v60  ;;  %4721 = vmatprep.subr.bf16.mxu0 %v5428_v0 }
 0x7c6   :  { %v614_v45 = vcombine.high %v613_v4, %v613_v4  ;;  %v621_v46 = vrot.slane %v613_v4, %v5725_v60  ;;  %v5870_v4 = vld [vmem:[#allocation10] ss:$0 sm:$0xff] }
 0x7c8   :  { %v628_v51 = vrot.slane %v614_v45, %v5725_v60  ;;  %v632_v52 = vrot.slane %v621_v46, %v5728_v2 }
 0x7ca   :  { %v636_v55 = vrot.slane %v628_v51, %v5728_v2  ;;  %v640_v56 = vsel %vm639_vm14, %v596_v50, %v632_v52 }
 0x7cb   :  { %v642_v58 = vpack.c.bf16 %v640_v56, %v640_v56 }
 0x7cc   :  { %v641_v61 = vsel %vm639_vm14, %v603_v53, %v636_v55 }
 0x7cd   :  { %4712 = vmatmul.mubr.msk.bf16.vlgmr.msra.gmra.mrb[8].mxu0 %vm644_vm15, %v642_v58  ;;  %v643_v62 = vpack.c.bf16 %v641_v61, %v641_v61 }
 0x7ce   :  { %4722 = vmatpush3.bf16.msra.mxu0 %v5821_v57  ;;  %4725 = vmatprep.mubr.msk.bf16.mxu0 %vm5429_vm0, %v5428_v0 }
 0x7cf   :  { %4718 = vmatmul.mubr.msk.bf16.vlgmr.msra.gmra.mrb[8].mxu1 %vm644_vm15, %v643_v62  ;;  %4723 = vmatprep.subr.bf16.mxu0 %v5428_v0 }
 0x7d0   :  { %4733 = vmatprep.mubr.msk.bf16.mxu1 %vm5429_vm0, %v5428_v0  ;;  %4730 = vmatpush3.bf16.msra.mxu1 %v5847_v1 }
 0x7d1   :  { %4731 = vmatprep.subr.bf16.mxu1 %v5428_v0 }
 0x7d2   :  { %4724 = vmatpush3.bf16.msra.mxu0 %v5829_v63 }
 0x7d3   :  { %4737 = vmatprep.subr.bf16.mxu0 %v5428_v0 }
 0x7d4   :  { %4732 = vmatpush3.bf16.msra.mxu1 %v5851_v6 }
 0x7d5   :  { %4726 = vmatmul.mubr.msk.bf16.vlgmr.msra.gmra.mrb[12].mxu0 %vm150_vm1, %v5714_v54  ;;  %4745 = vmatprep.subr.bf16.mxu1 %v5428_v0 }
 0x7d6   :  { %4738 = vmatpush3.bf16.msra.mxu0 %v5616_v3  ;;  %4741 = vmatprep.mubr.msk.bf16.mxu0 %vm5429_vm0, %v5428_v0 }
 0x7d7   :  { %4739 = vmatprep.subr.bf16.mxu0 %v5428_v0 }
 0x7da   :  { %4740 = vmatpush3.bf16.msra.mxu0 %v5636_v7 }
 0x7db   :  { %4753 = vmatprep.subr.bf16.mxu0 %v5428_v0 }
 0x8a0   :  { %v685_v54 = vpop.f32.mrb[8].mxu0 }
 0x8a1   :  { %v736_v9 = vpack.c.bf16 %v685_v54, %v685_v54  ;;  %v4713_v10 = vpop.f32.mrb[9].mxu0 }
 0x8a2   :  { %v688_v12 = vpop.f32.mrb[10].mxu0  ;;  %v730_v13 = vpop.f32.mrb[8].mxu1 }
 0x8a3   :  { %v792_v16 = vunpack.c.l.b16 %v736_v9  ;;  %v737_v18 = vpack.c.bf16 %v730_v13, %v730_v13  ;;  %v4714_v20 = vpop.f32.mrb[11].mxu0  ;;  %v4719_v21 = vpop.f32.mrb[9].mxu1 }
 0x8a4   :  { %v733_v23 = vpop.f32.mrb[10].mxu1 }
 0x8a5   :  { %v934_v26 = vrot.slane %v792_v16, 1  ;;  %v793_v14 = vunpack.c.l.b16 %v737_v18  ;;  %v4720_v27 = vpop.f32.mrb[11].mxu1 }
 0x8a7   :  { %v794_v29 = vrot.slane %v793_v14, 7  ;;  %v935_v17 = vsel %vm538_vm5, %v793_v14, %v934_v26 }
 0x8a8   :  { %v784_v34 = vpop.f32.mrb[12].mxu0  ;;  %v936_v35 = vpack.c.b16 %v935_v17, %v935_v17 }
 0x8a9   :  { %v795_v36 = vsel %vm538_vm5, %v794_v29, %v792_v16  ;;  %v4727_v5 = vpop.f32.mrb[13].mxu0 }
 0x8aa   :  { %v796_v37 = vpack.c.b16 %v795_v36, %v795_v36  ;;  %937 = vrot.lane.b32.xlu1 %v936_v35, %s5432_s19  ;;  %v787_v38 = vpop.f32.mrb[14].mxu0 }
 0x8ab   :  { %v4728_v40 = vpop.f32.mrb[15].mxu0 }
 0x8ac   :  { %4734 = vmatmul.mubr.msk.bf16.vlgmr.msra.gmra.mrb[12].mxu1 %vm150_vm1, %v796_v37 }
 0x8ad   :  { %4746 = vmatpush3.bf16.msra.mxu1 %v5641_v8  ;;  %4749 = vmatprep.mubr.msk.bf16.mxu1 %vm5429_vm0, %v5428_v0 }
 0x8ae   :  { %4747 = vmatprep.subr.bf16.mxu1 %v5428_v0 }
 0x8b1   :  { %4748 = vmatpush3.bf16.msra.mxu1 %v5651_v11 }
 0x8b2   :  { %4761 = vmatprep.subr.bf16.mxu1 %v5428_v0 }
 0x91c   :  { %v938_v41 = vpop.permute.xlu1 %937 }
 0x91d   :  { %4750 = vmatmul.mubr.msk.bf16.vlgmr.msra.gmra.mrb[16].mxu1 %vm150_vm1, %v938_v41 }
 0x91e   :  { %4762 = vmatpush3.bf16.msra.mxu1 %v5802_v42  ;;  %4763 = vmatprep.mubr.msk.bf16.mxu1 %vm5429_vm0, %v5428_v0 }
 0x91f   :  { %4773 = vmatprep.subr.bf16.mxu1 %v5428_v0 }
 0x97f   :  { %v846_v44 = vpop.f32.mrb[12].mxu1 }
 0x980   :  { %v847_v45 = vadd.f32 %v846_v44, %v784_v34  ;;  %v4735_v46 = vpop.f32.mrb[13].mxu1 }
 0x981   :  { %v849_v50 = vpop.f32.mrb[14].mxu1 }
 0x982   :  { %v858_v51 = vadd.f32 %v5870_v4, %v847_v45  ;;  %v4736_v52 = vpop.f32.mrb[15].mxu1 }
 0x984   :  { %5117 = vtanh.f32 %v858_v51 }
 0x98e   :  { %v5118_v53 = vpop.eup %5117 }
 0x98f   :  { %v890_v55 = vpack.c.bf16 %v5118_v53, %v5118_v53 }
 0x991   :  { %4742 = vmatmul.mubr.msk.bf16.vlgmr.msra.gmra.mrb[16].mxu0 %vm150_vm1, %v890_v55 }
 0x992   :  { %4754 = vmatpush3.bf16.msra.mxu0 %v5701_v48  ;;  %4757 = vmatprep.mubr.msk.bf16.mxu0 %vm5429_vm0, %v5428_v0 }
 0x993   :  { %4755 = vmatprep.subr.bf16.mxu0 %v5428_v0 }
 0x996   :  { %4756 = vmatpush3.bf16.msra.mxu0 %v5707_v49 }
 0x997   :  { %4767 = vmatprep.subr.bf16.mxu0 %v5428_v0 }
 0x9f0   :  { %v976_v56 = vpop.f32.mrb[16].mxu1 }
 0x9f1   :  { %v4751_v58 = vpop.f32.mrb[17].mxu1 }
 0x9f2   :  { %v979_v61 = vpop.f32.mrb[18].mxu1 }
 0x9f3   :  { %v4752_v62 = vpop.f32.mrb[19].mxu1 }
 0xa64   :  { %v928_v54 = vpop.f32.mrb[16].mxu0 }
 0xa65   :  { %v977_v9 = vadd.f32 %v976_v56, %v928_v54  ;;  %v4743_v10 = vpop.f32.mrb[17].mxu0 }
 0xa66   :  { %v931_v12 = vpop.f32.mrb[18].mxu0 }
 0xa67   :  { %v982_v13 = vadd.f32 %v5676_v24, %v977_v9  ;;  %v4744_v16 = vpop.f32.mrb[19].mxu0 }
 0xa69   :  { %v983_v18 = vmul.f32 2.0, %v982_v13 }
 0xa6b   :  { %v984_v20 = vsel %vm5681_vm4, %v983_v18, %v982_v13 }
 0xa6c   :  { %v4468_v21 = vmul.f32 -1.442695, %v984_v20 }
 0xa6e   :  { %5119 = vpow2.f32 %v4468_v21  ;;  %v579_v21 = vsub.f32 1.0, %v5805_v43 }
 0xa78   :  { %v5120_v23 = vpop.eup %5119 }
 0xa79   :  { %v988_v26 = vadd.f32 1.0, %v5120_v23 }
 0xa7b   :  { %5121 = vrcp.f32 %v988_v26  ;;  %v5915_v26 = vmul.f32 %v579_v21, %v5755_v33 }
 0xa7d   :  { %vm1103_vm2 = vcmp.eq.f32.partialorder %v5915_v26, 0.0 }
 0xa85   :  { %v5122_v14 = vpop.eup %5121 }
 0xa86   :  { %v991_v27 = vmul.f32 2.0, %v5122_v14 }
 0xa88   :  { %v4469_v29 = vadd.f32 -1.0, %v991_v27 }
 0xa8a   :  { %v993_v17 = vsel %vm5681_vm4, %v4469_v29, %v5122_v14 }
 0xa8b   :  { %996 = vrot.lane.b32.xlu0 %v993_v17, %s5423_s12  ;;  %v994_v36 = vmul.f32 %v993_v17, %v5695_v47 }
 0xafd   :  { %v997_v34 = vpop.permute.xlu0 %996 }
 0xafe   :  { %v999_v35 = vmul.f32 %v997_v34, %v993_v17 }
 0xb00   :  { %1001 = vrot.lane.b32.xlu1 %v999_v35, %s5430_s21 }
 0xb72   :  { %v1002_v5 = vpop.permute.xlu1 %1001 }
 0xb73   :  { %v5888_v37 = vadd.f32 %v1002_v5, %v994_v36 }
 0xb75   :  { %5123 = vtanh.f32 %v5888_v37 }
 0xb7f   :  { %v5124_v38 = vpop.eup %5123 }
 0xb80   :  { %1007 = vrot.lane.b32.xlu0 %v5124_v38, %s5423_s12 }
 0xbf2   :  { %v1008_v40 = vpop.permute.xlu0 %1007 }
 0xbf3   :  { %v1010_v41 = vmul.f32 %v1008_v40, %v993_v17 }
 0xbf5   :  { %v1011_v44 = vpack.c.bf16 %v1010_v41, %v1010_v41 }
 0xbf7   :  { %1013 = vrot.lane.b32.xlu1 %v1011_v44, %s5430_s21 }
 0xc69   :  { %v5893_v45 = vpop.permute.xlu1 %1013 }
 0xc6a   :  { %4758 = vmatmul.mubr.msk.bf16.vlgmr.msra.gmra.mrb[20].mxu0 %vm150_vm1, %v5893_v45 }
 0xc6b   :  { %4768 = vmatpush3.bf16.msra.mxu0 %v5786_v28  ;;  %4769 = vmatprep.mubr.msk.bf16.mxu0 %vm5429_vm0, %v5428_v0 }
 0xc6c   :  { %4781 = vmatprep.subr.bf16.mxu0 %v5428_v0 }
 0xd3d   :  { %v1052_v47 = vpop.f32.mrb[20].mxu0 }
 0xd3e   :  { %v1053_v46 = vadd.f32 %v5723_v59, %v1052_v47  ;;  %v4759_v50 = vpop.f32.mrb[21].mxu0 }
 0xd3f   :  { %v1055_v51 = vpop.f32.mrb[22].mxu0 }
 0xd40   :  { %v1065_v52 = vrot.slane %v1053_v46, %v5725_v60  ;;  %v4760_v53 = vpop.f32.mrb[23].mxu0 }
 0xd42   :  { %v1066_v55 = vcombine.high %v1065_v52, %v1065_v52  ;;  %v1073_v56 = vrot.slane %v1065_v52, %v5725_v60 }
 0xd44   :  { %v1080_v58 = vrot.slane %v1066_v55, %v5725_v60  ;;  %v1084_v61 = vrot.slane %v1073_v56, %v5728_v2 }
 0xd46   :  { %v1088_v62 = vrot.slane %v1080_v58, %v5728_v2  ;;  %v1091_v54 = vadd.f32 %v1084_v61, %v5733_v15 }
 0xd48   :  { %v1092_v9 = vadd.f32 %v1088_v62, %v5738_v19  ;;  %5125 = vtanh.f32 %v1091_v54 }
 0xd4a   :  { %5127 = vtanh.f32 %v1092_v9 }
 0xd52   :  { %v5126_v10 = vpop.eup %5125 }
 0xd53   :  { %v1095_v12 = vmul.f32 %v5126_v10, %v5743_v25 }
 0xd54   :  { %v5128_v13 = vpop.eup %5127 }
 0xd55   :  { %v1097_v16 = vsel %vm150_vm1, %v1095_v12, 0.0  ;;  %v1096_v18 = vmul.f32 %v5128_v13, %v5743_v25 }
 0xd56   :  { %1098 = vadd.xlane.f32.xlu0 %v1097_v16 }
 0xd57   :  { %v1100_v20 = vsel %vm150_vm1, %v1096_v18, 0.0 }
 0xd58   :  { %1101 = vadd.xlane.f32.xlu1 %v1100_v20 }
 0xde3   :  { %v1099_v23 = vpop.xlane.xlu0 %1098 }
 0xde4   :  { %v1109_v27 = vrot.slane %v1099_v23, %v5750_v30  ;;  %v861_v23 = vsel %vm860_vm9, %v5795_v39, 0  ;;  %vm1686_vm9 = vcmp.gt.s32.totalorder %v5790_v32, 2 }
 0xde5   :  { %v1102_v14 = vpop.xlane.xlu1 %1101 }
 0xde6   :  { %v1113_v29 = vrot.slane %v1102_v14, %v5750_v30 }
 0xde8   :  { %v1114_v17 = vsel %vm538_vm5, %v1113_v29, %v1109_v27 }
 0xde9   :  { %v1116_v34 = vsel %vm1103_vm2, -1e+09, %v1114_v17 }
 0xdea   :  { %v1117_v35 = vsel %vm241_vm7, %v1116_v34, -inf  ;;  %v1407_v36 = vrot.slane %v1116_v34, %v5725_v60 }
 0xdeb   :  { %1118 = vmax.xlane.f32.xlu0 %v1117_v35 }
 0xdec   :  { %v1408_v43 = vcombine.high %v1407_v36, %v1407_v36  ;;  %v1415_v5 = vrot.slane %v1407_v36, %v5725_v60 }
 0xdee   :  { %v1422_v33 = vrot.slane %v1408_v43, %v5725_v60  ;;  %1425 = vst.msk [vmem:[#allocation11 + $0x1] sm:$0x1] %vm887_vm8, %v1415_v5 }
 0xdf0   :  { %1426 = vst.msk [vmem:[#allocation11 + $0x9] sm:$0x1] %vm887_vm8, %v1422_v33 }
 0xe78   :  { %v1119_v38 = vpop.xlane.xlu0 %1118 }
 0xe79   :  { %v1120_v40 = vsub.f32 %v1116_v34, %v1119_v38 }
 0xe7b   :  { %v1121_v41 = vmul.f32 1.442695, %v1120_v40 }
 0xe7d   :  { %5129 = vpow2.f32 %v1121_v41 }
 0xe87   :  { %v5130_v44 = vpop.eup %5129 }
 0xe88   :  { %v1123_v47 = vsel %vm241_vm7, %v5130_v44, 0.0 }
 0xe89   :  { %1124 = vadd.xlane.f32.xlu0 %v1123_v47 }
 0xf16   :  { %v1125_v46 = vpop.xlane.xlu0 %1124 }
 0xf17   :  { %5131 = vrcp.f32 %v1125_v46 }
 0xf21   :  { %v5132_v50 = vpop.eup %5131 }
 0xf22   :  { %v1127_v51 = vmul.f32 %v5132_v50, %v5130_v44 }
 0xf24   :  { %v1128_v52 = vmul.f32 %v1127_v51, %v5915_v26  ;;  %v1163_v27 = vrot.slane %v1127_v51, %v5725_v60 }
 0xf26   :  { %v1129_v53 = vsel %vm241_vm7, %v1128_v52, -inf  ;;  %v1164_v35 = vcombine.high %v1163_v27, %v1163_v27  ;;  %v1171_v5 = vrot.slane %v1163_v27, %v5725_v60 }
 0xf27   :  { %1130 = vmax.xlane.f32.xlu1 %v1129_v53 }
 0xf28   :  { %v1178_v38 = vrot.slane %v1164_v35, %v5725_v60 }
 0xfb4   :  { %v1131_v55 = vpop.xlane.xlu1 %1130 }
 0xfb5   :  { %vm1132_vm3 = vcmp.eq.f32.partialorder %v1128_v52, %v1131_v55 }
 0xfb6   :  { %v1133_v56 = vsel %vm1132_vm3, %v5674_v22, 8 }
 0xfb7   :  { %v1134_v58 = vsel %vm241_vm7, %v1133_v56, 2147483647 }
 0xfb8   :  { %v1136_v61 = vshra.s32 %v1134_v58, 16  ;;  %v1135_v54 = vand.u32 65535, %v1134_v58 }
 0xfba   :  { %v1138_v62 = vcvt.s32.f32 %v1136_v61  ;;  %v1137_v10 = vcvt.s32.f32 %v1135_v54 }
 0xfbc   :  { %1139 = vmin.xlane.f32.xlu0 %v1138_v62 }
0x1049   :  { %v1140_v9 = vpop.xlane.xlu0 %1139 }
0x104a   :  { %vm1141_vm6 = vcmp.eq.f32.partialorder %v1138_v62, %v1140_v9  ;;  %v1146_v13 = vcvt.f32.s32 %v1140_v9 }
0x104b   :  { %v1142_v12 = vsel %vm1141_vm6, %v1137_v10, inf  ;;  %vm1935_vm6 = vcmp.eq.s32.totalorder %v5674_v22, 2 }
0x104c   :  { %1143 = vmin.xlane.f32.xlu1 %v1142_v12  ;;  %v1147_v18 = vshll.u32 %v1146_v13, 16 }
0x10d9   :  { %v1144_v16 = vpop.xlane.xlu1 %1143 }
0x10da   :  { %v1145_v20 = vcvt.f32.s32 %v1144_v16 }
0x10dc   :  { %v1148_v21 = vadd.s32 %v1147_v18, %v1145_v20 }
0x10de   :  { %v1150_v14 = vsel %vm1149_vm11, %v1148_v21, 1 }
0x10df   :  { %vm1151_vm12 = vcmp.eq.s32.totalorder %v5674_v22, %v1150_v14  ;;  %v5938_v29 = vsel %vm1398_vm10, %v1150_v14, %v861_v23 }
0x10e0   :  { %v5941_v17 = vsel %vm1151_vm12, 1.0, %v5428_v0 }
0x10e1   :  { %v1188_v34 = vrot.slane %v5941_v17, %v5725_v60 }
0x10e3   :  { %v1189_v36 = vcombine.high %v1188_v34, %v1188_v34  ;;  %v1196_v43 = vrot.slane %v1188_v34, %v5725_v60 }
0x10e5   :  { %v1203_v39 = vrot.slane %v1189_v36, %v5725_v60  ;;  %v1207_v33 = vrot.slane %v1196_v43, %v5728_v2 }
0x10e7   :  { %v1211_v40 = vrot.slane %v1203_v39, %v5728_v2  ;;  %v1214_v41 = vsel %vm639_vm14, %v1171_v5, %v1207_v33 }
0x10e8   :  { %v1216_v44 = vpack.c.bf16 %v1214_v41, %v1214_v41 }
0x10e9   :  { %v1215_v47 = vsel %vm639_vm14, %v1178_v38, %v1211_v40 }
0x10ea   :  { %4764 = vmatmul.mubr.msk.bf16.vlgmr.msra.gmra.mrb[20].mxu1 %vm644_vm15, %v1216_v44  ;;  %v1217_v46 = vpack.c.bf16 %v1215_v47, %v1215_v47 }
0x10eb   :  { %4774 = vmatpush3.bf16.msra.mxu1 %v5821_v57  ;;  %4777 = vmatprep.mubr.msk.bf16.mxu1 %vm5429_vm0, %v5428_v0 }
0x10ec   :  { %4770 = vmatmul.mubr.msk.bf16.vlgmr.msra.gmra.mrb[24].mxu0 %vm644_vm15, %v1217_v46  ;;  %4775 = vmatprep.subr.bf16.mxu1 %v5428_v0 }
0x10ed   :  { %4782 = vmatpush3.bf16.msra.mxu0 %v5847_v1  ;;  %4785 = vmatprep.mubr.msk.bf16.mxu0 %vm5429_vm0, %v5428_v0 }
0x10ee   :  { %4783 = vmatprep.subr.bf16.mxu0 %v5428_v0 }
0x10ef   :  { %4776 = vmatpush3.bf16.msra.mxu1 %v5829_v63 }
0x10f0   :  { %4789 = vmatprep.subr.bf16.mxu1 %v5428_v0 }
0x10f1   :  { %4784 = vmatpush3.bf16.msra.mxu0 %v5851_v6 }
0x10f2   :  { %4778 = vmatmul.mubr.msk.bf16.vlgmr.msra.gmra.mrb[24].mxu1 %vm150_vm1, %v5893_v45  ;;  %4797 = vmatprep.subr.bf16.mxu0 %v5428_v0 }
0x10f3   :  { %4790 = vmatpush3.bf16.msra.mxu1 %v5616_v3  ;;  %4793 = vmatprep.mubr.msk.bf16.mxu1 %vm5429_vm0, %v5428_v0 }
0x10f4   :  { %4791 = vmatprep.subr.bf16.mxu1 %v5428_v0 }
0x10f7   :  { %4792 = vmatpush3.bf16.msra.mxu1 %v5636_v7 }
0x10f8   :  { %4805 = vmatprep.subr.bf16.mxu1 %v5428_v0 }
0x11bd   :  { %v1255_v50 = vpop.f32.mrb[20].mxu1 }
0x11be   :  { %v1304_v51 = vpack.c.bf16 %v1255_v50, %v1255_v50  ;;  %v4765_v52 = vpop.f32.mrb[21].mxu1 }
0x11bf   :  { %v1258_v53 = vpop.f32.mrb[22].mxu1  ;;  %v1298_v55 = vpop.f32.mrb[24].mxu0 }
0x11c0   :  { %v1348_v56 = vunpack.c.l.b16 %v1304_v51  ;;  %v1305_v45 = vpack.c.bf16 %v1298_v55, %v1298_v55  ;;  %v4766_v58 = vpop.f32.mrb[23].mxu1  ;;  %v4771_v61 = vpop.f32.mrb[25].mxu0 }
0x11c1   :  { %v1301_v62 = vpop.f32.mrb[26].mxu0 }
0x11c2   :  { %v1471_v3 = vrot.slane %v1348_v56, 1  ;;  %v1349_v54 = vunpack.c.l.b16 %v1305_v45  ;;  %v4772_v9 = vpop.f32.mrb[27].mxu0 }
0x11c4   :  { %v1350_v10 = vrot.slane %v1349_v54, 7  ;;  %v1472_v12 = vsel %vm538_vm5, %v1349_v54, %v1471_v3 }
0x11c5   :  { %v1340_v13 = vpop.f32.mrb[24].mxu1  ;;  %v1473_v7 = vpack.c.b16 %v1472_v12, %v1472_v12 }
0x11c6   :  { %v1351_v16 = vsel %vm538_vm5, %v1350_v10, %v1348_v56  ;;  %v4779_v18 = vpop.f32.mrb[25].mxu1 }
0x11c7   :  { %v1352_v20 = vpack.c.b16 %v1351_v16, %v1351_v16  ;;  %v1343_v21 = vpop.f32.mrb[26].mxu1  ;;  %1474 = vrot.lane.b32.xlu0 %v1473_v7, %s5432_s19 }
0x11c8   :  { %v4780_v23 = vpop.f32.mrb[27].mxu1 }
0x11c9   :  { %4786 = vmatmul.mubr.msk.bf16.vlgmr.msra.gmra.mrb[28].mxu0 %vm150_vm1, %v1352_v20 }
0x11ca   :  { %4798 = vmatpush3.bf16.msra.mxu0 %v5641_v8  ;;  %4801 = vmatprep.mubr.msk.bf16.mxu0 %vm5429_vm0, %v5428_v0 }
0x11cb   :  { %4799 = vmatprep.subr.bf16.mxu0 %v5428_v0 }
0x11ce   :  { %4800 = vmatpush3.bf16.msra.mxu0 %v5651_v11 }
0x11cf   :  { %4813 = vmatprep.subr.bf16.mxu0 %v5428_v0 }
0x1239   :  { %v1475_v14 = vpop.permute.xlu0 %1474 }
0x123a   :  { %4802 = vmatmul.mubr.msk.bf16.vlgmr.msra.gmra.mrb[32].mxu0 %vm150_vm1, %v1475_v14 }
0x123b   :  { %4814 = vmatpush3.bf16.msra.mxu0 %v5802_v42  ;;  %4815 = vmatprep.mubr.msk.bf16.mxu0 %vm5429_vm0, %v5428_v0 }
0x123c   :  { %4825 = vmatprep.subr.bf16.mxu0 %v5428_v0 }
0x129c   :  { %v1390_v8 = vpop.f32.mrb[28].mxu0 }
0x129d   :  { %v1391_v27 = vadd.f32 %v1390_v8, %v1340_v13  ;;  %v4787_v34 = vpop.f32.mrb[29].mxu0 }
0x129e   :  { %v1393_v35 = vpop.f32.mrb[30].mxu0 }
0x129f   :  { %v1396_v36 = vadd.f32 %v5870_v4, %v1391_v27  ;;  %v4788_v43 = vpop.f32.mrb[31].mxu0 }
0x12a1   :  { %5133 = vtanh.f32 %v1396_v36 }
0x12ab   :  { %v5134_v11 = vpop.eup %5133 }
0x12ac   :  { %v1427_v5 = vpack.c.bf16 %v5134_v11, %v5134_v11 }
0x12ae   :  { %4794 = vmatmul.mubr.msk.bf16.vlgmr.msra.gmra.mrb[28].mxu1 %vm150_vm1, %v1427_v5 }
0x12af   :  { %4806 = vmatpush3.bf16.msra.mxu1 %v5701_v48  ;;  %4809 = vmatprep.mubr.msk.bf16.mxu1 %vm5429_vm0, %v5428_v0 }
0x12b0   :  { %4807 = vmatprep.subr.bf16.mxu1 %v5428_v0 }
0x12b3   :  { %4808 = vmatpush3.bf16.msra.mxu1 %v5707_v49 }
0x12b4   :  { %4819 = vmatprep.subr.bf16.mxu1 %v5428_v0 }
0x130d   :  { %v1513_v39 = vpop.f32.mrb[32].mxu0 }
0x130e   :  { %v4803_v33 = vpop.f32.mrb[33].mxu0 }
0x130f   :  { %v1516_v38 = vpop.f32.mrb[34].mxu0 }
0x1310   :  { %v4804_v40 = vpop.f32.mrb[35].mxu0 }
0x1381   :  { %v1465_v41 = vpop.f32.mrb[28].mxu1 }
0x1382   :  { %v1514_v44 = vadd.f32 %v1513_v39, %v1465_v41  ;;  %v4795_v47 = vpop.f32.mrb[29].mxu1  ;;  %v1154_v41 = vsub.f32 1.0, %v5941_v17 }
0x1383   :  { %v1468_v46 = vpop.f32.mrb[30].mxu1 }
0x1384   :  { %v1519_v50 = vadd.f32 %v5676_v24, %v1514_v44  ;;  %v4796_v48 = vpop.f32.mrb[31].mxu1  ;;  %v6033_v47 = vmul.f32 %v1154_v41, %v5915_v26 }
0x1386   :  { %v1520_v51 = vmul.f32 2.0, %v1519_v50  ;;  %vm1640_vm13 = vcmp.eq.f32.partialorder %v6033_v47, 0.0 }
0x1388   :  { %v1521_v52 = vsel %vm5681_vm4, %v1520_v51, %v1519_v50 }
0x1389   :  { %v4478_v53 = vmul.f32 -1.442695, %v1521_v52 }
0x138b   :  { %5135 = vpow2.f32 %v4478_v53 }
0x1395   :  { %v5136_v49 = vpop.eup %5135 }
0x1396   :  { %v1525_v55 = vadd.f32 1.0, %v5136_v49 }
0x1398   :  { %5137 = vrcp.f32 %v1525_v55 }
0x13a2   :  { %v5138_v56 = vpop.eup %5137 }
0x13a3   :  { %v1528_v45 = vmul.f32 2.0, %v5138_v56 }
0x13a5   :  { %v4479_v58 = vadd.f32 -1.0, %v1528_v45 }
0x13a7   :  { %v1530_v61 = vsel %vm5681_vm4, %v4479_v58, %v5138_v56 }
0x13a8   :  { %1533 = vrot.lane.b32.xlu1 %v1530_v61, %s5423_s12  ;;  %v1531_v3 = vmul.f32 %v1530_v61, %v5888_v37 }
0x141a   :  { %v1534_v62 = vpop.permute.xlu1 %1533 }
0x141b   :  { %v1536_v24 = vmul.f32 %v1534_v62, %v1530_v61 }
0x141d   :  { %1538 = vrot.lane.b32.xlu1 %v1536_v24, %s5430_s21 }
0x148f   :  { %v1539_v54 = vpop.permute.xlu1 %1538 }
0x1490   :  { %v6006_v9 = vadd.f32 %v1539_v54, %v1531_v3 }
0x1492   :  { %5139 = vtanh.f32 %v6006_v9 }
0x149c   :  { %v5140_v10 = vpop.eup %5139 }
0x149d   :  { %1544 = vrot.lane.b32.xlu0 %v5140_v10, %s5423_s12 }
0x150f   :  { %v1545_v12 = vpop.permute.xlu0 %1544 }
0x1510   :  { %v1547_v13 = vmul.f32 %v1545_v12, %v1530_v61 }
0x1512   :  { %v1548_v7 = vpack.c.bf16 %v1547_v13, %v1547_v13 }
0x1514   :  { %1550 = vrot.lane.b32.xlu1 %v1548_v7, %s5430_s21 }
0x1586   :  { %v6011_v16 = vpop.permute.xlu1 %1550 }
0x1587   :  { %4810 = vmatmul.mubr.msk.bf16.vlgmr.msra.gmra.mrb[32].mxu1 %vm150_vm1, %v6011_v16 }
0x1588   :  { %4820 = vmatpush3.bf16.msra.mxu1 %v5786_v28  ;;  %4821 = vmatprep.mubr.msk.bf16.mxu1 %vm5429_vm0, %v5428_v0 }
0x1589   :  { %4833 = vmatprep.subr.bf16.mxu1 %v5428_v0 }
0x165a   :  { %v1589_v37 = vpop.f32.mrb[32].mxu1 }
0x165b   :  { %v1590_v18 = vadd.f32 %v5723_v59, %v1589_v37  ;;  %v4811_v20 = vpop.f32.mrb[33].mxu1 }
0x165c   :  { %v1592_v21 = vpop.f32.mrb[34].mxu1 }
0x165d   :  { %v1602_v23 = vrot.slane %v1590_v18, %v5725_v60  ;;  %v4812_v14 = vpop.f32.mrb[35].mxu1 }
0x165f   :  { %v1603_v8 = vcombine.high %v1602_v23, %v1602_v23  ;;  %v1610_v27 = vrot.slane %v1602_v23, %v5725_v60 }
0x1661   :  { %v1617_v34 = vrot.slane %v1603_v8, %v5725_v60  ;;  %v1621_v35 = vrot.slane %v1610_v27, %v5728_v2 }
0x1663   :  { %v1625_v36 = vrot.slane %v1617_v34, %v5728_v2  ;;  %v1628_v43 = vadd.f32 %v1621_v35, %v5733_v15 }
0x1665   :  { %v1629_v11 = vadd.f32 %v1625_v36, %v5738_v19  ;;  %5141 = vtanh.f32 %v1628_v43 }
0x1667   :  { %5143 = vtanh.f32 %v1629_v11 }
0x166f   :  { %v5142_v59 = vpop.eup %5141 }
0x1670   :  { %v1632_v5 = vmul.f32 %v5142_v59, %v5743_v25 }
0x1671   :  { %v5144_v39 = vpop.eup %5143 }
0x1672   :  { %v1634_v33 = vsel %vm150_vm1, %v1632_v5, 0.0  ;;  %v1633_v38 = vmul.f32 %v5144_v39, %v5743_v25 }
0x1673   :  { %1635 = vadd.xlane.f32.xlu0 %v1634_v33 }
0x1674   :  { %v1637_v40 = vsel %vm150_vm1, %v1633_v38, 0.0 }
0x1675   :  { %1638 = vadd.xlane.f32.xlu1 %v1637_v40 }
0x1700   :  { %v1636_v44 = vpop.xlane.xlu0 %1635 }
0x1701   :  { %v1646_v50 = vrot.slane %v1636_v44, %v5750_v30 }
0x1702   :  { %v1639_v46 = vpop.xlane.xlu1 %1638 }
0x1703   :  { %v1650_v48 = vrot.slane %v1639_v46, %v5750_v30 }
0x1705   :  { %v1651_v51 = vsel %vm538_vm5, %v1650_v48, %v1646_v50 }
0x1706   :  { %v1653_v25 = vsel %vm1640_vm13, -1e+09, %v1651_v51 }
0x1707   :  { %v1654_v52 = vsel %vm241_vm7, %v1653_v25, -inf  ;;  %v1944_v53 = vrot.slane %v1653_v25, %v5725_v60 }
0x1708   :  { %1655 = vmax.xlane.f32.xlu0 %v1654_v52 }
0x1709   :  { %v1945_v17 = vcombine.high %v1944_v53, %v1944_v53  ;;  %v1952_v49 = vrot.slane %v1944_v53, %v5725_v60 }
0x170b   :  { %v1959_v26 = vrot.slane %v1945_v17, %v5725_v60  ;;  %1962 = vst.msk [vmem:[#allocation11 + $0x2] sm:$0x1] %vm887_vm8, %v1952_v49 }
0x170d   :  { %1963 = vst.msk [vmem:[#allocation11 + $0xa] sm:$0x1] %vm887_vm8, %v1959_v26 }
0x1795   :  { %v1656_v55 = vpop.xlane.xlu0 %1655 }
0x1796   :  { %v1657_v56 = vsub.f32 %v1653_v25, %v1656_v55 }
0x1798   :  { %v1658_v45 = vmul.f32 1.442695, %v1657_v56 }
0x179a   :  { %5145 = vpow2.f32 %v1658_v45 }
0x17a4   :  { %v5146_v58 = vpop.eup %5145 }
0x17a5   :  { %v1660_v61 = vsel %vm241_vm7, %v5146_v58, 0.0 }
0x17a6   :  { %1661 = vadd.xlane.f32.xlu0 %v1660_v61 }
0x1833   :  { %v1662_v62 = vpop.xlane.xlu0 %1661 }
0x1834   :  { %5147 = vrcp.f32 %v1662_v62 }
0x183e   :  { %v5148_v24 = vpop.eup %5147 }
0x183f   :  { %v1664_v3 = vmul.f32 %v5148_v24, %v5146_v58 }
0x1841   :  { %v1665_v54 = vmul.f32 %v1664_v3, %v6033_v47  ;;  %v1700_v11 = vrot.slane %v1664_v3, %v5725_v60 }
0x1843   :  { %v1666_v10 = vsel %vm241_vm7, %v1665_v54, -inf  ;;  %v1701_v33 = vcombine.high %v1700_v11, %v1700_v11  ;;  %v1708_v41 = vrot.slane %v1700_v11, %v5725_v60 }
0x1844   :  { %1667 = vmax.xlane.f32.xlu1 %v1666_v10 }
0x1845   :  { %v1715_v50 = vrot.slane %v1701_v33, %v5725_v60 }
0x18d1   :  { %v1668_v12 = vpop.xlane.xlu1 %1667 }
0x18d2   :  { %vm1669_vm2 = vcmp.eq.f32.partialorder %v1665_v54, %v1668_v12 }
0x18d3   :  { %v1670_v13 = vsel %vm1669_vm2, %v5674_v22, 8  ;;  %vm2472_vm2 = vcmp.eq.s32.totalorder %v5674_v22, 3 }
0x18d4   :  { %v1671_v7 = vsel %vm241_vm7, %v1670_v13, 2147483647 }
0x18d5   :  { %v1673_v37 = vshra.s32 %v1671_v7, 16  ;;  %v1672_v20 = vand.u32 65535, %v1671_v7 }
0x18d7   :  { %v1675_v18 = vcvt.s32.f32 %v1673_v37  ;;  %v1674_v23 = vcvt.s32.f32 %v1672_v20  ;;  %v6109_v20 = vld [vmem:[%s6744_s6] sm:$0xff]  }
0x18d9   :  { %1676 = vmin.xlane.f32.xlu0 %v1675_v18 }
0x1966   :  { %v1677_v21 = vpop.xlane.xlu0 %1676 }
0x1967   :  { %vm1678_vm3 = vcmp.eq.f32.partialorder %v1675_v18, %v1677_v21  ;;  %v1683_v8 = vcvt.f32.s32 %v1677_v21  ;;  %v6118_v21 = vld [vmem:[%s6744_s6 + $0x8] sm:$0xff]  }
0x1968   :  { %v1679_v14 = vsel %vm1678_vm3, %v1674_v23, inf  ;;  %vm2223_vm3 = vcmp.gt.s32.totalorder %v5790_v32, 3 }
0x1969   :  { %1680 = vmin.xlane.f32.xlu1 %v1679_v14  ;;  %v1684_v34 = vshll.u32 %v1683_v8, 16 }
0x19f6   :  { %v1681_v27 = vpop.xlane.xlu1 %1680 }
0x19f7   :  { %v1682_v35 = vcvt.f32.s32 %v1681_v27 }
0x19f9   :  { %v1685_v36 = vadd.s32 %v1684_v34, %v1682_v35 }
0x19fb   :  { %v1687_v43 = vsel %vm1686_vm9, %v1685_v36, 2 }
0x19fc   :  { %vm1688_vm10 = vcmp.eq.s32.totalorder %v5674_v22, %v1687_v43  ;;  %v6055_v59 = vsel %vm1935_vm6, %v1687_v43, %v5938_v29 }
0x19fd   :  { %v6058_v5 = vsel %vm1688_vm10, 1.0, %v5428_v0 }
0x19fe   :  { %v1725_v39 = vrot.slane %v6058_v5, %v5725_v60 }
0x1a00   :  { %v1726_v38 = vcombine.high %v1725_v39, %v1725_v39  ;;  %v1733_v40 = vrot.slane %v1725_v39, %v5725_v60  ;;  %v6132_v39 = vld [vmem:[%s6747_s9] sm:$0xff]  }
0x1a02   :  { %v1740_v44 = vrot.slane %v1726_v38, %v5725_v60  ;;  %v1744_v46 = vrot.slane %v1733_v40, %v5728_v2 }
0x1a04   :  { %v1748_v29 = vrot.slane %v1740_v44, %v5728_v2  ;;  %v1751_v48 = vsel %vm639_vm14, %v1708_v41, %v1744_v46 }
0x1a05   :  { %v1753_v51 = vpack.c.bf16 %v1751_v48, %v1751_v48  ;;  %v6145_v48 = vld [vmem:[#allocation2] ss:$0 sm:$0xff] }
0x1a06   :  { %v1752_v25 = vsel %vm639_vm14, %v1715_v50, %v1748_v29 }
0x1a07   :  { %4816 = vmatmul.mubr.msk.bf16.vlgmr.msra.gmra.mrb[36].mxu0 %vm644_vm15, %v1753_v51  ;;  %v1754_v52 = vpack.c.bf16 %v1752_v25, %v1752_v25 }
0x1a08   :  { %4826 = vmatpush3.bf16.msra.mxu0 %v5821_v57  ;;  %4829 = vmatprep.mubr.msk.bf16.mxu0 %vm5429_vm0, %v5428_v0  ;;  %v6089_v57 = vld [vmem:[%s6745_s7] sm:$0xff]  }
0x1a09   :  { %4822 = vmatmul.mubr.msk.bf16.vlgmr.msra.gmra.mrb[36].mxu1 %vm644_vm15, %v1754_v52  ;;  %4827 = vmatprep.subr.bf16.mxu0 %v5428_v0 }
0x1a0a   :  { %4834 = vmatpush3.bf16.msra.mxu1 %v5847_v1  ;;  %4837 = vmatprep.mubr.msk.bf16.mxu1 %vm5429_vm0, %v5428_v0 }
0x1a0b   :  { %4835 = vmatprep.subr.bf16.mxu1 %v5428_v0 }
0x1a0c   :  { %4828 = vmatpush3.bf16.msra.mxu0 %v5829_v63  ;;  %v6098_v63 = vld [vmem:[%s6745_s7 + $0x8] sm:$0xff]  }
0x1a0d   :  { %4841 = vmatprep.subr.bf16.mxu0 %v5428_v0 }
0x1a0e   :  { %4836 = vmatpush3.bf16.msra.mxu1 %v5851_v6 }
0x1a0f   :  { %4830 = vmatmul.mubr.msk.bf16.vlgmr.msra.gmra.mrb[40].mxu0 %vm150_vm1, %v6011_v16  ;;  %4849 = vmatprep.subr.bf16.mxu1 %v5428_v0 }
0x1a10   :  { %4842 = vmatpush3.bf16.msra.mxu0 %v6089_v57  ;;  %4845 = vmatprep.mubr.msk.bf16.mxu0 %vm5429_vm0, %v5428_v0 }
0x1a11   :  { %4843 = vmatprep.subr.bf16.mxu0 %v5428_v0 }
0x1a14   :  { %4844 = vmatpush3.bf16.msra.mxu0 %v6098_v63 }
0x1a15   :  { %4857 = vmatprep.subr.bf16.mxu0 %v5428_v0 }
0x1ada   :  { %v1792_v1 = vpop.f32.mrb[36].mxu0 }
0x1adb   :  { %v1841_v6 = vpack.c.bf16 %v1792_v1, %v1792_v1  ;;  %v4817_v16 = vpop.f32.mrb[37].mxu0 }
0x1adc   :  { %v1795_v53 = vpop.f32.mrb[38].mxu0  ;;  %v1835_v17 = vpop.f32.mrb[36].mxu1 }
0x1add   :  { %v1885_v49 = vunpack.c.l.b16 %v1841_v6  ;;  %v1842_v26 = vpack.c.bf16 %v1835_v17, %v1835_v17  ;;  %v4818_v55 = vpop.f32.mrb[39].mxu0  ;;  %v4823_v56 = vpop.f32.mrb[37].mxu1 }
0x1ade   :  { %v1838_v45 = vpop.f32.mrb[38].mxu1 }
0x1adf   :  { %v2008_v58 = vrot.slane %v1885_v49, 1  ;;  %v1886_v61 = vunpack.c.l.b16 %v1842_v26  ;;  %v4824_v62 = vpop.f32.mrb[39].mxu1 }
0x1ae1   :  { %v1887_v24 = vrot.slane %v1886_v61, 7  ;;  %v2009_v3 = vsel %vm538_vm5, %v1886_v61, %v2008_v58 }
0x1ae2   :  { %v1877_v54 = vpop.f32.mrb[40].mxu0  ;;  %v2010_v10 = vpack.c.b16 %v2009_v3, %v2009_v3 }
0x1ae3   :  { %v1888_v12 = vsel %vm538_vm5, %v1887_v24, %v1885_v49  ;;  %v4831_v13 = vpop.f32.mrb[41].mxu0 }
0x1ae4   :  { %v1889_v7 = vpack.c.b16 %v1888_v12, %v1888_v12  ;;  %2011 = vrot.lane.b32.xlu0 %v2010_v10, %s5432_s19  ;;  %v1880_v37 = vpop.f32.mrb[42].mxu0  ;;  %v6171_v13 = vld [vmem:[%s6748_s10] ss:$0 sm:$0xff] }
0x1ae5   :  { %v4832_v18 = vpop.f32.mrb[43].mxu0 }
0x1ae6   :  { %4838 = vmatmul.mubr.msk.bf16.vlgmr.msra.gmra.mrb[40].mxu1 %vm150_vm1, %v1889_v7 }
0x1ae7   :  { %4850 = vmatpush3.bf16.msra.mxu1 %v6109_v20  ;;  %4853 = vmatprep.mubr.msk.bf16.mxu1 %vm5429_vm0, %v5428_v0 }
0x1ae8   :  { %4851 = vmatprep.subr.bf16.mxu1 %v5428_v0 }
0x1aeb   :  { %4852 = vmatpush3.bf16.msra.mxu1 %v6118_v21 }
0x1aec   :  { %4865 = vmatprep.subr.bf16.mxu1 %v5428_v0 }
0x1b56   :  { %v2012_v23 = vpop.permute.xlu0 %2011 }
0x1b57   :  { %4854 = vmatmul.mubr.msk.bf16.vlgmr.msra.gmra.mrb[44].mxu1 %vm150_vm1, %v2012_v23 }
0x1b58   :  { %4866 = vmatpush3.bf16.msra.mxu1 %v5802_v42  ;;  %4867 = vmatprep.mubr.msk.bf16.mxu1 %vm5429_vm0, %v5428_v0 }
0x1b59   :  { %4877 = vmatprep.subr.bf16.mxu1 %v5428_v0 }
0x1bb9   :  { %v1927_v14 = vpop.f32.mrb[40].mxu1 }
0x1bba   :  { %v1928_v8 = vadd.f32 %v1927_v14, %v1877_v54  ;;  %v4839_v27 = vpop.f32.mrb[41].mxu1 }
0x1bbb   :  { %v1930_v34 = vpop.f32.mrb[42].mxu1 }
0x1bbc   :  { %v1933_v35 = vadd.f32 %v5870_v4, %v1928_v8  ;;  %v4840_v36 = vpop.f32.mrb[43].mxu1  ;;  %v6141_v4 = vld [vmem:[%s6747_s9 + $0x8] sm:$0xff]  }
0x1bbe   :  { %5149 = vtanh.f32 %v1933_v35 }
0x1bc8   :  { %v5150_v43 = vpop.eup %5149 }
0x1bc9   :  { %v1964_v11 = vpack.c.bf16 %v5150_v43, %v5150_v43 }
0x1bcb   :  { %4846 = vmatmul.mubr.msk.bf16.vlgmr.msra.gmra.mrb[44].mxu0 %vm150_vm1, %v1964_v11 }
0x1bcc   :  { %4858 = vmatpush3.bf16.msra.mxu0 %v6132_v39  ;;  %4861 = vmatprep.mubr.msk.bf16.mxu0 %vm5429_vm0, %v5428_v0 }
0x1bcd   :  { %4859 = vmatprep.subr.bf16.mxu0 %v5428_v0 }
0x1bd0   :  { %4860 = vmatpush3.bf16.msra.mxu0 %v6141_v4 }
0x1bd1   :  { %4871 = vmatprep.subr.bf16.mxu0 %v5428_v0 }
0x1c2a   :  { %v2050_v33 = vpop.f32.mrb[44].mxu1 }
0x1c2b   :  { %v4855_v38 = vpop.f32.mrb[45].mxu1 }
0x1c2c   :  { %v2053_v40 = vpop.f32.mrb[46].mxu1  ;;  %v6181_v38 = vld [vmem:[#allocation7] ss:$0 sm:$0xff] }
0x1c2d   :  { %v4856_v41 = vpop.f32.mrb[47].mxu1 }
0x1c9e   :  { %v2002_v44 = vpop.f32.mrb[44].mxu0 }
0x1c9f   :  { %v2051_v46 = vadd.f32 %v2050_v33, %v2002_v44  ;;  %v4847_v50 = vpop.f32.mrb[45].mxu0 }
0x1ca0   :  { %v2005_v29 = vpop.f32.mrb[46].mxu0 }
0x1ca1   :  { %v2056_v51 = vadd.f32 %v6145_v48, %v2051_v46  ;;  %v4848_v25 = vpop.f32.mrb[47].mxu0  ;;  %v1691_v29 = vsub.f32 1.0, %v6058_v5 }
0x1ca3   :  { %v2057_v52 = vmul.f32 2.0, %v2056_v51  ;;  %v6189_v25 = vmul.f32 %v1691_v29, %v6033_v47 }
0x1ca5   :  { %v2058_v1 = vsel %vm5681_vm4, %v2057_v52, %v2056_v51  ;;  %vm2177_vm11 = vcmp.eq.f32.partialorder %v6189_v25, 0.0 }
0x1ca6   :  { %v4488_v6 = vmul.f32 -1.442695, %v2058_v1 }
0x1ca8   :  { %5151 = vpow2.f32 %v4488_v6 }
0x1cb2   :  { %v5152_v16 = vpop.eup %5151 }
0x1cb3   :  { %v2062_v53 = vadd.f32 1.0, %v5152_v16 }
0x1cb5   :  { %5153 = vrcp.f32 %v2062_v53 }
0x1cbf   :  { %v5154_v17 = vpop.eup %5153 }
0x1cc0   :  { %v2065_v49 = vmul.f32 2.0, %v5154_v17 }
0x1cc2   :  { %v4489_v26 = vadd.f32 -1.0, %v2065_v49 }
0x1cc4   :  { %v2067_v55 = vsel %vm5681_vm4, %v4489_v26, %v5154_v17 }
0x1cc5   :  { %2070 = vrot.lane.b32.xlu1 %v2067_v55, %s5423_s12  ;;  %v2068_v58 = vmul.f32 %v2067_v55, %v6006_v9 }
0x1d37   :  { %v2071_v56 = vpop.permute.xlu1 %2070 }
0x1d38   :  { %v2073_v45 = vmul.f32 %v2071_v56, %v2067_v55 }
0x1d3a   :  { %2075 = vrot.lane.b32.xlu1 %v2073_v45, %s5430_s21 }
0x1dac   :  { %v2076_v61 = vpop.permute.xlu1 %2075 }
0x1dad   :  { %v6155_v62 = vadd.f32 %v2076_v61, %v2068_v58 }
0x1daf   :  { %5155 = vtanh.f32 %v6155_v62 }
0x1db9   :  { %v5156_v24 = vpop.eup %5155 }
0x1dba   :  { %2081 = vrot.lane.b32.xlu0 %v5156_v24, %s5423_s12 }
0x1e2c   :  { %v2082_v3 = vpop.permute.xlu0 %2081 }
0x1e2d   :  { %v2084_v54 = vmul.f32 %v2082_v3, %v2067_v55 }
0x1e2f   :  { %v2085_v10 = vpack.c.bf16 %v2084_v54, %v2084_v54 }
0x1e31   :  { %2087 = vrot.lane.b32.xlu1 %v2085_v10, %s5430_s21 }
0x1ea3   :  { %v6160_v12 = vpop.permute.xlu1 %2087 }
0x1ea4   :  { %4862 = vmatmul.mubr.msk.bf16.vlgmr.msra.gmra.mrb[48].mxu0 %vm150_vm1, %v6160_v12 }
0x1ea5   :  { %4872 = vmatpush3.bf16.msra.mxu0 %v5786_v28  ;;  %4873 = vmatprep.mubr.msk.bf16.mxu0 %vm5429_vm0, %v5428_v0 }
0x1ea6   :  { %4885 = vmatprep.subr.bf16.mxu0 %v5428_v0 }
0x1f77   :  { %v2126_v9 = vpop.f32.mrb[48].mxu0 }
0x1f78   :  { %v2127_v7 = vadd.f32 %v6171_v13, %v2126_v9  ;;  %v4863_v37 = vpop.f32.mrb[49].mxu0 }
0x1f79   :  { %v2129_v18 = vpop.f32.mrb[50].mxu0 }
0x1f7a   :  { %v2139_v23 = vrot.slane %v2127_v7, %v5725_v60  ;;  %v4864_v14 = vpop.f32.mrb[51].mxu0 }
0x1f7c   :  { %v2140_v8 = vcombine.high %v2139_v23, %v2139_v23  ;;  %v2147_v27 = vrot.slane %v2139_v23, %v5725_v60 }
0x1f7e   :  { %v2154_v34 = vrot.slane %v2140_v8, %v5725_v60  ;;  %v2158_v35 = vrot.slane %v2147_v27, %v5728_v2 }
0x1f80   :  { %v2162_v36 = vrot.slane %v2154_v34, %v5728_v2  ;;  %v2165_v43 = vadd.f32 %v2158_v35, %v5733_v15 }
0x1f82   :  { %v2166_v11 = vadd.f32 %v2162_v36, %v5738_v19  ;;  %5157 = vtanh.f32 %v2165_v43 }
0x1f84   :  { %5159 = vtanh.f32 %v2166_v11 }
0x1f8c   :  { %v5158_v33 = vpop.eup %5157 }
0x1f8d   :  { %v2169_v40 = vmul.f32 %v6181_v38, %v5158_v33 }
0x1f8e   :  { %v5160_v41 = vpop.eup %5159 }
0x1f8f   :  { %v2171_v44 = vsel %vm150_vm1, %v2169_v40, 0.0  ;;  %v2170_v46 = vmul.f32 %v6181_v38, %v5160_v41 }
0x1f90   :  { %2172 = vadd.xlane.f32.xlu0 %v2171_v44 }
0x1f91   :  { %v2174_v50 = vsel %vm150_vm1, %v2170_v46, 0.0 }
0x1f92   :  { %2175 = vadd.xlane.f32.xlu1 %v2174_v50 }
0x201d   :  { %v2173_v51 = vpop.xlane.xlu0 %2172 }
0x201e   :  { %v2183_v1 = vrot.slane %v2173_v51, %v5750_v30 }
0x201f   :  { %v2176_v52 = vpop.xlane.xlu1 %2175 }
0x2020   :  { %v2187_v6 = vrot.slane %v2176_v52, %v5750_v30 }
0x2022   :  { %v2188_v16 = vsel %vm538_vm5, %v2187_v6, %v2183_v1 }
0x2023   :  { %v2190_v53 = vsel %vm2177_vm11, -1e+09, %v2188_v16 }
0x2024   :  { %v2191_v17 = vsel %vm241_vm7, %v2190_v53, -inf  ;;  %v2481_v49 = vrot.slane %v2190_v53, %v5725_v60 }
0x2025   :  { %2192 = vmax.xlane.f32.xlu0 %v2191_v17 }
0x2026   :  { %v2482_v5 = vcombine.high %v2481_v49, %v2481_v49  ;;  %v2489_v26 = vrot.slane %v2481_v49, %v5725_v60 }
0x2028   :  { %v2496_v47 = vrot.slane %v2482_v5, %v5725_v60  ;;  %2499 = vst.msk [vmem:[#allocation11 + $0x3] sm:$0x1] %vm887_vm8, %v2489_v26 }
0x202a   :  { %2500 = vst.msk [vmem:[#allocation11 + $0xb] sm:$0x1] %vm887_vm8, %v2496_v47 }
0x20b2   :  { %v2193_v55 = vpop.xlane.xlu0 %2192 }
0x20b3   :  { %v2194_v56 = vsub.f32 %v2190_v53, %v2193_v55  ;;  %v6230_v55 = vld [vmem:[%s6753_s15] sm:$0xff]  }
0x20b5   :  { %v2195_v45 = vmul.f32 1.442695, %v2194_v56  ;;  %v6237_v56 = vld [vmem:[#allocation8] sm:$0xff]  }
0x20b7   :  { %5161 = vpow2.f32 %v2195_v45  ;;  %v6246_v45 = vld [vmem:[%s6753_s15 + $0x8] sm:$0xff]  }
0x20c1   :  { %v5162_v58 = vpop.eup %5161 }
0x20c2   :  { %v2197_v61 = vsel %vm241_vm7, %v5162_v58, 0.0 }
0x20c3   :  { %2198 = vadd.xlane.f32.xlu0 %v2197_v61 }
0x2150   :  { %v2199_v24 = vpop.xlane.xlu0 %2198 }
0x2151   :  { %5163 = vrcp.f32 %v2199_v24 }
0x215b   :  { %v5164_v3 = vpop.eup %5163 }
0x215c   :  { %v2201_v54 = vmul.f32 %v5164_v3, %v5162_v58  ;;  %v6250_v58 = vld [vmem:[#allocation8 + $0x8] sm:$0xff]  }
0x215e   :  { %v2202_v10 = vmul.f32 %v2201_v54, %v6189_v25  ;;  %v2237_v44 = vrot.slane %v2201_v54, %v5725_v60 }
0x2160   :  { %v2203_v9 = vsel %vm241_vm7, %v2202_v10, -inf  ;;  %v2238_v51 = vcombine.high %v2237_v44, %v2237_v44  ;;  %v2245_v6 = vrot.slane %v2237_v44, %v5725_v60 }
0x2161   :  { %2204 = vmax.xlane.f32.xlu1 %v2203_v9 }
0x2162   :  { %v2252_v17 = vrot.slane %v2238_v51, %v5725_v60 }
0x21ee   :  { %v2205_v7 = vpop.xlane.xlu1 %2204 }
0x21ef   :  { %vm2206_vm12 = vcmp.eq.f32.partialorder %v2202_v10, %v2205_v7 }
0x21f0   :  { %v2207_v37 = vsel %vm2206_vm12, %v5674_v22, 8  ;;  %vm3009_vm12 = vcmp.eq.s32.totalorder %v5674_v22, 4 }
0x21f1   :  { %v2208_v18 = vsel %vm241_vm7, %v2207_v37, 2147483647 }
0x21f2   :  { %v2210_v23 = vshra.s32 %v2208_v18, 16  ;;  %v2209_v8 = vand.u32 65535, %v2208_v18 }
0x21f4   :  { %v2212_v14 = vcvt.s32.f32 %v2210_v23  ;;  %v2211_v34 = vcvt.s32.f32 %v2209_v8 }
0x21f6   :  { %2213 = vmin.xlane.f32.xlu0 %v2212_v14 }
0x2283   :  { %v2214_v27 = vpop.xlane.xlu0 %2213 }
0x2284   :  { %vm2215_vm13 = vcmp.eq.f32.partialorder %v2212_v14, %v2214_v27  ;;  %v2220_v36 = vcvt.f32.s32 %v2214_v27 }
0x2285   :  { %v2216_v35 = vsel %vm2215_vm13, %v2211_v34, inf  ;;  %vm2760_vm13 = vcmp.gt.s32.totalorder %v5790_v32, 4 }
0x2286   :  { %2217 = vmin.xlane.f32.xlu1 %v2216_v35  ;;  %v2221_v11 = vshll.u32 %v2220_v36, 16 }
0x2313   :  { %v2218_v43 = vpop.xlane.xlu1 %2217 }
0x2314   :  { %v2219_v33 = vcvt.f32.s32 %v2218_v43 }
0x2316   :  { %v2222_v40 = vadd.s32 %v2221_v11, %v2219_v33 }
0x2318   :  { %v2224_v41 = vsel %vm2223_vm3, %v2222_v40, 3 }
0x2319   :  { %vm2225_vm6 = vcmp.eq.s32.totalorder %v5674_v22, %v2224_v41  ;;  %v6211_v46 = vsel %vm2472_vm2, %v2224_v41, %v6055_v59 }
0x231a   :  { %v6214_v50 = vsel %vm2225_vm6, 1.0, %v5428_v0 }
0x231b   :  { %v2262_v29 = vrot.slane %v6214_v50, %v5725_v60 }
0x231d   :  { %v2263_v52 = vcombine.high %v2262_v29, %v2262_v29  ;;  %v2270_v1 = vrot.slane %v2262_v29, %v5725_v60 }
0x231f   :  { %v2277_v16 = vrot.slane %v2263_v52, %v5725_v60  ;;  %v2281_v53 = vrot.slane %v2270_v1, %v5728_v2 }
0x2321   :  { %v2285_v59 = vrot.slane %v2277_v16, %v5728_v2  ;;  %v2288_v49 = vsel %vm639_vm14, %v2245_v6, %v2281_v53  ;;  %v6277_v6 = vld [vmem:[#allocation10] ss:$0 sm:$0xff] }
0x2322   :  { %v2290_v5 = vpack.c.bf16 %v2288_v49, %v2288_v49 }
0x2323   :  { %v2289_v26 = vsel %vm639_vm14, %v2252_v17, %v2285_v59 }
0x2324   :  { %4868 = vmatmul.mubr.msk.bf16.vlgmr.msra.gmra.mrb[48].mxu1 %vm644_vm15, %v2290_v5  ;;  %v2291_v47 = vpack.c.bf16 %v2289_v26, %v2289_v26 }
0x2325   :  { %4878 = vmatpush3.bf16.msra.mxu1 %v6230_v55  ;;  %4881 = vmatprep.mubr.msk.bf16.mxu1 %vm5429_vm0, %v5428_v0 }
0x2326   :  { %4874 = vmatmul.mubr.msk.bf16.vlgmr.msra.gmra.mrb[52].mxu0 %vm644_vm15, %v2291_v47  ;;  %4879 = vmatprep.subr.bf16.mxu1 %v5428_v0 }
0x2327   :  { %4886 = vmatpush3.bf16.msra.mxu0 %v6237_v56  ;;  %4889 = vmatprep.mubr.msk.bf16.mxu0 %vm5429_vm0, %v5428_v0 }
0x2328   :  { %4887 = vmatprep.subr.bf16.mxu0 %v5428_v0 }
0x2329   :  { %4880 = vmatpush3.bf16.msra.mxu1 %v6246_v45 }
0x232a   :  { %4893 = vmatprep.subr.bf16.mxu1 %v5428_v0 }
0x232b   :  { %4888 = vmatpush3.bf16.msra.mxu0 %v6250_v58 }
0x232c   :  { %4882 = vmatmul.mubr.msk.bf16.vlgmr.msra.gmra.mrb[52].mxu1 %vm150_vm1, %v6160_v12  ;;  %4901 = vmatprep.subr.bf16.mxu0 %v5428_v0 }
0x232d   :  { %4894 = vmatpush3.bf16.msra.mxu1 %v6089_v57  ;;  %4897 = vmatprep.mubr.msk.bf16.mxu1 %vm5429_vm0, %v5428_v0 }
0x232e   :  { %4895 = vmatprep.subr.bf16.mxu1 %v5428_v0 }
0x2331   :  { %4896 = vmatpush3.bf16.msra.mxu1 %v6098_v63 }
0x2332   :  { %4909 = vmatprep.subr.bf16.mxu1 %v5428_v0 }
0x23f7   :  { %v2329_v61 = vpop.f32.mrb[48].mxu1 }
0x23f8   :  { %v2378_v24 = vpack.c.bf16 %v2329_v61, %v2329_v61  ;;  %v4869_v3 = vpop.f32.mrb[49].mxu1 }
0x23f9   :  { %v2332_v54 = vpop.f32.mrb[50].mxu1  ;;  %v2372_v10 = vpop.f32.mrb[52].mxu0 }
0x23fa   :  { %v2422_v9 = vunpack.c.l.b16 %v2378_v24  ;;  %v2379_v12 = vpack.c.bf16 %v2372_v10, %v2372_v10  ;;  %v4870_v7 = vpop.f32.mrb[51].mxu1  ;;  %v4875_v37 = vpop.f32.mrb[53].mxu0 }
0x23fb   :  { %v2375_v18 = vpop.f32.mrb[54].mxu0 }
0x23fc   :  { %v2545_v23 = vrot.slane %v2422_v9, 1  ;;  %v2423_v14 = vunpack.c.l.b16 %v2379_v12  ;;  %v4876_v8 = vpop.f32.mrb[55].mxu0 }
0x23fe   :  { %v2424_v27 = vrot.slane %v2423_v14, 7  ;;  %v2546_v34 = vsel %vm538_vm5, %v2423_v14, %v2545_v23 }
0x23ff   :  { %v2414_v35 = vpop.f32.mrb[52].mxu1  ;;  %v2547_v36 = vpack.c.b16 %v2546_v34, %v2546_v34 }
0x2400   :  { %v2425_v43 = vsel %vm538_vm5, %v2424_v27, %v2422_v9  ;;  %v4883_v11 = vpop.f32.mrb[53].mxu1 }
0x2401   :  { %v2426_v33 = vpack.c.b16 %v2425_v43, %v2425_v43  ;;  %v2417_v40 = vpop.f32.mrb[54].mxu1  ;;  %2548 = vrot.lane.b32.xlu0 %v2547_v36, %s5432_s19 }
0x2402   :  { %v4884_v41 = vpop.f32.mrb[55].mxu1 }
0x2403   :  { %4890 = vmatmul.mubr.msk.bf16.vlgmr.msra.gmra.mrb[56].mxu0 %vm150_vm1, %v2426_v33 }
0x2404   :  { %4902 = vmatpush3.bf16.msra.mxu0 %v6109_v20  ;;  %4905 = vmatprep.mubr.msk.bf16.mxu0 %vm5429_vm0, %v5428_v0 }
0x2405   :  { %4903 = vmatprep.subr.bf16.mxu0 %v5428_v0 }
0x2408   :  { %4904 = vmatpush3.bf16.msra.mxu0 %v6118_v21 }
0x2409   :  { %4917 = vmatprep.subr.bf16.mxu0 %v5428_v0 }
0x2473   :  { %v2549_v44 = vpop.permute.xlu0 %2548 }
0x2474   :  { %4906 = vmatmul.mubr.msk.bf16.vlgmr.msra.gmra.mrb[60].mxu0 %vm150_vm1, %v2549_v44 }
0x2475   :  { %4918 = vmatpush3.bf16.msra.mxu0 %v5802_v42  ;;  %4919 = vmatprep.mubr.msk.bf16.mxu0 %vm5429_vm0, %v5428_v0 }
0x2476   :  { %4929 = vmatprep.subr.bf16.mxu0 %v5428_v0 }
0x24d6   :  { %v2464_v29 = vpop.f32.mrb[56].mxu0 }
0x24d7   :  { %v2465_v51 = vadd.f32 %v2464_v29, %v2414_v35  ;;  %v4891_v52 = vpop.f32.mrb[57].mxu0 }
0x24d8   :  { %v2467_v1 = vpop.f32.mrb[58].mxu0 }
0x24d9   :  { %v2470_v16 = vadd.f32 %v6277_v6, %v2465_v51  ;;  %v4892_v53 = vpop.f32.mrb[59].mxu0 }
0x24db   :  { %5165 = vtanh.f32 %v2470_v16 }
0x24e5   :  { %v5166_v17 = vpop.eup %5165 }
0x24e6   :  { %v2501_v59 = vpack.c.bf16 %v5166_v17, %v5166_v17 }
0x24e8   :  { %4898 = vmatmul.mubr.msk.bf16.vlgmr.msra.gmra.mrb[56].mxu1 %vm150_vm1, %v2501_v59 }
0x24e9   :  { %4910 = vmatpush3.bf16.msra.mxu1 %v6132_v39  ;;  %4913 = vmatprep.mubr.msk.bf16.mxu1 %vm5429_vm0, %v5428_v0 }
0x24ea   :  { %4911 = vmatprep.subr.bf16.mxu1 %v5428_v0 }
0x24ed   :  { %4912 = vmatpush3.bf16.msra.mxu1 %v6141_v4 }
0x24ee   :  { %4923 = vmatprep.subr.bf16.mxu1 %v5428_v0 }
0x2547   :  { %v2587_v49 = vpop.f32.mrb[60].mxu0 }
0x2548   :  { %v4907_v5 = vpop.f32.mrb[61].mxu0 }
0x2549   :  { %v2590_v26 = vpop.f32.mrb[62].mxu0 }
0x254a   :  { %v4908_v47 = vpop.f32.mrb[63].mxu0 }
0x25bb   :  { %v2539_v61 = vpop.f32.mrb[56].mxu1 }
0x25bc   :  { %v2588_v24 = vadd.f32 %v2587_v49, %v2539_v61  ;;  %v4899_v3 = vpop.f32.mrb[57].mxu1 }
0x25bd   :  { %v2542_v54 = vpop.f32.mrb[58].mxu1 }
0x25be   :  { %v2593_v10 = vadd.f32 %v6145_v48, %v2588_v24  ;;  %v4900_v9 = vpop.f32.mrb[59].mxu1 }
0x25c0   :  { %v2594_v12 = vmul.f32 2.0, %v2593_v10 }
0x25c2   :  { %v2595_v7 = vsel %vm5681_vm4, %v2594_v12, %v2593_v10 }
0x25c3   :  { %v4498_v37 = vmul.f32 -1.442695, %v2595_v7 }
0x25c5   :  { %5167 = vpow2.f32 %v4498_v37  ;;  %v2228_v37 = vsub.f32 1.0, %v6214_v50 }
0x25cf   :  { %v5168_v18 = vpop.eup %5167 }
0x25d0   :  { %v2599_v23 = vadd.f32 1.0, %v5168_v18 }
0x25d2   :  { %5169 = vrcp.f32 %v2599_v23  ;;  %v6322_v23 = vmul.f32 %v2228_v37, %v6189_v25 }
0x25d4   :  { %vm2714_vm9 = vcmp.eq.f32.partialorder %v6322_v23, 0.0 }
0x25dc   :  { %v5170_v14 = vpop.eup %5169 }
0x25dd   :  { %v2602_v8 = vmul.f32 2.0, %v5170_v14 }
0x25df   :  { %v4499_v27 = vadd.f32 -1.0, %v2602_v8 }
0x25e1   :  { %v2604_v34 = vsel %vm5681_vm4, %v4499_v27, %v5170_v14 }
0x25e2   :  { %2607 = vrot.lane.b32.xlu1 %v2604_v34, %s5423_s12  ;;  %v2605_v43 = vmul.f32 %v2604_v34, %v6155_v62 }
0x2654   :  { %v2608_v35 = vpop.permute.xlu1 %2607 }
0x2655   :  { %v2610_v36 = vmul.f32 %v2608_v35, %v2604_v34 }
0x2657   :  { %2612 = vrot.lane.b32.xlu1 %v2610_v36, %s5430_s21 }
0x26c9   :  { %v2613_v11 = vpop.permute.xlu1 %2612 }
0x26ca   :  { %v6295_v33 = vadd.f32 %v2613_v11, %v2605_v43 }
0x26cc   :  { %5171 = vtanh.f32 %v6295_v33 }
0x26d6   :  { %v5172_v40 = vpop.eup %5171 }
0x26d7   :  { %2618 = vrot.lane.b32.xlu0 %v5172_v40, %s5423_s12 }
0x2749   :  { %v2619_v41 = vpop.permute.xlu0 %2618 }
0x274a   :  { %v2621_v44 = vmul.f32 %v2619_v41, %v2604_v34 }
0x274c   :  { %v2622_v29 = vpack.c.bf16 %v2621_v44, %v2621_v44 }
0x274e   :  { %2624 = vrot.lane.b32.xlu1 %v2622_v29, %s5430_s21 }
0x27c0   :  { %v6300_v51 = vpop.permute.xlu1 %2624 }
0x27c1   :  { %4914 = vmatmul.mubr.msk.bf16.vlgmr.msra.gmra.mrb[60].mxu1 %vm150_vm1, %v6300_v51 }
0x27c2   :  { %4924 = vmatpush3.bf16.msra.mxu1 %v5786_v28  ;;  %4925 = vmatprep.mubr.msk.bf16.mxu1 %vm5429_vm0, %v5428_v0 }
0x27c3   :  { %4937 = vmatprep.subr.bf16.mxu1 %v5428_v0 }
0x2894   :  { %v2663_v62 = vpop.f32.mrb[60].mxu1 }
0x2895   :  { %v2664_v52 = vadd.f32 %v6171_v13, %v2663_v62  ;;  %v4915_v1 = vpop.f32.mrb[61].mxu1 }
0x2896   :  { %v2666_v16 = vpop.f32.mrb[62].mxu1 }
0x2897   :  { %v2676_v53 = vrot.slane %v2664_v52, %v5725_v60  ;;  %v4916_v17 = vpop.f32.mrb[63].mxu1 }
0x2899   :  { %v2677_v59 = vcombine.high %v2676_v53, %v2676_v53  ;;  %v2684_v49 = vrot.slane %v2676_v53, %v5725_v60 }
0x289b   :  { %v2691_v5 = vrot.slane %v2677_v59, %v5725_v60  ;;  %v2695_v26 = vrot.slane %v2684_v49, %v5728_v2 }
0x289d   :  { %v2699_v47 = vrot.slane %v2691_v5, %v5728_v2  ;;  %v2702_v61 = vadd.f32 %v2695_v26, %v5733_v15 }
0x289f   :  { %v2703_v24 = vadd.f32 %v2699_v47, %v5738_v19  ;;  %5173 = vtanh.f32 %v2702_v61 }
0x28a1   :  { %5175 = vtanh.f32 %v2703_v24 }
0x28a9   :  { %v5174_v3 = vpop.eup %5173 }
0x28aa   :  { %v2706_v54 = vmul.f32 %v6181_v38, %v5174_v3 }
0x28ab   :  { %v5176_v10 = vpop.eup %5175 }
0x28ac   :  { %v2708_v9 = vsel %vm150_vm1, %v2706_v54, 0.0  ;;  %v2707_v12 = vmul.f32 %v6181_v38, %v5176_v10 }
0x28ad   :  { %2709 = vadd.xlane.f32.xlu0 %v2708_v9 }
0x28ae   :  { %v2711_v7 = vsel %vm150_vm1, %v2707_v12, 0.0 }
0x28af   :  { %2712 = vadd.xlane.f32.xlu1 %v2711_v7 }
0x293a   :  { %v2710_v18 = vpop.xlane.xlu0 %2709 }
0x293b   :  { %v2720_v8 = vrot.slane %v2710_v18, %v5750_v30 }
0x293c   :  { %v2713_v14 = vpop.xlane.xlu1 %2712 }
0x293d   :  { %v2724_v27 = vrot.slane %v2713_v14, %v5750_v30 }
0x293f   :  { %v2725_v34 = vsel %vm538_vm5, %v2724_v27, %v2720_v8 }
0x2940   :  { %v2727_v35 = vsel %vm2714_vm9, -1e+09, %v2725_v34 }
0x2941   :  { %v2728_v36 = vsel %vm241_vm7, %v2727_v35, -inf  ;;  %v3018_v43 = vrot.slane %v2727_v35, %v5725_v60 }
0x2942   :  { %2729 = vmax.xlane.f32.xlu0 %v2728_v36 }
0x2943   :  { %v3019_v50 = vcombine.high %v3018_v43, %v3018_v43  ;;  %v3026_v11 = vrot.slane %v3018_v43, %v5725_v60 }
0x2945   :  { %v3033_v25 = vrot.slane %v3019_v50, %v5725_v60  ;;  %3036 = vst.msk [vmem:[#allocation11 + $0x4] sm:$0x1] %vm887_vm8, %v3026_v11 }
0x2947   :  { %3037 = vst.msk [vmem:[#allocation11 + $0xc] sm:$0x1] %vm887_vm8, %v3033_v25 }
0x29cf   :  { %v2730_v40 = vpop.xlane.xlu0 %2729 }
0x29d0   :  { %v2731_v41 = vsub.f32 %v2727_v35, %v2730_v40 }
0x29d2   :  { %v2732_v44 = vmul.f32 1.442695, %v2731_v41 }
0x29d4   :  { %5177 = vpow2.f32 %v2732_v44 }
0x29de   :  { %v5178_v29 = vpop.eup %5177 }
0x29df   :  { %v2734_v62 = vsel %vm241_vm7, %v5178_v29, 0.0 }
0x29e0   :  { %2735 = vadd.xlane.f32.xlu0 %v2734_v62 }
0x2a6d   :  { %v2736_v52 = vpop.xlane.xlu0 %2735 }
0x2a6e   :  { %5179 = vrcp.f32 %v2736_v52 }
0x2a78   :  { %v5180_v1 = vpop.eup %5179 }
0x2a79   :  { %v2738_v16 = vmul.f32 %v5180_v1, %v5178_v29 }
0x2a7b   :  { %v2739_v53 = vmul.f32 %v2738_v16, %v6322_v23  ;;  %v2774_v14 = vrot.slane %v2738_v16, %v5725_v60 }
0x2a7d   :  { %v2740_v17 = vsel %vm241_vm7, %v2739_v53, -inf  ;;  %v2775_v35 = vcombine.high %v2774_v14, %v2774_v14  ;;  %v2782_v50 = vrot.slane %v2774_v14, %v5725_v60 }
0x2a7e   :  { %2741 = vmax.xlane.f32.xlu1 %v2740_v17 }
0x2a7f   :  { %v2789_v40 = vrot.slane %v2775_v35, %v5725_v60 }
0x2b0b   :  { %v2742_v59 = vpop.xlane.xlu1 %2741 }
0x2b0c   :  { %vm2743_vm10 = vcmp.eq.f32.partialorder %v2739_v53, %v2742_v59 }
0x2b0d   :  { %v2744_v49 = vsel %vm2743_vm10, %v5674_v22, 8  ;;  %vm3546_vm10 = vcmp.eq.s32.totalorder %v5674_v22, 5 }
0x2b0e   :  { %v2745_v5 = vsel %vm241_vm7, %v2744_v49, 2147483647 }
0x2b0f   :  { %v2747_v26 = vshra.s32 %v2745_v5, 16  ;;  %v2746_v61 = vand.u32 65535, %v2745_v5 }
0x2b11   :  { %v2749_v47 = vcvt.s32.f32 %v2747_v26  ;;  %v2748_v3 = vcvt.s32.f32 %v2746_v61 }
0x2b13   :  { %2750 = vmin.xlane.f32.xlu0 %v2749_v47 }
0x2ba0   :  { %v2751_v24 = vpop.xlane.xlu0 %2750 }
0x2ba1   :  { %vm2752_vm11 = vcmp.eq.f32.partialorder %v2749_v47, %v2751_v24  ;;  %v2757_v10 = vcvt.f32.s32 %v2751_v24 }
0x2ba2   :  { %v2753_v54 = vsel %vm2752_vm11, %v2748_v3, inf  ;;  %vm3297_vm11 = vcmp.gt.s32.totalorder %v5790_v32, 5 }
0x2ba3   :  { %2754 = vmin.xlane.f32.xlu1 %v2753_v54  ;;  %v2758_v12 = vshll.u32 %v2757_v10, 16 }
0x2c30   :  { %v2755_v9 = vpop.xlane.xlu1 %2754 }
0x2c31   :  { %v2756_v7 = vcvt.f32.s32 %v2755_v9 }
0x2c33   :  { %v2759_v37 = vadd.s32 %v2758_v12, %v2756_v7 }
0x2c35   :  { %v2761_v18 = vsel %vm2760_vm13, %v2759_v37, 4 }
0x2c36   :  { %vm2762_vm2 = vcmp.eq.s32.totalorder %v5674_v22, %v2761_v18  ;;  %v6344_v8 = vsel %vm3009_vm12, %v2761_v18, %v6211_v46 }
0x2c37   :  { %v6347_v27 = vsel %vm2762_vm2, 1.0, %v5428_v0 }
0x2c38   :  { %v2799_v34 = vrot.slane %v6347_v27, %v5725_v60 }
0x2c3a   :  { %v2800_v36 = vcombine.high %v2799_v34, %v2799_v34  ;;  %v2807_v43 = vrot.slane %v2799_v34, %v5725_v60 }
0x2c3c   :  { %v2814_v11 = vrot.slane %v2800_v36, %v5725_v60  ;;  %v2818_v25 = vrot.slane %v2807_v43, %v5728_v2 }
0x2c3e   :  { %v2822_v46 = vrot.slane %v2814_v11, %v5728_v2  ;;  %v2825_v41 = vsel %vm639_vm14, %v2782_v50, %v2818_v25 }
0x2c3f   :  { %v2827_v44 = vpack.c.bf16 %v2825_v41, %v2825_v41 }
0x2c40   :  { %v2826_v29 = vsel %vm639_vm14, %v2789_v40, %v2822_v46 }
0x2c41   :  { %4920 = vmatmul.mubr.msk.bf16.vlgmr.msra.gmra.mrb[64].mxu0 %vm644_vm15, %v2827_v44  ;;  %v2828_v62 = vpack.c.bf16 %v2826_v29, %v2826_v29 }
0x2c42   :  { %4930 = vmatpush3.bf16.msra.mxu0 %v6230_v55  ;;  %4933 = vmatprep.mubr.msk.bf16.mxu0 %vm5429_vm0, %v5428_v0 }
0x2c43   :  { %4926 = vmatmul.mubr.msk.bf16.vlgmr.msra.gmra.mrb[64].mxu1 %vm644_vm15, %v2828_v62  ;;  %4931 = vmatprep.subr.bf16.mxu0 %v5428_v0 }
0x2c44   :  { %4938 = vmatpush3.bf16.msra.mxu1 %v6237_v56  ;;  %4941 = vmatprep.mubr.msk.bf16.mxu1 %vm5429_vm0, %v5428_v0 }
0x2c45   :  { %4939 = vmatprep.subr.bf16.mxu1 %v5428_v0 }
0x2c46   :  { %4932 = vmatpush3.bf16.msra.mxu0 %v6246_v45 }
0x2c47   :  { %4945 = vmatprep.subr.bf16.mxu0 %v5428_v0 }
0x2c48   :  { %4940 = vmatpush3.bf16.msra.mxu1 %v6250_v58 }
0x2c49   :  { %4934 = vmatmul.mubr.msk.bf16.vlgmr.msra.gmra.mrb[68].mxu0 %vm150_vm1, %v6300_v51  ;;  %4953 = vmatprep.subr.bf16.mxu1 %v5428_v0 }
0x2c4a   :  { %4946 = vmatpush3.bf16.msra.mxu0 %v6089_v57  ;;  %4949 = vmatprep.mubr.msk.bf16.mxu0 %vm5429_vm0, %v5428_v0 }
0x2c4b   :  { %4947 = vmatprep.subr.bf16.mxu0 %v5428_v0 }
0x2c4e   :  { %4948 = vmatpush3.bf16.msra.mxu0 %v6098_v63 }
0x2c4f   :  { %4961 = vmatprep.subr.bf16.mxu0 %v5428_v0 }
0x2d14   :  { %v2866_v52 = vpop.f32.mrb[64].mxu0 }
0x2d15   :  { %v2915_v1 = vpack.c.bf16 %v2866_v52, %v2866_v52  ;;  %v4921_v16 = vpop.f32.mrb[65].mxu0 }
0x2d16   :  { %v2869_v53 = vpop.f32.mrb[66].mxu0  ;;  %v2909_v17 = vpop.f32.mrb[64].mxu1 }
0x2d17   :  { %v2959_v59 = vunpack.c.l.b16 %v2915_v1  ;;  %v2916_v51 = vpack.c.bf16 %v2909_v17, %v2909_v17  ;;  %v4922_v49 = vpop.f32.mrb[67].mxu0  ;;  %v4927_v5 = vpop.f32.mrb[65].mxu1 }
0x2d18   :  { %v2912_v26 = vpop.f32.mrb[66].mxu1 }
0x2d19   :  { %v3082_v57 = vrot.slane %v2959_v59, 1  ;;  %v2960_v47 = vunpack.c.l.b16 %v2916_v51  ;;  %v4928_v61 = vpop.f32.mrb[67].mxu1 }
0x2d1b   :  { %v2961_v24 = vrot.slane %v2960_v47, 7  ;;  %v3083_v3 = vsel %vm538_vm5, %v2960_v47, %v3082_v57 }
0x2d1c   :  { %v2951_v54 = vpop.f32.mrb[68].mxu0  ;;  %v3084_v63 = vpack.c.b16 %v3083_v3, %v3083_v3 }
0x2d1d   :  { %v2962_v10 = vsel %vm538_vm5, %v2961_v24, %v2959_v59  ;;  %v4935_v9 = vpop.f32.mrb[69].mxu0 }
0x2d1e   :  { %v2963_v12 = vpack.c.b16 %v2962_v10, %v2962_v10  ;;  %3085 = vrot.lane.b32.xlu0 %v3084_v63, %s5432_s19  ;;  %v2954_v7 = vpop.f32.mrb[70].mxu0 }
0x2d1f   :  { %v4936_v37 = vpop.f32.mrb[71].mxu0 }
0x2d20   :  { %4942 = vmatmul.mubr.msk.bf16.vlgmr.msra.gmra.mrb[68].mxu1 %vm150_vm1, %v2963_v12 }
0x2d21   :  { %4954 = vmatpush3.bf16.msra.mxu1 %v6109_v20  ;;  %4957 = vmatprep.mubr.msk.bf16.mxu1 %vm5429_vm0, %v5428_v0 }
0x2d22   :  { %4955 = vmatprep.subr.bf16.mxu1 %v5428_v0 }
0x2d25   :  { %4956 = vmatpush3.bf16.msra.mxu1 %v6118_v21 }
0x2d26   :  { %4969 = vmatprep.subr.bf16.mxu1 %v5428_v0 }
0x2d90   :  { %v3086_v18 = vpop.permute.xlu0 %3085 }
0x2d91   :  { %4958 = vmatmul.mubr.msk.bf16.vlgmr.msra.gmra.mrb[72].mxu1 %vm150_vm1, %v3086_v18 }
0x2d92   :  { %4970 = vmatpush3.bf16.msra.mxu1 %v5802_v42  ;;  %4971 = vmatprep.mubr.msk.bf16.mxu1 %vm5429_vm0, %v5428_v0 }
0x2d93   :  { %4981 = vmatprep.subr.bf16.mxu1 %v5428_v0 }
0x2df3   :  { %v3001_v20 = vpop.f32.mrb[68].mxu1 }
0x2df4   :  { %v3002_v14 = vadd.f32 %v3001_v20, %v2951_v54  ;;  %v4943_v34 = vpop.f32.mrb[69].mxu1 }
0x2df5   :  { %v3004_v35 = vpop.f32.mrb[70].mxu1 }
0x2df6   :  { %v3007_v36 = vadd.f32 %v6277_v6, %v3002_v14  ;;  %v4944_v43 = vpop.f32.mrb[71].mxu1 }
0x2df8   :  { %5181 = vtanh.f32 %v3007_v36 }
0x2e02   :  { %v5182_v21 = vpop.eup %5181 }
0x2e03   :  { %v3038_v50 = vpack.c.bf16 %v5182_v21, %v5182_v21 }
0x2e05   :  { %4950 = vmatmul.mubr.msk.bf16.vlgmr.msra.gmra.mrb[72].mxu0 %vm150_vm1, %v3038_v50 }
0x2e06   :  { %4962 = vmatpush3.bf16.msra.mxu0 %v6132_v39  ;;  %4965 = vmatprep.mubr.msk.bf16.mxu0 %vm5429_vm0, %v5428_v0 }
0x2e07   :  { %4963 = vmatprep.subr.bf16.mxu0 %v5428_v0 }
0x2e0a   :  { %4964 = vmatpush3.bf16.msra.mxu0 %v6141_v4 }
0x2e0b   :  { %4975 = vmatprep.subr.bf16.mxu0 %v5428_v0 }
0x2e64   :  { %v3124_v11 = vpop.f32.mrb[72].mxu1 }
0x2e65   :  { %v4959_v25 = vpop.f32.mrb[73].mxu1 }
0x2e66   :  { %v3127_v40 = vpop.f32.mrb[74].mxu1 }
0x2e67   :  { %v4960_v46 = vpop.f32.mrb[75].mxu1 }
0x2ed8   :  { %v3076_v41 = vpop.f32.mrb[72].mxu0 }
0x2ed9   :  { %v3125_v44 = vadd.f32 %v3124_v11, %v3076_v41  ;;  %v4951_v29 = vpop.f32.mrb[73].mxu0  ;;  %v2765_v41 = vsub.f32 1.0, %v6347_v27 }
0x2eda   :  { %v3079_v62 = vpop.f32.mrb[74].mxu0 }
0x2edb   :  { %v3130_v52 = vadd.f32 %v6145_v48, %v3125_v44  ;;  %v4952_v39 = vpop.f32.mrb[75].mxu0  ;;  %v6439_v29 = vmul.f32 %v2765_v41, %v6322_v23 }
0x2edd   :  { %v3131_v1 = vmul.f32 2.0, %v3130_v52  ;;  %vm3251_vm3 = vcmp.eq.f32.partialorder %v6439_v29, 0.0 }
0x2edf   :  { %v3132_v16 = vsel %vm5681_vm4, %v3131_v1, %v3130_v52 }
0x2ee0   :  { %v4508_v53 = vmul.f32 -1.442695, %v3132_v16 }
0x2ee2   :  { %5183 = vpow2.f32 %v4508_v53 }
0x2eec   :  { %v5184_v4 = vpop.eup %5183 }
0x2eed   :  { %v3136_v17 = vadd.f32 1.0, %v5184_v4 }
0x2eef   :  { %5185 = vrcp.f32 %v3136_v17 }
0x2ef9   :  { %v5186_v59 = vpop.eup %5185 }
0x2efa   :  { %v3139_v51 = vmul.f32 2.0, %v5186_v59 }
0x2efc   :  { %v4509_v49 = vadd.f32 -1.0, %v3139_v51 }
0x2efe   :  { %v3141_v5 = vsel %vm5681_vm4, %v4509_v49, %v5186_v59 }
0x2eff   :  { %3144 = vrot.lane.b32.xlu1 %v3141_v5, %s5423_s12  ;;  %v3142_v57 = vmul.f32 %v3141_v5, %v6295_v33 }
0x2f71   :  { %v3145_v26 = vpop.permute.xlu1 %3144 }
0x2f72   :  { %v3147_v48 = vmul.f32 %v3145_v26, %v3141_v5 }
0x2f74   :  { %3149 = vrot.lane.b32.xlu1 %v3147_v48, %s5430_s21 }
0x2fe6   :  { %v3150_v47 = vpop.permute.xlu1 %3149 }
0x2fe7   :  { %v6412_v61 = vadd.f32 %v3150_v47, %v3142_v57 }
0x2fe9   :  { %5187 = vtanh.f32 %v6412_v61 }
0x2ff3   :  { %v5188_v24 = vpop.eup %5187 }
0x2ff4   :  { %3155 = vrot.lane.b32.xlu0 %v5188_v24, %s5423_s12 }
0x3066   :  { %v3156_v3 = vpop.permute.xlu0 %3155 }
0x3067   :  { %v3158_v54 = vmul.f32 %v3156_v3, %v3141_v5 }
0x3069   :  { %v3159_v63 = vpack.c.bf16 %v3158_v54, %v3158_v54 }
0x306b   :  { %3161 = vrot.lane.b32.xlu1 %v3159_v63, %s5430_s21 }
0x30dd   :  { %v6417_v10 = vpop.permute.xlu1 %3161 }
0x30de   :  { %4966 = vmatmul.mubr.msk.bf16.vlgmr.msra.gmra.mrb[76].mxu0 %vm150_vm1, %v6417_v10 }
0x30df   :  { %4976 = vmatpush3.bf16.msra.mxu0 %v5786_v28  ;;  %4977 = vmatprep.mubr.msk.bf16.mxu0 %vm5429_vm0, %v5428_v0 }
0x30e0   :  { %4989 = vmatprep.subr.bf16.mxu0 %v5428_v0 }
0x31b1   :  { %v3200_v33 = vpop.f32.mrb[76].mxu0 }
0x31b2   :  { %v3201_v9 = vadd.f32 %v6171_v13, %v3200_v33  ;;  %v4967_v12 = vpop.f32.mrb[77].mxu0 }
0x31b3   :  { %v3203_v7 = vpop.f32.mrb[78].mxu0 }
0x31b4   :  { %v3213_v37 = vrot.slane %v3201_v9, %v5725_v60  ;;  %v4968_v18 = vpop.f32.mrb[79].mxu0 }
0x31b6   :  { %v3214_v20 = vcombine.high %v3213_v37, %v3213_v37  ;;  %v3221_v14 = vrot.slane %v3213_v37, %v5725_v60 }
0x31b8   :  { %v3228_v34 = vrot.slane %v3214_v20, %v5725_v60  ;;  %v3232_v35 = vrot.slane %v3221_v14, %v5728_v2 }
0x31ba   :  { %v3236_v36 = vrot.slane %v3228_v34, %v5728_v2  ;;  %v3239_v43 = vadd.f32 %v3232_v35, %v5733_v15 }
0x31bc   :  { %v3240_v21 = vadd.f32 %v3236_v36, %v5738_v19  ;;  %5189 = vtanh.f32 %v3239_v43 }
0x31be   :  { %5191 = vtanh.f32 %v3240_v21 }
0x31c6   :  { %v5190_v13 = vpop.eup %5189 }
0x31c7   :  { %v3243_v50 = vmul.f32 %v6181_v38, %v5190_v13 }
0x31c8   :  { %v5192_v11 = vpop.eup %5191 }
0x31c9   :  { %v3245_v25 = vsel %vm150_vm1, %v3243_v50, 0.0  ;;  %v3244_v40 = vmul.f32 %v6181_v38, %v5192_v11 }
0x31ca   :  { %3246 = vadd.xlane.f32.xlu0 %v3245_v25 }
0x31cb   :  { %v3248_v46 = vsel %vm150_vm1, %v3244_v40, 0.0 }
0x31cc   :  { %3249 = vadd.xlane.f32.xlu1 %v3248_v46 }
0x3257   :  { %v3247_v44 = vpop.xlane.xlu0 %3246 }
0x3258   :  { %v3257_v52 = vrot.slane %v3247_v44, %v5750_v30 }
0x3259   :  { %v3250_v62 = vpop.xlane.xlu1 %3249 }
0x325a   :  { %v3261_v39 = vrot.slane %v3250_v62, %v5750_v30 }
0x325c   :  { %v3262_v1 = vsel %vm538_vm5, %v3261_v39, %v3257_v52 }
0x325d   :  { %v3264_v38 = vsel %vm3251_vm3, -1e+09, %v3262_v1 }
0x325e   :  { %v3265_v16 = vsel %vm241_vm7, %v3264_v38, -inf  ;;  %v3555_v53 = vrot.slane %v3264_v38, %v5725_v60 }
0x325f   :  { %3266 = vmax.xlane.f32.xlu0 %v3265_v16 }
0x3260   :  { %v3556_v27 = vcombine.high %v3555_v53, %v3555_v53  ;;  %v3563_v4 = vrot.slane %v3555_v53, %v5725_v60 }
0x3262   :  { %v3570_v23 = vrot.slane %v3556_v27, %v5725_v60  ;;  %3573 = vst.msk [vmem:[#allocation11 + $0x5] sm:$0x1] %vm887_vm8, %v3563_v4 }
0x3264   :  { %3574 = vst.msk [vmem:[#allocation11 + $0xd] sm:$0x1] %vm887_vm8, %v3570_v23 }
0x32ec   :  { %v3267_v17 = vpop.xlane.xlu0 %3266 }
0x32ed   :  { %v3268_v59 = vsub.f32 %v3264_v38, %v3267_v17 }
0x32ef   :  { %v3269_v51 = vmul.f32 1.442695, %v3268_v59 }
0x32f1   :  { %5193 = vpow2.f32 %v3269_v51 }
0x32fb   :  { %v5194_v49 = vpop.eup %5193 }
0x32fc   :  { %v3271_v5 = vsel %vm241_vm7, %v5194_v49, 0.0 }
0x32fd   :  { %3272 = vadd.xlane.f32.xlu0 %v3271_v5 }
0x338a   :  { %v3273_v26 = vpop.xlane.xlu0 %3272 }
0x338b   :  { %5195 = vrcp.f32 %v3273_v26 }
0x3395   :  { %v5196_v48 = vpop.eup %5195 }
0x3396   :  { %v3275_v57 = vmul.f32 %v5196_v48, %v5194_v49 }
0x3398   :  { %v3276_v47 = vmul.f32 %v3275_v57, %v6439_v29  ;;  %v3311_v21 = vrot.slane %v3275_v57, %v5725_v60 }
0x339a   :  { %v3277_v24 = vsel %vm241_vm7, %v3276_v47, -inf  ;;  %v3312_v25 = vcombine.high %v3311_v21, %v3311_v21  ;;  %v3319_v41 = vrot.slane %v3311_v21, %v5725_v60 }
0x339b   :  { %3278 = vmax.xlane.f32.xlu1 %v3277_v24 }
0x339c   :  { %v3326_v52 = vrot.slane %v3312_v25, %v5725_v60 }
0x3428   :  { %v3279_v3 = vpop.xlane.xlu1 %3278 }
0x3429   :  { %vm3280_vm6 = vcmp.eq.f32.partialorder %v3276_v47, %v3279_v3 }
0x342a   :  { %v3281_v54 = vsel %vm3280_vm6, %v5674_v22, 8  ;;  %vm4083_vm6 = vcmp.eq.s32.totalorder %v5674_v22, 6 }
0x342b   :  { %v3282_v63 = vsel %vm241_vm7, %v3281_v54, 2147483647 }
0x342c   :  { %v3284_v33 = vshra.s32 %v3282_v63, 16  ;;  %v3283_v12 = vand.u32 65535, %v3282_v63 }
0x342e   :  { %v3286_v9 = vcvt.s32.f32 %v3284_v33  ;;  %v3285_v37 = vcvt.s32.f32 %v3283_v12  ;;  %v6515_v12 = vld [vmem:[%s6744_s6] sm:$0xff]  }
0x3430   :  { %3287 = vmin.xlane.f32.xlu0 %v3286_v9 }
0x34bd   :  { %v3288_v7 = vpop.xlane.xlu0 %3287 }
0x34be   :  { %vm3289_vm9 = vcmp.eq.f32.partialorder %v3286_v9, %v3288_v7  ;;  %v3294_v20 = vcvt.f32.s32 %v3288_v7  ;;  %v6524_v7 = vld [vmem:[%s6744_s6 + $0x8] sm:$0xff]  }
0x34bf   :  { %v3290_v18 = vsel %vm3289_vm9, %v3285_v37, inf  ;;  %vm3834_vm9 = vcmp.gt.s32.totalorder %v5790_v32, 6 }
0x34c0   :  { %3291 = vmin.xlane.f32.xlu1 %v3290_v18  ;;  %v3295_v34 = vshll.u32 %v3294_v20, 16 }
0x354d   :  { %v3292_v14 = vpop.xlane.xlu1 %3291 }
0x354e   :  { %v3293_v35 = vcvt.f32.s32 %v3292_v14 }
0x3550   :  { %v3296_v36 = vadd.s32 %v3295_v34, %v3293_v35 }
0x3552   :  { %v3298_v43 = vsel %vm3297_vm11, %v3296_v36, 5 }
0x3553   :  { %vm3299_vm12 = vcmp.eq.s32.totalorder %v5674_v22, %v3298_v43  ;;  %v6461_v13 = vsel %vm3546_vm10, %v3298_v43, %v6344_v8 }
0x3554   :  { %v6464_v50 = vsel %vm3299_vm12, 1.0, %v5428_v0 }
0x3555   :  { %v3336_v11 = vrot.slane %v6464_v50, %v5725_v60 }
0x3557   :  { %v3337_v40 = vcombine.high %v3336_v11, %v3336_v11  ;;  %v3344_v46 = vrot.slane %v3336_v11, %v5725_v60 }
0x3559   :  { %v3351_v44 = vrot.slane %v3337_v40, %v5725_v60  ;;  %v3355_v62 = vrot.slane %v3344_v46, %v5728_v2 }
0x355b   :  { %v3359_v8 = vrot.slane %v3351_v44, %v5728_v2  ;;  %v3362_v39 = vsel %vm639_vm14, %v3319_v41, %v3355_v62 }
0x355c   :  { %v3364_v1 = vpack.c.bf16 %v3362_v39, %v3362_v39 }
0x355d   :  { %v3363_v38 = vsel %vm639_vm14, %v3326_v52, %v3359_v8  ;;  %v6551_v8 = vld [vmem:[#allocation2] ss:$0 sm:$0xff] }
0x355e   :  { %4972 = vmatmul.mubr.msk.bf16.vlgmr.msra.gmra.mrb[76].mxu1 %vm644_vm15, %v3364_v1  ;;  %v3365_v16 = vpack.c.bf16 %v3363_v38, %v3363_v38 }
0x355f   :  { %4982 = vmatpush3.bf16.msra.mxu1 %v6230_v55  ;;  %4985 = vmatprep.mubr.msk.bf16.mxu1 %vm5429_vm0, %v5428_v0  ;;  %v6495_v55 = vld [vmem:[%s6745_s7] sm:$0xff]  }
0x3560   :  { %4978 = vmatmul.mubr.msk.bf16.vlgmr.msra.gmra.mrb[80].mxu0 %vm644_vm15, %v3365_v16  ;;  %4983 = vmatprep.subr.bf16.mxu1 %v5428_v0 }
0x3561   :  { %4990 = vmatpush3.bf16.msra.mxu0 %v6237_v56  ;;  %4993 = vmatprep.mubr.msk.bf16.mxu0 %vm5429_vm0, %v5428_v0  ;;  %v6504_v56 = vld [vmem:[%s6745_s7 + $0x8] sm:$0xff]  }
0x3562   :  { %4991 = vmatprep.subr.bf16.mxu0 %v5428_v0 }
0x3563   :  { %4984 = vmatpush3.bf16.msra.mxu1 %v6246_v45 }
0x3564   :  { %4997 = vmatprep.subr.bf16.mxu1 %v5428_v0 }
0x3565   :  { %4992 = vmatpush3.bf16.msra.mxu0 %v6250_v58 }
0x3566   :  { %4986 = vmatmul.mubr.msk.bf16.vlgmr.msra.gmra.mrb[80].mxu1 %vm150_vm1, %v6417_v10  ;;  %5005 = vmatprep.subr.bf16.mxu0 %v5428_v0 }
0x3567   :  { %4998 = vmatpush3.bf16.msra.mxu1 %v6495_v55  ;;  %5001 = vmatprep.mubr.msk.bf16.mxu1 %vm5429_vm0, %v5428_v0 }
0x3568   :  { %4999 = vmatprep.subr.bf16.mxu1 %v5428_v0 }
0x356b   :  { %5000 = vmatpush3.bf16.msra.mxu1 %v6504_v56 }
0x356c   :  { %5013 = vmatprep.subr.bf16.mxu1 %v5428_v0 }
0x3631   :  { %v3403_v45 = vpop.f32.mrb[76].mxu1 }
0x3632   :  { %v3452_v58 = vpack.c.bf16 %v3403_v45, %v3403_v45  ;;  %v4973_v10 = vpop.f32.mrb[77].mxu1 }
0x3633   :  { %v3406_v53 = vpop.f32.mrb[78].mxu1  ;;  %v3446_v27 = vpop.f32.mrb[80].mxu0 }
0x3634   :  { %v3496_v4 = vunpack.c.l.b16 %v3452_v58  ;;  %v3453_v23 = vpack.c.bf16 %v3446_v27, %v3446_v27  ;;  %v4974_v17 = vpop.f32.mrb[79].mxu1  ;;  %v4979_v59 = vpop.f32.mrb[81].mxu0 }
0x3635   :  { %v3449_v51 = vpop.f32.mrb[82].mxu0 }
0x3636   :  { %v3619_v49 = vrot.slane %v3496_v4, 1  ;;  %v3497_v5 = vunpack.c.l.b16 %v3453_v23  ;;  %v4980_v26 = vpop.f32.mrb[83].mxu0 }
0x3638   :  { %v3498_v48 = vrot.slane %v3497_v5, 7  ;;  %v3620_v57 = vsel %vm538_vm5, %v3497_v5, %v3619_v49 }
0x3639   :  { %v3488_v47 = vpop.f32.mrb[80].mxu1  ;;  %v3621_v24 = vpack.c.b16 %v3620_v57, %v3620_v57 }
0x363a   :  { %v3499_v3 = vsel %vm538_vm5, %v3498_v48, %v3496_v4  ;;  %v4987_v54 = vpop.f32.mrb[81].mxu1 }
0x363b   :  { %v3500_v63 = vpack.c.b16 %v3499_v3, %v3499_v3  ;;  %v3491_v33 = vpop.f32.mrb[82].mxu1  ;;  %3622 = vrot.lane.b32.xlu0 %v3621_v24, %s5432_s19  ;;  %v6577_v3 = vld [vmem:[%s6748_s10] ss:$0 sm:$0xff] }
0x363c   :  { %v4988_v9 = vpop.f32.mrb[83].mxu1 }
0x363d   :  { %4994 = vmatmul.mubr.msk.bf16.vlgmr.msra.gmra.mrb[84].mxu0 %vm150_vm1, %v3500_v63 }
0x363e   :  { %5006 = vmatpush3.bf16.msra.mxu0 %v6515_v12  ;;  %5009 = vmatprep.mubr.msk.bf16.mxu0 %vm5429_vm0, %v5428_v0 }
0x363f   :  { %5007 = vmatprep.subr.bf16.mxu0 %v5428_v0 }
0x3642   :  { %5008 = vmatpush3.bf16.msra.mxu0 %v6524_v7 }
0x3643   :  { %5021 = vmatprep.subr.bf16.mxu0 %v5428_v0 }
0x36ad   :  { %v3623_v37 = vpop.permute.xlu0 %3622 }
0x36ae   :  { %5010 = vmatmul.mubr.msk.bf16.vlgmr.msra.gmra.mrb[88].mxu0 %vm150_vm1, %v3623_v37 }
0x36af   :  { %5022 = vmatpush3.bf16.msra.mxu0 %v5802_v42  ;;  %5023 = vmatprep.mubr.msk.bf16.mxu0 %vm5429_vm0, %v5428_v0  ;;  %v6538_v42 = vld [vmem:[%s6747_s9] sm:$0xff]  }
0x36b0   :  { %5033 = vmatprep.subr.bf16.mxu0 %v5428_v0 }
0x3710   :  { %v3538_v18 = vpop.f32.mrb[84].mxu0 }
0x3711   :  { %v3539_v20 = vadd.f32 %v3538_v18, %v3488_v47  ;;  %v4995_v14 = vpop.f32.mrb[85].mxu0 }
0x3712   :  { %v3541_v34 = vpop.f32.mrb[86].mxu0 }
0x3713   :  { %v3544_v35 = vadd.f32 %v6277_v6, %v3539_v20  ;;  %v4996_v36 = vpop.f32.mrb[87].mxu0  ;;  %v6547_v6 = vld [vmem:[%s6747_s9 + $0x8] sm:$0xff]  }
0x3715   :  { %5197 = vtanh.f32 %v3544_v35 }
0x371f   :  { %v5198_v43 = vpop.eup %5197 }
0x3720   :  { %v3575_v21 = vpack.c.bf16 %v5198_v43, %v5198_v43 }
0x3722   :  { %5002 = vmatmul.mubr.msk.bf16.vlgmr.msra.gmra.mrb[84].mxu1 %vm150_vm1, %v3575_v21  ;;  %v6587_v21 = vld [vmem:[#allocation7] ss:$0 sm:$0xff] }
0x3723   :  { %5014 = vmatpush3.bf16.msra.mxu1 %v6538_v42  ;;  %5017 = vmatprep.mubr.msk.bf16.mxu1 %vm5429_vm0, %v5428_v0 }
0x3724   :  { %5015 = vmatprep.subr.bf16.mxu1 %v5428_v0 }
0x3727   :  { %5016 = vmatpush3.bf16.msra.mxu1 %v6547_v6 }
0x3728   :  { %5027 = vmatprep.subr.bf16.mxu1 %v5428_v0 }
0x3781   :  { %v3661_v11 = vpop.f32.mrb[88].mxu0 }
0x3782   :  { %v5011_v25 = vpop.f32.mrb[89].mxu0 }
0x3783   :  { %v3664_v40 = vpop.f32.mrb[90].mxu0 }
0x3784   :  { %v5012_v46 = vpop.f32.mrb[91].mxu0 }
0x37f5   :  { %v3613_v41 = vpop.f32.mrb[84].mxu1 }
0x37f6   :  { %v3662_v44 = vadd.f32 %v3661_v11, %v3613_v41  ;;  %v5003_v62 = vpop.f32.mrb[85].mxu1 }
0x37f7   :  { %v3616_v52 = vpop.f32.mrb[86].mxu1 }
0x37f8   :  { %v3667_v39 = vadd.f32 %v6551_v8, %v3662_v44  ;;  %v5004_v1 = vpop.f32.mrb[87].mxu1  ;;  %v3302_v44 = vsub.f32 1.0, %v6464_v50 }
0x37fa   :  { %v3668_v38 = vmul.f32 2.0, %v3667_v39  ;;  %v6595_v52 = vmul.f32 %v3302_v44, %v6439_v29 }
0x37fc   :  { %v3669_v16 = vsel %vm5681_vm4, %v3668_v38, %v3667_v39  ;;  %vm3788_vm13 = vcmp.eq.f32.partialorder %v6595_v52, 0.0 }
0x37fd   :  { %v4518_v45 = vmul.f32 -1.442695, %v3669_v16 }
0x37ff   :  { %5199 = vpow2.f32 %v4518_v45 }
0x3809   :  { %v5200_v58 = vpop.eup %5199 }
0x380a   :  { %v3673_v10 = vadd.f32 1.0, %v5200_v58 }
0x380c   :  { %5201 = vrcp.f32 %v3673_v10 }
0x3816   :  { %v5202_v53 = vpop.eup %5201 }
0x3817   :  { %v3676_v27 = vmul.f32 2.0, %v5202_v53 }
0x3819   :  { %v4519_v4 = vadd.f32 -1.0, %v3676_v27 }
0x381b   :  { %v3678_v23 = vsel %vm5681_vm4, %v4519_v4, %v5202_v53 }
0x381c   :  { %3681 = vrot.lane.b32.xlu1 %v3678_v23, %s5423_s12  ;;  %v3679_v51 = vmul.f32 %v3678_v23, %v6412_v61 }
0x388e   :  { %v3682_v17 = vpop.permute.xlu1 %3681 }
0x388f   :  { %v3684_v59 = vmul.f32 %v3682_v17, %v3678_v23 }
0x3891   :  { %3686 = vrot.lane.b32.xlu1 %v3684_v59, %s5430_s21 }
0x3903   :  { %v3687_v49 = vpop.permute.xlu1 %3686 }
0x3904   :  { %v6561_v5 = vadd.f32 %v3687_v49, %v3679_v51 }
0x3906   :  { %5203 = vtanh.f32 %v6561_v5 }
0x3910   :  { %v5204_v26 = vpop.eup %5203 }
0x3911   :  { %3692 = vrot.lane.b32.xlu0 %v5204_v26, %s5423_s12 }
0x3983   :  { %v3693_v48 = vpop.permute.xlu0 %3692 }
0x3984   :  { %v3695_v57 = vmul.f32 %v3693_v48, %v3678_v23 }
0x3986   :  { %v3696_v47 = vpack.c.bf16 %v3695_v57, %v3695_v57 }
0x3988   :  { %3698 = vrot.lane.b32.xlu1 %v3696_v47, %s5430_s21 }
0x39fa   :  { %v6566_v24 = vpop.permute.xlu1 %3698 }
0x39fb   :  { %5018 = vmatmul.mubr.msk.bf16.vlgmr.msra.gmra.mrb[88].mxu1 %vm150_vm1, %v6566_v24 }
0x39fc   :  { %5028 = vmatpush3.bf16.msra.mxu1 %v5786_v28  ;;  %5029 = vmatprep.mubr.msk.bf16.mxu1 %vm5429_vm0, %v5428_v0 }
0x39fd   :  { %5041 = vmatprep.subr.bf16.mxu1 %v5428_v0 }
0x3ace   :  { %v3737_v61 = vpop.f32.mrb[88].mxu1 }
0x3acf   :  { %v3738_v54 = vadd.f32 %v6577_v3, %v3737_v61  ;;  %v5019_v63 = vpop.f32.mrb[89].mxu1 }
0x3ad0   :  { %v3740_v33 = vpop.f32.mrb[90].mxu1 }
0x3ad1   :  { %v3750_v9 = vrot.slane %v3738_v54, %v5725_v60  ;;  %v5020_v37 = vpop.f32.mrb[91].mxu1 }
0x3ad3   :  { %v3751_v18 = vcombine.high %v3750_v9, %v3750_v9  ;;  %v3758_v28 = vrot.slane %v3750_v9, %v5725_v60 }
0x3ad5   :  { %v3765_v20 = vrot.slane %v3751_v18, %v5725_v60  ;;  %v3769_v14 = vrot.slane %v3758_v28, %v5728_v2 }
0x3ad7   :  { %v3773_v34 = vrot.slane %v3765_v20, %v5728_v2  ;;  %v3776_v35 = vadd.f32 %v3769_v14, %v5733_v15 }
0x3ad9   :  { %v3777_v36 = vadd.f32 %v3773_v34, %v5738_v19  ;;  %5205 = vtanh.f32 %v3776_v35 }
0x3adb   :  { %5207 = vtanh.f32 %v3777_v36 }
0x3ae3   :  { %v5206_v43 = vpop.eup %5205 }
0x3ae4   :  { %v3780_v11 = vmul.f32 %v6587_v21, %v5206_v43 }
0x3ae5   :  { %v5208_v25 = vpop.eup %5207 }
0x3ae6   :  { %v3782_v40 = vsel %vm150_vm1, %v3780_v11, 0.0  ;;  %v3781_v46 = vmul.f32 %v6587_v21, %v5208_v25 }
0x3ae7   :  { %3783 = vadd.xlane.f32.xlu0 %v3782_v40 }
0x3ae8   :  { %v3785_v41 = vsel %vm150_vm1, %v3781_v46, 0.0 }
0x3ae9   :  { %3786 = vadd.xlane.f32.xlu1 %v3785_v41 }
0x3b74   :  { %v3784_v62 = vpop.xlane.xlu0 %3783 }
0x3b75   :  { %v3794_v1 = vrot.slane %v3784_v62, %v5750_v30 }
0x3b76   :  { %v3787_v39 = vpop.xlane.xlu1 %3786 }
0x3b77   :  { %v3798_v38 = vrot.slane %v3787_v39, %v5750_v30 }
0x3b79   :  { %v3799_v16 = vsel %vm538_vm5, %v3798_v38, %v3794_v1 }
0x3b7a   :  { %v3801_v45 = vsel %vm3788_vm13, -1e+09, %v3799_v16 }
0x3b7b   :  { %v3802_v58 = vsel %vm241_vm7, %v3801_v45, -inf  ;;  %v4092_v10 = vrot.slane %v3801_v45, %v5725_v60 }
0x3b7c   :  { %3803 = vmax.xlane.f32.xlu0 %v3802_v58 }
0x3b7d   :  { %v4093_v50 = vcombine.high %v4092_v10, %v4092_v10  ;;  %v4100_v53 = vrot.slane %v4092_v10, %v5725_v60 }
0x3b7f   :  { %v4107_v29 = vrot.slane %v4093_v50, %v5725_v60  ;;  %4110 = vst.msk [vmem:[#allocation11 + $0x6] sm:$0x1] %vm887_vm8, %v4100_v53  ;;  %v5252_v53 = vld [vmem:[%s6753_s15] sm:$0xff]  }
0x3b81   :  { %4111 = vst.msk [vmem:[#allocation11 + $0xe] sm:$0x1] %vm887_vm8, %v4107_v29  ;;  %v5253_v29 = vld [vmem:[#allocation8] sm:$0xff]  }
0x3c09   :  { %v3804_v27 = vpop.xlane.xlu0 %3803 }
0x3c0a   :  { %v3805_v4 = vsub.f32 %v3801_v45, %v3804_v27  ;;  %v5254_v27 = vld [vmem:[%s6753_s15 + $0x8] sm:$0xff]   ;;  %s5433_s15 = smov [#allocation11]  }
0x3c0c   :  { %v3806_v23 = vmul.f32 1.442695, %v3805_v4  ;;  %v5255_v4 = vld [vmem:[#allocation8 + $0x8] sm:$0xff]  }
0x3c0e   :  { %5209 = vpow2.f32 %v3806_v23 }
0x3c18   :  { %v5210_v17 = vpop.eup %5209 }
0x3c19   :  { %v3808_v59 = vsel %vm241_vm7, %v5210_v17, 0.0 }
0x3c1a   :  { %3809 = vadd.xlane.f32.xlu0 %v3808_v59 }
0x3ca7   :  { %v3810_v51 = vpop.xlane.xlu0 %3809 }
0x3ca8   :  { %5211 = vrcp.f32 %v3810_v51 }
0x3cb2   :  { %v5212_v49 = vpop.eup %5211 }
0x3cb3   :  { %v3812_v26 = vmul.f32 %v5212_v49, %v5210_v17 }
0x3cb5   :  { %v3813_v48 = vmul.f32 %v3812_v26, %v6595_v52  ;;  %v3848_v11 = vrot.slane %v3812_v26, %v5725_v60 }
0x3cb7   :  { %v3814_v57 = vsel %vm241_vm7, %v3813_v48, -inf  ;;  %v3849_v41 = vcombine.high %v3848_v11, %v3848_v11  ;;  %v3856_v39 = vrot.slane %v3848_v11, %v5725_v60 }
0x3cb8   :  { %3815 = vmax.xlane.f32.xlu1 %v3814_v57 }
0x3cb9   :  { %v3863_v16 = vrot.slane %v3849_v41, %v5725_v60 }
0x3d45   :  { %v3816_v47 = vpop.xlane.xlu1 %3815 }
0x3d46   :  { %vm3817_vm2 = vcmp.eq.f32.partialorder %v3813_v48, %v3816_v47 }
0x3d47   :  { %v3818_v61 = vsel %vm3817_vm2, %v5674_v22, 8 }
0x3d48   :  { %v3819_v54 = vsel %vm241_vm7, %v3818_v61, 2147483647 }
0x3d49   :  { %v3821_v63 = vshra.s32 %v3819_v54, 16  ;;  %v3820_v9 = vand.u32 65535, %v3819_v54 }
0x3d4b   :  { %v3823_v33 = vcvt.s32.f32 %v3821_v63  ;;  %v3822_v18 = vcvt.s32.f32 %v3820_v9 }
0x3d4d   :  { %3824 = vmin.xlane.f32.xlu0 %v3823_v33 }
0x3dda   :  { %v3825_v37 = vpop.xlane.xlu0 %3824 }
0x3ddb   :  { %vm3826_vm3 = vcmp.eq.f32.partialorder %v3823_v33, %v3825_v37  ;;  %v3831_v20 = vcvt.f32.s32 %v3825_v37 }
0x3ddc   :  { %v3827_v28 = vsel %vm3826_vm3, %v3822_v18, inf }
0x3ddd   :  { %3828 = vmin.xlane.f32.xlu1 %v3827_v28  ;;  %v3832_v34 = vshll.u32 %v3831_v20, 16 }
0x3e6a   :  { %v3829_v14 = vpop.xlane.xlu1 %3828 }
0x3e6b   :  { %v3830_v35 = vcvt.f32.s32 %v3829_v14 }
0x3e6d   :  { %v3833_v36 = vadd.s32 %v3832_v34, %v3830_v35 }
0x3e6f   :  { %v3835_v43 = vsel %vm3834_vm9, %v3833_v36, 6 }
0x3e70   :  { %vm3836_vm10 = vcmp.eq.s32.totalorder %v5674_v22, %v3835_v43  ;;  %v6617_v25 = vsel %vm4083_vm6, %v3835_v43, %v6461_v13 }
0x3e71   :  { %v6620_v40 = vsel %vm3836_vm10, 1.0, %v5428_v0 }
0x3e72   :  { %v3873_v46 = vrot.slane %v6620_v40, %v5725_v60 }
0x3e74   :  { %v3874_v44 = vcombine.high %v3873_v46, %v3873_v46  ;;  %v3881_v62 = vrot.slane %v3873_v46, %v5725_v60  ;;  %v5256_v46 = vld [vmem:[#allocation10] ss:$0 sm:$0xff] }
0x3e76   :  { %v3888_v1 = vrot.slane %v3874_v44, %v5725_v60  ;;  %v3892_v38 = vrot.slane %v3881_v62, %v5728_v2 }
0x3e78   :  { %v3896_v13 = vrot.slane %v3888_v1, %v5728_v2  ;;  %v3899_v45 = vsel %vm639_vm14, %v3856_v39, %v3892_v38 }
0x3e79   :  { %v3901_v58 = vpack.c.bf16 %v3899_v45, %v3899_v45 }
0x3e7a   :  { %v3900_v10 = vsel %vm639_vm14, %v3863_v16, %v3896_v13 }
0x3e7b   :  { %5024 = vmatmul.mubr.msk.bf16.vlgmr.msra.gmra.mrb[92].mxu0 %vm644_vm15, %v3901_v58  ;;  %v3902_v50 = vpack.c.bf16 %v3900_v10, %v3900_v10 }
0x3e7c   :  { %5034 = vmatpush3.bf16.msra.mxu0 %v5252_v53  ;;  %5037 = vmatprep.mubr.msk.bf16.mxu0 %vm5429_vm0, %v5428_v0 }
0x3e7d   :  { %5030 = vmatmul.mubr.msk.bf16.vlgmr.msra.gmra.mrb[92].mxu1 %vm644_vm15, %v3902_v50  ;;  %5035 = vmatprep.subr.bf16.mxu0 %v5428_v0 }
0x3e7e   :  { %5042 = vmatpush3.bf16.msra.mxu1 %v5253_v29  ;;  %5045 = vmatprep.mubr.msk.bf16.mxu1 %vm5429_vm0, %v5428_v0 }
0x3e7f   :  { %5043 = vmatprep.subr.bf16.mxu1 %v5428_v0 }
0x3e80   :  { %5036 = vmatpush3.bf16.msra.mxu0 %v5254_v27 }
0x3e81   :  { %5049 = vmatprep.subr.bf16.mxu0 %v5428_v0 }
0x3e82   :  { %5044 = vmatpush3.bf16.msra.mxu1 %v5255_v4 }
0x3e83   :  { %5038 = vmatmul.mubr.msk.bf16.vlgmr.msra.gmra.mrb[96].mxu0 %vm150_vm1, %v6566_v24  ;;  %5057 = vmatprep.subr.bf16.mxu1 %v5428_v0 }
0x3e84   :  { %5050 = vmatpush3.bf16.msra.mxu0 %v6495_v55  ;;  %5053 = vmatprep.mubr.msk.bf16.mxu0 %vm5429_vm0, %v5428_v0 }
0x3e85   :  { %5051 = vmatprep.subr.bf16.mxu0 %v5428_v0 }
0x3e88   :  { %5052 = vmatpush3.bf16.msra.mxu0 %v6504_v56 }
0x3e89   :  { %5065 = vmatprep.subr.bf16.mxu0 %v5428_v0 }
0x3f4e   :  { %v3940_v23 = vpop.f32.mrb[92].mxu0 }
0x3f4f   :  { %v3989_v17 = vpack.c.bf16 %v3940_v23, %v3940_v23  ;;  %v5025_v59 = vpop.f32.mrb[93].mxu0 }
0x3f50   :  { %v3943_v51 = vpop.f32.mrb[94].mxu0  ;;  %v3983_v49 = vpop.f32.mrb[92].mxu1 }
0x3f51   :  { %v4033_v26 = vunpack.c.l.b16 %v3989_v17  ;;  %v3990_v24 = vpack.c.bf16 %v3983_v49, %v3983_v49  ;;  %v5026_v48 = vpop.f32.mrb[95].mxu0  ;;  %v5031_v57 = vpop.f32.mrb[93].mxu1 }
0x3f52   :  { %v3986_v47 = vpop.f32.mrb[94].mxu1 }
0x3f53   :  { %v4156_v55 = vrot.slane %v4033_v26, 1  ;;  %v4034_v61 = vunpack.c.l.b16 %v3990_v24  ;;  %v5032_v54 = vpop.f32.mrb[95].mxu1 }
0x3f55   :  { %v4035_v63 = vrot.slane %v4034_v61, 7  ;;  %v4157_v33 = vsel %vm538_vm5, %v4034_v61, %v4156_v55 }
0x3f56   :  { %v4025_v9 = vpop.f32.mrb[96].mxu0  ;;  %v4158_v56 = vpack.c.b16 %v4157_v33, %v4157_v33 }
0x3f57   :  { %v4036_v37 = vsel %vm538_vm5, %v4035_v63, %v4033_v26  ;;  %v5039_v18 = vpop.f32.mrb[97].mxu0 }
0x3f58   :  { %v4037_v28 = vpack.c.b16 %v4036_v37, %v4036_v37  ;;  %4159 = vrot.lane.b32.xlu0 %v4158_v56, %s5432_s19  ;;  %v4028_v20 = vpop.f32.mrb[98].mxu0 }
0x3f59   :  { %v5040_v14 = vpop.f32.mrb[99].mxu0 }
0x3f5a   :  { %5046 = vmatmul.mubr.msk.bf16.vlgmr.msra.gmra.mrb[96].mxu1 %vm150_vm1, %v4037_v28 }
0x3f5b   :  { %5058 = vmatpush3.bf16.msra.mxu1 %v6515_v12  ;;  %5061 = vmatprep.mubr.msk.bf16.mxu1 %vm5429_vm0, %v5428_v0 }
0x3f5c   :  { %5059 = vmatprep.subr.bf16.mxu1 %v5428_v0 }
0x3f5f   :  { %5060 = vmatpush3.bf16.msra.mxu1 %v6524_v7 }
0x3fca   :  { %v4160_v34 = vpop.permute.xlu0 %4159 }
0x3fcb   :  { %5062 = vmatmul.mubr.msk.bf16.vlgmr.msra.gmra.mrb[100].mxu1 %vm150_vm1, %v4160_v34 }
0x402d   :  { %v4075_v35 = vpop.f32.mrb[96].mxu1 }
0x402e   :  { %v4076_v36 = vadd.f32 %v4075_v35, %v4025_v9  ;;  %v5047_v43 = vpop.f32.mrb[97].mxu1 }
0x402f   :  { %v4078_v11 = vpop.f32.mrb[98].mxu1 }
0x4030   :  { %v4081_v41 = vadd.f32 %v5256_v46, %v4076_v36  ;;  %v5048_v44 = vpop.f32.mrb[99].mxu1 }
0x4032   :  { %5213 = vtanh.f32 %v4081_v41 }
0x403c   :  { %v5214_v62 = vpop.eup %5213 }
0x403d   :  { %v4112_v12 = vpack.c.bf16 %v5214_v62, %v5214_v62 }
0x403f   :  { %5054 = vmatmul.mubr.msk.bf16.vlgmr.msra.gmra.mrb[100].mxu0 %vm150_vm1, %v4112_v12 }
0x4040   :  { %5066 = vmatpush3.bf16.msra.mxu0 %v6538_v42  ;;  %5069 = vmatprep.mubr.msk.bf16.mxu0 %vm5429_vm0, %v5428_v0 }
0x4041   :  { %5067 = vmatprep.subr.bf16.mxu0 %v5428_v0 }
0x4044   :  { %5068 = vmatpush3.bf16.msra.mxu0 %v6547_v6 }
0x409e   :  { %v4198_v7 = vpop.f32.mrb[100].mxu1 }
0x409f   :  { %v5063_v39 = vpop.f32.mrb[101].mxu1 }
0x40a0   :  { %v4201_v1 = vpop.f32.mrb[102].mxu1 }
0x40a1   :  { %v5064_v38 = vpop.f32.mrb[103].mxu1 }
0x4112   :  { %v4150_v16 = vpop.f32.mrb[100].mxu0 }
0x4113   :  { %v4199_v13 = vadd.f32 %v4198_v7, %v4150_v16  ;;  %v5055_v45 = vpop.f32.mrb[101].mxu0 }
0x4114   :  { %v4153_v58 = vpop.f32.mrb[102].mxu0 }
0x4115   :  { %v4204_v10 = vadd.f32 %v6551_v8, %v4199_v13  ;;  %v5056_v50 = vpop.f32.mrb[103].mxu0 }
0x4117   :  { %v4205_v53 = vmul.f32 2.0, %v4204_v10 }
0x4119   :  { %v4206_v42 = vsel %vm5681_vm4, %v4205_v53, %v4204_v10 }
0x411a   :  { %v4528_v29 = vmul.f32 -1.442695, %v4206_v42 }
0x411c   :  { %5215 = vpow2.f32 %v4528_v29 }
0x4126   :  { %v5216_v0 = vpop.eup %5215 }
0x4127   :  { %v4210_v27 = vadd.f32 1.0, %v5216_v0 }
0x4129   :  { %5217 = vrcp.f32 %v4210_v27 }
0x4133   :  { %v5218_v6 = vpop.eup %5217 }
0x4134   :  { %v4213_v4 = vmul.f32 2.0, %v5218_v6 }
0x4136   :  { %v4529_v23 = vadd.f32 -1.0, %v4213_v4 }
0x4138   :  { %v4215_v17 = vsel %vm5681_vm4, %v4529_v23, %v5218_v6 }
0x4139   :  { %4218 = vrot.lane.b32.xlu1 %v4215_v17, %s5423_s12  ;;  %v4216_v51 = vmul.f32 %v4215_v17, %v6561_v5 }
0x41ab   :  { %v4219_v59 = vpop.permute.xlu1 %4218 }
0x41ac   :  { %v4221_v8 = vmul.f32 %v4219_v59, %v4215_v17 }
0x41ae   :  { %4223 = vrot.lane.b32.xlu1 %v4221_v8, %s5430_s21 }
0x4220   :  { %v4224_v49 = vpop.permute.xlu1 %4223 }
0x4221   :  { %v4226_v26 = vadd.f32 %v4224_v49, %v4216_v51 }
0x4223   :  { %5219 = vtanh.f32 %v4226_v26 }
0x422d   :  { %v5220_v24 = vpop.eup %5219 }
0x422e   :  { %4229 = vrot.lane.b32.xlu0 %v5220_v24, %s5423_s12  ;;  %s4408_s12 = sshll.u32 %s5433_s15, 4  ;;  %s4409_s12 = int_to_ptr.vmem [resolvable:$true] %s4408_s12 }
0x422f   :  { %p5372_p13 = scmp.lt.s32.totalorder %s4409_s12, %s4409_s12 }
0x42a0   :  { %v4230_v48 = vpop.permute.xlu0 %4229 }
0x42a1   :  { %v4232_v57 = vmul.f32 %v4230_v48, %v4215_v17 }
0x42a3   :  { %v4233_v47 = vpack.c.bf16 %v4232_v57, %v4232_v57 }
0x42a5   :  { %4235 = vrot.lane.b32.xlu1 %v4233_v47, %s5430_s21  ;;  %s5367_s21 = scalar_lea.vmem %s4409_s12, 256 }
0x42a6   :  { %p5368_p12 = scmp.ne.s32.totalorder %s4409_s12, %s5367_s21  ;;  %p5373_p0 = scmp.lt.s32.totalorder %s5367_s21, %s5367_s21 }
0x42a8   :  { %p5374_p1 = por %p5373_p0, %p5372_p13 }
0x42aa   :  { %p5375_p2 = pnand %p5374_p1, %p5368_p12 }
0x4317   :  { %v4236_v31 = vpop.permute.xlu1 %4235 }
0x4318   :  { %5070 = vmatmul.mubr.msk.bf16.vlgmr.msra.gmra.mrb[104].mxu0 %vm150_vm1, %v4236_v31 }
0x43eb   :  { %v4274_v55 = vpop.f32.mrb[104].mxu0 }
0x43ec   :  { %v4275_v61 = vadd.f32 %v6577_v3, %v4274_v55  ;;  %v5071_v54 = vpop.f32.mrb[105].mxu0 }
0x43ed   :  { %v4277_v63 = vpop.f32.mrb[106].mxu0 }
0x43ee   :  { %v4287_v5 = vrot.slane %v4275_v61, %v5725_v60  ;;  %v5072_v33 = vpop.f32.mrb[107].mxu0 }
0x43f0   :  { %v4288_v9 = vcombine.high %v4287_v5, %v4287_v5  ;;  %v4295_v56 = vrot.slane %v4287_v5, %v5725_v60 }
0x43f2   :  { %v4302_v37 = vrot.slane %v4288_v9, %v5725_v60  ;;  %v4306_v18 = vrot.slane %v4295_v56, %v5728_v2 }
0x43f4   :  { %v4310_v28 = vrot.slane %v4302_v37, %v5728_v2  ;;  %v4313_v20 = vadd.f32 %v4306_v18, %v5733_v15  ;;  %v3839_v2 = vsub.f32 1.0, %v6620_v40 }
0x43f6   :  { %v4314_v14 = vadd.f32 %v4310_v28, %v5738_v19  ;;  %5221 = vtanh.f32 %v4313_v20  ;;  %v3840_v15 = vmul.f32 %v3839_v2, %v6595_v52 }
0x43f8   :  { %5223 = vtanh.f32 %v4314_v14  ;;  %vm4325_vm0 = vcmp.eq.f32.partialorder %v3840_v15, 0.0 }
0x4400   :  { %v5222_v3 = vpop.eup %5221 }
0x4401   :  { %v4317_v34 = vmul.f32 %v6587_v21, %v5222_v3 }
0x4402   :  { %v5224_v35 = vpop.eup %5223 }
0x4403   :  { %v4319_v36 = vsel %vm150_vm1, %v4317_v34, 0.0  ;;  %v4318_v43 = vmul.f32 %v6587_v21, %v5224_v35 }
0x4404   :  { %4320 = vadd.xlane.f32.xlu0 %v4319_v36 }
0x4405   :  { %v4322_v11 = vsel %vm150_vm1, %v4318_v43, 0.0 }
0x4406   :  { %4323 = vadd.xlane.f32.xlu1 %v4322_v11 }
0x4491   :  { %v4321_v46 = vpop.xlane.xlu0 %4320 }
0x4492   :  { %v4331_v41 = vrot.slane %v4321_v46, %v5750_v30 }
0x4493   :  { %v4324_v19 = vpop.xlane.xlu1 %4323 }
0x4494   :  { %v4335_v44 = vrot.slane %v4324_v19, %v5750_v30 }
0x4496   :  { %v4336_v62 = vsel %vm538_vm5, %v4335_v44, %v4331_v41 }
0x4497   :  { %v4338_v12 = vsel %vm4325_vm0, -1e+09, %v4336_v62 }
0x4498   :  { %v4339_v21 = vsel %vm241_vm7, %v4338_v12, -inf  ;;  %v4382_v7 = vrot.slane %v4338_v12, %v5725_v60 }
0x4499   :  { %4340 = vmax.xlane.f32.xlu0 %v4339_v21 }
0x449a   :  { %v4383_v39 = vcombine.high %v4382_v7, %v4382_v7  ;;  %v4390_v40 = vrot.slane %v4382_v7, %v5725_v60 }
0x449c   :  { %v4397_v1 = vrot.slane %v4383_v39, %v5725_v60  ;;  %4400 = vst.msk [vmem:[#allocation11 + $0x7] sm:$0x1] %vm887_vm8, %v4390_v40 }
0x449e   :  { %4401 = vst.msk [vmem:[#allocation11 + $0xf] sm:$0x1] %vm887_vm8, %v4397_v1 }
0x4526   :  { %v4341_v52 = vpop.xlane.xlu0 %4340 }
0x4527   :  { %v4342_v30 = vsub.f32 %v4338_v12, %v4341_v52 }
0x4529   :  { %v4343_v38 = vmul.f32 1.442695, %v4342_v30 }
0x452b   :  { %5225 = vpow2.f32 %v4343_v38 }
0x4535   :  { %v5226_v16 = vpop.eup %5225 }
0x4536   :  { %v4345_v13 = vsel %vm241_vm7, %v5226_v16, 0.0 }
0x4537   :  { %4346 = vadd.xlane.f32.xlu0 %v4345_v13 }
0x45c4   :  { %v4347_v45 = vpop.xlane.xlu0 %4346 }
0x45c5   :  { %5227 = vrcp.f32 %v4347_v45 }
0x45cf   :  { %v5228_v58 = vpop.eup %5227 }
0x45d0   :  { %v4349_v10 = vmul.f32 %v5228_v58, %v5226_v16 }
0x45d2   :  { %v4350_v50 = vmul.f32 %v4349_v10, %v3840_v15 }
0x45d4   :  { %v4351_v53 = vsel %vm241_vm7, %v4350_v50, -inf }
0x45d5   :  { %4352 = vmax.xlane.f32.xlu1 %v4351_v53 }
0x4662   :  { %v4353_v60 = vpop.xlane.xlu1 %4352 }
0x4663   :  { %vm4354_vm1 = vcmp.eq.f32.partialorder %v4350_v50, %v4353_v60 }
0x4664   :  { %v4355_v42 = vsel %vm4354_vm1, %v5674_v22, 8 }
0x4665   :  { %v4356_v29 = vsel %vm241_vm7, %v4355_v42, 2147483647 }
0x4666   :  { %v4358_v0 = vshra.s32 %v4356_v29, 16  ;;  %v4357_v6 = vand.u32 65535, %v4356_v29 }
0x4668   :  { %v4360_v27 = vcvt.s32.f32 %v4358_v0  ;;  %v4359_v23 = vcvt.s32.f32 %v4357_v6 }
0x466a   :  { %4361 = vmin.xlane.f32.xlu0 %v4360_v27 }
0x46f7   :  { %v4362_v4 = vpop.xlane.xlu0 %4361 }
0x46f8   :  { %vm4363_vm4 = vcmp.eq.f32.partialorder %v4360_v27, %v4362_v4 }
0x46f9   :  { %v4364_v17 = vsel %vm4363_vm4, %v4359_v23, inf }
0x46fa   :  { %4365 = vmin.xlane.f32.xlu1 %v4364_v17 }
0x46fb   :  { %5378 = shalt.err (!%p5375_p2)
}
0x46fc   :  { %s5379_s4 = scalar_lea.hbm %s6755_s17, 256 }
0x46fd   :  { %p5380_p3 = scmp.ne.s32.totalorder %s6755_s17, %s5379_s4  ;;  %p5383_p4 = scmp.lt.u32.totalorder %s5379_s4, %s6755_s17 }
0x46ff   :  { %p5385_p5 = pnand %p5383_p4, %p5380_p3 }
0x4701   :  { %5388 = shalt.err (!%p5385_p5)
}
0x4702   :  { %s5434_s29 = smov 128   ;;  %s5435_s0 = smov 8   ;;  %v4368_v59 = vcvt.f32.s32 %v4362_v4  ;;  %vm4373_vm5 = vcmp.eq.s32.totalorder %v5674_v22, 7  ;;  %vm4371_vm8 = vcmp.gt.s32.totalorder %v5790_v32, 7 }
0x4703   :  { %4414 = dma.vmem_to_hbm [thread:$0]  %s4409_s12, 256, %s6755_s17, [#allocation4], %s5434_s29, %s5434_s29, %s5435_s0  }
0x4704   :  { %v4369_v51 = vshll.u32 %v4368_v59, 16  ;;  %s5436_s1 = smov [#allocation12]  }
0x4705   :  { %s4421_s7 = sshll.u32 %s5436_s1, 4  ;;  %s4422_s7 = int_to_ptr.vmem [resolvable:$true] %s4421_s7 }
0x4706   :  { %s5389_s16 = scalar_lea.vmem %s4422_s7, 32  ;;  %p5394_p7 = scmp.lt.s32.totalorder %s4422_s7, %s4422_s7 }
0x4707   :  { %p5390_p6 = scmp.ne.s32.totalorder %s4422_s7, %s5389_s16  ;;  %p5395_p8 = scmp.lt.s32.totalorder %s5389_s16, %s5389_s16 }
0x4709   :  { %p5396_p9 = por %p5395_p8, %p5394_p7 }
0x470b   :  { %p5397_p10 = pnand %p5396_p9, %p5390_p6 }
0x4787   :  { %v4366_v8 = vpop.xlane.xlu1 %4365 }
0x4788   :  { %v4367_v49 = vcvt.f32.s32 %v4366_v8 }
0x478a   :  { %v4370_v26 = vadd.s32 %v4369_v51, %v4367_v49 }
0x478c   :  { %v4372_v24 = vsel %vm4371_vm8, %v4370_v26, 7 }
0x478d   :  { %v4374_v48 = vsel %vm4373_vm5, %v4372_v24, %v6617_v25 }
0x478e   :  { %4402 = vst.msk [vmem:[#allocation12] sm:$0x3] %vm241_vm7, %v4374_v48 }
0x478f   :  { %5400 = shalt.err (!%p5397_p10)
}
0x4790   :  { %s5401_s20 = scalar_lea.hbm %s6756_s18, 32 }
0x4791   :  { %p5402_p11 = scmp.ne.s32.totalorder %s6756_s18, %s5401_s20  ;;  %p5405_p12 = scmp.lt.u32.totalorder %s5401_s20, %s6756_s18 }
0x4793   :  { %p5407_p13 = pnand %p5405_p12, %p5402_p11 }
0x4795   :  { %5410 = shalt.err (!%p5407_p13)
}
0x4796   :  { %4424 = dma.vmem_to_hbm [thread:$0]  %s4422_s7, 32, %s6756_s18, [#allocation13]  }
0x4797   :  { %5417 = dma.done.wait [#allocation4], 256  }
0x4798   :  { %5418 = vsyncadd [#allocation4], 4294967040 }
0x4799   :  { %5419 = dma.done.wait [#allocation13], 32  }
0x479a   :  { %5420 = vsyncadd [#allocation13], 4294967264 }
0x479b   :  { %4431 = vsyncpa [#allocation3], 1 }
0x479c   :  { %4432 = vsyncpa [#allocation6], 1 }
0x479d   :  { %4433 = vsyncpa [#allocation9], 1 }
0x479e   :  { %4434 = vsyncpa [#allocation4], 1 }
0x479f   :  { %4435 = vsyncpa [#allocation13], 1 }

</bundles_post_ra>
